<compile_context>
chip_gen: v6e
topology: v6e:2x2x1
jax: 0.10.0
libtpu: 0.0.40
codegen_flags: <defaults>
</compile_context>

<pallas_src>
import functools
import math

import jax
import jax.numpy as jnp
from jax import lax
from jax.experimental import pallas as pl
from jax.experimental.pallas import tpu as pltpu

LANE = 128


def _round_up(x, m):
    return ((x + m - 1) // m) * m


def _basic_block_kernel(core_ref, hup_ref, hdn_ref,
                        w1_ref, s1_ref, b1_ref,
                        w2_ref, s2_ref, b2_ref,
                        cmask_ref, o_ref,
                        xflat_ref, mid_ref,
                        *, TH, W, Wp, Cin, Cout, Cp, n_row_tiles):
    """conv3x3 -> BN -> ReLU -> conv3x3 -> BN -> +residual -> ReLU for one row tile.

    core_ref : (1, TH, W, Cin) f32   unpadded NHWC rows of this tile (also residual)
    hup/hdn  : (1, 2,  W, Cin) f32   2-row halos above / below (clamped at image edges)
    w1/w2    : (9, Cp, Cp)     bf16  per-tap (Cin_p, Cout_p) matrices
    s*/b*    : (1, Cp)         f32   folded BatchNorm scale / bias
    cmask    : ((TH+2)*Wp, 1)  f32   1.0 for real columns (< W), 0.0 for width padding
    o_ref    : (1, TH, W, Cout)      output rows of this tile
    xflat    : ((TH+5)*Wp+8, Cp)     flattened zero-padded conv1 input (scratch)
    mid      : ((TH+3)*Wp+8, Cp)     flattened zero-padded conv2 input (scratch)
    """
    r = pl.program_id(1)
    cdt = xflat_ref.dtype
    n_mid = (TH + 2) * Wp                 # flattened conv1-output / conv2-input rows
    n_out = TH * Wp                       # flattened conv2-output rows

    # ---- Stage the conv1 input: buffer row j (j in [0, TH+4)) = input row r*TH-2+j,
    # placed at flat offset (1+j)*Wp; cols [W, Wp) and lanes [Cin, Cp) stay zero; the
    # leading Wp zeros act as the "column -1" left padding.  Full zero first (cheap,
    # contiguous unmasked stores) guarantees no garbage enters the matmuls.
    xflat_ref[...] = jnp.zeros(xflat_ref.shape, cdt)

    @pl.when(r > 0)
    def _():
        for j in range(2):                                  # top 2-row halo
            base = (1 + j) * Wp
            xflat_ref[base:base + W, 0:Cin] = hup_ref[0, j].astype(cdt)

    for j in range(TH):                                     # core rows
        base = (3 + j) * Wp
        xflat_ref[base:base + W, 0:Cin] = core_ref[0, j].astype(cdt)

    @pl.when(r < n_row_tiles - 1)
    def _():
        for j in range(2):                                  # bottom 2-row halo
            base = (TH + 3 + j) * Wp
            xflat_ref[base:base + W, 0:Cin] = hdn_ref[0, j].astype(cdt)

    # ---- conv1: 9 shifted contiguous-slice MXU matmuls, summed as an f32 value.
    acc1 = None
    for k in range(9):
        dy, dx = divmod(k, 3)
        off = (1 + dy) * Wp + dx - 1
        t = jnp.dot(xflat_ref[off:off + n_mid, :], w1_ref[k],
                    preferred_element_type=jnp.float32)
        acc1 = t if acc1 is None else acc1 + t

    mid = jnp.maximum(acc1 * s1_ref[...] + b1_ref[...], 0.0)         # BN1 + ReLU
    mid = jnp.where(cmask_ref[...] > 0.5, mid, 0.0).astype(cdt)      # zero pad columns

    # conv2 input buffer: zero guard row + tail, then one contiguous full-lane store.
    mid_ref[0:Wp, :] = jnp.zeros((Wp, Cp), cdt)
    tail = (TH + 3) * Wp
    mid_ref[tail:, :] = jnp.zeros((mid_ref.shape[0] - tail, Cp), cdt)
    mid_ref[Wp:Wp + n_mid, :] = mid

    @pl.when(r == 0)                       # padded-mid row -1 (top of image) is zero
    def _():
        mid_ref[Wp:2 * Wp, :] = jnp.zeros((Wp, Cp), cdt)

    @pl.when(r == n_row_tiles - 1)         # padded-mid row H (bottom of image) is zero
    def _():
        mid_ref[(TH + 2) * Wp:(TH + 3) * Wp, :] = jnp.zeros((Wp, Cp), cdt)

    # ---- conv2 + BN2 + residual (f32 from HBM) + ReLU.
    acc2 = None
    for k in range(9):
        dy, dx = divmod(k, 3)
        off = (1 + dy) * Wp + dx - 1
        t = jnp.dot(mid_ref[off:off + n_out, :], w2_ref[k],
                    preferred_element_type=jnp.float32)
        acc2 = t if acc2 is None else acc2 + t

    y = acc2 * s2_ref[...] + b2_ref[...]
    y = y.reshape(TH, Wp, Cp)[:, :W, :Cout]
    y = jnp.maximum(y + core_ref[0].astype(jnp.float32), 0.0)
    o_ref[...] = y[None].astype(o_ref.dtype)


def basic_block_forward_nhwc(x, params, *, eps=1e-5,
                             compute_dtype=jnp.bfloat16, row_tile=None):
    """x: (N, H, W, Cin) float32 NHWC (unpadded).  Returns (N, H, W, Cout) NHWC."""
    w1, g1, be1, m1, v1, w2, g2, be2, m2, v2 = params
    N, H, W, Cin = x.shape
    Cout = w1.shape[0]
    if Cin != Cout:
        # TODO(synk): stride>1 / downsample residual projection not implemented.
        raise NotImplementedError("kernel assumes Cin == Cout, stride=1, no downsample")

    if row_tile is None:
        row_tile = H
        for cand in (32, 16, 8):
            if H % cand == 0 and H > cand:
                row_tile = cand
                break
    TH = row_tile
    assert H % TH == 0, (H, TH)
    n_row_tiles = H // TH
    assert TH % 2 == 0 or n_row_tiles == 1, "row tile must be even when tiling H"

    Cp = _round_up(max(Cout, LANE), LANE)           # lane-dense channel count
    Wp = _round_up(W + 2, 8)                        # sublane-aligned padded width
    n_mid = (TH + 2) * Wp
    LX = (TH + 5) * Wp + 8                          # conv1 input scratch rows (+ slack)
    LM = (TH + 3) * Wp + 8                          # conv2 input scratch rows (+ slack)
    half = TH // 2 if TH % 2 == 0 else 1            # halo block index unit (2-row blocks)

    # Fold eval-mode BatchNorm into per-channel scale / bias (f32).
    s1 = g1 / jnp.sqrt(v1 + eps)
    b1 = be1 - m1 * s1
    s2 = g2 / jnp.sqrt(v2 + eps)
    b2 = be2 - m2 * s2

    def prep_w(w):
        co, ci = w.shape[0], w.shape[1]
        wt = jnp.transpose(w, (2, 3, 1, 0)).reshape(9, ci, co)     # (kh*3+kw, ci, co)
        return jnp.pad(wt, ((0, 0), (0, Cp - ci), (0, Cp - co))).astype(compute_dtype)

    def prep_v(v):
        return jnp.pad(v.astype(jnp.float32), (0, Cp - Cout)).reshape(1, Cp)

    w1t, w2t = prep_w(w1), prep_w(w2)
    s1p, b1p, s2p, b2p = prep_v(s1), prep_v(b1), prep_v(s2), prep_v(b2)

    # Column mask for the flattened mid buffer: 1.0 for real columns, 0.0 for width pad.
    col = jnp.arange(n_mid, dtype=jnp.int32) % Wp
    cmask = (col < W).astype(jnp.float32).reshape(n_mid, 1)

    kernel = functools.partial(_basic_block_kernel, TH=TH, W=W, Wp=Wp,
                               Cin=Cin, Cout=Cout, Cp=Cp, n_row_tiles=n_row_tiles)

    # vmem limit derived from the actual per-step footprint (feedback #7).
    cbytes = jnp.dtype(compute_dtype).itemsize
    xbytes = x.dtype.itemsize
    blocks = ((TH * W * Cin + 2 * 2 * W * Cin) * xbytes       # input tile + halos
              + TH * W * Cout * xbytes                         # output tile
              + n_mid * 4 + 4 * Cp * 4)                        # mask + BN vectors
    weights = 2 * 9 * Cp * Cp * cbytes
    scratch = (LX + LM) * Cp * cbytes
    temps = 3 * n_mid * Cp * 4                                 # live f32 accumulators
    footprint = 2 * blocks + 2 * weights + scratch + temps
    vmem_limit = int(min(max(1.25 * footprint + (4 << 20), 32 << 20), 64 << 20))

    def run(single_buffer_weights):
        wkw = {"pipeline_mode": pl.Buffered(1)} if single_buffer_weights else {}
        in_specs = [
            pl.BlockSpec((1, TH, W, Cin), lambda n, r: (n, r, 0, 0)),          # core rows
            pl.BlockSpec((1, 2, W, Cin),
                         lambda n, r: (n, jnp.maximum(r * half - 1, 0), 0, 0)),        # top halo
            pl.BlockSpec((1, 2, W, Cin),
                         lambda n, r: (n, jnp.minimum((r + 1) * half, H // 2 - 1), 0, 0)),  # bottom halo
            pl.BlockSpec((9, Cp, Cp), lambda n, r: (0, 0, 0), **wkw),
            pl.BlockSpec((1, Cp), lambda n, r: (0, 0)),
            pl.BlockSpec((1, Cp), lambda n, r: (0, 0)),
            pl.BlockSpec((9, Cp, Cp), lambda n, r: (0, 0, 0), **wkw),
            pl.BlockSpec((1, Cp), lambda n, r: (0, 0)),
            pl.BlockSpec((1, Cp), lambda n, r: (0, 0)),
            pl.BlockSpec((n_mid, 1), lambda n, r: (0, 0)),
        ]
        return pl.pallas_call(
            kernel,
            out_shape=jax.ShapeDtypeStruct((N, H, W, Cout), x.dtype),
            grid=(N, n_row_tiles),
            in_specs=in_specs,
            out_specs=pl.BlockSpec((1, TH, W, Cout), lambda n, r: (n, r, 0, 0)),
            scratch_shapes=[
                pltpu.VMEM((LX, Cp), compute_dtype),   # flattened padded conv1 input
                pltpu.VMEM((LM, Cp), compute_dtype),   # flattened padded conv2 input
            ],
            compiler_params=pltpu.CompilerParams(
                dimension_semantics=("parallel", "parallel"),
                vmem_limit_bytes=vmem_limit),
        )(x, x, x, w1t, s1p, b1p, w2t, s2p, b2p, cmask)

    try:
        return run(True)
    except Exception:
        # pl.Buffered(1) not supported by this jax version -> default double buffering.
        return run(False)


def basic_block_forward(x_nchw, params, **kw):
    """NCHW convenience wrapper (test only).  Production code should call the NHWC
    entry point directly and keep activations NHWC end-to-end (no HBM transposes)."""
    x_nhwc = jnp.transpose(x_nchw, (0, 2, 3, 1))
    out = basic_block_forward_nhwc(x_nhwc, params, **kw)
    return jnp.transpose(out, (0, 3, 1, 2))


def basic_block_reference(x, params, eps=1e-5):
    """Pure-JAX reference matching PyTorch BasicBlock.forward (eval-mode BN), NCHW."""
    w1, g1, be1, m1, v1, w2, g2, be2, m2, v2 = params

    def bn(y, g, b, m, v):
        inv = g / jnp.sqrt(v + eps)
        return y * inv[None, :, None, None] + (b - m * inv)[None, :, None, None]

    dn = ('NCHW', 'OIHW', 'NCHW')
    out = lax.conv_general_dilated(x, w1, (1, 1), 'SAME', dimension_numbers=dn)
    out = jax.nn.relu(bn(out, g1, be1, m1, v1))
    out = lax.conv_general_dilated(out, w2, (1, 1), 'SAME', dimension_numbers=dn)
    out = bn(out, g2, be2, m2, v2) + x
    return jax.nn.relu(out)


def init_params(key, inplanes, planes):
    ks = jax.random.split(key, 8)
    w1 = 0.1 * jax.random.normal(ks[0], (planes, inplanes, 3, 3), jnp.float32)
    w2 = 0.1 * jax.random.normal(ks[1], (planes, planes, 3, 3), jnp.float32)
    g1 = 1.0 + 0.1 * jax.random.normal(ks[2], (planes,), jnp.float32)
    be1 = 0.1 * jax.random.normal(ks[3], (planes,), jnp.float32)
    m1 = 0.1 * jax.random.normal(ks[4], (planes,), jnp.float32)
    v1 = jax.random.uniform(ks[5], (planes,), jnp.float32, 0.5, 1.5)
    g2 = 1.0 + 0.1 * jax.random.normal(ks[6], (planes,), jnp.float32)
    be2 = 0.1 * jax.random.normal(ks[7], (planes,), jnp.float32)
    m2 = jnp.zeros((planes,), jnp.float32)
    v2 = jnp.ones((planes,), jnp.float32)
    return (w1, g1, be1, m1, v1, w2, g2, be2, m2, v2)


if __name__ == "__main__":
    key = jax.random.PRNGKey(0)
    kx, kp = jax.random.split(key)

    N, C, H, W = 2, 4, 16, 16          # inplanes = planes = 4, stride = 1
    x = jax.random.normal(kx, (N, C, H, W), jnp.float32)
    params = init_params(kp, C, C)

    ref = basic_block_reference(x, params)
    ref_nhwc = jnp.transpose(ref, (0, 2, 3, 1))
    x_nhwc = jnp.transpose(x, (0, 2, 3, 1))   # test-only layout change to NHWC

    # Strict structural check with f32 MXU operands (row_tile=4 exercises
    # first / interior / last row-tile boundary handling).
    out32 = jax.block_until_ready(
        basic_block_forward_nhwc(x_nhwc, params,
                                 compute_dtype=jnp.float32, row_tile=4))
    assert out32.shape == ref_nhwc.shape, (out32.shape, ref_nhwc.shape)
    err32 = float(jnp.max(jnp.abs(out32 - ref_nhwc)))
    assert err32 < 2e-3, err32

    # Production setting: bf16 MXU operands, f32 accumulation, f32 residual.
    out16 = jax.block_until_ready(
        basic_block_forward_nhwc(x_nhwc, params,
                                 compute_dtype=jnp.bfloat16, row_tile=4))
    err16 = float(jnp.max(jnp.abs(out16 - ref_nhwc)))
    assert err16 < 2e-1, err16     # bf16 operand rounding only; structure checked above

    print("KERNEL_OK")
</pallas_src>

<mosaic_0001>
module attributes {stable_mosaic.version = 11 : i64} {
  func.func @_basic_block_kernel(%arg0: i32, %arg1: i32, %arg2: memref<1x4x16x4xf32, #tpu.memory_space<vmem>>, %arg3: memref<1x2x16x4xf32, #tpu.memory_space<vmem>>, %arg4: memref<1x2x16x4xf32, #tpu.memory_space<vmem>>, %arg5: memref<9x128x128xf32, #tpu.memory_space<vmem>>, %arg6: memref<1x128xf32, #tpu.memory_space<vmem>>, %arg7: memref<1x128xf32, #tpu.memory_space<vmem>>, %arg8: memref<9x128x128xf32, #tpu.memory_space<vmem>>, %arg9: memref<1x128xf32, #tpu.memory_space<vmem>>, %arg10: memref<1x128xf32, #tpu.memory_space<vmem>>, %arg11: memref<144x1xf32, #tpu.memory_space<vmem>>, %arg12: memref<1x4x16x4xf32, #tpu.memory_space<vmem>>, %arg13: memref<224x128xf32, #tpu.memory_space<vmem>>, %arg14: memref<176x128xf32, #tpu.memory_space<vmem>>) attributes {dimension_semantics = [#tpu.dimension_semantics<parallel>, #tpu.dimension_semantics<parallel>], iteration_bounds = array<i64: 2, 4>, scalar_prefetch = 0 : i64, scratch_operands = 2 : i64, tpu.core_type = #tpu.core_type<tc>, window_params = [{transform_indices = @transform_0, window_bounds = array<i64: 1, 4, 16, 4>}, {transform_indices = @transform_1, window_bounds = array<i64: 1, 2, 16, 4>}, {transform_indices = @transform_2, window_bounds = array<i64: 1, 2, 16, 4>}, {pipeline_mode = #tpu.pipeline_mode<synchronous>, transform_indices = @transform_3, window_bounds = array<i64: 9, 128, 128>}, {pipeline_mode = #tpu.pipeline_mode<synchronous>, transform_indices = @transform_4, window_bounds = array<i64: 1, 128>}, {pipeline_mode = #tpu.pipeline_mode<synchronous>, transform_indices = @transform_5, window_bounds = array<i64: 1, 128>}, {pipeline_mode = #tpu.pipeline_mode<synchronous>, transform_indices = @transform_6, window_bounds = array<i64: 9, 128, 128>}, {pipeline_mode = #tpu.pipeline_mode<synchronous>, transform_indices = @transform_7, window_bounds = array<i64: 1, 128>}, {pipeline_mode = #tpu.pipeline_mode<synchronous>, transform_indices = @transform_8, window_bounds = array<i64: 1, 128>}, {pipeline_mode = #tpu.pipeline_mode<synchronous>, transform_indices = @transform_9, window_bounds = array<i64: 144, 1>}, {transform_indices = @transform_10, window_bounds = array<i64: 1, 4, 16, 4>}]} {
    %cst = arith.constant 0.000000e+00 : f32
    %0 = vector.broadcast %cst : f32 to vector<224x128xf32>
    %c0 = arith.constant 0 : index
    %c0_0 = arith.constant 0 : index
    %1 = vector.load %arg13[%c0, %c0_0] : memref<224x128xf32, #tpu.memory_space<vmem>>, vector<224x128xf32>
    tpu.vector_store %arg13[%c0, %c0_0], %0 {strides = array<i32>} : memref<224x128xf32, #tpu.memory_space<vmem>>, vector<224x128xf32>,
    %c0_i32 = arith.constant 0 : i32
    %2 = arith.cmpi sgt, %arg1, %c0_i32 : i32
    %3 = arith.extui %2 : i1 to i32
    %c0_i32_1 = arith.constant 0 : i32
    %4 = arith.cmpi ne, %3, %c0_i32_1 : i32
    scf.if %4 {
      %c0_148 = arith.constant 0 : index
      %c0_149 = arith.constant 0 : index
      %c0_150 = arith.constant 0 : index
      %c0_151 = arith.constant 0 : index
      %149 = vector.load %arg3[%c0_148, %c0_149, %c0_150, %c0_151] : memref<1x2x16x4xf32, #tpu.memory_space<vmem>>, vector<1x1x16x4xf32>
      %150 = vector.shape_cast %149 : vector<1x1x16x4xf32> to vector<16x4xf32>
      %c24_152 = arith.constant 24 : index
      %c0_153 = arith.constant 0 : index
      %151 = vector.load %arg13[%c24_152, %c0_153] : memref<224x128xf32, #tpu.memory_space<vmem>>, vector<16x4xf32>
      tpu.vector_store %arg13[%c24_152, %c0_153], %150 {strides = array<i32>} : memref<224x128xf32, #tpu.memory_space<vmem>>, vector<16x4xf32>,
      %c0_154 = arith.constant 0 : index
      %c1_155 = arith.constant 1 : index
      %c0_156 = arith.constant 0 : index
      %c0_157 = arith.constant 0 : index
      %152 = vector.load %arg3[%c0_154, %c1_155, %c0_156, %c0_157] : memref<1x2x16x4xf32, #tpu.memory_space<vmem>>, vector<1x1x16x4xf32>
      %153 = vector.shape_cast %152 : vector<1x1x16x4xf32> to vector<16x4xf32>
      %c48_158 = arith.constant 48 : index
      %c0_159 = arith.constant 0 : index
      %154 = vector.load %arg13[%c48_158, %c0_159] : memref<224x128xf32, #tpu.memory_space<vmem>>, vector<16x4xf32>
      tpu.vector_store %arg13[%c48_158, %c0_159], %153 {strides = array<i32>} : memref<224x128xf32, #tpu.memory_space<vmem>>, vector<16x4xf32>,
    } else {
    }
    %c0_2 = arith.constant 0 : index
    %c0_3 = arith.constant 0 : index
    %c0_4 = arith.constant 0 : index
    %c0_5 = arith.constant 0 : index
    %5 = vector.load %arg2[%c0_2, %c0_3, %c0_4, %c0_5] : memref<1x4x16x4xf32, #tpu.memory_space<vmem>>, vector<1x1x16x4xf32>
    %6 = vector.shape_cast %5 : vector<1x1x16x4xf32> to vector<16x4xf32>
    %c72 = arith.constant 72 : index
    %c0_6 = arith.constant 0 : index
    %7 = vector.load %arg13[%c72, %c0_6] : memref<224x128xf32, #tpu.memory_space<vmem>>, vector<16x4xf32>
    tpu.vector_store %arg13[%c72, %c0_6], %6 {strides = array<i32>} : memref<224x128xf32, #tpu.memory_space<vmem>>, vector<16x4xf32>,
    %c0_7 = arith.constant 0 : index
    %c1 = arith.constant 1 : index
    %c0_8 = arith.constant 0 : index
    %c0_9 = arith.constant 0 : index
    %8 = vector.load %arg2[%c0_7, %c1, %c0_8, %c0_9] : memref<1x4x16x4xf32, #tpu.memory_space<vmem>>, vector<1x1x16x4xf32>
    %9 = vector.shape_cast %8 : vector<1x1x16x4xf32> to vector<16x4xf32>
    %c96 = arith.constant 96 : index
    %c0_10 = arith.constant 0 : index
    %10 = vector.load %arg13[%c96, %c0_10] : memref<224x128xf32, #tpu.memory_space<vmem>>, vector<16x4xf32>
    tpu.vector_store %arg13[%c96, %c0_10], %9 {strides = array<i32>} : memref<224x128xf32, #tpu.memory_space<vmem>>, vector<16x4xf32>,
    %c0_11 = arith.constant 0 : index
    %c2 = arith.constant 2 : index
    %c0_12 = arith.constant 0 : index
    %c0_13 = arith.constant 0 : index
    %11 = vector.load %arg2[%c0_11, %c2, %c0_12, %c0_13] : memref<1x4x16x4xf32, #tpu.memory_space<vmem>>, vector<1x1x16x4xf32>
    %12 = vector.shape_cast %11 : vector<1x1x16x4xf32> to vector<16x4xf32>
    %c120 = arith.constant 120 : index
    %c0_14 = arith.constant 0 : index
    %13 = vector.load %arg13[%c120, %c0_14] : memref<224x128xf32, #tpu.memory_space<vmem>>, vector<16x4xf32>
    tpu.vector_store %arg13[%c120, %c0_14], %12 {strides = array<i32>} : memref<224x128xf32, #tpu.memory_space<vmem>>, vector<16x4xf32>,
    %c0_15 = arith.constant 0 : index
    %c3 = arith.constant 3 : index
    %c0_16 = arith.constant 0 : index
    %c0_17 = arith.constant 0 : index
    %14 = vector.load %arg2[%c0_15, %c3, %c0_16, %c0_17] : memref<1x4x16x4xf32, #tpu.memory_space<vmem>>, vector<1x1x16x4xf32>
    %15 = vector.shape_cast %14 : vector<1x1x16x4xf32> to vector<16x4xf32>
    %c144 = arith.constant 144 : index
    %c0_18 = arith.constant 0 : index
    %16 = vector.load %arg13[%c144, %c0_18] : memref<224x128xf32, #tpu.memory_space<vmem>>, vector<16x4xf32>
    tpu.vector_store %arg13[%c144, %c0_18], %15 {strides = array<i32>} : memref<224x128xf32, #tpu.memory_space<vmem>>, vector<16x4xf32>,
    %c3_i32 = arith.constant 3 : i32
    %17 = arith.cmpi slt, %arg1, %c3_i32 : i32
    %18 = arith.extui %17 : i1 to i32
    %c0_i32_19 = arith.constant 0 : i32
    %19 = arith.cmpi ne, %18, %c0_i32_19 : i32
    scf.if %19 {
      %c0_148 = arith.constant 0 : index
      %c0_149 = arith.constant 0 : index
      %c0_150 = arith.constant 0 : index
      %c0_151 = arith.constant 0 : index
      %149 = vector.load %arg4[%c0_148, %c0_149, %c0_150, %c0_151] : memref<1x2x16x4xf32, #tpu.memory_space<vmem>>, vector<1x1x16x4xf32>
      %150 = vector.shape_cast %149 : vector<1x1x16x4xf32> to vector<16x4xf32>
      %c168_152 = arith.constant 168 : index
      %c0_153 = arith.constant 0 : index
      %151 = vector.load %arg13[%c168_152, %c0_153] : memref<224x128xf32, #tpu.memory_space<vmem>>, vector<16x4xf32>
      tpu.vector_store %arg13[%c168_152, %c0_153], %150 {strides = array<i32>} : memref<224x128xf32, #tpu.memory_space<vmem>>, vector<16x4xf32>,
      %c0_154 = arith.constant 0 : index
      %c1_155 = arith.constant 1 : index
      %c0_156 = arith.constant 0 : index
      %c0_157 = arith.constant 0 : index
      %152 = vector.load %arg4[%c0_154, %c1_155, %c0_156, %c0_157] : memref<1x2x16x4xf32, #tpu.memory_space<vmem>>, vector<1x1x16x4xf32>
      %153 = vector.shape_cast %152 : vector<1x1x16x4xf32> to vector<16x4xf32>
      %c192 = arith.constant 192 : index
      %c0_158 = arith.constant 0 : index
      %154 = vector.load %arg13[%c192, %c0_158] : memref<224x128xf32, #tpu.memory_space<vmem>>, vector<16x4xf32>
      tpu.vector_store %arg13[%c192, %c0_158], %153 {strides = array<i32>} : memref<224x128xf32, #tpu.memory_space<vmem>>, vector<16x4xf32>,
    } else {
    }
    %c23 = arith.constant 23 : index
    %c0_20 = arith.constant 0 : index
    %20 = vector.load %arg13[%c23, %c0_20] : memref<224x128xf32, #tpu.memory_space<vmem>>, vector<144x128xf32>
    %c0_21 = arith.constant 0 : index
    %c0_22 = arith.constant 0 : index
    %c0_23 = arith.constant 0 : index
    %21 = vector.load %arg5[%c0_21, %c0_22, %c0_23] : memref<9x128x128xf32, #tpu.memory_space<vmem>>, vector<1x128x128xf32>
    %22 = vector.shape_cast %21 : vector<1x128x128xf32> to vector<128x128xf32>
    %cst_24 = arith.constant dense<0.000000e+00> : vector<144x128xf32>
    %23 = tpu.matmul %20, %22, %cst_24 {dimension_numbers = #tpu.dot_dimension_numbers<[1], [0], [0], [1], [0, 0, 1, 1], [], []>} : vector<144x128xf32>, vector<128x128xf32>, vector<144x128xf32> -> vector<144x128xf32>
    %c24 = arith.constant 24 : index
    %c0_25 = arith.constant 0 : index
    %24 = vector.load %arg13[%c24, %c0_25] : memref<224x128xf32, #tpu.memory_space<vmem>>, vector<144x128xf32>
    %c1_26 = arith.constant 1 : index
    %c0_27 = arith.constant 0 : index
    %c0_28 = arith.constant 0 : index
    %25 = vector.load %arg5[%c1_26, %c0_27, %c0_28] : memref<9x128x128xf32, #tpu.memory_space<vmem>>, vector<1x128x128xf32>
    %26 = vector.shape_cast %25 : vector<1x128x128xf32> to vector<128x128xf32>
    %cst_29 = arith.constant dense<0.000000e+00> : vector<144x128xf32>
    %27 = tpu.matmul %24, %26, %cst_29 {dimension_numbers = #tpu.dot_dimension_numbers<[1], [0], [0], [1], [0, 0, 1, 1], [], []>} : vector<144x128xf32>, vector<128x128xf32>, vector<144x128xf32> -> vector<144x128xf32>
    %28 = arith.addf %23, %27 : vector<144x128xf32>
    %c25 = arith.constant 25 : index
    %c0_30 = arith.constant 0 : index
    %29 = vector.load %arg13[%c25, %c0_30] : memref<224x128xf32, #tpu.memory_space<vmem>>, vector<144x128xf32>
    %c2_31 = arith.constant 2 : index
    %c0_32 = arith.constant 0 : index
    %c0_33 = arith.constant 0 : index
    %30 = vector.load %arg5[%c2_31, %c0_32, %c0_33] : memref<9x128x128xf32, #tpu.memory_space<vmem>>, vector<1x128x128xf32>
    %31 = vector.shape_cast %30 : vector<1x128x128xf32> to vector<128x128xf32>
    %cst_34 = arith.constant dense<0.000000e+00> : vector<144x128xf32>
    %32 = tpu.matmul %29, %31, %cst_34 {dimension_numbers = #tpu.dot_dimension_numbers<[1], [0], [0], [1], [0, 0, 1, 1], [], []>} : vector<144x128xf32>, vector<128x128xf32>, vector<144x128xf32> -> vector<144x128xf32>
    %33 = arith.addf %28, %32 : vector<144x128xf32>
    %c47 = arith.constant 47 : index
    %c0_35 = arith.constant 0 : index
    %34 = vector.load %arg13[%c47, %c0_35] : memref<224x128xf32, #tpu.memory_space<vmem>>, vector<144x128xf32>
    %c3_36 = arith.constant 3 : index
    %c0_37 = arith.constant 0 : index
    %c0_38 = arith.constant 0 : index
    %35 = vector.load %arg5[%c3_36, %c0_37, %c0_38] : memref<9x128x128xf32, #tpu.memory_space<vmem>>, vector<1x128x128xf32>
    %36 = vector.shape_cast %35 : vector<1x128x128xf32> to vector<128x128xf32>
    %cst_39 = arith.constant dense<0.000000e+00> : vector<144x128xf32>
    %37 = tpu.matmul %34, %36, %cst_39 {dimension_numbers = #tpu.dot_dimension_numbers<[1], [0], [0], [1], [0, 0, 1, 1], [], []>} : vector<144x128xf32>, vector<128x128xf32>, vector<144x128xf32> -> vector<144x128xf32>
    %38 = arith.addf %33, %37 : vector<144x128xf32>
    %c48 = arith.constant 48 : index
    %c0_40 = arith.constant 0 : index
    %39 = vector.load %arg13[%c48, %c0_40] : memref<224x128xf32, #tpu.memory_space<vmem>>, vector<144x128xf32>
    %c4 = arith.constant 4 : index
    %c0_41 = arith.constant 0 : index
    %c0_42 = arith.constant 0 : index
    %40 = vector.load %arg5[%c4, %c0_41, %c0_42] : memref<9x128x128xf32, #tpu.memory_space<vmem>>, vector<1x128x128xf32>
    %41 = vector.shape_cast %40 : vector<1x128x128xf32> to vector<128x128xf32>
    %cst_43 = arith.constant dense<0.000000e+00> : vector<144x128xf32>
    %42 = tpu.matmul %39, %41, %cst_43 {dimension_numbers = #tpu.dot_dimension_numbers<[1], [0], [0], [1], [0, 0, 1, 1], [], []>} : vector<144x128xf32>, vector<128x128xf32>, vector<144x128xf32> -> vector<144x128xf32>
    %43 = arith.addf %38, %42 : vector<144x128xf32>
    %c49 = arith.constant 49 : index
    %c0_44 = arith.constant 0 : index
    %44 = vector.load %arg13[%c49, %c0_44] : memref<224x128xf32, #tpu.memory_space<vmem>>, vector<144x128xf32>
    %c5 = arith.constant 5 : index
    %c0_45 = arith.constant 0 : index
    %c0_46 = arith.constant 0 : index
    %45 = vector.load %arg5[%c5, %c0_45, %c0_46] : memref<9x128x128xf32, #tpu.memory_space<vmem>>, vector<1x128x128xf32>
    %46 = vector.shape_cast %45 : vector<1x128x128xf32> to vector<128x128xf32>
    %cst_47 = arith.constant dense<0.000000e+00> : vector<144x128xf32>
    %47 = tpu.matmul %44, %46, %cst_47 {dimension_numbers = #tpu.dot_dimension_numbers<[1], [0], [0], [1], [0, 0, 1, 1], [], []>} : vector<144x128xf32>, vector<128x128xf32>, vector<144x128xf32> -> vector<144x128xf32>
    %48 = arith.addf %43, %47 : vector<144x128xf32>
    %c71 = arith.constant 71 : index
    %c0_48 = arith.constant 0 : index
    %49 = vector.load %arg13[%c71, %c0_48] : memref<224x128xf32, #tpu.memory_space<vmem>>, vector<144x128xf32>
    %c6 = arith.constant 6 : index
    %c0_49 = arith.constant 0 : index
    %c0_50 = arith.constant 0 : index
    %50 = vector.load %arg5[%c6, %c0_49, %c0_50] : memref<9x128x128xf32, #tpu.memory_space<vmem>>, vector<1x128x128xf32>
    %51 = vector.shape_cast %50 : vector<1x128x128xf32> to vector<128x128xf32>
    %cst_51 = arith.constant dense<0.000000e+00> : vector<144x128xf32>
    %52 = tpu.matmul %49, %51, %cst_51 {dimension_numbers = #tpu.dot_dimension_numbers<[1], [0], [0], [1], [0, 0, 1, 1], [], []>} : vector<144x128xf32>, vector<128x128xf32>, vector<144x128xf32> -> vector<144x128xf32>
    %53 = arith.addf %48, %52 : vector<144x128xf32>
    %c72_52 = arith.constant 72 : index
    %c0_53 = arith.constant 0 : index
    %54 = vector.load %arg13[%c72_52, %c0_53] : memref<224x128xf32, #tpu.memory_space<vmem>>, vector<144x128xf32>
    %c7 = arith.constant 7 : index
    %c0_54 = arith.constant 0 : index
    %c0_55 = arith.constant 0 : index
    %55 = vector.load %arg5[%c7, %c0_54, %c0_55] : memref<9x128x128xf32, #tpu.memory_space<vmem>>, vector<1x128x128xf32>
    %56 = vector.shape_cast %55 : vector<1x128x128xf32> to vector<128x128xf32>
    %cst_56 = arith.constant dense<0.000000e+00> : vector<144x128xf32>
    %57 = tpu.matmul %54, %56, %cst_56 {dimension_numbers = #tpu.dot_dimension_numbers<[1], [0], [0], [1], [0, 0, 1, 1], [], []>} : vector<144x128xf32>, vector<128x128xf32>, vector<144x128xf32> -> vector<144x128xf32>
    %58 = arith.addf %53, %57 : vector<144x128xf32>
    %c73 = arith.constant 73 : index
    %c0_57 = arith.constant 0 : index
    %59 = vector.load %arg13[%c73, %c0_57] : memref<224x128xf32, #tpu.memory_space<vmem>>, vector<144x128xf32>
    %c8 = arith.constant 8 : index
    %c0_58 = arith.constant 0 : index
    %c0_59 = arith.constant 0 : index
    %60 = vector.load %arg5[%c8, %c0_58, %c0_59] : memref<9x128x128xf32, #tpu.memory_space<vmem>>, vector<1x128x128xf32>
    %61 = vector.shape_cast %60 : vector<1x128x128xf32> to vector<128x128xf32>
    %cst_60 = arith.constant dense<0.000000e+00> : vector<144x128xf32>
    %62 = tpu.matmul %59, %61, %cst_60 {dimension_numbers = #tpu.dot_dimension_numbers<[1], [0], [0], [1], [0, 0, 1, 1], [], []>} : vector<144x128xf32>, vector<128x128xf32>, vector<144x128xf32> -> vector<144x128xf32>
    %63 = arith.addf %58, %62 : vector<144x128xf32>
    %c0_61 = arith.constant 0 : index
    %c0_62 = arith.constant 0 : index
    %64 = vector.load %arg6[%c0_61, %c0_62] : memref<1x128xf32, #tpu.memory_space<vmem>>, vector<1x128xf32>
    %65 = vector.broadcast %64 : vector<1x128xf32> to vector<144x128xf32>
    %66 = arith.mulf %63, %65 : vector<144x128xf32>
    %c0_63 = arith.constant 0 : index
    %c0_64 = arith.constant 0 : index
    %67 = vector.load %arg7[%c0_63, %c0_64] : memref<1x128xf32, #tpu.memory_space<vmem>>, vector<1x128xf32>
    %68 = vector.broadcast %67 : vector<1x128xf32> to vector<144x128xf32>
    %69 = arith.addf %66, %68 : vector<144x128xf32>
    %cst_65 = arith.constant 0.000000e+00 : f32
    %70 = vector.broadcast %cst_65 : f32 to vector<144x128xf32>
    %71 = arith.maximumf %69, %70 : vector<144x128xf32>
    %c0_66 = arith.constant 0 : index
    %c0_67 = arith.constant 0 : index
    %72 = vector.load %arg11[%c0_66, %c0_67] : memref<144x1xf32, #tpu.memory_space<vmem>>, vector<144x1xf32>
    %cst_68 = arith.constant 5.000000e-01 : f32
    %73 = vector.broadcast %cst_68 : f32 to vector<144x1xf32>
    %74 = arith.cmpf ogt, %72, %73 : vector<144x1xf32>
    %cst_69 = arith.constant 0.000000e+00 : f32
    %75 = vector.shape_cast %74 : vector<144x1xi1> to vector<144x1xi1>
    %76 = vector.broadcast %75 : vector<144x1xi1> to vector<144x128xi1>
    %77 = vector.broadcast %cst_69 : f32 to vector<144x128xf32>
    %78 = arith.select %76, %71, %77 : vector<144x128xi1>, vector<144x128xf32>
    %cst_70 = arith.constant 0.000000e+00 : f32
    %79 = vector.broadcast %cst_70 : f32 to vector<24x128xf32>
    %c0_71 = arith.constant 0 : index
    %c0_72 = arith.constant 0 : index
    %80 = vector.load %arg14[%c0_71, %c0_72] : memref<176x128xf32, #tpu.memory_space<vmem>>, vector<24x128xf32>
    tpu.vector_store %arg14[%c0_71, %c0_72], %79 {strides = array<i32>} : memref<176x128xf32, #tpu.memory_space<vmem>>, vector<24x128xf32>,
    %cst_73 = arith.constant 0.000000e+00 : f32
    %81 = vector.broadcast %cst_73 : f32 to vector<8x128xf32>
    %c168 = arith.constant 168 : index
    %c0_74 = arith.constant 0 : index
    %82 = vector.load %arg14[%c168, %c0_74] : memref<176x128xf32, #tpu.memory_space<vmem>>, vector<8x128xf32>
    tpu.vector_store %arg14[%c168, %c0_74], %81 {strides = array<i32>} : memref<176x128xf32, #tpu.memory_space<vmem>>, vector<8x128xf32>,
    %c24_75 = arith.constant 24 : index
    %c0_76 = arith.constant 0 : index
    %83 = vector.load %arg14[%c24_75, %c0_76] : memref<176x128xf32, #tpu.memory_space<vmem>>, vector<144x128xf32>
    tpu.vector_store %arg14[%c24_75, %c0_76], %78 {strides = array<i32>} : memref<176x128xf32, #tpu.memory_space<vmem>>, vector<144x128xf32>,
    %c0_i32_77 = arith.constant 0 : i32
    %84 = arith.cmpi eq, %arg1, %c0_i32_77 : i32
    %85 = arith.extui %84 : i1 to i32
    %c0_i32_78 = arith.constant 0 : i32
    %86 = arith.cmpi ne, %85, %c0_i32_78 : i32
    scf.if %86 {
      %cst_148 = arith.constant 0.000000e+00 : f32
      %149 = vector.broadcast %cst_148 : f32 to vector<24x128xf32>
      %c24_149 = arith.constant 24 : index
      %c0_150 = arith.constant 0 : index
      %150 = vector.load %arg14[%c24_149, %c0_150] : memref<176x128xf32, #tpu.memory_space<vmem>>, vector<24x128xf32>
      tpu.vector_store %arg14[%c24_149, %c0_150], %149 {strides = array<i32>} : memref<176x128xf32, #tpu.memory_space<vmem>>, vector<24x128xf32>,
    } else {
    }
    %c3_i32_79 = arith.constant 3 : i32
    %87 = arith.cmpi eq, %arg1, %c3_i32_79 : i32
    %88 = arith.extui %87 : i1 to i32
    %c0_i32_80 = arith.constant 0 : i32
    %89 = arith.cmpi ne, %88, %c0_i32_80 : i32
    scf.if %89 {
      %cst_148 = arith.constant 0.000000e+00 : f32
      %149 = vector.broadcast %cst_148 : f32 to vector<24x128xf32>
      %c144_149 = arith.constant 144 : index
      %c0_150 = arith.constant 0 : index
      %150 = vector.load %arg14[%c144_149, %c0_150] : memref<176x128xf32, #tpu.memory_space<vmem>>, vector<24x128xf32>
      tpu.vector_store %arg14[%c144_149, %c0_150], %149 {strides = array<i32>} : memref<176x128xf32, #tpu.memory_space<vmem>>, vector<24x128xf32>,
    } else {
    }
    %c23_81 = arith.constant 23 : index
    %c0_82 = arith.constant 0 : index
    %90 = vector.load %arg14[%c23_81, %c0_82] : memref<176x128xf32, #tpu.memory_space<vmem>>, vector<96x128xf32>
    %c0_83 = arith.constant 0 : index
    %c0_84 = arith.constant 0 : index
    %c0_85 = arith.constant 0 : index
    %91 = vector.load %arg8[%c0_83, %c0_84, %c0_85] : memref<9x128x128xf32, #tpu.memory_space<vmem>>, vector<1x128x128xf32>
    %92 = vector.shape_cast %91 : vector<1x128x128xf32> to vector<128x128xf32>
    %cst_86 = arith.constant dense<0.000000e+00> : vector<96x128xf32>
    %93 = tpu.matmul %90, %92, %cst_86 {dimension_numbers = #tpu.dot_dimension_numbers<[1], [0], [0], [1], [0, 0, 1, 1], [], []>} : vector<96x128xf32>, vector<128x128xf32>, vector<96x128xf32> -> vector<96x128xf32>
    %c24_87 = arith.constant 24 : index
    %c0_88 = arith.constant 0 : index
    %94 = vector.load %arg14[%c24_87, %c0_88] : memref<176x128xf32, #tpu.memory_space<vmem>>, vector<96x128xf32>
    %c1_89 = arith.constant 1 : index
    %c0_90 = arith.constant 0 : index
    %c0_91 = arith.constant 0 : index
    %95 = vector.load %arg8[%c1_89, %c0_90, %c0_91] : memref<9x128x128xf32, #tpu.memory_space<vmem>>, vector<1x128x128xf32>
    %96 = vector.shape_cast %95 : vector<1x128x128xf32> to vector<128x128xf32>
    %cst_92 = arith.constant dense<0.000000e+00> : vector<96x128xf32>
    %97 = tpu.matmul %94, %96, %cst_92 {dimension_numbers = #tpu.dot_dimension_numbers<[1], [0], [0], [1], [0, 0, 1, 1], [], []>} : vector<96x128xf32>, vector<128x128xf32>, vector<96x128xf32> -> vector<96x128xf32>
    %98 = arith.addf %93, %97 : vector<96x128xf32>
    %c25_93 = arith.constant 25 : index
    %c0_94 = arith.constant 0 : index
    %99 = vector.load %arg14[%c25_93, %c0_94] : memref<176x128xf32, #tpu.memory_space<vmem>>, vector<96x128xf32>
    %c2_95 = arith.constant 2 : index
    %c0_96 = arith.constant 0 : index
    %c0_97 = arith.constant 0 : index
    %100 = vector.load %arg8[%c2_95, %c0_96, %c0_97] : memref<9x128x128xf32, #tpu.memory_space<vmem>>, vector<1x128x128xf32>
    %101 = vector.shape_cast %100 : vector<1x128x128xf32> to vector<128x128xf32>
    %cst_98 = arith.constant dense<0.000000e+00> : vector<96x128xf32>
    %102 = tpu.matmul %99, %101, %cst_98 {dimension_numbers = #tpu.dot_dimension_numbers<[1], [0], [0], [1], [0, 0, 1, 1], [], []>} : vector<96x128xf32>, vector<128x128xf32>, vector<96x128xf32> -> vector<96x128xf32>
    %103 = arith.addf %98, %102 : vector<96x128xf32>
    %c47_99 = arith.constant 47 : index
    %c0_100 = arith.constant 0 : index
    %104 = vector.load %arg14[%c47_99, %c0_100] : memref<176x128xf32, #tpu.memory_space<vmem>>, vector<96x128xf32>
    %c3_101 = arith.constant 3 : index
    %c0_102 = arith.constant 0 : index
    %c0_103 = arith.constant 0 : index
    %105 = vector.load %arg8[%c3_101, %c0_102, %c0_103] : memref<9x128x128xf32, #tpu.memory_space<vmem>>, vector<1x128x128xf32>
    %106 = vector.shape_cast %105 : vector<1x128x128xf32> to vector<128x128xf32>
    %cst_104 = arith.constant dense<0.000000e+00> : vector<96x128xf32>
    %107 = tpu.matmul %104, %106, %cst_104 {dimension_numbers = #tpu.dot_dimension_numbers<[1], [0], [0], [1], [0, 0, 1, 1], [], []>} : vector<96x128xf32>, vector<128x128xf32>, vector<96x128xf32> -> vector<96x128xf32>
    %108 = arith.addf %103, %107 : vector<96x128xf32>
    %c48_105 = arith.constant 48 : index
    %c0_106 = arith.constant 0 : index
    %109 = vector.load %arg14[%c48_105, %c0_106] : memref<176x128xf32, #tpu.memory_space<vmem>>, vector<96x128xf32>
    %c4_107 = arith.constant 4 : index
    %c0_108 = arith.constant 0 : index
    %c0_109 = arith.constant 0 : index
    %110 = vector.load %arg8[%c4_107, %c0_108, %c0_109] : memref<9x128x128xf32, #tpu.memory_space<vmem>>, vector<1x128x128xf32>
    %111 = vector.shape_cast %110 : vector<1x128x128xf32> to vector<128x128xf32>
    %cst_110 = arith.constant dense<0.000000e+00> : vector<96x128xf32>
    %112 = tpu.matmul %109, %111, %cst_110 {dimension_numbers = #tpu.dot_dimension_numbers<[1], [0], [0], [1], [0, 0, 1, 1], [], []>} : vector<96x128xf32>, vector<128x128xf32>, vector<96x128xf32> -> vector<96x128xf32>
    %113 = arith.addf %108, %112 : vector<96x128xf32>
    %c49_111 = arith.constant 49 : index
    %c0_112 = arith.constant 0 : index
    %114 = vector.load %arg14[%c49_111, %c0_112] : memref<176x128xf32, #tpu.memory_space<vmem>>, vector<96x128xf32>
    %c5_113 = arith.constant 5 : index
    %c0_114 = arith.constant 0 : index
    %c0_115 = arith.constant 0 : index
    %115 = vector.load %arg8[%c5_113, %c0_114, %c0_115] : memref<9x128x128xf32, #tpu.memory_space<vmem>>, vector<1x128x128xf32>
    %116 = vector.shape_cast %115 : vector<1x128x128xf32> to vector<128x128xf32>
    %cst_116 = arith.constant dense<0.000000e+00> : vector<96x128xf32>
    %117 = tpu.matmul %114, %116, %cst_116 {dimension_numbers = #tpu.dot_dimension_numbers<[1], [0], [0], [1], [0, 0, 1, 1], [], []>} : vector<96x128xf32>, vector<128x128xf32>, vector<96x128xf32> -> vector<96x128xf32>
    %118 = arith.addf %113, %117 : vector<96x128xf32>
    %c71_117 = arith.constant 71 : index
    %c0_118 = arith.constant 0 : index
    %119 = vector.load %arg14[%c71_117, %c0_118] : memref<176x128xf32, #tpu.memory_space<vmem>>, vector<96x128xf32>
    %c6_119 = arith.constant 6 : index
    %c0_120 = arith.constant 0 : index
    %c0_121 = arith.constant 0 : index
    %120 = vector.load %arg8[%c6_119, %c0_120, %c0_121] : memref<9x128x128xf32, #tpu.memory_space<vmem>>, vector<1x128x128xf32>
    %121 = vector.shape_cast %120 : vector<1x128x128xf32> to vector<128x128xf32>
    %cst_122 = arith.constant dense<0.000000e+00> : vector<96x128xf32>
    %122 = tpu.matmul %119, %121, %cst_122 {dimension_numbers = #tpu.dot_dimension_numbers<[1], [0], [0], [1], [0, 0, 1, 1], [], []>} : vector<96x128xf32>, vector<128x128xf32>, vector<96x128xf32> -> vector<96x128xf32>
    %123 = arith.addf %118, %122 : vector<96x128xf32>
    %c72_123 = arith.constant 72 : index
    %c0_124 = arith.constant 0 : index
    %124 = vector.load %arg14[%c72_123, %c0_124] : memref<176x128xf32, #tpu.memory_space<vmem>>, vector<96x128xf32>
    %c7_125 = arith.constant 7 : index
    %c0_126 = arith.constant 0 : index
    %c0_127 = arith.constant 0 : index
    %125 = vector.load %arg8[%c7_125, %c0_126, %c0_127] : memref<9x128x128xf32, #tpu.memory_space<vmem>>, vector<1x128x128xf32>
    %126 = vector.shape_cast %125 : vector<1x128x128xf32> to vector<128x128xf32>
    %cst_128 = arith.constant dense<0.000000e+00> : vector<96x128xf32>
    %127 = tpu.matmul %124, %126, %cst_128 {dimension_numbers = #tpu.dot_dimension_numbers<[1], [0], [0], [1], [0, 0, 1, 1], [], []>} : vector<96x128xf32>, vector<128x128xf32>, vector<96x128xf32> -> vector<96x128xf32>
    %128 = arith.addf %123, %127 : vector<96x128xf32>
    %c73_129 = arith.constant 73 : index
    %c0_130 = arith.constant 0 : index
    %129 = vector.load %arg14[%c73_129, %c0_130] : memref<176x128xf32, #tpu.memory_space<vmem>>, vector<96x128xf32>
    %c8_131 = arith.constant 8 : index
    %c0_132 = arith.constant 0 : index
    %c0_133 = arith.constant 0 : index
    %130 = vector.load %arg8[%c8_131, %c0_132, %c0_133] : memref<9x128x128xf32, #tpu.memory_space<vmem>>, vector<1x128x128xf32>
    %131 = vector.shape_cast %130 : vector<1x128x128xf32> to vector<128x128xf32>
    %cst_134 = arith.constant dense<0.000000e+00> : vector<96x128xf32>
    %132 = tpu.matmul %129, %131, %cst_134 {dimension_numbers = #tpu.dot_dimension_numbers<[1], [0], [0], [1], [0, 0, 1, 1], [], []>} : vector<96x128xf32>, vector<128x128xf32>, vector<96x128xf32> -> vector<96x128xf32>
    %133 = arith.addf %128, %132 : vector<96x128xf32>
    %c0_135 = arith.constant 0 : index
    %c0_136 = arith.constant 0 : index
    %134 = vector.load %arg9[%c0_135, %c0_136] : memref<1x128xf32, #tpu.memory_space<vmem>>, vector<1x128xf32>
    %135 = vector.broadcast %134 : vector<1x128xf32> to vector<96x128xf32>
    %136 = arith.mulf %133, %135 : vector<96x128xf32>
    %c0_137 = arith.constant 0 : index
    %c0_138 = arith.constant 0 : index
    %137 = vector.load %arg10[%c0_137, %c0_138] : memref<1x128xf32, #tpu.memory_space<vmem>>, vector<1x128xf32>
    %138 = vector.broadcast %137 : vector<1x128xf32> to vector<96x128xf32>
    %139 = arith.addf %136, %138 : vector<96x128xf32>
    %140 = vector.shape_cast %139 : vector<96x128xf32> to vector<4x24x128xf32>
    %141 = vector.extract_strided_slice %140 {offsets = [0, 0, 0], sizes = [4, 16, 4], strides = [1, 1, 1]} : vector<4x24x128xf32> to vector<4x16x4xf32>
    %c0_139 = arith.constant 0 : index
    %c0_140 = arith.constant 0 : index
    %c0_141 = arith.constant 0 : index
    %c0_142 = arith.constant 0 : index
    %142 = vector.load %arg2[%c0_139, %c0_140, %c0_141, %c0_142] : memref<1x4x16x4xf32, #tpu.memory_space<vmem>>, vector<1x4x16x4xf32>
    %143 = vector.shape_cast %142 : vector<1x4x16x4xf32> to vector<4x16x4xf32>
    %144 = arith.addf %141, %143 : vector<4x16x4xf32>
    %cst_143 = arith.constant 0.000000e+00 : f32
    %145 = vector.broadcast %cst_143 : f32 to vector<4x16x4xf32>
    %146 = arith.maximumf %144, %145 : vector<4x16x4xf32>
    %147 = vector.shape_cast %146 : vector<4x16x4xf32> to vector<1x4x16x4xf32>
    %c0_144 = arith.constant 0 : index
    %c0_145 = arith.constant 0 : index
    %c0_146 = arith.constant 0 : index
    %c0_147 = arith.constant 0 : index
    %148 = vector.load %arg12[%c0_144, %c0_145, %c0_146, %c0_147] : memref<1x4x16x4xf32, #tpu.memory_space<vmem>>, vector<1x4x16x4xf32>
    tpu.vector_store %arg12[%c0_144, %c0_145, %c0_146, %c0_147], %147 {strides = array<i32>} : memref<1x4x16x4xf32, #tpu.memory_space<vmem>>, vector<1x4x16x4xf32>,
    return
  }
  func.func @transform_0(%arg0: i32, %arg1: i32) -> (i32, i32, i32, i32) {
    %c0_i32 = arith.constant 0 : i32
    %c0_i32_0 = arith.constant 0 : i32
    %c0_i32_1 = arith.constant 0 : i32
    return %arg0, %arg1, %c0_i32, %c0_i32_0 : i32, i32, i32, i32
  }
  func.func @transform_1(%arg0: i32, %arg1: i32) -> (i32, i32, i32, i32) {
    %c2_i32 = arith.constant 2 : i32
    %0 = arith.muli %arg1, %c2_i32 : i32
    %c1_i32 = arith.constant 1 : i32
    %1 = arith.subi %0, %c1_i32 : i32
    %c0_i32 = arith.constant 0 : i32
    %2 = arith.maxsi %1, %c0_i32 : i32
    %c0_i32_0 = arith.constant 0 : i32
    %c0_i32_1 = arith.constant 0 : i32
    %c0_i32_2 = arith.constant 0 : i32
    return %arg0, %2, %c0_i32_0, %c0_i32_1 : i32, i32, i32, i32
  }
  func.func @transform_2(%arg0: i32, %arg1: i32) -> (i32, i32, i32, i32) {
    %c1_i32 = arith.constant 1 : i32
    %0 = arith.addi %arg1, %c1_i32 : i32
    %c2_i32 = arith.constant 2 : i32
    %1 = arith.muli %0, %c2_i32 : i32
    %c7_i32 = arith.constant 7 : i32
    %2 = arith.minsi %1, %c7_i32 : i32
    %c0_i32 = arith.constant 0 : i32
    %c0_i32_0 = arith.constant 0 : i32
    %c0_i32_1 = arith.constant 0 : i32
    return %arg0, %2, %c0_i32, %c0_i32_0 : i32, i32, i32, i32
  }
  func.func @transform_3(%arg0: i32, %arg1: i32) -> (i32, i32, i32) {
    %c0_i32 = arith.constant 0 : i32
    %c0_i32_0 = arith.constant 0 : i32
    %c0_i32_1 = arith.constant 0 : i32
    %c0_i32_2 = arith.constant 0 : i32
    return %c0_i32, %c0_i32_0, %c0_i32_1 : i32, i32, i32
  }
  func.func @transform_4(%arg0: i32, %arg1: i32) -> (i32, i32) {
    %c0_i32 = arith.constant 0 : i32
    %c0_i32_0 = arith.constant 0 : i32
    %c0_i32_1 = arith.constant 0 : i32
    return %c0_i32, %c0_i32_0 : i32, i32
  }
  func.func @transform_5(%arg0: i32, %arg1: i32) -> (i32, i32) {
    %c0_i32 = arith.constant 0 : i32
    %c0_i32_0 = arith.constant 0 : i32
    %c0_i32_1 = arith.constant 0 : i32
    return %c0_i32, %c0_i32_0 : i32, i32
  }
  func.func @transform_6(%arg0: i32, %arg1: i32) -> (i32, i32, i32) {
    %c0_i32 = arith.constant 0 : i32
    %c0_i32_0 = arith.constant 0 : i32
    %c0_i32_1 = arith.constant 0 : i32
    %c0_i32_2 = arith.constant 0 : i32
    return %c0_i32, %c0_i32_0, %c0_i32_1 : i32, i32, i32
  }
  func.func @transform_7(%arg0: i32, %arg1: i32) -> (i32, i32) {
    %c0_i32 = arith.constant 0 : i32
    %c0_i32_0 = arith.constant 0 : i32
    %c0_i32_1 = arith.constant 0 : i32
    return %c0_i32, %c0_i32_0 : i32, i32
  }
  func.func @transform_8(%arg0: i32, %arg1: i32) -> (i32, i32) {
    %c0_i32 = arith.constant 0 : i32
    %c0_i32_0 = arith.constant 0 : i32
    %c0_i32_1 = arith.constant 0 : i32
    return %c0_i32, %c0_i32_0 : i32, i32
  }
  func.func @transform_9(%arg0: i32, %arg1: i32) -> (i32, i32) {
    %c0_i32 = arith.constant 0 : i32
    %c0_i32_0 = arith.constant 0 : i32
    %c0_i32_1 = arith.constant 0 : i32
    return %c0_i32, %c0_i32_0 : i32, i32
  }
  func.func @transform_10(%arg0: i32, %arg1: i32) -> (i32, i32, i32, i32) {
    %c0_i32 = arith.constant 0 : i32
    %c0_i32_0 = arith.constant 0 : i32
    %c0_i32_1 = arith.constant 0 : i32
    return %arg0, %arg1, %c0_i32, %c0_i32_0 : i32, i32, i32, i32
  }
}

module attributes {stable_mosaic.version = 11 : i64} {
  func.func @_basic_block_kernel(%arg0: i32, %arg1: i32, %arg2: memref<1x4x16x4xf32, #tpu.memory_space<vmem>>, %arg3: memref<1x2x16x4xf32, #tpu.memory_space<vmem>>, %arg4: memref<1x2x16x4xf32, #tpu.memory_space<vmem>>, %arg5: memref<9x128x128xf32, #tpu.memory_space<vmem>>, %arg6: memref<1x128xf32, #tpu.memory_space<vmem>>, %arg7: memref<1x128xf32, #tpu.memory_space<vmem>>, %arg8: memref<9x128x128xf32, #tpu.memory_space<vmem>>, %arg9: memref<1x128xf32, #tpu.memory_space<vmem>>, %arg10: memref<1x128xf32, #tpu.memory_space<vmem>>, %arg11: memref<144x1xf32, #tpu.memory_space<vmem>>, %arg12: memref<1x4x16x4xf32, #tpu.memory_space<vmem>>, %arg13: memref<224x128xf32, #tpu.memory_space<vmem>>, %arg14: memref<176x128xf32, #tpu.memory_space<vmem>>) attributes {dimension_semantics = [#tpu.dimension_semantics<parallel>, #tpu.dimension_semantics<parallel>], iteration_bounds = array<i64: 2, 4>, scalar_prefetch = 0 : i64, scratch_operands = 2 : i64, tpu.core_type = #tpu.core_type<tc>, window_params = [{transform_indices = @transform_0, window_bounds = array<i64: 1, 4, 16, 4>}, {transform_indices = @transform_1, window_bounds = array<i64: 1, 2, 16, 4>}, {transform_indices = @transform_2, window_bounds = array<i64: 1, 2, 16, 4>}, {pipeline_mode = #tpu.pipeline_mode<synchronous>, transform_indices = @transform_3, window_bounds = array<i64: 9, 128, 128>}, {pipeline_mode = #tpu.pipeline_mode<synchronous>, transform_indices = @transform_4, window_bounds = array<i64: 1, 128>}, {pipeline_mode = #tpu.pipeline_mode<synchronous>, transform_indices = @transform_5, window_bounds = array<i64: 1, 128>}, {pipeline_mode = #tpu.pipeline_mode<synchronous>, transform_indices = @transform_6, window_bounds = array<i64: 9, 128, 128>}, {pipeline_mode = #tpu.pipeline_mode<synchronous>, transform_indices = @transform_7, window_bounds = array<i64: 1, 128>}, {pipeline_mode = #tpu.pipeline_mode<synchronous>, transform_indices = @transform_8, window_bounds = array<i64: 1, 128>}, {pipeline_mode = #tpu.pipeline_mode<synchronous>, transform_indices = @transform_9, window_bounds = array<i64: 144, 1>}, {transform_indices = @transform_10, window_bounds = array<i64: 1, 4, 16, 4>}]} {
    %cst = arith.constant 0.000000e+00 : f32
    %0 = vector.broadcast %cst : f32 to vector<224x128xf32>
    %c0 = arith.constant 0 : index
    %c0_0 = arith.constant 0 : index
    %1 = vector.load %arg13[%c0, %c0_0] : memref<224x128xf32, #tpu.memory_space<vmem>>, vector<224x128xf32>
    tpu.vector_store %arg13[%c0, %c0_0], %0 {strides = array<i32>} : memref<224x128xf32, #tpu.memory_space<vmem>>, vector<224x128xf32>,
    %c0_i32 = arith.constant 0 : i32
    %2 = arith.cmpi sgt, %arg1, %c0_i32 : i32
    %3 = arith.extui %2 : i1 to i32
    %c0_i32_1 = arith.constant 0 : i32
    %4 = arith.cmpi ne, %3, %c0_i32_1 : i32
    scf.if %4 {
      %c0_148 = arith.constant 0 : index
      %c0_149 = arith.constant 0 : index
      %c0_150 = arith.constant 0 : index
      %c0_151 = arith.constant 0 : index
      %149 = vector.load %arg3[%c0_148, %c0_149, %c0_150, %c0_151] : memref<1x2x16x4xf32, #tpu.memory_space<vmem>>, vector<1x1x16x4xf32>
      %150 = vector.shape_cast %149 : vector<1x1x16x4xf32> to vector<16x4xf32>
      %c24_152 = arith.constant 24 : index
      %c0_153 = arith.constant 0 : index
      %151 = vector.load %arg13[%c24_152, %c0_153] : memref<224x128xf32, #tpu.memory_space<vmem>>, vector<16x4xf32>
      tpu.vector_store %arg13[%c24_152, %c0_153], %150 {strides = array<i32>} : memref<224x128xf32, #tpu.memory_space<vmem>>, vector<16x4xf32>,
      %c0_154 = arith.constant 0 : index
      %c1_155 = arith.constant 1 : index
      %c0_156 = arith.constant 0 : index
      %c0_157 = arith.constant 0 : index
      %152 = vector.load %arg3[%c0_154, %c1_155, %c0_156, %c0_157] : memref<1x2x16x4xf32, #tpu.memory_space<vmem>>, vector<1x1x16x4xf32>
      %153 = vector.shape_cast %152 : vector<1x1x16x4xf32> to vector<16x4xf32>
      %c48_158 = arith.constant 48 : index
      %c0_159 = arith.constant 0 : index
      %154 = vector.load %arg13[%c48_158, %c0_159] : memref<224x128xf32, #tpu.memory_space<vmem>>, vector<16x4xf32>
      tpu.vector_store %arg13[%c48_158, %c0_159], %153 {strides = array<i32>} : memref<224x128xf32, #tpu.memory_space<vmem>>, vector<16x4xf32>,
    } else {
    }
    %c0_2 = arith.constant 0 : index
    %c0_3 = arith.constant 0 : index
    %c0_4 = arith.constant 0 : index
    %c0_5 = arith.constant 0 : index
    %5 = vector.load %arg2[%c0_2, %c0_3, %c0_4, %c0_5] : memref<1x4x16x4xf32, #tpu.memory_space<vmem>>, vector<1x1x16x4xf32>
    %6 = vector.shape_cast %5 : vector<1x1x16x4xf32> to vector<16x4xf32>
    %c72 = arith.constant 72 : index
    %c0_6 = arith.constant 0 : index
    %7 = vector.load %arg13[%c72, %c0_6] : memref<224x128xf32, #tpu.memory_space<vmem>>, vector<16x4xf32>
    tpu.vector_store %arg13[%c72, %c0_6], %6 {strides = array<i32>} : memref<224x128xf32, #tpu.memory_space<vmem>>, vector<16x4xf32>,
    %c0_7 = arith.constant 0 : index
    %c1 = arith.constant 1 : index
    %c0_8 = arith.constant 0 : index
    %c0_9 = arith.constant 0 : index
    %8 = vector.load %arg2[%c0_7, %c1, %c0_8, %c0_9] : memref<1x4x16x4xf32, #tpu.memory_space<vmem>>, vector<1x1x16x4xf32>
    %9 = vector.shape_cast %8 : vector<1x1x16x4xf32> to vector<16x4xf32>
    %c96 = arith.constant 96 : index
    %c0_10 = arith.constant 0 : index
    %10 = vector.load %arg13[%c96, %c0_10] : memref<224x128xf32, #tpu.memory_space<vmem>>, vector<16x4xf32>
    tpu.vector_store %arg13[%c96, %c0_10], %9 {strides = array<i32>} : memref<224x128xf32, #tpu.memory_space<vmem>>, vector<16x4xf32>,
    %c0_11 = arith.constant 0 : index
    %c2 = arith.constant 2 : index
    %c0_12 = arith.constant 0 : index
    %c0_13 = arith.constant 0 : index
    %11 = vector.load %arg2[%c0_11, %c2, %c0_12, %c0_13] : memref<1x4x16x4xf32, #tpu.memory_space<vmem>>, vector<1x1x16x4xf32>
    %12 = vector.shape_cast %11 : vector<1x1x16x4xf32> to vector<16x4xf32>
    %c120 = arith.constant 120 : index
    %c0_14 = arith.constant 0 : index
    %13 = vector.load %arg13[%c120, %c0_14] : memref<224x128xf32, #tpu.memory_space<vmem>>, vector<16x4xf32>
    tpu.vector_store %arg13[%c120, %c0_14], %12 {strides = array<i32>} : memref<224x128xf32, #tpu.memory_space<vmem>>, vector<16x4xf32>,
    %c0_15 = arith.constant 0 : index
    %c3 = arith.constant 3 : index
    %c0_16 = arith.constant 0 : index
    %c0_17 = arith.constant 0 : index
    %14 = vector.load %arg2[%c0_15, %c3, %c0_16, %c0_17] : memref<1x4x16x4xf32, #tpu.memory_space<vmem>>, vector<1x1x16x4xf32>
    %15 = vector.shape_cast %14 : vector<1x1x16x4xf32> to vector<16x4xf32>
    %c144 = arith.constant 144 : index
    %c0_18 = arith.constant 0 : index
    %16 = vector.load %arg13[%c144, %c0_18] : memref<224x128xf32, #tpu.memory_space<vmem>>, vector<16x4xf32>
    tpu.vector_store %arg13[%c144, %c0_18], %15 {strides = array<i32>} : memref<224x128xf32, #tpu.memory_space<vmem>>, vector<16x4xf32>,
    %c3_i32 = arith.constant 3 : i32
    %17 = arith.cmpi slt, %arg1, %c3_i32 : i32
    %18 = arith.extui %17 : i1 to i32
    %c0_i32_19 = arith.constant 0 : i32
    %19 = arith.cmpi ne, %18, %c0_i32_19 : i32
    scf.if %19 {
      %c0_148 = arith.constant 0 : index
      %c0_149 = arith.constant 0 : index
      %c0_150 = arith.constant 0 : index
      %c0_151 = arith.constant 0 : index
      %149 = vector.load %arg4[%c0_148, %c0_149, %c0_150, %c0_151] : memref<1x2x16x4xf32, #tpu.memory_space<vmem>>, vector<1x1x16x4xf32>
      %150 = vector.shape_cast %149 : vector<1x1x16x4xf32> to vector<16x4xf32>
      %c168_152 = arith.constant 168 : index
      %c0_153 = arith.constant 0 : index
      %151 = vector.load %arg13[%c168_152, %c0_153] : memref<224x128xf32, #tpu.memory_space<vmem>>, vector<16x4xf32>
      tpu.vector_store %arg13[%c168_152, %c0_153], %150 {strides = array<i32>} : memref<224x128xf32, #tpu.memory_space<vmem>>, vector<16x4xf32>,
      %c0_154 = arith.constant 0 : index
      %c1_155 = arith.constant 1 : index
      %c0_156 = arith.constant 0 : index
      %c0_157 = arith.constant 0 : index
      %152 = vector.load %arg4[%c0_154, %c1_155, %c0_156, %c0_157] : memref<1x2x16x4xf32, #tpu.memory_space<vmem>>, vector<1x1x16x4xf32>
      %153 = vector.shape_cast %152 : vector<1x1x16x4xf32> to vector<16x4xf32>
      %c192 = arith.constant 192 : index
      %c0_158 = arith.constant 0 : index
      %154 = vector.load %arg13[%c192, %c0_158] : memref<224x128xf32, #tpu.memory_space<vmem>>, vector<16x4xf32>
      tpu.vector_store %arg13[%c192, %c0_158], %153 {strides = array<i32>} : memref<224x128xf32, #tpu.memory_space<vmem>>, vector<16x4xf32>,
    } else {
    }
    %c23 = arith.constant 23 : index
    %c0_20 = arith.constant 0 : index
    %20 = vector.load %arg13[%c23, %c0_20] : memref<224x128xf32, #tpu.memory_space<vmem>>, vector<144x128xf32>
    %c0_21 = arith.constant 0 : index
    %c0_22 = arith.constant 0 : index
    %c0_23 = arith.constant 0 : index
    %21 = vector.load %arg5[%c0_21, %c0_22, %c0_23] : memref<9x128x128xf32, #tpu.memory_space<vmem>>, vector<1x128x128xf32>
    %22 = vector.shape_cast %21 : vector<1x128x128xf32> to vector<128x128xf32>
    %cst_24 = arith.constant dense<0.000000e+00> : vector<144x128xf32>
    %23 = tpu.matmul %20, %22, %cst_24 {dimension_numbers = #tpu.dot_dimension_numbers<[1], [0], [0], [1], [0, 0, 1, 1], [], []>} : vector<144x128xf32>, vector<128x128xf32>, vector<144x128xf32> -> vector<144x128xf32>
    %c24 = arith.constant 24 : index
    %c0_25 = arith.constant 0 : index
    %24 = vector.load %arg13[%c24, %c0_25] : memref<224x128xf32, #tpu.memory_space<vmem>>, vector<144x128xf32>
    %c1_26 = arith.constant 1 : index
    %c0_27 = arith.constant 0 : index
    %c0_28 = arith.constant 0 : index
    %25 = vector.load %arg5[%c1_26, %c0_27, %c0_28] : memref<9x128x128xf32, #tpu.memory_space<vmem>>, vector<1x128x128xf32>
    %26 = vector.shape_cast %25 : vector<1x128x128xf32> to vector<128x128xf32>
    %cst_29 = arith.constant dense<0.000000e+00> : vector<144x128xf32>
    %27 = tpu.matmul %24, %26, %cst_29 {dimension_numbers = #tpu.dot_dimension_numbers<[1], [0], [0], [1], [0, 0, 1, 1], [], []>} : vector<144x128xf32>, vector<128x128xf32>, vector<144x128xf32> -> vector<144x128xf32>
    %28 = arith.addf %23, %27 : vector<144x128xf32>
    %c25 = arith.constant 25 : index
    %c0_30 = arith.constant 0 : index
    %29 = vector.load %arg13[%c25, %c0_30] : memref<224x128xf32, #tpu.memory_space<vmem>>, vector<144x128xf32>
    %c2_31 = arith.constant 2 : index
    %c0_32 = arith.constant 0 : index
    %c0_33 = arith.constant 0 : index
    %30 = vector.load %arg5[%c2_31, %c0_32, %c0_33] : memref<9x128x128xf32, #tpu.memory_space<vmem>>, vector<1x128x128xf32>
    %31 = vector.shape_cast %30 : vector<1x128x128xf32> to vector<128x128xf32>
    %cst_34 = arith.constant dense<0.000000e+00> : vector<144x128xf32>
    %32 = tpu.matmul %29, %31, %cst_34 {dimension_numbers = #tpu.dot_dimension_numbers<[1], [0], [0], [1], [0, 0, 1, 1], [], []>} : vector<144x128xf32>, vector<128x128xf32>, vector<144x128xf32> -> vector<144x128xf32>
    %33 = arith.addf %28, %32 : vector<144x128xf32>
    %c47 = arith.constant 47 : index
    %c0_35 = arith.constant 0 : index
    %34 = vector.load %arg13[%c47, %c0_35] : memref<224x128xf32, #tpu.memory_space<vmem>>, vector<144x128xf32>
    %c3_36 = arith.constant 3 : index
    %c0_37 = arith.constant 0 : index
    %c0_38 = arith.constant 0 : index
    %35 = vector.load %arg5[%c3_36, %c0_37, %c0_38] : memref<9x128x128xf32, #tpu.memory_space<vmem>>, vector<1x128x128xf32>
    %36 = vector.shape_cast %35 : vector<1x128x128xf32> to vector<128x128xf32>
    %cst_39 = arith.constant dense<0.000000e+00> : vector<144x128xf32>
    %37 = tpu.matmul %34, %36, %cst_39 {dimension_numbers = #tpu.dot_dimension_numbers<[1], [0], [0], [1], [0, 0, 1, 1], [], []>} : vector<144x128xf32>, vector<128x128xf32>, vector<144x128xf32> -> vector<144x128xf32>
    %38 = arith.addf %33, %37 : vector<144x128xf32>
    %c48 = arith.constant 48 : index
    %c0_40 = arith.constant 0 : index
    %39 = vector.load %arg13[%c48, %c0_40] : memref<224x128xf32, #tpu.memory_space<vmem>>, vector<144x128xf32>
    %c4 = arith.constant 4 : index
    %c0_41 = arith.constant 0 : index
    %c0_42 = arith.constant 0 : index
    %40 = vector.load %arg5[%c4, %c0_41, %c0_42] : memref<9x128x128xf32, #tpu.memory_space<vmem>>, vector<1x128x128xf32>
    %41 = vector.shape_cast %40 : vector<1x128x128xf32> to vector<128x128xf32>
    %cst_43 = arith.constant dense<0.000000e+00> : vector<144x128xf32>
    %42 = tpu.matmul %39, %41, %cst_43 {dimension_numbers = #tpu.dot_dimension_numbers<[1], [0], [0], [1], [0, 0, 1, 1], [], []>} : vector<144x128xf32>, vector<128x128xf32>, vector<144x128xf32> -> vector<144x128xf32>
    %43 = arith.addf %38, %42 : vector<144x128xf32>
    %c49 = arith.constant 49 : index
    %c0_44 = arith.constant 0 : index
    %44 = vector.load %arg13[%c49, %c0_44] : memref<224x128xf32, #tpu.memory_space<vmem>>, vector<144x128xf32>
    %c5 = arith.constant 5 : index
    %c0_45 = arith.constant 0 : index
    %c0_46 = arith.constant 0 : index
    %45 = vector.load %arg5[%c5, %c0_45, %c0_46] : memref<9x128x128xf32, #tpu.memory_space<vmem>>, vector<1x128x128xf32>
    %46 = vector.shape_cast %45 : vector<1x128x128xf32> to vector<128x128xf32>
    %cst_47 = arith.constant dense<0.000000e+00> : vector<144x128xf32>
    %47 = tpu.matmul %44, %46, %cst_47 {dimension_numbers = #tpu.dot_dimension_numbers<[1], [0], [0], [1], [0, 0, 1, 1], [], []>} : vector<144x128xf32>, vector<128x128xf32>, vector<144x128xf32> -> vector<144x128xf32>
    %48 = arith.addf %43, %47 : vector<144x128xf32>
    %c71 = arith.constant 71 : index
    %c0_48 = arith.constant 0 : index
    %49 = vector.load %arg13[%c71, %c0_48] : memref<224x128xf32, #tpu.memory_space<vmem>>, vector<144x128xf32>
    %c6 = arith.constant 6 : index
    %c0_49 = arith.constant 0 : index
    %c0_50 = arith.constant 0 : index
    %50 = vector.load %arg5[%c6, %c0_49, %c0_50] : memref<9x128x128xf32, #tpu.memory_space<vmem>>, vector<1x128x128xf32>
    %51 = vector.shape_cast %50 : vector<1x128x128xf32> to vector<128x128xf32>
    %cst_51 = arith.constant dense<0.000000e+00> : vector<144x128xf32>
    %52 = tpu.matmul %49, %51, %cst_51 {dimension_numbers = #tpu.dot_dimension_numbers<[1], [0], [0], [1], [0, 0, 1, 1], [], []>} : vector<144x128xf32>, vector<128x128xf32>, vector<144x128xf32> -> vector<144x128xf32>
    %53 = arith.addf %48, %52 : vector<144x128xf32>
    %c72_52 = arith.constant 72 : index
    %c0_53 = arith.constant 0 : index
    %54 = vector.load %arg13[%c72_52, %c0_53] : memref<224x128xf32, #tpu.memory_space<vmem>>, vector<144x128xf32>
    %c7 = arith.constant 7 : index
    %c0_54 = arith.constant 0 : index
    %c0_55 = arith.constant 0 : index
    %55 = vector.load %arg5[%c7, %c0_54, %c0_55] : memref<9x128x128xf32, #tpu.memory_space<vmem>>, vector<1x128x128xf32>
    %56 = vector.shape_cast %55 : vector<1x128x128xf32> to vector<128x128xf32>
    %cst_56 = arith.constant dense<0.000000e+00> : vector<144x128xf32>
    %57 = tpu.matmul %54, %56, %cst_56 {dimension_numbers = #tpu.dot_dimension_numbers<[1], [0], [0], [1], [0, 0, 1, 1], [], []>} : vector<144x128xf32>, vector<128x128xf32>, vector<144x128xf32> -> vector<144x128xf32>
    %58 = arith.addf %53, %57 : vector<144x128xf32>
    %c73 = arith.constant 73 : index
    %c0_57 = arith.constant 0 : index
    %59 = vector.load %arg13[%c73, %c0_57] : memref<224x128xf32, #tpu.memory_space<vmem>>, vector<144x128xf32>
    %c8 = arith.constant 8 : index
    %c0_58 = arith.constant 0 : index
    %c0_59 = arith.constant 0 : index
    %60 = vector.load %arg5[%c8, %c0_58, %c0_59] : memref<9x128x128xf32, #tpu.memory_space<vmem>>, vector<1x128x128xf32>
    %61 = vector.shape_cast %60 : vector<1x128x128xf32> to vector<128x128xf32>
    %cst_60 = arith.constant dense<0.000000e+00> : vector<144x128xf32>
    %62 = tpu.matmul %59, %61, %cst_60 {dimension_numbers = #tpu.dot_dimension_numbers<[1], [0], [0], [1], [0, 0, 1, 1], [], []>} : vector<144x128xf32>, vector<128x128xf32>, vector<144x128xf32> -> vector<144x128xf32>
    %63 = arith.addf %58, %62 : vector<144x128xf32>
    %c0_61 = arith.constant 0 : index
    %c0_62 = arith.constant 0 : index
    %64 = vector.load %arg6[%c0_61, %c0_62] : memref<1x128xf32, #tpu.memory_space<vmem>>, vector<1x128xf32>
    %65 = vector.broadcast %64 : vector<1x128xf32> to vector<144x128xf32>
    %66 = arith.mulf %63, %65 : vector<144x128xf32>
    %c0_63 = arith.constant 0 : index
    %c0_64 = arith.constant 0 : index
    %67 = vector.load %arg7[%c0_63, %c0_64] : memref<1x128xf32, #tpu.memory_space<vmem>>, vector<1x128xf32>
    %68 = vector.broadcast %67 : vector<1x128xf32> to vector<144x128xf32>
    %69 = arith.addf %66, %68 : vector<144x128xf32>
    %cst_65 = arith.constant 0.000000e+00 : f32
    %70 = vector.broadcast %cst_65 : f32 to vector<144x128xf32>
    %71 = arith.maximumf %69, %70 : vector<144x128xf32>
    %c0_66 = arith.constant 0 : index
    %c0_67 = arith.constant 0 : index
    %72 = vector.load %arg11[%c0_66, %c0_67] : memref<144x1xf32, #tpu.memory_space<vmem>>, vector<144x1xf32>
    %cst_68 = arith.constant 5.000000e-01 : f32
    %73 = vector.broadcast %cst_68 : f32 to vector<144x1xf32>
    %74 = arith.cmpf ogt, %72, %73 : vector<144x1xf32>
    %cst_69 = arith.constant 0.000000e+00 : f32
    %75 = vector.shape_cast %74 : vector<144x1xi1> to vector<144x1xi1>
    %76 = vector.broadcast %75 : vector<144x1xi1> to vector<144x128xi1>
    %77 = vector.broadcast %cst_69 : f32 to vector<144x128xf32>
    %78 = arith.select %76, %71, %77 : vector<144x128xi1>, vector<144x128xf32>
    %cst_70 = arith.constant 0.000000e+00 : f32
    %79 = vector.broadcast %cst_70 : f32 to vector<24x128xf32>
    %c0_71 = arith.constant 0 : index
    %c0_72 = arith.constant 0 : index
    %80 = vector.load %arg14[%c0_71, %c0_72] : memref<176x128xf32, #tpu.memory_space<vmem>>, vector<24x128xf32>
    tpu.vector_store %arg14[%c0_71, %c0_72], %79 {strides = array<i32>} : memref<176x128xf32, #tpu.memory_space<vmem>>, vector<24x128xf32>,
    %cst_73 = arith.constant 0.000000e+00 : f32
    %81 = vector.broadcast %cst_73 : f32 to vector<8x128xf32>
    %c168 = arith.constant 168 : index
    %c0_74 = arith.constant 0 : index
    %82 = vector.load %arg14[%c168, %c0_74] : memref<176x128xf32, #tpu.memory_space<vmem>>, vector<8x128xf32>
    tpu.vector_store %arg14[%c168, %c0_74], %81 {strides = array<i32>} : memref<176x128xf32, #tpu.memory_space<vmem>>, vector<8x128xf32>,
    %c24_75 = arith.constant 24 : index
    %c0_76 = arith.constant 0 : index
    %83 = vector.load %arg14[%c24_75, %c0_76] : memref<176x128xf32, #tpu.memory_space<vmem>>, vector<144x128xf32>
    tpu.vector_store %arg14[%c24_75, %c0_76], %78 {strides = array<i32>} : memref<176x128xf32, #tpu.memory_space<vmem>>, vector<144x128xf32>,
    %c0_i32_77 = arith.constant 0 : i32
    %84 = arith.cmpi eq, %arg1, %c0_i32_77 : i32
    %85 = arith.extui %84 : i1 to i32
    %c0_i32_78 = arith.constant 0 : i32
    %86 = arith.cmpi ne, %85, %c0_i32_78 : i32
    scf.if %86 {
      %cst_148 = arith.constant 0.000000e+00 : f32
      %149 = vector.broadcast %cst_148 : f32 to vector<24x128xf32>
      %c24_149 = arith.constant 24 : index
      %c0_150 = arith.constant 0 : index
      %150 = vector.load %arg14[%c24_149, %c0_150] : memref<176x128xf32, #tpu.memory_space<vmem>>, vector<24x128xf32>
      tpu.vector_store %arg14[%c24_149, %c0_150], %149 {strides = array<i32>} : memref<176x128xf32, #tpu.memory_space<vmem>>, vector<24x128xf32>,
    } else {
    }
    %c3_i32_79 = arith.constant 3 : i32
    %87 = arith.cmpi eq, %arg1, %c3_i32_79 : i32
    %88 = arith.extui %87 : i1 to i32
    %c0_i32_80 = arith.constant 0 : i32
    %89 = arith.cmpi ne, %88, %c0_i32_80 : i32
    scf.if %89 {
      %cst_148 = arith.constant 0.000000e+00 : f32
      %149 = vector.broadcast %cst_148 : f32 to vector<24x128xf32>
      %c144_149 = arith.constant 144 : index
      %c0_150 = arith.constant 0 : index
      %150 = vector.load %arg14[%c144_149, %c0_150] : memref<176x128xf32, #tpu.memory_space<vmem>>, vector<24x128xf32>
      tpu.vector_store %arg14[%c144_149, %c0_150], %149 {strides = array<i32>} : memref<176x128xf32, #tpu.memory_space<vmem>>, vector<24x128xf32>,
    } else {
    }
    %c23_81 = arith.constant 23 : index
    %c0_82 = arith.constant 0 : index
    %90 = vector.load %arg14[%c23_81, %c0_82] : memref<176x128xf32, #tpu.memory_space<vmem>>, vector<96x128xf32>
    %c0_83 = arith.constant 0 : index
    %c0_84 = arith.constant 0 : index
    %c0_85 = arith.constant 0 : index
    %91 = vector.load %arg8[%c0_83, %c0_84, %c0_85] : memref<9x128x128xf32, #tpu.memory_space<vmem>>, vector<1x128x128xf32>
    %92 = vector.shape_cast %91 : vector<1x128x128xf32> to vector<128x128xf32>
    %cst_86 = arith.constant dense<0.000000e+00> : vector<96x128xf32>
    %93 = tpu.matmul %90, %92, %cst_86 {dimension_numbers = #tpu.dot_dimension_numbers<[1], [0], [0], [1], [0, 0, 1, 1], [], []>} : vector<96x128xf32>, vector<128x128xf32>, vector<96x128xf32> -> vector<96x128xf32>
    %c24_87 = arith.constant 24 : index
    %c0_88 = arith.constant 0 : index
    %94 = vector.load %arg14[%c24_87, %c0_88] : memref<176x128xf32, #tpu.memory_space<vmem>>, vector<96x128xf32>
    %c1_89 = arith.constant 1 : index
    %c0_90 = arith.constant 0 : index
    %c0_91 = arith.constant 0 : index
    %95 = vector.load %arg8[%c1_89, %c0_90, %c0_91] : memref<9x128x128xf32, #tpu.memory_space<vmem>>, vector<1x128x128xf32>
    %96 = vector.shape_cast %95 : vector<1x128x128xf32> to vector<128x128xf32>
    %cst_92 = arith.constant dense<0.000000e+00> : vector<96x128xf32>
    %97 = tpu.matmul %94, %96, %cst_92 {dimension_numbers = #tpu.dot_dimension_numbers<[1], [0], [0], [1], [0, 0, 1, 1], [], []>} : vector<96x128xf32>, vector<128x128xf32>, vector<96x128xf32> -> vector<96x128xf32>
    %98 = arith.addf %93, %97 : vector<96x128xf32>
    %c25_93 = arith.constant 25 : index
    %c0_94 = arith.constant 0 : index
    %99 = vector.load %arg14[%c25_93, %c0_94] : memref<176x128xf32, #tpu.memory_space<vmem>>, vector<96x128xf32>
    %c2_95 = arith.constant 2 : index
    %c0_96 = arith.constant 0 : index
    %c0_97 = arith.constant 0 : index
    %100 = vector.load %arg8[%c2_95, %c0_96, %c0_97] : memref<9x128x128xf32, #tpu.memory_space<vmem>>, vector<1x128x128xf32>
    %101 = vector.shape_cast %100 : vector<1x128x128xf32> to vector<128x128xf32>
    %cst_98 = arith.constant dense<0.000000e+00> : vector<96x128xf32>
    %102 = tpu.matmul %99, %101, %cst_98 {dimension_numbers = #tpu.dot_dimension_numbers<[1], [0], [0], [1], [0, 0, 1, 1], [], []>} : vector<96x128xf32>, vector<128x128xf32>, vector<96x128xf32> -> vector<96x128xf32>
    %103 = arith.addf %98, %102 : vector<96x128xf32>
    %c47_99 = arith.constant 47 : index
    %c0_100 = arith.constant 0 : index
    %104 = vector.load %arg14[%c47_99, %c0_100] : memref<176x128xf32, #tpu.memory_space<vmem>>, vector<96x128xf32>
    %c3_101 = arith.constant 3 : index
    %c0_102 = arith.constant 0 : index
    %c0_103 = arith.constant 0 : index
    %105 = vector.load %arg8[%c3_101, %c0_102, %c0_103] : memref<9x128x128xf32, #tpu.memory_space<vmem>>, vector<1x128x128xf32>
    %106 = vector.shape_cast %105 : vector<1x128x128xf32> to vector<128x128xf32>
    %cst_104 = arith.constant dense<0.000000e+00> : vector<96x128xf32>
    %107 = tpu.matmul %104, %106, %cst_104 {dimension_numbers = #tpu.dot_dimension_numbers<[1], [0], [0], [1], [0, 0, 1, 1], [], []>} : vector<96x128xf32>, vector<128x128xf32>, vector<96x128xf32> -> vector<96x128xf32>
    %108 = arith.addf %103, %107 : vector<96x128xf32>
    %c48_105 = arith.constant 48 : index
    %c0_106 = arith.constant 0 : index
    %109 = vector.load %arg14[%c48_105, %c0_106] : memref<176x128xf32, #tpu.memory_space<vmem>>, vector<96x128xf32>
    %c4_107 = arith.constant 4 : index
    %c0_108 = arith.constant 0 : index
    %c0_109 = arith.constant 0 : index
    %110 = vector.load %arg8[%c4_107, %c0_108, %c0_109] : memref<9x128x128xf32, #tpu.memory_space<vmem>>, vector<1x128x128xf32>
    %111 = vector.shape_cast %110 : vector<1x128x128xf32> to vector<128x128xf32>
    %cst_110 = arith.constant dense<0.000000e+00> : vector<96x128xf32>
    %112 = tpu.matmul %109, %111, %cst_110 {dimension_numbers = #tpu.dot_dimension_numbers<[1], [0], [0], [1], [0, 0, 1, 1], [], []>} : vector<96x128xf32>, vector<128x128xf32>, vector<96x128xf32> -> vector<96x128xf32>
    %113 = arith.addf %108, %112 : vector<96x128xf32>
    %c49_111 = arith.constant 49 : index
    %c0_112 = arith.constant 0 : index
    %114 = vector.load %arg14[%c49_111, %c0_112] : memref<176x128xf32, #tpu.memory_space<vmem>>, vector<96x128xf32>
    %c5_113 = arith.constant 5 : index
    %c0_114 = arith.constant 0 : index
    %c0_115 = arith.constant 0 : index
    %115 = vector.load %arg8[%c5_113, %c0_114, %c0_115] : memref<9x128x128xf32, #tpu.memory_space<vmem>>, vector<1x128x128xf32>
    %116 = vector.shape_cast %115 : vector<1x128x128xf32> to vector<128x128xf32>
    %cst_116 = arith.constant dense<0.000000e+00> : vector<96x128xf32>
    %117 = tpu.matmul %114, %116, %cst_116 {dimension_numbers = #tpu.dot_dimension_numbers<[1], [0], [0], [1], [0, 0, 1, 1], [], []>} : vector<96x128xf32>, vector<128x128xf32>, vector<96x128xf32> -> vector<96x128xf32>
    %118 = arith.addf %113, %117 : vector<96x128xf32>
    %c71_117 = arith.constant 71 : index
    %c0_118 = arith.constant 0 : index
    %119 = vector.load %arg14[%c71_117, %c0_118] : memref<176x128xf32, #tpu.memory_space<vmem>>, vector<96x128xf32>
    %c6_119 = arith.constant 6 : index
    %c0_120 = arith.constant 0 : index
    %c0_121 = arith.constant 0 : index
    %120 = vector.load %arg8[%c6_119, %c0_120, %c0_121] : memref<9x128x128xf32, #tpu.memory_space<vmem>>, vector<1x128x128xf32>
    %121 = vector.shape_cast %120 : vector<1x128x128xf32> to vector<128x128xf32>
    %cst_122 = arith.constant dense<0.000000e+00> : vector<96x128xf32>
    %122 = tpu.matmul %119, %121, %cst_122 {dimension_numbers = #tpu.dot_dimension_numbers<[1], [0], [0], [1], [0, 0, 1, 1], [], []>} : vector<96x128xf32>, vector<128x128xf32>, vector<96x128xf32> -> vector<96x128xf32>
    %123 = arith.addf %118, %122 : vector<96x128xf32>
    %c72_123 = arith.constant 72 : index
    %c0_124 = arith.constant 0 : index
    %124 = vector.load %arg14[%c72_123, %c0_124] : memref<176x128xf32, #tpu.memory_space<vmem>>, vector<96x128xf32>
    %c7_125 = arith.constant 7 : index
    %c0_126 = arith.constant 0 : index
    %c0_127 = arith.constant 0 : index
    %125 = vector.load %arg8[%c7_125, %c0_126, %c0_127] : memref<9x128x128xf32, #tpu.memory_space<vmem>>, vector<1x128x128xf32>
    %126 = vector.shape_cast %125 : vector<1x128x128xf32> to vector<128x128xf32>
    %cst_128 = arith.constant dense<0.000000e+00> : vector<96x128xf32>
    %127 = tpu.matmul %124, %126, %cst_128 {dimension_numbers = #tpu.dot_dimension_numbers<[1], [0], [0], [1], [0, 0, 1, 1], [], []>} : vector<96x128xf32>, vector<128x128xf32>, vector<96x128xf32> -> vector<96x128xf32>
    %128 = arith.addf %123, %127 : vector<96x128xf32>
    %c73_129 = arith.constant 73 : index
    %c0_130 = arith.constant 0 : index
    %129 = vector.load %arg14[%c73_129, %c0_130] : memref<176x128xf32, #tpu.memory_space<vmem>>, vector<96x128xf32>
    %c8_131 = arith.constant 8 : index
    %c0_132 = arith.constant 0 : index
    %c0_133 = arith.constant 0 : index
    %130 = vector.load %arg8[%c8_131, %c0_132, %c0_133] : memref<9x128x128xf32, #tpu.memory_space<vmem>>, vector<1x128x128xf32>
    %131 = vector.shape_cast %130 : vector<1x128x128xf32> to vector<128x128xf32>
    %cst_134 = arith.constant dense<0.000000e+00> : vector<96x128xf32>
    %132 = tpu.matmul %129, %131, %cst_134 {dimension_numbers = #tpu.dot_dimension_numbers<[1], [0], [0], [1], [0, 0, 1, 1], [], []>} : vector<96x128xf32>, vector<128x128xf32>, vector<96x128xf32> -> vector<96x128xf32>
    %133 = arith.addf %128, %132 : vector<96x128xf32>
    %c0_135 = arith.constant 0 : index
    %c0_136 = arith.constant 0 : index
    %134 = vector.load %arg9[%c0_135, %c0_136] : memref<1x128xf32, #tpu.memory_space<vmem>>, vector<1x128xf32>
    %135 = vector.broadcast %134 : vector<1x128xf32> to vector<96x128xf32>
    %136 = arith.mulf %133, %135 : vector<96x128xf32>
    %c0_137 = arith.constant 0 : index
    %c0_138 = arith.constant 0 : index
    %137 = vector.load %arg10[%c0_137, %c0_138] : memref<1x128xf32, #tpu.memory_space<vmem>>, vector<1x128xf32>
    %138 = vector.broadcast %137 : vector<1x128xf32> to vector<96x128xf32>
    %139 = arith.addf %136, %138 : vector<96x128xf32>
    %140 = vector.shape_cast %139 : vector<96x128xf32> to vector<4x24x128xf32>
    %141 = vector.extract_strided_slice %140 {offsets = [0, 0, 0], sizes = [4, 16, 4], strides = [1, 1, 1]} : vector<4x24x128xf32> to vector<4x16x4xf32>
    %c0_139 = arith.constant 0 : index
    %c0_140 = arith.constant 0 : index
    %c0_141 = arith.constant 0 : index
    %c0_142 = arith.constant 0 : index
    %142 = vector.load %arg2[%c0_139, %c0_140, %c0_141, %c0_142] : memref<1x4x16x4xf32, #tpu.memory_space<vmem>>, vector<1x4x16x4xf32>
    %143 = vector.shape_cast %142 : vector<1x4x16x4xf32> to vector<4x16x4xf32>
    %144 = arith.addf %141, %143 : vector<4x16x4xf32>
    %cst_143 = arith.constant 0.000000e+00 : f32
    %145 = vector.broadcast %cst_143 : f32 to vector<4x16x4xf32>
    %146 = arith.maximumf %144, %145 : vector<4x16x4xf32>
    %147 = vector.shape_cast %146 : vector<4x16x4xf32> to vector<1x4x16x4xf32>
    %c0_144 = arith.constant 0 : index
    %c0_145 = arith.constant 0 : index
    %c0_146 = arith.constant 0 : index
    %c0_147 = arith.constant 0 : index
    %148 = vector.load %arg12[%c0_144, %c0_145, %c0_146, %c0_147] : memref<1x4x16x4xf32, #tpu.memory_space<vmem>>, vector<1x4x16x4xf32>
    tpu.vector_store %arg12[%c0_144, %c0_145, %c0_146, %c0_147], %147 {strides = array<i32>} : memref<1x4x16x4xf32, #tpu.memory_space<vmem>>, vector<1x4x16x4xf32>,
    return
  }
  func.func @transform_0(%arg0: i32, %arg1: i32) -> (i32, i32, i32, i32) {
    %c0_i32 = arith.constant 0 : i32
    %c0_i32_0 = arith.constant 0 : i32
    %c0_i32_1 = arith.constant 0 : i32
    return %arg0, %arg1, %c0_i32, %c0_i32_0 : i32, i32, i32, i32
  }
  func.func @transform_1(%arg0: i32, %arg1: i32) -> (i32, i32, i32, i32) {
    %c2_i32 = arith.constant 2 : i32
    %0 = arith.muli %arg1, %c2_i32 : i32
    %c1_i32 = arith.constant 1 : i32
    %1 = arith.subi %0, %c1_i32 : i32
    %c0_i32 = arith.constant 0 : i32
    %2 = arith.maxsi %1, %c0_i32 : i32
    %c0_i32_0 = arith.constant 0 : i32
    %c0_i32_1 = arith.constant 0 : i32
    %c0_i32_2 = arith.constant 0 : i32
    return %arg0, %2, %c0_i32_0, %c0_i32_1 : i32, i32, i32, i32
  }
  func.func @transform_2(%arg0: i32, %arg1: i32) -> (i32, i32, i32, i32) {
    %c1_i32 = arith.constant 1 : i32
    %0 = arith.addi %arg1, %c1_i32 : i32
    %c2_i32 = arith.constant 2 : i32
    %1 = arith.muli %0, %c2_i32 : i32
    %c7_i32 = arith.constant 7 : i32
    %2 = arith.minsi %1, %c7_i32 : i32
    %c0_i32 = arith.constant 0 : i32
    %c0_i32_0 = arith.constant 0 : i32
    %c0_i32_1 = arith.constant 0 : i32
    return %arg0, %2, %c0_i32, %c0_i32_0 : i32, i32, i32, i32
  }
  func.func @transform_3(%arg0: i32, %arg1: i32) -> (i32, i32, i32) {
    %c0_i32 = arith.constant 0 : i32
    %c0_i32_0 = arith.constant 0 : i32
    %c0_i32_1 = arith.constant 0 : i32
    %c0_i32_2 = arith.constant 0 : i32
    return %c0_i32, %c0_i32_0, %c0_i32_1 : i32, i32, i32
  }
  func.func @transform_4(%arg0: i32, %arg1: i32) -> (i32, i32) {
    %c0_i32 = arith.constant 0 : i32
    %c0_i32_0 = arith.constant 0 : i32
    %c0_i32_1 = arith.constant 0 : i32
    return %c0_i32, %c0_i32_0 : i32, i32
  }
  func.func @transform_5(%arg0: i32, %arg1: i32) -> (i32, i32) {
    %c0_i32 = arith.constant 0 : i32
    %c0_i32_0 = arith.constant 0 : i32
    %c0_i32_1 = arith.constant 0 : i32
    return %c0_i32, %c0_i32_0 : i32, i32
  }
  func.func @transform_6(%arg0: i32, %arg1: i32) -> (i32, i32, i32) {
    %c0_i32 = arith.constant 0 : i32
    %c0_i32_0 = arith.constant 0 : i32
    %c0_i32_1 = arith.constant 0 : i32
    %c0_i32_2 = arith.constant 0 : i32
    return %c0_i32, %c0_i32_0, %c0_i32_1 : i32, i32, i32
  }
  func.func @transform_7(%arg0: i32, %arg1: i32) -> (i32, i32) {
    %c0_i32 = arith.constant 0 : i32
    %c0_i32_0 = arith.constant 0 : i32
    %c0_i32_1 = arith.constant 0 : i32
    return %c0_i32, %c0_i32_0 : i32, i32
  }
  func.func @transform_8(%arg0: i32, %arg1: i32) -> (i32, i32) {
    %c0_i32 = arith.constant 0 : i32
    %c0_i32_0 = arith.constant 0 : i32
    %c0_i32_1 = arith.constant 0 : i32
    return %c0_i32, %c0_i32_0 : i32, i32
  }
  func.func @transform_9(%arg0: i32, %arg1: i32) -> (i32, i32) {
    %c0_i32 = arith.constant 0 : i32
    %c0_i32_0 = arith.constant 0 : i32
    %c0_i32_1 = arith.constant 0 : i32
    return %c0_i32, %c0_i32_0 : i32, i32
  }
  func.func @transform_10(%arg0: i32, %arg1: i32) -> (i32, i32, i32, i32) {
    %c0_i32 = arith.constant 0 : i32
    %c0_i32_0 = arith.constant 0 : i32
    %c0_i32_1 = arith.constant 0 : i32
    return %arg0, %arg1, %c0_i32, %c0_i32_0 : i32, i32, i32, i32
  }
}

</mosaic_0001>

<bundles_post_ra>
// kernel: tpu_custom_call.1
= control target key start
LH: loop header
LB: loop body
LE: loop exit
PB: predicated region body
PF: predicated region fallthrough
CT: control target
= control target key end

     0   :  { %s7731_s0 = inlined_call_operand.vmem [shape: f32[2,16,16,4], index: 0, kind: input, shape index: {}]   ;;  %s7732_s1 = inlined_call_operand.vmem [shape: f32[2,16,16,4], index: 1, kind: input, shape index: {}]   ;;  %s7733_s2 = inlined_call_operand.vmem [shape: f32[2,16,16,4], index: 2, kind: input, shape index: {}]   ;;  %s7734_s3 = inlined_call_operand.vmem [shape: f32[9,128,128], index: 3, kind: input, shape index: {}]   ;;  %s7735_s4 = inlined_call_operand.vmem [shape: f32[1,128], index: 4, kind: input, shape index: {}]   ;;  %s7736_s5 = inlined_call_operand.vmem [shape: f32[1,128], index: 5, kind: input, shape index: {}]   ;;  %s7737_s6 = inlined_call_operand.hbm [shape: f32[9,128,128], index: 6, kind: input, shape index: {}]   ;;  %s7738_s7 = inlined_call_operand.vmem [shape: f32[1,128], index: 7, kind: input, shape index: {}]   ;;  %s7739_s8 = inlined_call_operand.vmem [shape: f32[1,128], index: 8, kind: input, shape index: {}]   ;;  %s7740_s9 = inlined_call_operand.vmem [shape: f32[144,1], index: 9, kind: input, shape index: {}]   ;;  %s7741_s10 = inlined_call_operand.vmem [shape: f32[2,16,16,4], index: 10, kind: output, shape index: {}]  }
   0x1   :  { %7742 = sst [smem:[#allocation19_spill]] %s7731_s0 }
   0x2   :  { %7743 = sst [smem:[#allocation20_spill]] %s7737_s6 }
   0x3   :  { %7744 = sst [smem:[#allocation21_spill]] %s7741_s10 }
   0x4   :  { %15 = vsyncpa [#allocation5], 0  ;;  %s6247_s13 = smov 0   ;;  %s6249_s14 = smov 0  }
   0x5   :  { %s6251_s15 = smov 0   ;;  %s6253_s16 = smov 0  }
   0x6   :  { %s6255_s17 = smov 0  }
   0x7 LB: > { %s4331_s18 = sadd.s32 4294967295, %s6183_s17   ;;  %s30_s19 = sadd.s32 1, %s6175_s15  ;;  %s6183_s17 = sphi %s6255_s17, %s21_s17   ;;  %s6179_s16 = sphi %s6253_s16, %s7779_s16   ;;  %s6175_s15 = sphi %s6251_s15, %s7778_s15   ;;  %s6171_s14 = sphi %s6249_s14, %s7777_s14   ;;  %s6167_s13 = sphi %s6247_s13, %s7776_s13  }
   0x8   : > { %p31_p0 = scmp.ge.s32.totalorder %s30_s19, 4  ;;  %s33_s20 = sadd.s32 1, %s6179_s16 }
   0x9   : > { %p4339_p1 = scmp.ge.s32.totalorder %s6183_s17, 1  ;;  %p313_p2 = scmp.lt.s32.totalorder %s6183_s17, 9 }
   0xa   : > { %s7781_s19 = smov (%p31_p0, %s30_s19), 0  ;;  %s7783_s20 = smov (!%p31_p0, %s33_s20), %s6179_s16 }
   0xb   : > { %7745 = sst [smem:[#allocation7_spill]] %s7781_s19  ;;  %p6280_p3 = pnand %p4339_p1, %p313_p2 }
   0xc   : > { %p35_p4 = scmp.ge.s32.totalorder %s7783_s20, 2  ;;  %p6284_p5 = scmp.eq.s32.totalorder %s4331_s18, 0 }
   0xd   : > { %p6060_p6 = pneg %p6280_p3  ;;  %s6185_s23 = smov [#allocation4]  }
   0xe   : > { %s7785_s20 = smov (%p35_p4, %s7783_s20), 0  ;;  %s334_s24 = sshll.u32 %s6185_s23, 4  ;;  %s335_s24 = int_to_ptr.vmem [resolvable:$true] %s334_s24 }
   0xf   : > { %7748 = sst [smem:[#allocation8_spill]] %s7785_s20  ;;  %p6294_p7 = pnand %p6284_p5, %p6060_p6 }
  0x10   : > { %s6126_s26 = scalar_lea.vmem %s335_s24, 18432  ;;  %p6134_p12 = scmp.lt.s32.totalorder %s335_s24, %s335_s24 }
  0x11   : > { %p6117_p8 = pneg %p6294_p7  ;;  %p6127_p9 = scmp.ne.s32.totalorder %s335_s24, %s6126_s26 }
  0x12   : > { %p6135_p13 = scmp.lt.s32.totalorder %s6126_s26, %s6126_s26 }
  0x13   : > { %p6129_p10 = pnand %p6127_p9, %p6117_p8 }
  0x14   : > { %p6136_p0 = por %p6135_p13, %p6134_p12 }
  0x15   : > { %p6130_p11 = pneg %p6129_p10 }
  0x17   : > { %p6137_p1 = pnand %p6136_p0, %p6130_p11 }
  0x19   : > { %6140 = shalt.err (!%p6137_p1)
}
  0x1a   : > { %s6186_s27 = smov 128   ;;  %s6187_s28 = smov 8  }
  0x1b   : > { %s7750_s6 = sld [smem:[#allocation20_spill]] }
  0x1d   : > { %417 = sbr.rel (%p6280_p3) target bundleno = 956 (0x3bc), region = 60 }
  0x21   : > { %6063 = dma.hbm_to_vmem [thread:$0]  (!%p6294_p7), %s7750_s6, 18432, %s335_s24, [#allocation5], %s6186_s27, %s6186_s27, %s6187_s28  }
  0x22   : > { %6162 = dma.done.wait (%p6284_p5), [#allocation5], 18432  }
  0x23   : > { %6164 = vsyncadd (%p6284_p5), [#allocation5], 4294948864  ;;  %s4344_s11 = sshll.u32 %s6167_s13, 2  ;;  %p494_p2 = scmp.lt.s32.totalorder %s6171_s14, 1  ;;  %v6188_v0 = vmov 0.0  }
  0x24   : > { %p6315_p4 = scmp.lt.s32.totalorder %s4344_s11, 15  ;;  %s4348_s18 = sshll.u32 %s6167_s13, 1  ;;  %555 = vst [vmem:[#allocation2 + $0x10] sm:$0xff] %v6188_v0  ;;  %556 = vst [vmem:[#allocation2 + $0x18] sm:$0xff] %v6188_v0 }
  0x25   : > { %557 = vst [vmem:[#allocation2 + $0x20] sm:$0xff] %v6188_v0  ;;  %558 = vst [vmem:[#allocation2 + $0x28] sm:$0xff] %v6188_v0  ;;  %s7787_s14 = smov (!%p494_p2, %s6171_s14), 1  ;;  %s4349_s22 = sadd.s32 4294967295, %s4348_s18 }
  0x26   : > { %559 = vst [vmem:[#allocation2 + $0x30] sm:$0xff] %v6188_v0  ;;  %560 = vst [vmem:[#allocation2 + $0x38] sm:$0xff] %v6188_v0  ;;  %s7789_s11 = smov (!%p6315_p4, %s4344_s11), 15  ;;  %s4346_s21 = sshll.u32 %s7787_s14, 5 }
  0x27   : > { %561 = vst [vmem:[#allocation2 + $0x40] sm:$0xff] %v6188_v0  ;;  %562 = vst [vmem:[#allocation2 + $0x48] sm:$0xff] %v6188_v0  ;;  %s4345_s23 = sshll.u32 %s7789_s11, 1  ;;  %p506_p3 = scmp.gt.s32.totalorder %s4349_s22, 0 }
  0x28   : > { %563 = vst [vmem:[#allocation2 + $0x50] sm:$0xff] %v6188_v0  ;;  %564 = vst [vmem:[#allocation2 + $0x58] sm:$0xff] %v6188_v0  ;;  %s500_s24 = sadd.s32 %s4346_s21, %s4345_s23  ;;  %s4516_s25 = sadd.s32 2, %s4348_s18 }
  0x29   : > { %565 = vst [vmem:[#allocation2 + $0x60] sm:$0xff] %v6188_v0  ;;  %566 = vst [vmem:[#allocation2 + $0x68] sm:$0xff] %v6188_v0  ;;  %s4347_s26 = sshll.u32 %s500_s24, 3  ;;  %p525_p5 = scmp.lt.s32.totalorder %s4516_s25, 7 }
  0x2a   : > { %567 = vst [vmem:[#allocation2 + $0x70] sm:$0xff] %v6188_v0  ;;  %568 = vst [vmem:[#allocation2 + $0x78] sm:$0xff] %v6188_v0  ;;  %s7752_s0 = sld [smem:[#allocation19_spill]]  ;;  %s7791_s22 = smov (!%p506_p3, %s4349_s22), 0 }
  0x2b   : > { %569 = vst [vmem:[#allocation2 + $0x80] sm:$0xff] %v6188_v0  ;;  %570 = vst [vmem:[#allocation2 + $0x88] sm:$0xff] %v6188_v0  ;;  %s7753_s10 = sld [smem:[#allocation21_spill]]  ;;  %s7793_s25 = smov (!%p525_p5, %s4516_s25), 7 }
  0x2c   : > { %571 = vst [vmem:[#allocation2 + $0x90] sm:$0xff] %v6188_v0  ;;  %572 = vst [vmem:[#allocation2 + $0x98] sm:$0xff] %v6188_v0  ;;  %s4350_s14 = sshll.u32 %s7791_s22, 1  ;;  %s4355_s11 = sshll.u32 %s7793_s25, 1 }
  0x2d   : > { %573 = vst [vmem:[#allocation2 + $0xa0] sm:$0xff] %v6188_v0  ;;  %574 = vst [vmem:[#allocation2 + $0xa8] sm:$0xff] %v6188_v0  ;;  %p511_p6 = scmp.lt.s32.totalorder %s4350_s14, 15  ;;  %p530_p7 = scmp.lt.s32.totalorder %s4355_s11, 15 }
  0x2e   : > { %575 = vst [vmem:[#allocation2 + $0xb0] sm:$0xff] %v6188_v0  ;;  %576 = vst [vmem:[#allocation2 + $0xb8] sm:$0xff] %v6188_v0  ;;  %p4363_p8 = scmp.le.s32.totalorder %s6167_s13, 0 }
  0x2f   : > { %577 = vst [vmem:[#allocation2 + $0xc0] sm:$0xff] %v6188_v0  ;;  %578 = vst [vmem:[#allocation2 + $0xc8] sm:$0xff] %v6188_v0  ;;  %s7795_s14 = smov (!%p511_p6, %s4350_s14), 15  ;;  %s7797_s11 = smov (!%p530_p7, %s4355_s11), 15 }
  0x30   : > { %579 = vst [vmem:[#allocation2 + $0xd0] sm:$0xff] %v6188_v0  ;;  %580 = vst [vmem:[#allocation2 + $0xd8] sm:$0xff] %v6188_v0  ;;  %s6360_s29 = scalar_lea.vmem %s7752_s0, %s4347_s26  ;;  %s4351_s18 = sshll.u32 %s7795_s14, 1 }
  0x31   : > { %s6365_s12 = scalar_lea.vmem %s7753_s10, %s4347_s26  ;;  %s515_s23 = sadd.s32 %s4351_s18, %s4346_s21 }
  0x32   : > { %s4356_s24 = sshll.u32 %s7797_s11, 1  ;;  %s4353_s20 = sshll.u32 %s515_s23, 3 }
  0x33   : > { %s534_s27 = sadd.s32 %s4356_s24, %s4346_s21  ;;  %s517_s19 = scalar_lea.vmem %s7732_s1, %s4353_s20 }
  0x34   : > { %s4358_s6 = sshll.u32 %s534_s27, 3  ;;  %584 = sbr.rel (%p4363_p8) target bundleno = 60 (0x3c), region = 68 }
  0x35   : > { %s6373_s10 = scalar_lea.vmem %s7733_s2, %s4358_s6 }
  0x39   : > { %v585_v1 = vld [vmem:[%s517_s19] sm:$0xff]  ;;  %vm587_vm0 = vcmask 31744   ;;  %v586_v2 = vld [vmem:[%s517_s19 + $0x8] sm:$0xff]  ;;  %v4364_v3 = vld [vmem:[%s517_s19 + $0x10] sm:$0xff] }
  0x3a   : > { %588 = vst.msk [vmem:[#allocation2 + $0x18] sm:$0xff] %vm587_vm0, %v585_v1  ;;  %589 = vst.msk [vmem:[#allocation2 + $0x20] sm:$0xff] %vm587_vm0, %v586_v2  ;;  %v4365_v4 = vld [vmem:[%s517_s19 + $0x18] sm:$0xff] }
  0x3b   : > { %593 = vst.msk [vmem:[#allocation2 + $0x30] sm:$0xff] %vm587_vm0, %v4364_v3  ;;  %594 = vst.msk [vmem:[#allocation2 + $0x38] sm:$0xff] %vm587_vm0, %v4365_v4 }
  0x3c PF: > { %v595_v5 = vld [vmem:[%s6360_s29] sm:$0xff]  ;;  %vm597_vm1 = vcmask 31744   ;;  %v596_v6 = vld [vmem:[%s6360_s29 + $0x8] sm:$0xff]  ;;  %v4366_v7 = vld [vmem:[%s6360_s29 + $0x10] sm:$0xff]  ;;  %p4372_p9 = scmp.ge.s32.totalorder %s6167_s13, 3 }
  0x3d   : > { %598 = vst.msk [vmem:[#allocation2 + $0x48] sm:$0xff] %vm597_vm1, %v595_v5  ;;  %599 = vst.msk [vmem:[#allocation2 + $0x50] sm:$0xff] %vm597_vm1, %v596_v6  ;;  %v4367_v8 = vld [vmem:[%s6360_s29 + $0x18] sm:$0xff]  ;;  %v4368_v9 = vld [vmem:[%s6360_s29 + $0x20] sm:$0xff] }
  0x3e   : > { %603 = vst.msk [vmem:[#allocation2 + $0x60] sm:$0xff] %vm597_vm1, %v4366_v7  ;;  %v4369_v10 = vld [vmem:[%s6360_s29 + $0x28] sm:$0xff]  ;;  %604 = vst.msk [vmem:[#allocation2 + $0x68] sm:$0xff] %vm597_vm1, %v4367_v8  ;;  %v4370_v11 = vld [vmem:[%s6360_s29 + $0x30] sm:$0xff]  ;;  %618 = sbr.rel (%p4372_p9) target bundleno = 70 (0x46), region = 72 }
  0x3f   : > { %608 = vst.msk [vmem:[#allocation2 + $0x78] sm:$0xff] %vm597_vm1, %v4368_v9  ;;  %609 = vst.msk [vmem:[#allocation2 + $0x80] sm:$0xff] %vm597_vm1, %v4369_v10  ;;  %v4371_v12 = vld [vmem:[%s6360_s29 + $0x38] sm:$0xff] }
  0x40   : > { %613 = vst.msk [vmem:[#allocation2 + $0x90] sm:$0xff] %vm597_vm1, %v4370_v11  ;;  %614 = vst.msk [vmem:[#allocation2 + $0x98] sm:$0xff] %vm597_vm1, %v4371_v12 }
  0x43   : > { %v619_v13 = vld [vmem:[%s6373_s10] sm:$0xff]  ;;  %v620_v14 = vld [vmem:[%s6373_s10 + $0x8] sm:$0xff]  ;;  %v4373_v15 = vld [vmem:[%s6373_s10 + $0x10] sm:$0xff] }
  0x44   : > { %621 = vst.msk [vmem:[#allocation2 + $0xa8] sm:$0xff] %vm597_vm1, %v619_v13  ;;  %622 = vst.msk [vmem:[#allocation2 + $0xb0] sm:$0xff] %vm597_vm1, %v620_v14  ;;  %v4374_v16 = vld [vmem:[%s6373_s10 + $0x18] sm:$0xff] }
  0x45   : > { %626 = vst.msk [vmem:[#allocation2 + $0xc0] sm:$0xff] %vm597_vm1, %v4373_v15  ;;  %627 = vst.msk [vmem:[#allocation2 + $0xc8] sm:$0xff] %vm597_vm1, %v4374_v16 }
  0x46 PF: > { %v4390_v17 = vld [vmem:[%s7734_s3 + $0xf8] sm:$0xff]  ;;  %v4389_v19 = vld [vmem:[%s7734_s3 + $0xf0] sm:$0xff]  ;;  %2677 = vst [vmem:[#allocation3 + $0x10] sm:$0xff] %v6188_v0  ;;  %2678 = vst [vmem:[#allocation3 + $0xa8] sm:$0xff] %v6188_v0  ;;  %p4505_p10 = scmp.ne.s32.totalorder %s6167_s13, 0 }
  0x47   : > { %v661_v18 = vld [vmem:[%s7734_s3 + $0x78] sm:$0xff]  ;;  %5075 = vmatprep.subr.mxu0 %v4390_v17  ;;  %v660_v20 = vld [vmem:[%s7734_s3 + $0x70] sm:$0xff]  ;;  %v4388_v21 = vld [vmem:[%s7734_s3 + $0xe8] sm:$0xff] }
  0x48   : > { %5134 = vmatprep.subr.mxu1 %v661_v18  ;;  %5076 = vmatpush3.msra.mxu0 %v4390_v17  ;;  %v659_v22 = vld [vmem:[%s7734_s3 + $0x68] sm:$0xff]  ;;  %v4387_v23 = vld [vmem:[%s7734_s3 + $0xe0] sm:$0xff]  ;;  %v4386_v25 = vld [vmem:[%s7734_s3 + $0xd8] sm:$0xff] }
  0x49   : > { %5135 = vmatpush3.msra.mxu1 %v661_v18  ;;  %5077 = vmatprep.subr.mxu0 %v4389_v19  ;;  %v658_v24 = vld [vmem:[%s7734_s3 + $0x60] sm:$0xff]  ;;  %v657_v26 = vld [vmem:[%s7734_s3 + $0x58] sm:$0xff]  ;;  %v4385_v27 = vld [vmem:[%s7734_s3 + $0xd0] sm:$0xff] }
  0x4a   : > { %5136 = vmatprep.subr.mxu1 %v660_v20  ;;  %5078 = vmatpush3.msra.mxu0 %v4389_v19  ;;  %v656_v28 = vld [vmem:[%s7734_s3 + $0x50] sm:$0xff]  ;;  %v4384_v29 = vld [vmem:[%s7734_s3 + $0xc8] sm:$0xff]  ;;  %v4383_v31 = vld [vmem:[%s7734_s3 + $0xc0] sm:$0xff] }
  0x4b   : > { %5137 = vmatpush3.msra.mxu1 %v660_v20  ;;  %5079 = vmatprep.subr.mxu0 %v4388_v21  ;;  %v655_v30 = vld [vmem:[%s7734_s3 + $0x48] sm:$0xff]  ;;  %v654_v32 = vld [vmem:[%s7734_s3 + $0x40] sm:$0xff]  ;;  %v4382_v33 = vld [vmem:[%s7734_s3 + $0xb8] sm:$0xff] }
  0x4c   : > { %5138 = vmatprep.subr.mxu1 %v659_v22  ;;  %5080 = vmatpush3.msra.mxu0 %v4388_v21  ;;  %v653_v34 = vld [vmem:[%s7734_s3 + $0x38] sm:$0xff]  ;;  %v4381_v35 = vld [vmem:[%s7734_s3 + $0xb0] sm:$0xff]  ;;  %v4380_v37 = vld [vmem:[%s7734_s3 + $0xa8] sm:$0xff] }
  0x4d   : > { %5139 = vmatpush3.msra.mxu1 %v659_v22  ;;  %5081 = vmatprep.subr.mxu0 %v4387_v23  ;;  %v652_v36 = vld [vmem:[%s7734_s3 + $0x30] sm:$0xff]  ;;  %v651_v38 = vld [vmem:[%s7734_s3 + $0x28] sm:$0xff]  ;;  %v4379_v39 = vld [vmem:[%s7734_s3 + $0xa0] sm:$0xff] }
  0x4e   : > { %5140 = vmatprep.subr.mxu1 %v658_v24  ;;  %5082 = vmatpush3.msra.mxu0 %v4387_v23  ;;  %v650_v40 = vld [vmem:[%s7734_s3 + $0x20] sm:$0xff]  ;;  %v4378_v41 = vld [vmem:[%s7734_s3 + $0x98] sm:$0xff]  ;;  %v4377_v43 = vld [vmem:[%s7734_s3 + $0x90] sm:$0xff] }
  0x4f   : > { %5141 = vmatpush3.msra.mxu1 %v658_v24  ;;  %5083 = vmatprep.subr.mxu0 %v4386_v25  ;;  %v649_v42 = vld [vmem:[%s7734_s3 + $0x18] sm:$0xff]  ;;  %v648_v44 = vld [vmem:[%s7734_s3 + $0x10] sm:$0xff]  ;;  %v4376_v45 = vld [vmem:[%s7734_s3 + $0x88] sm:$0xff] }
  0x50   : > { %5142 = vmatprep.subr.mxu1 %v657_v26  ;;  %5084 = vmatpush3.msra.mxu0 %v4386_v25  ;;  %v647_v46 = vld [vmem:[%s7734_s3 + $0x8] sm:$0xff]  ;;  %v4375_v47 = vld [vmem:[%s7734_s3 + $0x80] sm:$0xff]  ;;  %v662_v49 = vld [vmem:[#allocation2 + $0x18] sm:$0xff] }
  0x51   : > { %5143 = vmatpush3.msra.mxu1 %v657_v26  ;;  %5085 = vmatprep.subr.mxu0 %v4385_v27  ;;  %v646_v48 = vld [vmem:[%s7734_s3] sm:$0xff]  ;;  %v628_v50 = vld [vmem:[#allocation2 + $0x17] sm:$0xff]  ;;  %v664_v54 = vld [vmem:[#allocation2 + $0x28] sm:$0xff] }
  0x52   : > { %5144 = vmatprep.subr.mxu1 %v656_v28  ;;  %5086 = vmatpush3.msra.mxu0 %v4385_v27  ;;  %v663_v51 = vld [vmem:[#allocation2 + $0x20] sm:$0xff]  ;;  %v4406_v53 = vld [vmem:[%s7734_s3 + $0x178] sm:$0xff]  ;;  %v4405_v56 = vld [vmem:[%s7734_s3 + $0x170] sm:$0xff] }
  0x53   : > { %5145 = vmatpush3.msra.mxu1 %v656_v28  ;;  %5087 = vmatprep.subr.mxu0 %v4384_v29  ;;  %v629_v52 = vld [vmem:[#allocation2 + $0x1f] sm:$0xff]  ;;  %v630_v55 = vld [vmem:[#allocation2 + $0x27] sm:$0xff]  ;;  %v6508_v58 = vld [vmem:[#allocation2 + $0x30] sm:$0xff] }
  0x54   : > { %5146 = vmatprep.subr.mxu1 %v655_v30  ;;  %5088 = vmatpush3.msra.mxu0 %v4384_v29  ;;  %v4422_v57 = vld [vmem:[%s7734_s3 + $0x1f8] sm:$0xff]  ;;  %v6510_v59 = vld [vmem:[#allocation2 + $0x2f] sm:$0xff]  ;;  %v4403_v63 = vld [vmem:[%s7734_s3 + $0x160] sm:$0xff] }
  0x55   : > { %5147 = vmatpush3.msra.mxu1 %v655_v30  ;;  %5089 = vmatprep.subr.mxu0 %v4383_v31  ;;  %v6512_v60 = vld [vmem:[#allocation2 + $0x38] sm:$0xff]  ;;  %v4404_v61 = vld [vmem:[%s7734_s3 + $0x168] sm:$0xff]  ;;  %v6525_v0 = vld [vmem:[#allocation2 + $0x40] sm:$0xff] }
  0x56   : > { %5148 = vmatprep.subr.mxu1 %v654_v32  ;;  %5090 = vmatpush3.msra.mxu0 %v4383_v31  ;;  %v6517_v62 = vld [vmem:[#allocation2 + $0x37] sm:$0xff]  ;;  %v6528_v1 = vld [vmem:[#allocation2 + $0x3f] sm:$0xff]  ;;  %v4420_v4 = vld [vmem:[%s7734_s3 + $0x1e8] sm:$0xff] }
  0x57   : > { %5149 = vmatpush3.msra.mxu1 %v654_v32  ;;  %5091 = vmatprep.subr.mxu0 %v4382_v33  ;;  %v4421_v2 = vld [vmem:[%s7734_s3 + $0x1f0] sm:$0xff]  ;;  %v4402_v3 = vld [vmem:[%s7734_s3 + $0x158] sm:$0xff]  ;;  %v6541_v5 = vld [vmem:[#allocation2 + $0x48] sm:$0xff] }
  0x58   : > { %5150 = vmatprep.subr.mxu1 %v653_v34  ;;  %5092 = vmatpush3.msra.mxu0 %v4382_v33  ;;  %v6543_v6 = vld [vmem:[#allocation2 + $0x47] sm:$0xff]  ;;  %v6545_v7 = vld [vmem:[#allocation2 + $0x50] sm:$0xff]  ;;  %v4418_v12 = vld [vmem:[%s7734_s3 + $0x1d8] sm:$0xff] }
  0x59   : > { %5151 = vmatpush3.msra.mxu1 %v653_v34  ;;  %5093 = vmatprep.subr.mxu0 %v4381_v35  ;;  %v6547_v8 = vld [vmem:[#allocation2 + $0x4f] sm:$0xff]  ;;  %v4419_v10 = vld [vmem:[%s7734_s3 + $0x1e0] sm:$0xff]  ;;  %v6565_v13 = vld [vmem:[#allocation2 + $0x58] sm:$0xff] }
  0x5a   : > { %5152 = vmatprep.subr.mxu1 %v652_v36  ;;  %5094 = vmatpush3.msra.mxu0 %v4381_v35  ;;  %v4401_v9 = vld [vmem:[%s7734_s3 + $0x150] sm:$0xff]  ;;  %v4400_v11 = vld [vmem:[%s7734_s3 + $0x148] sm:$0xff]  ;;  %v6569_v15 = vld [vmem:[#allocation2 + $0x60] sm:$0xff] }
  0x5b   : > { %5153 = vmatpush3.msra.mxu1 %v652_v36  ;;  %5095 = vmatprep.subr.mxu0 %v4380_v37  ;;  %v6567_v14 = vld [vmem:[#allocation2 + $0x57] sm:$0xff]  ;;  %v6571_v16 = vld [vmem:[#allocation2 + $0x5f] sm:$0xff]  ;;  %v4416_v20 = vld [vmem:[%s7734_s3 + $0x1c8] sm:$0xff] }
  0x5c   : > { %5154 = vmatprep.subr.mxu1 %v651_v38  ;;  %5096 = vmatpush3.msra.mxu0 %v4380_v37  ;;  %v4399_v17 = vld [vmem:[%s7734_s3 + $0x140] sm:$0xff]  ;;  %v4417_v18 = vld [vmem:[%s7734_s3 + $0x1d0] sm:$0xff]  ;;  %v4398_v19 = vld [vmem:[%s7734_s3 + $0x138] sm:$0xff] }
  0x5d   : > { %5155 = vmatpush3.msra.mxu1 %v651_v38  ;;  %5097 = vmatprep.subr.mxu0 %v4379_v39  ;;  %v6589_v21 = vld [vmem:[#allocation2 + $0x68] sm:$0xff]  ;;  %v6593_v23 = vld [vmem:[#allocation2 + $0x70] sm:$0xff]  ;;  %v4415_v25 = vld [vmem:[%s7734_s3 + $0x1c0] sm:$0xff] }
  0x5e   : > { %5156 = vmatprep.subr.mxu1 %v650_v40  ;;  %5098 = vmatpush3.msra.mxu0 %v4379_v39  ;;  %v6591_v22 = vld [vmem:[#allocation2 + $0x67] sm:$0xff]  ;;  %v6595_v24 = vld [vmem:[#allocation2 + $0x6f] sm:$0xff]  ;;  %v4414_v27 = vld [vmem:[%s7734_s3 + $0x1b8] sm:$0xff] }
  0x5f   : > { %5157 = vmatpush3.msra.mxu1 %v650_v40  ;;  %5099 = vmatprep.subr.mxu0 %v4378_v41  ;;  %v4397_v26 = vld [vmem:[%s7734_s3 + $0x130] sm:$0xff]  ;;  %v6610_v28 = vld [vmem:[#allocation2 + $0x78] sm:$0xff]  ;;  %v4396_v30 = vld [vmem:[%s7734_s3 + $0x128] sm:$0xff] }
  0x60   : > { %5158 = vmatprep.subr.mxu1 %v649_v42  ;;  %5100 = vmatpush3.msra.mxu0 %v4378_v41  ;;  %v6612_v29 = vld [vmem:[#allocation2 + $0x77] sm:$0xff]  ;;  %v6617_v31 = vld [vmem:[#allocation2 + $0x80] sm:$0xff]  ;;  %v4412_v35 = vld [vmem:[%s7734_s3 + $0x1a8] sm:$0xff] }
  0x61   : > { %5159 = vmatpush3.msra.mxu1 %v649_v42  ;;  %5101 = vmatprep.subr.mxu0 %v4377_v43  ;;  %v6620_v32 = vld [vmem:[#allocation2 + $0x7f] sm:$0xff]  ;;  %v4413_v33 = vld [vmem:[%s7734_s3 + $0x1b0] sm:$0xff]  ;;  %v6634_v36 = vld [vmem:[#allocation2 + $0x88] sm:$0xff] }
  0x62   : > { %5160 = vmatprep.subr.mxu1 %v648_v44  ;;  %5102 = vmatpush3.msra.mxu0 %v4377_v43  ;;  %v4395_v34 = vld [vmem:[%s7734_s3 + $0x120] sm:$0xff]  ;;  %v4394_v38 = vld [vmem:[%s7734_s3 + $0x118] sm:$0xff]  ;;  %v6641_v39 = vld [vmem:[#allocation2 + $0x90] sm:$0xff] }
  0x63   : > { %5161 = vmatpush3.msra.mxu1 %v648_v44  ;;  %5103 = vmatprep.subr.mxu0 %v4376_v45  ;;  %v6636_v37 = vld [vmem:[#allocation2 + $0x87] sm:$0xff]  ;;  %v6644_v40 = vld [vmem:[#allocation2 + $0x8f] sm:$0xff]  ;;  %v6654_v43 = vld [vmem:[#allocation2 + $0x98] sm:$0xff] }
  0x64   : > { %5162 = vmatprep.subr.mxu1 %v647_v46  ;;  %5104 = vmatpush3.msra.mxu0 %v4376_v45  ;;  %v4411_v41 = vld [vmem:[%s7734_s3 + $0x1a0] sm:$0xff]  ;;  %v4393_v42 = vld [vmem:[%s7734_s3 + $0x110] sm:$0xff]  ;;  %v4410_v44 = vld [vmem:[%s7734_s3 + $0x198] sm:$0xff] }
  0x65   : > { %5163 = vmatpush3.msra.mxu1 %v647_v46  ;;  %5105 = vmatprep.subr.mxu0 %v4375_v47  ;;  %v6660_v45 = vld [vmem:[#allocation2 + $0x97] sm:$0xff]  ;;  %v6663_v46 = vld [vmem:[#allocation2 + $0xa0] sm:$0xff] }
  0x66   : > { %5164 = vmatprep.subr.mxu1 %v646_v48  ;;  %5106 = vmatpush3.msra.mxu0 %v4375_v47  ;;  %v6665_v47 = vld [vmem:[#allocation2 + $0x9f] sm:$0xff] }
  0x67   : > { %5107 = vmatprep.mubr.f32.mxu0 %v662_v49  ;;  %5165 = vmatpush3.msra.mxu1 %v646_v48  ;;  %v4392_v48 = vld [vmem:[%s7734_s3 + $0x108] sm:$0xff]  ;;  %v4409_v49 = vld [vmem:[%s7734_s3 + $0x190] sm:$0xff] }
  0x68   : > { %5166 = vmatprep.mubr.f32.mxu1 %v628_v50  ;;  %5108 = vmatmul.mubr.f32.vlgmr.msra.gmra.mxu0 %v663_v51  ;;  %v4391_v50 = vld [vmem:[%s7734_s3 + $0x100] sm:$0xff]  ;;  %v4408_v51 = vld [vmem:[%s7734_s3 + $0x188] sm:$0xff] }
  0x69   : > { %5167 = vmatmul.mubr.f32.vlgmr.msra.gmra.mxu1 %v629_v52  ;;  %5193 = vmatprep.subr.mxu0 %v4406_v53  ;;  %v1007_v52 = vld [vmem:[#allocation2 + $0x19] sm:$0xff] }
  0x6a   : > { %5110 = vmatprep.mubr.f32.mxu0 %v664_v54  ;;  %5194 = vmatpush3.msra.mxu0 %v4406_v53  ;;  %v1008_v53 = vld [vmem:[#allocation2 + $0x21] sm:$0xff] }
  0x6b   : > { %5169 = vmatprep.mubr.f32.mxu1 %v630_v55  ;;  %5195 = vmatprep.subr.mxu0 %v4405_v56  ;;  %v4407_v54 = vld [vmem:[%s7734_s3 + $0x180] sm:$0xff]  ;;  %v4438_v55 = vld [vmem:[%s7734_s3 + $0x278] sm:$0xff] }
  0x6c   : > { %5252 = vmatprep.subr.mxu1 %v4422_v57  ;;  %5111 = vmatmul.mubr.f32.gmra.mxu0 %v6508_v58 }
  0x6d   : > { %5170 = vmatmul.mubr.f32.gmra.mxu1 %v6510_v59  ;;  %5196 = vmatpush3.msra.mxu0 %v4405_v56  ;;  %v1009_v56 = vld [vmem:[#allocation2 + $0x29] sm:$0xff] }
  0x6e   : > { %5113 = vmatprep.mubr.f32.mxu0 %v6512_v60  ;;  %5197 = vmatprep.subr.mxu0 %v4404_v61 }
  0x6f   : > { %5172 = vmatprep.mubr.f32.mxu1 %v6517_v62  ;;  %5198 = vmatpush3.msra.mxu0 %v4404_v61  ;;  %v6692_v61 = vld [vmem:[#allocation2 + $0x31] sm:$0xff] }
  0x70   : > { %5253 = vmatpush3.msra.mxu1 %v4422_v57  ;;  %5199 = vmatprep.subr.mxu0 %v4403_v63  ;;  %v4437_v57 = vld [vmem:[%s7734_s3 + $0x270] sm:$0xff] }
  0x71   : > { %5114 = vmatmul.mubr.f32.gmra.mxu0 %v6525_v0  ;;  %5173 = vmatmul.mubr.f32.gmra.mxu1 %v6528_v1 }
  0x72   : > { %5200 = vmatpush3.msra.mxu0 %v4403_v63  ;;  %5254 = vmatprep.subr.mxu1 %v4421_v2  ;;  %v4454_v63 = vld [vmem:[%s7734_s3 + $0x2f8] sm:$0xff] }
  0x73   : > { %5201 = vmatprep.subr.mxu0 %v4402_v3  ;;  %5255 = vmatpush3.msra.mxu1 %v4421_v2  ;;  %v4436_v2 = vld [vmem:[%s7734_s3 + $0x268] sm:$0xff] }
  0x74   : > { %5202 = vmatpush3.msra.mxu0 %v4402_v3  ;;  %5256 = vmatprep.subr.mxu1 %v4420_v4  ;;  %v6709_v3 = vld [vmem:[#allocation2 + $0x41] sm:$0xff] }
  0x75   : > { %5116 = vmatprep.mubr.f32.mxu0 %v6541_v5  ;;  %5175 = vmatprep.mubr.f32.mxu1 %v6543_v6 }
  0x76   : > { %5257 = vmatpush3.msra.mxu1 %v4420_v4  ;;  %5117 = vmatmul.mubr.f32.gmra.mxu0 %v6545_v7  ;;  %v4453_v4 = vld [vmem:[%s7734_s3 + $0x2f0] sm:$0xff] }
  0x77   : > { %5176 = vmatmul.mubr.f32.gmra.mxu1 %v6547_v8  ;;  %5203 = vmatprep.subr.mxu0 %v4401_v9 }
  0x78   : > { %5258 = vmatprep.subr.mxu1 %v4419_v10  ;;  %5204 = vmatpush3.msra.mxu0 %v4401_v9  ;;  %v4452_v9 = vld [vmem:[%s7734_s3 + $0x2e8] sm:$0xff] }
  0x79   : > { %5259 = vmatpush3.msra.mxu1 %v4419_v10  ;;  %5205 = vmatprep.subr.mxu0 %v4400_v11  ;;  %v6723_v10 = vld [vmem:[#allocation2 + $0x49] sm:$0xff] }
  0x7a   : > { %5260 = vmatprep.subr.mxu1 %v4418_v12  ;;  %5119 = vmatprep.mubr.f32.mxu0 %v6565_v13 }
  0x7b   : > { %5178 = vmatprep.mubr.f32.mxu1 %v6567_v14  ;;  %5206 = vmatpush3.msra.mxu0 %v4400_v11  ;;  %v6725_v11 = vld [vmem:[#allocation2 + $0x51] sm:$0xff] }
  0x7c   : > { %5261 = vmatpush3.msra.mxu1 %v4418_v12  ;;  %5120 = vmatmul.mubr.f32.gmra.mxu0 %v6569_v15  ;;  %v4433_v12 = vld [vmem:[%s7734_s3 + $0x250] sm:$0xff] }
  0x7d   : > { %5179 = vmatmul.mubr.f32.gmra.mxu1 %v6571_v16  ;;  %5207 = vmatprep.subr.mxu0 %v4399_v17 }
  0x7e   : > { %5262 = vmatprep.subr.mxu1 %v4417_v18  ;;  %5208 = vmatpush3.msra.mxu0 %v4399_v17  ;;  %v4451_v17 = vld [vmem:[%s7734_s3 + $0x2e0] sm:$0xff] }
  0x7f   : > { %5263 = vmatpush3.msra.mxu1 %v4417_v18  ;;  %5209 = vmatprep.subr.mxu0 %v4398_v19  ;;  %v4432_v18 = vld [vmem:[%s7734_s3 + $0x248] sm:$0xff] }
  0x80   : > { %5264 = vmatprep.subr.mxu1 %v4416_v20  ;;  %5122 = vmatprep.mubr.f32.mxu0 %v6589_v21 }
  0x81   : > { %5181 = vmatprep.mubr.f32.mxu1 %v6591_v22  ;;  %5210 = vmatpush3.msra.mxu0 %v4398_v19  ;;  %v4450_v19 = vld [vmem:[%s7734_s3 + $0x2d8] sm:$0xff] }
  0x82   : > { %5265 = vmatpush3.msra.mxu1 %v4416_v20  ;;  %5123 = vmatmul.mubr.f32.gmra.mxu0 %v6593_v23  ;;  %v6743_v20 = vld [vmem:[#allocation2 + $0x59] sm:$0xff] }
  0x83   : > { %5182 = vmatmul.mubr.f32.gmra.mxu1 %v6595_v24  ;;  %5266 = vmatprep.subr.mxu1 %v4415_v25 }
  0x84   : > { %5211 = vmatprep.subr.mxu0 %v4397_v26  ;;  %5267 = vmatpush3.msra.mxu1 %v4415_v25  ;;  %v6745_v25 = vld [vmem:[#allocation2 + $0x61] sm:$0xff] }
  0x85   : > { %5212 = vmatpush3.msra.mxu0 %v4397_v26  ;;  %5268 = vmatprep.subr.mxu1 %v4414_v27  ;;  %v4431_v26 = vld [vmem:[%s7734_s3 + $0x240] sm:$0xff] }
  0x86   : > { %5125 = vmatprep.mubr.f32.mxu0 %v6610_v28  ;;  %5184 = vmatprep.mubr.f32.mxu1 %v6612_v29 }
  0x87   : > { %5213 = vmatprep.subr.mxu0 %v4396_v30  ;;  %5269 = vmatpush3.msra.mxu1 %v4414_v27  ;;  %v4449_v27 = vld [vmem:[%s7734_s3 + $0x2d0] sm:$0xff] }
  0x88   : > { %5126 = vmatmul.mubr.f32.gmra.mxu0 %v6617_v31  ;;  %5185 = vmatmul.mubr.f32.gmra.mxu1 %v6620_v32 }
  0x89   : > { %5214 = vmatpush3.msra.mxu0 %v4396_v30  ;;  %5270 = vmatprep.subr.mxu1 %v4413_v33  ;;  %v4430_v30 = vld [vmem:[%s7734_s3 + $0x238] sm:$0xff] }
  0x8a   : > { %5215 = vmatprep.subr.mxu0 %v4395_v34  ;;  %5271 = vmatpush3.msra.mxu1 %v4413_v33  ;;  %v4448_v33 = vld [vmem:[%s7734_s3 + $0x2c8] sm:$0xff] }
  0x8b   : > { %5216 = vmatpush3.msra.mxu0 %v4395_v34  ;;  %5272 = vmatprep.subr.mxu1 %v4412_v35  ;;  %v6763_v34 = vld [vmem:[#allocation2 + $0x69] sm:$0xff] }
  0x8c   : > { %5128 = vmatprep.mubr.f32.mxu0 %v6634_v36  ;;  %5187 = vmatprep.mubr.f32.mxu1 %v6636_v37 }
  0x8d   : > { %5217 = vmatprep.subr.mxu0 %v4394_v38  ;;  %5273 = vmatpush3.msra.mxu1 %v4412_v35  ;;  %v6765_v35 = vld [vmem:[#allocation2 + $0x71] sm:$0xff] }
  0x8e   : > { %5129 = vmatmul.mubr.f32.gmra.mxu0 %v6641_v39  ;;  %5188 = vmatmul.mubr.f32.gmra.mxu1 %v6644_v40 }
  0x8f   : > { %5218 = vmatpush3.msra.mxu0 %v4394_v38  ;;  %5274 = vmatprep.subr.mxu1 %v4411_v41  ;;  %v4447_v38 = vld [vmem:[%s7734_s3 + $0x2c0] sm:$0xff] }
  0x90   : > { %5219 = vmatprep.subr.mxu0 %v4393_v42  ;;  %5275 = vmatpush3.msra.mxu1 %v4411_v41  ;;  %v4429_v41 = vld [vmem:[%s7734_s3 + $0x230] sm:$0xff] }
  0x91   : > { %5131 = vmatprep.mubr.f32.mxu0 %v6654_v43  ;;  %5276 = vmatprep.subr.mxu1 %v4410_v44 }
  0x92   : > { %5190 = vmatprep.mubr.f32.mxu1 %v6660_v45  ;;  %5220 = vmatpush3.msra.mxu0 %v4393_v42  ;;  %v4446_v42 = vld [vmem:[%s7734_s3 + $0x2b8] sm:$0xff] }
  0x93   : > { %5277 = vmatpush3.msra.mxu1 %v4410_v44  ;;  %5132 = vmatmul.mubr.f32.gmra.mxu0 %v6663_v46  ;;  %v6780_v44 = vld [vmem:[#allocation2 + $0x79] sm:$0xff] }
  0x94   : > { %5191 = vmatmul.mubr.f32.gmra.mxu1 %v6665_v47  ;;  %5221 = vmatprep.subr.mxu0 %v4392_v48 }
  0x95   : > { %5278 = vmatprep.subr.mxu1 %v4409_v49  ;;  %5222 = vmatpush3.msra.mxu0 %v4392_v48  ;;  %v4428_v48 = vld [vmem:[%s7734_s3 + $0x228] sm:$0xff] }
  0x96   : > { %5279 = vmatpush3.msra.mxu1 %v4409_v49  ;;  %5223 = vmatprep.subr.mxu0 %v4391_v50  ;;  %v6786_v49 = vld [vmem:[#allocation2 + $0x81] sm:$0xff] }
  0x97   : > { %5280 = vmatprep.subr.mxu1 %v4408_v51  ;;  %5224 = vmatpush3.msra.mxu0 %v4391_v50  ;;  %v4445_v50 = vld [vmem:[%s7734_s3 + $0x2b0] sm:$0xff] }
  0x98   : > { %5225 = vmatprep.mubr.f32.mxu0 %v1007_v52  ;;  %5281 = vmatpush3.msra.mxu1 %v4408_v51  ;;  %v4427_v51 = vld [vmem:[%s7734_s3 + $0x220] sm:$0xff]  ;;  %v4444_v52 = vld [vmem:[%s7734_s3 + $0x2a8] sm:$0xff] }
  0x99   : > { %5226 = vmatmul.mubr.f32.vlgmr.msra.gmra.mxu0 %v1008_v53  ;;  %5282 = vmatprep.subr.mxu1 %v4407_v54  ;;  %v6800_v53 = vld [vmem:[#allocation2 + $0x89] sm:$0xff] }
  0x9a   : > { %5311 = vmatprep.subr.mxu0 %v4438_v55  ;;  %5283 = vmatpush3.msra.mxu1 %v4407_v54  ;;  %v4426_v54 = vld [vmem:[%s7734_s3 + $0x218] sm:$0xff] }
  0x9b   : > { %5284 = vmatprep.mubr.f32.mxu1 %v6510_v59  ;;  %5312 = vmatpush3.msra.mxu0 %v4438_v55  ;;  %v6703_v59 = vld [vmem:[#allocation2 + $0x39] sm:$0xff]  ;;  %v6806_v55 = vld [vmem:[#allocation2 + $0x91] sm:$0xff] }
  0x9c   : > { %5285 = vmatmul.mubr.f32.vlgmr.msra.gmra.mxu1 %v6517_v62  ;;  %5228 = vmatprep.mubr.f32.mxu0 %v1009_v56  ;;  %v4435_v62 = vld [vmem:[%s7734_s3 + $0x260] sm:$0xff] }
  0x9d   : > { %5313 = vmatprep.subr.mxu0 %v4437_v57  ;;  %5229 = vmatmul.mubr.f32.gmra.mxu0 %v6692_v61  ;;  %v4443_v56 = vld [vmem:[%s7734_s3 + $0x2a0] sm:$0xff] }
  0x9e   : > { %5287 = vmatprep.mubr.f32.mxu1 %v6528_v1  ;;  %5314 = vmatpush3.msra.mxu0 %v4437_v57  ;;  %v4434_v1 = vld [vmem:[%s7734_s3 + $0x258] sm:$0xff]  ;;  %v4425_v57 = vld [vmem:[%s7734_s3 + $0x210] sm:$0xff] }
  0x9f   : > { %5370 = vmatprep.subr.mxu1 %v4454_v63  ;;  %5315 = vmatprep.subr.mxu0 %v4436_v2 }
  0xa0   : > { %5288 = vmatmul.mubr.f32.gmra.mxu1 %v6543_v6  ;;  %5316 = vmatpush3.msra.mxu0 %v4436_v2  ;;  %v4442_v2 = vld [vmem:[%s7734_s3 + $0x298] sm:$0xff] }
  0xa1   : > { %5231 = vmatprep.mubr.f32.mxu0 %v6703_v59  ;;  %5317 = vmatprep.subr.mxu0 %v4435_v62 }
  0xa2   : > { %5371 = vmatpush3.msra.mxu1 %v4454_v63  ;;  %5232 = vmatmul.mubr.f32.gmra.mxu0 %v6709_v3  ;;  %v6816_v63 = vld [vmem:[#allocation2 + $0xa7] sm:$0xff] }
  0xa3   : > { %5372 = vmatprep.subr.mxu1 %v4453_v4  ;;  %5318 = vmatpush3.msra.mxu0 %v4435_v62  ;;  %v6822_v62 = vld [vmem:[#allocation2 + $0x99] sm:$0xff] }
  0xa4   : > { %5290 = vmatprep.mubr.f32.mxu1 %v6547_v8  ;;  %5319 = vmatprep.subr.mxu0 %v4434_v1 }
  0xa5   : > { %5373 = vmatpush3.msra.mxu1 %v4453_v4  ;;  %5320 = vmatpush3.msra.mxu0 %v4434_v1  ;;  %v6824_v4 = vld [vmem:[#allocation2 + $0xa1] sm:$0xff] }
  0xa6   : > { %5291 = vmatmul.mubr.f32.gmra.mxu1 %v6567_v14  ;;  %5374 = vmatprep.subr.mxu1 %v4452_v9  ;;  %v4424_v1 = vld [vmem:[%s7734_s3 + $0x208] sm:$0xff] }
  0xa7   : > { %5234 = vmatprep.mubr.f32.mxu0 %v6723_v10  ;;  %5375 = vmatpush3.msra.mxu1 %v4452_v9  ;;  %v4441_v9 = vld [vmem:[%s7734_s3 + $0x290] sm:$0xff] }
  0xa8   : > { %5235 = vmatmul.mubr.f32.gmra.mxu0 %v6725_v11  ;;  %5321 = vmatprep.subr.mxu0 %v4433_v12 }
  0xa9   : > { %5376 = vmatprep.subr.mxu1 %v4451_v17  ;;  %5293 = vmatprep.mubr.f32.mxu1 %v6571_v16 }
  0xaa   : > { %5322 = vmatpush3.msra.mxu0 %v4433_v12  ;;  %5377 = vmatpush3.msra.mxu1 %v4451_v17  ;;  %v6834_v12 = vld [vmem:[#allocation2 + $0xaf] sm:$0xff]  ;;  %v4423_v17 = vld [vmem:[%s7734_s3 + $0x200] sm:$0xff] }
  0xab   : > { %5323 = vmatprep.subr.mxu0 %v4432_v18  ;;  %5294 = vmatmul.mubr.f32.gmra.mxu1 %v6591_v22 }
  0xac   : > { %5378 = vmatprep.subr.mxu1 %v4450_v19  ;;  %5237 = vmatprep.mubr.f32.mxu0 %v6743_v20 }
  0xad   : > { %5324 = vmatpush3.msra.mxu0 %v4432_v18  ;;  %5379 = vmatpush3.msra.mxu1 %v4450_v19  ;;  %v6840_v18 = vld [vmem:[#allocation2 + $0xb7] sm:$0xff]  ;;  %v4440_v19 = vld [vmem:[%s7734_s3 + $0x288] sm:$0xff] }
  0xae   : > { %5238 = vmatmul.mubr.f32.gmra.mxu0 %v6745_v25  ;;  %5325 = vmatprep.subr.mxu0 %v4431_v26 }
  0xaf   : > { %5380 = vmatprep.subr.mxu1 %v4449_v27  ;;  %5296 = vmatprep.mubr.f32.mxu1 %v6595_v24 }
  0xb0   : > { %5326 = vmatpush3.msra.mxu0 %v4431_v26  ;;  %5381 = vmatpush3.msra.mxu1 %v4449_v27  ;;  %v4439_v26 = vld [vmem:[%s7734_s3 + $0x280] sm:$0xff]  ;;  %v4470_v27 = vld [vmem:[%s7734_s3 + $0x378] sm:$0xff] }
  0xb1   : > { %5327 = vmatprep.subr.mxu0 %v4430_v30  ;;  %5297 = vmatmul.mubr.f32.gmra.mxu1 %v6612_v29 }
  0xb2   : > { %5382 = vmatprep.subr.mxu1 %v4448_v33  ;;  %5240 = vmatprep.mubr.f32.mxu0 %v6763_v34 }
  0xb3   : > { %5328 = vmatpush3.msra.mxu0 %v4430_v30  ;;  %5383 = vmatpush3.msra.mxu1 %v4448_v33  ;;  %v4469_v30 = vld [vmem:[%s7734_s3 + $0x370] sm:$0xff]  ;;  %v4486_v33 = vld [vmem:[%s7734_s3 + $0x3f8] sm:$0xff] }
  0xb4   : > { %5241 = vmatmul.mubr.f32.gmra.mxu0 %v6765_v35  ;;  %5384 = vmatprep.subr.mxu1 %v4447_v38 }
  0xb5   : > { %5299 = vmatprep.mubr.f32.mxu1 %v6620_v32  ;;  %5329 = vmatprep.subr.mxu0 %v4429_v41 }
  0xb6   : > { %5385 = vmatpush3.msra.mxu1 %v4447_v38  ;;  %5330 = vmatpush3.msra.mxu0 %v4429_v41  ;;  %v4483_v38 = vld [vmem:[%s7734_s3 + $0x3e0] sm:$0xff]  ;;  %v4464_v41 = vld [vmem:[%s7734_s3 + $0x348] sm:$0xff] }
  0xb7   : > { %5300 = vmatmul.mubr.f32.gmra.mxu1 %v6636_v37  ;;  %5386 = vmatprep.subr.mxu1 %v4446_v42 }
  0xb8   : > { %5243 = vmatprep.mubr.f32.mxu0 %v6780_v44  ;;  %5331 = vmatprep.subr.mxu0 %v4428_v48 }
  0xb9   : > { %5387 = vmatpush3.msra.mxu1 %v4446_v42  ;;  %5244 = vmatmul.mubr.f32.gmra.mxu0 %v6786_v49  ;;  %v4482_v42 = vld [vmem:[%s7734_s3 + $0x3d8] sm:$0xff] }
  0xba   : > { %5388 = vmatprep.subr.mxu1 %v4445_v50  ;;  %5332 = vmatpush3.msra.mxu0 %v4428_v48  ;;  %v4463_v48 = vld [vmem:[%s7734_s3 + $0x340] sm:$0xff] }
  0xbb   : > { %5302 = vmatprep.mubr.f32.mxu1 %v6644_v40  ;;  %5333 = vmatprep.subr.mxu0 %v4427_v51 }
  0xbc   : > { %5389 = vmatpush3.msra.mxu1 %v4445_v50  ;;  %5334 = vmatpush3.msra.mxu0 %v4427_v51  ;;  %v4481_v50 = vld [vmem:[%s7734_s3 + $0x3d0] sm:$0xff]  ;;  %v4462_v51 = vld [vmem:[%s7734_s3 + $0x338] sm:$0xff] }
  0xbd   : > { %5303 = vmatmul.mubr.f32.gmra.mxu1 %v6660_v45  ;;  %5390 = vmatprep.subr.mxu1 %v4444_v52 }
  0xbe   : > { %5246 = vmatprep.mubr.f32.mxu0 %v6800_v53  ;;  %5335 = vmatprep.subr.mxu0 %v4426_v54 }
  0xbf   : > { %5391 = vmatpush3.msra.mxu1 %v4444_v52  ;;  %5247 = vmatmul.mubr.f32.gmra.mxu0 %v6806_v55  ;;  %v4480_v52 = vld [vmem:[%s7734_s3 + $0x3c8] sm:$0xff] }
  0xc0   : > { %5392 = vmatprep.subr.mxu1 %v4443_v56  ;;  %5336 = vmatpush3.msra.mxu0 %v4426_v54  ;;  %v4479_v54 = vld [vmem:[%s7734_s3 + $0x3c0] sm:$0xff] }
  0xc1   : > { %5305 = vmatprep.mubr.f32.mxu1 %v6665_v47  ;;  %5393 = vmatpush3.msra.mxu1 %v4443_v56  ;;  %v4461_v56 = vld [vmem:[%s7734_s3 + $0x330] sm:$0xff] }
  0xc2   : > { %5337 = vmatprep.subr.mxu0 %v4425_v57  ;;  %5306 = vmatmul.mubr.f32.gmra.mxu1 %v6816_v63 }
  0xc3   : > { %5394 = vmatprep.subr.mxu1 %v4442_v2  ;;  %5249 = vmatprep.mubr.f32.mxu0 %v6822_v62 }
  0xc4   : > { %5338 = vmatpush3.msra.mxu0 %v4425_v57  ;;  %5395 = vmatpush3.msra.mxu1 %v4442_v2  ;;  %v4478_v57 = vld [vmem:[%s7734_s3 + $0x3b8] sm:$0xff]  ;;  %v4460_v2 = vld [vmem:[%s7734_s3 + $0x328] sm:$0xff] }
  0xc5   : > { %5250 = vmatmul.mubr.f32.gmra.mxu0 %v6824_v4  ;;  %5339 = vmatprep.subr.mxu0 %v4424_v1 }
  0xc6   : > { %5396 = vmatprep.subr.mxu1 %v4441_v9  ;;  %5308 = vmatprep.mubr.f32.mxu1 %v6834_v12 }
  0xc7   : > { %5340 = vmatpush3.msra.mxu0 %v4424_v1  ;;  %5397 = vmatpush3.msra.mxu1 %v4441_v9  ;;  %v4477_v1 = vld [vmem:[%s7734_s3 + $0x3b0] sm:$0xff]  ;;  %v4459_v9 = vld [vmem:[%s7734_s3 + $0x320] sm:$0xff] }
  0xc8   : > { %5341 = vmatprep.subr.mxu0 %v4423_v17  ;;  %5309 = vmatmul.mubr.f32.gmra.mxu1 %v6840_v18 }
  0xc9   : > { %5398 = vmatprep.subr.mxu1 %v4440_v19  ;;  %5342 = vmatpush3.msra.mxu0 %v4423_v17  ;;  %v4476_v17 = vld [vmem:[%s7734_s3 + $0x3a8] sm:$0xff] }
  0xca   : > { %5343 = vmatprep.mubr.f32.mxu0 %v6508_v58  ;;  %5399 = vmatpush3.msra.mxu1 %v4440_v19  ;;  %v4468_v58 = vld [vmem:[%s7734_s3 + $0x368] sm:$0xff]  ;;  %v4458_v19 = vld [vmem:[%s7734_s3 + $0x318] sm:$0xff] }
  0xcb   : > { %5344 = vmatmul.mubr.f32.vlgmr.msra.gmra.mxu0 %v6512_v60  ;;  %5400 = vmatprep.subr.mxu1 %v4439_v26  ;;  %v4467_v60 = vld [vmem:[%s7734_s3 + $0x360] sm:$0xff] }
  0xcc   : > { %5429 = vmatprep.subr.mxu0 %v4470_v27  ;;  %5401 = vmatpush3.msra.mxu1 %v4439_v26  ;;  %v6950_v26 = vld [vmem:[#allocation2 + $0xa8] sm:$0xff] }
  0xcd   : > { %5402 = vmatprep.mubr.f32.mxu1 %v6692_v61  ;;  %5430 = vmatpush3.msra.mxu0 %v4470_v27  ;;  %v4466_v61 = vld [vmem:[%s7734_s3 + $0x358] sm:$0xff]  ;;  %v4475_v27 = vld [vmem:[%s7734_s3 + $0x3a0] sm:$0xff] }
  0xce   : > { %5403 = vmatmul.mubr.f32.vlgmr.msra.gmra.mxu1 %v6703_v59  ;;  %5346 = vmatprep.mubr.f32.mxu0 %v6525_v0  ;;  %v4485_v0 = vld [vmem:[%s7734_s3 + $0x3f0] sm:$0xff]  ;;  %v4484_v59 = vld [vmem:[%s7734_s3 + $0x3e8] sm:$0xff] }
  0xcf   : > { %5431 = vmatprep.subr.mxu0 %v4469_v30  ;;  %5347 = vmatmul.mubr.f32.gmra.mxu0 %v6541_v5 }
  0xd0   : > { %5405 = vmatprep.mubr.f32.mxu1 %v6709_v3  ;;  %5432 = vmatpush3.msra.mxu0 %v4469_v30  ;;  %v4465_v3 = vld [vmem:[%s7734_s3 + $0x350] sm:$0xff] }
  0xd1   : > { %5488 = vmatprep.subr.mxu1 %v4486_v33  ;;  %5433 = vmatprep.subr.mxu0 %v4468_v58  ;;  %v4457_v30 = vld [vmem:[%s7734_s3 + $0x310] sm:$0xff] }
  0xd2   : > { %5406 = vmatmul.mubr.f32.gmra.mxu1 %v6723_v10  ;;  %5434 = vmatpush3.msra.mxu0 %v4468_v58  ;;  %v4474_v58 = vld [vmem:[%s7734_s3 + $0x398] sm:$0xff] }
  0xd3   : > { %5349 = vmatprep.mubr.f32.mxu0 %v6545_v7  ;;  %5435 = vmatprep.subr.mxu0 %v4467_v60 }
  0xd4   : > { %5489 = vmatpush3.msra.mxu1 %v4486_v33  ;;  %5350 = vmatmul.mubr.f32.gmra.mxu0 %v6565_v13  ;;  %v6960_v33 = vld [vmem:[#allocation2 + $0xa9] sm:$0xff] }
  0xd5   : > { %5490 = vmatprep.subr.mxu1 %v4485_v0  ;;  %5436 = vmatpush3.msra.mxu0 %v4467_v60  ;;  %v6966_v60 = vld [vmem:[#allocation2 + $0xb0] sm:$0xff] }
  0xd6   : > { %5408 = vmatprep.mubr.f32.mxu1 %v6725_v11  ;;  %5437 = vmatprep.subr.mxu0 %v4466_v61 }
  0xd7   : > { %5491 = vmatpush3.msra.mxu1 %v4485_v0  ;;  %5438 = vmatpush3.msra.mxu0 %v4466_v61  ;;  %v6968_v0 = vld [vmem:[#allocation2 + $0xb8] sm:$0xff]  ;;  %v4456_v61 = vld [vmem:[%s7734_s3 + $0x308] sm:$0xff] }
  0xd8   : > { %5409 = vmatmul.mubr.f32.gmra.mxu1 %v6743_v20  ;;  %5492 = vmatprep.subr.mxu1 %v4484_v59 }
  0xd9   : > { %5352 = vmatprep.mubr.f32.mxu0 %v6569_v15  ;;  %5493 = vmatpush3.msra.mxu1 %v4484_v59  ;;  %v4473_v59 = vld [vmem:[%s7734_s3 + $0x390] sm:$0xff] }
  0xda   : > { %5353 = vmatmul.mubr.f32.gmra.mxu0 %v6589_v21  ;;  %5439 = vmatprep.subr.mxu0 %v4465_v3 }
  0xdb   : > { %5494 = vmatprep.subr.mxu1 %v4483_v38  ;;  %5411 = vmatprep.mubr.f32.mxu1 %v6745_v25 }
  0xdc   : > { %5440 = vmatpush3.msra.mxu0 %v4465_v3  ;;  %5495 = vmatpush3.msra.mxu1 %v4483_v38  ;;  %v6978_v3 = vld [vmem:[#allocation2 + $0xb1] sm:$0xff]  ;;  %v4455_v38 = vld [vmem:[%s7734_s3 + $0x300] sm:$0xff] }
  0xdd   : > { %5441 = vmatprep.subr.mxu0 %v4464_v41  ;;  %5412 = vmatmul.mubr.f32.gmra.mxu1 %v6763_v34 }
  0xde   : > { %5496 = vmatprep.subr.mxu1 %v4482_v42  ;;  %5355 = vmatprep.mubr.f32.mxu0 %v6593_v23 }
  0xdf   : > { %5442 = vmatpush3.msra.mxu0 %v4464_v41  ;;  %5497 = vmatpush3.msra.mxu1 %v4482_v42  ;;  %v6984_v41 = vld [vmem:[#allocation2 + $0xb9] sm:$0xff]  ;;  %v4472_v42 = vld [vmem:[%s7734_s3 + $0x388] sm:$0xff] }
  0xe0   : > { %5356 = vmatmul.mubr.f32.gmra.mxu0 %v6610_v28  ;;  %5443 = vmatprep.subr.mxu0 %v4463_v48 }
  0xe1   : > { %5498 = vmatprep.subr.mxu1 %v4481_v50  ;;  %5414 = vmatprep.mubr.f32.mxu1 %v6765_v35 }
  0xe2   : > { %5444 = vmatpush3.msra.mxu0 %v4463_v48  ;;  %5499 = vmatpush3.msra.mxu1 %v4481_v50  ;;  %v4471_v48 = vld [vmem:[%s7734_s3 + $0x380] sm:$0xff]  ;;  %v4502_v50 = vld [vmem:[%s7734_s3 + $0x478] sm:$0xff] }
  0xe3   : > { %5445 = vmatprep.subr.mxu0 %v4462_v51  ;;  %5415 = vmatmul.mubr.f32.gmra.mxu1 %v6780_v44 }
  0xe4   : > { %5500 = vmatprep.subr.mxu1 %v4480_v52  ;;  %5358 = vmatprep.mubr.f32.mxu0 %v6617_v31 }
  0xe5   : > { %5446 = vmatpush3.msra.mxu0 %v4462_v51  ;;  %5501 = vmatpush3.msra.mxu1 %v4480_v52  ;;  %v4501_v51 = vld [vmem:[%s7734_s3 + $0x470] sm:$0xff]  ;;  %v2536_v52 = vld [vmem:[%s7740_s9 + $0x28] sm:$0xff] }
  0xe6   : > { %5359 = vmatmul.mubr.f32.gmra.mxu0 %v6634_v36  ;;  %5502 = vmatprep.subr.mxu1 %v4479_v54  ;;  %vm2554_vm6 = vcmp.gt.f32.partialorder %v2536_v52, 0.5 }
  0xe7   : > { %5417 = vmatprep.mubr.f32.mxu1 %v6786_v49  ;;  %5447 = vmatprep.subr.mxu0 %v4461_v56 }
  0xe8   : > { %5503 = vmatpush3.msra.mxu1 %v4479_v54  ;;  %5448 = vmatpush3.msra.mxu0 %v4461_v56  ;;  %v2535_v54 = vld [vmem:[%s7740_s9 + $0x20] sm:$0xff] }
  0xe9   : > { %5418 = vmatmul.mubr.f32.gmra.mxu1 %v6800_v53  ;;  %5504 = vmatprep.subr.mxu1 %v4478_v57  ;;  %vm2553_vm7 = vcmp.gt.f32.partialorder %v2535_v54, 0.5 }
  0xea   : > { %5361 = vmatprep.mubr.f32.mxu0 %v6641_v39  ;;  %5449 = vmatprep.subr.mxu0 %v4460_v2 }
  0xeb   : > { %5505 = vmatpush3.msra.mxu1 %v4478_v57  ;;  %5362 = vmatmul.mubr.f32.gmra.mxu0 %v6654_v43  ;;  %v2538_v57 = vld [vmem:[%s7740_s9 + $0x38] sm:$0xff] }
  0xec   : > { %5506 = vmatprep.subr.mxu1 %v4477_v1  ;;  %5450 = vmatpush3.msra.mxu0 %v4460_v2  ;;  %v2537_v2 = vld [vmem:[%s7740_s9 + $0x30] sm:$0xff]  ;;  %vm2556_vm8 = vcmp.gt.f32.partialorder %v2538_v57, 0.5 }
  0xed   : > { %5420 = vmatprep.mubr.f32.mxu1 %v6806_v55  ;;  %5451 = vmatprep.subr.mxu0 %v4459_v9  ;;  %vm2555_vm9 = vcmp.gt.f32.partialorder %v2537_v2, 0.5 }
  0xee   : > { %5507 = vmatpush3.msra.mxu1 %v4477_v1  ;;  %5452 = vmatpush3.msra.mxu0 %v4459_v9  ;;  %v2540_v1 = vld [vmem:[%s7740_s9 + $0x48] sm:$0xff] }
  0xef   : > { %5421 = vmatmul.mubr.f32.gmra.mxu1 %v6822_v62  ;;  %5508 = vmatprep.subr.mxu1 %v4476_v17  ;;  %vm2558_vm10 = vcmp.gt.f32.partialorder %v2540_v1, 0.5 }
  0xf0   : > { %5364 = vmatprep.mubr.f32.mxu0 %v6663_v46  ;;  %5453 = vmatprep.subr.mxu0 %v4458_v19 }
  0xf1   : > { %5509 = vmatpush3.msra.mxu1 %v4476_v17  ;;  %5365 = vmatmul.mubr.f32.gmra.mxu0 %v6950_v26 }
  0xf2   : > { %5510 = vmatprep.subr.mxu1 %v4475_v27  ;;  %5454 = vmatpush3.msra.mxu0 %v4458_v19 }
  0xf3   : > { %5423 = vmatprep.mubr.f32.mxu1 %v6824_v4  ;;  %5511 = vmatpush3.msra.mxu1 %v4475_v27 }
  0xf4   : > { %5455 = vmatprep.subr.mxu0 %v4457_v30  ;;  %5424 = vmatmul.mubr.f32.gmra.mxu1 %v6960_v33 }
  0xf5   : > { %5512 = vmatprep.subr.mxu1 %v4474_v58  ;;  %5367 = vmatprep.mubr.f32.mxu0 %v6966_v60 }
  0xf6   : > { %5456 = vmatpush3.msra.mxu0 %v4457_v30  ;;  %5513 = vmatpush3.msra.mxu1 %v4474_v58 }
  0xf7   : > { %5368 = vmatmul.mubr.f32.gmra.mxu0 %v6968_v0  ;;  %5457 = vmatprep.subr.mxu0 %v4456_v61 }
  0xf8   : > { %5514 = vmatprep.subr.mxu1 %v4473_v59  ;;  %5426 = vmatprep.mubr.f32.mxu1 %v6978_v3 }
  0xf9   : > { %5458 = vmatpush3.msra.mxu0 %v4456_v61  ;;  %5515 = vmatpush3.msra.mxu1 %v4473_v59  ;;  %v2541_v61 = vld [vmem:[%s7740_s9 + $0x50] sm:$0xff] }
  0xfa   : > { %5459 = vmatprep.subr.mxu0 %v4455_v38  ;;  %5427 = vmatmul.mubr.f32.gmra.mxu1 %v6984_v41  ;;  %vm2559_vm13 = vcmp.gt.f32.partialorder %v2541_v61, 0.5 }
  0xfb   : > { %5516 = vmatprep.subr.mxu1 %v4472_v42  ;;  %5460 = vmatpush3.msra.mxu0 %v4455_v38 }
  0xfc   : > { %5461 = vmatprep.mubr.f32.mxu0 %v6543_v6  ;;  %5517 = vmatpush3.msra.mxu1 %v4472_v42  ;;  %v4500_v6 = vld [vmem:[%s7734_s3 + $0x468] sm:$0xff] }
  0xfd   : > { %5462 = vmatmul.mubr.f32.vlgmr.msra.gmra.mxu0 %v6547_v8  ;;  %5518 = vmatprep.subr.mxu1 %v4471_v48  ;;  %v4497_v8 = vld [vmem:[%s7734_s3 + $0x450] sm:$0xff] }
  0xfe   : > { %5547 = vmatprep.subr.mxu0 %v4502_v50  ;;  %5519 = vmatpush3.msra.mxu1 %v4471_v48 }
  0xff   : > { %5520 = vmatprep.mubr.f32.mxu1 %v6541_v5  ;;  %5548 = vmatpush3.msra.mxu0 %v4502_v50  ;;  %v4499_v5 = vld [vmem:[%s7734_s3 + $0x460] sm:$0xff] }
 0x100   : > { %5521 = vmatmul.mubr.f32.vlgmr.msra.gmra.mxu1 %v6545_v7  ;;  %5464 = vmatprep.mubr.f32.mxu0 %v6567_v14  ;;  %v4498_v7 = vld [vmem:[%s7734_s3 + $0x458] sm:$0xff]  ;;  %v4495_v14 = vld [vmem:[%s7734_s3 + $0x440] sm:$0xff] }
 0x101   : > { %5549 = vmatprep.subr.mxu0 %v4501_v51  ;;  %5465 = vmatmul.mubr.f32.gmra.mxu0 %v6571_v16  ;;  %v4493_v16 = vld [vmem:[%s7734_s3 + $0x430] sm:$0xff] }
 0x102   : > { %5523 = vmatprep.mubr.f32.mxu1 %v6565_v13  ;;  %5550 = vmatpush3.msra.mxu0 %v4501_v51  ;;  %v4496_v13 = vld [vmem:[%s7734_s3 + $0x448] sm:$0xff] }
 0x103   : > { %5467 = vmatprep.mubr.f32.mxu0 %v6591_v22  ;;  %5551 = vmatprep.subr.mxu0 %v4500_v6  ;;  %v4491_v22 = vld [vmem:[%s7734_s3 + $0x420] sm:$0xff]  ;;  %v2544_v51 = vld [vmem:[%s7740_s9 + $0x68] sm:$0xff] }
 0x104   : > { %5524 = vmatmul.mubr.f32.gmra.mxu1 %v6569_v15  ;;  %5552 = vmatpush3.msra.mxu0 %v4500_v6  ;;  %v4494_v15 = vld [vmem:[%s7734_s3 + $0x438] sm:$0xff]  ;;  %v2543_v6 = vld [vmem:[%s7740_s9 + $0x60] sm:$0xff]  ;;  %vm2562_vm14 = vcmp.gt.f32.partialorder %v2544_v51, 0.5 }
 0x105   : > { %5526 = vmatprep.mubr.f32.mxu1 %v6589_v21  ;;  %5553 = vmatprep.subr.mxu0 %v4499_v5  ;;  %v4492_v21 = vld [vmem:[%s7734_s3 + $0x428] sm:$0xff]  ;;  %vm2561_vm15 = vcmp.gt.f32.partialorder %v2543_v6, 0.5 }
 0x106   : > { %5468 = vmatmul.mubr.f32.gmra.mxu0 %v6595_v24  ;;  %v1854_v24 = vld [vmem:[#allocation2 + $0xbf] sm:$0xff] }
 0x107   : > { %5554 = vmatpush3.msra.mxu0 %v4499_v5  ;;  %5470 = vmatprep.mubr.f32.mxu0 %v6612_v29  ;;  %v1855_v29 = vld [vmem:[#allocation2 + $0xc7] sm:$0xff] }
 0x108   : > { %5555 = vmatprep.subr.mxu0 %v4498_v7  ;;  %5527 = vmatmul.mubr.f32.gmra.mxu1 %v6593_v23  ;;  %v4490_v23 = vld [vmem:[%s7734_s3 + $0x418] sm:$0xff] }
 0x109   : > { %5556 = vmatpush3.msra.mxu0 %v4498_v7  ;;  %5529 = vmatprep.mubr.f32.mxu1 %v6610_v28  ;;  %v4489_v28 = vld [vmem:[%s7734_s3 + $0x410] sm:$0xff] }
 0x10a   : > { %5471 = vmatmul.mubr.f32.gmra.mxu0 %v6620_v32  ;;  %5557 = vmatprep.subr.mxu0 %v4497_v8  ;;  %v2062_v32 = vld [vmem:[#allocation2 + $0xc0] sm:$0xff] }
 0x10b   : > { %5558 = vmatpush3.msra.mxu0 %v4497_v8  ;;  %5473 = vmatprep.mubr.f32.mxu0 %v6636_v37  ;;  %v2531_v37 = vld [vmem:[%s7740_s9] sm:$0xff] }
 0x10c   : > { %5530 = vmatmul.mubr.f32.gmra.mxu1 %v6617_v31  ;;  %5559 = vmatprep.subr.mxu0 %v4496_v13  ;;  %v2533_v31 = vld [vmem:[%s7740_s9 + $0x10] sm:$0xff]  ;;  %vm2549_vm3 = vcmp.gt.f32.partialorder %v2531_v37, 0.5 }
 0x10d   : > { %5560 = vmatpush3.msra.mxu0 %v4496_v13  ;;  %5532 = vmatprep.mubr.f32.mxu1 %v6634_v36  ;;  %v4488_v36 = vld [vmem:[%s7734_s3 + $0x408] sm:$0xff]  ;;  %vm2551_vm2 = vcmp.gt.f32.partialorder %v2533_v31, 0.5 }
 0x10e   : > { %5474 = vmatmul.mubr.f32.gmra.mxu0 %v6644_v40  ;;  %5561 = vmatprep.subr.mxu0 %v4495_v14  ;;  %v1856_v40 = vld [vmem:[#allocation2 + $0xcf] sm:$0xff] }
 0x10f   : > { %5562 = vmatpush3.msra.mxu0 %v4495_v14  ;;  %5476 = vmatprep.mubr.f32.mxu0 %v6660_v45  ;;  %v2534_v45 = vld [vmem:[%s7740_s9 + $0x18] sm:$0xff] }
 0x110   : > { %5533 = vmatmul.mubr.f32.gmra.mxu1 %v6641_v39  ;;  %5563 = vmatprep.subr.mxu0 %v4494_v15  ;;  %v2063_v39 = vld [vmem:[#allocation2 + $0xc8] sm:$0xff]  ;;  %vm2552_vm4 = vcmp.gt.f32.partialorder %v2534_v45, 0.5 }
 0x111   : > { %5564 = vmatpush3.msra.mxu0 %v4494_v15  ;;  %5535 = vmatprep.mubr.f32.mxu1 %v6654_v43  ;;  %v4487_v43 = vld [vmem:[%s7734_s3 + $0x400] sm:$0xff]  ;;  %v2546_v15 = vld [vmem:[%s7740_s9 + $0x78] sm:$0xff] }
 0x112   : > { %5477 = vmatmul.mubr.f32.gmra.mxu0 %v6665_v47  ;;  %5565 = vmatprep.subr.mxu0 %v4493_v16  ;;  %v2532_v47 = vld [vmem:[%s7740_s9 + $0x8] sm:$0xff]  ;;  %vm2564_vm0 = vcmp.gt.f32.partialorder %v2546_v15, 0.5 }
 0x113   : > { %5566 = vmatpush3.msra.mxu0 %v4493_v16  ;;  %5479 = vmatprep.mubr.f32.mxu0 %v6816_v63  ;;  %v6189_v63 = vmov 0   ;;  %vm2550_vm5 = vcmp.gt.f32.partialorder %v2532_v47, 0.5 }
 0x114   : > { %5536 = vmatmul.mubr.f32.gmra.mxu1 %v6663_v46  ;;  %5567 = vmatprep.subr.mxu0 %v4492_v21  ;;  %v2064_v46 = vld [vmem:[#allocation2 + $0xd0] sm:$0xff]  ;;  %v2568_v56 = vsel %vm2550_vm5, 1, %v6189_v63  ;;  %v2573_v30 = vsel %vm2555_vm9, 1, %v6189_v63  ;;  %v2576_v59 = vsel %vm2558_vm10, 1, %v6189_v63  ;;  %v2577_v13 = vsel %vm2559_vm13, 1, %v6189_v63 }
 0x115   : > { %5568 = vmatpush3.msra.mxu0 %v4492_v21  ;;  %5538 = vmatprep.mubr.f32.mxu1 %v6950_v26 }
 0x116   : > { %5480 = vmatmul.mubr.f32.gmra.mxu0 %v6834_v12  ;;  %5569 = vmatprep.subr.mxu0 %v4491_v22  ;;  %v2569_v12 = vsel %vm2551_vm2, 1, %v6189_v63 }
 0x117   : > { %5570 = vmatpush3.msra.mxu0 %v4491_v22  ;;  %5482 = vmatprep.mubr.f32.mxu0 %v6840_v18  ;;  %v2567_v18 = vsel %vm2549_vm3, 1, %v6189_v63 }
 0x118   : > { %5539 = vmatmul.mubr.f32.gmra.mxu1 %v6966_v60  ;;  %5571 = vmatprep.subr.mxu0 %v4490_v23  ;;  %v2542_v60 = vld [vmem:[%s7740_s9 + $0x58] sm:$0xff] }
 0x119   : > { %5572 = vmatpush3.msra.mxu0 %v4490_v23  ;;  %5541 = vmatprep.mubr.f32.mxu1 %v6968_v0  ;;  %vm2560_vm12 = vcmp.gt.f32.partialorder %v2542_v60, 0.5  ;;  %v2579_v23 = vsel %vm2561_vm15, 1, %v6189_v63 }
 0x11a   : > { %5483 = vmatmul.mubr.f32.gmra.mxu0 %v1854_v24  ;;  %5573 = vmatprep.subr.mxu0 %v4489_v28  ;;  %v2578_v5 = vsel %vm2560_vm12, 1, %v6189_v63 }
 0x11b   : > { %5485 = vmatprep.mubr.f32.mxu0 %v1855_v29  ;;  %5574 = vmatpush3.msra.mxu0 %v4489_v28  ;;  %v2548_v28 = vld [vmem:[%s7740_s9 + $0x88] sm:$0xff] }
 0x11c   : > { %5542 = vmatmul.mubr.f32.gmra.mxu1 %v2062_v32  ;;  %5575 = vmatprep.subr.mxu0 %v4488_v36  ;;  %v2582_v32 = vsel %vm2564_vm0, 1, %v6189_v63  ;;  %vm2566_vm3 = vcmp.gt.f32.partialorder %v2548_v28, 0.5 }
 0x11d   : > { %5544 = vmatprep.mubr.f32.mxu1 %v2063_v39  ;;  %5576 = vmatpush3.msra.mxu0 %v4488_v36  ;;  %v2270_v36 = vld [vmem:[#allocation2 + $0xc1] sm:$0xff]  ;;  %v2271_v39 = vld [vmem:[#allocation2 + $0xc9] sm:$0xff] }
 0x11e   : > { %5486 = vmatmul.mubr.f32.gmra.mxu0 %v1856_v40  ;;  %5577 = vmatprep.subr.mxu0 %v4487_v43 }
 0x11f   : > { %5578 = vmatpush3.msra.mxu0 %v4487_v43  ;;  %5579 = vmatprep.mubr.f32.mxu0 %v6723_v10  ;;  %v2570_v10 = vsel %vm2552_vm4, 1, %v6189_v63 }
 0x120   : > { %5545 = vmatmul.mubr.f32.gmra.mxu1 %v2064_v46  ;;  %6114 = vset.pattern.permute.xlu1 %v6189_v63  ;;  %v2272_v46 = vld [vmem:[#allocation2 + $0xd1] sm:$0xff] }
 0x121   : > { %6113 = vset.pattern.permute.xlu0 %v6189_v63  ;;  %2592 = vperm.xlu1 %6114, %v2569_v12  }
 0x122   : > { %5580 = vmatmul.mubr.f32.vlgmr.msra.gmra.mxu0 %v6725_v11  ;;  %2586 = vperm.xlu0 %6113, %v2567_v18   ;;  %v2572_v11 = vsel %vm2554_vm6, 1, %v6189_v63 }
 0x123   : > { %5582 = vmatprep.mubr.f32.mxu0 %v6743_v20  ;;  %v2571_v20 = vsel %vm2553_vm7, 1, %v6189_v63 }
 0x125   : > { %2595 = vperm.xlu1 %6114, %v2570_v10  }
 0x126   : > { %5583 = vmatmul.mubr.f32.gmra.mxu0 %v6745_v25  ;;  %2589 = vperm.xlu0 %6113, %v2568_v56   ;;  %v2539_v25 = vld [vmem:[%s7740_s9 + $0x40] sm:$0xff] }
 0x127   : > { %5585 = vmatprep.mubr.f32.mxu0 %v6763_v34  ;;  %v2574_v34 = vsel %vm2556_vm8, 1, %v6189_v63  ;;  %vm2557_vm11 = vcmp.gt.f32.partialorder %v2539_v25, 0.5 }
 0x128   : > { %v5109_v9 = vpop.f32.mrf.mxu0  ;;  %v2575_v48 = vsel %vm2557_vm11, 1, %v6189_v63 }
 0x129   : > { %v5168_v17 = vpop.f32.mrf.mxu1  ;;  %2601 = vperm.xlu1 %6114, %v2572_v11  }
 0x12a   : > { %5586 = vmatmul.mubr.f32.gmra.mxu0 %v6765_v35  ;;  %v7116_v19 = vadd.f32 %v5168_v17, %v5109_v9  ;;  %2598 = vperm.xlu0 %6113, %v2571_v20   ;;  %v763_v26 = vpop.f32.mrf.mxu0 }
 0x12b   : > { %5588 = vmatprep.mubr.f32.mxu0 %v6780_v44  ;;  %v918_v27 = vpop.f32.mrf.mxu1 }
 0x12c   : > { %v7121_v58 = vadd.f32 %v918_v27, %v763_v26  ;;  %v5112_v35 = vpop.f32.mrf.mxu0 }
 0x12d   : > { %v5171_v0 = vpop.f32.mrf.mxu1  ;;  %2607 = vperm.xlu1 %6114, %v2574_v34  }
 0x12e   : > { %5589 = vmatmul.mubr.f32.gmra.mxu0 %v6786_v49  ;;  %v7130_v44 = vadd.f32 %v5171_v0, %v5112_v35  ;;  %2604 = vperm.xlu0 %6113, %v2573_v30   ;;  %v773_v38 = vpop.f32.mrf.mxu0 }
 0x12f   : > { %5591 = vmatprep.mubr.f32.mxu0 %v6800_v53  ;;  %v928_v42 = vpop.f32.mrf.mxu1 }
 0x130   : > { %v7135_v50 = vadd.f32 %v928_v42, %v773_v38 }
 0x131   : > { %v5115_v49 = vpop.f32.mrf.mxu0  ;;  %2613 = vperm.xlu1 %6114, %v2576_v59   ;;  %v5174_v53 = vpop.f32.mrf.mxu1 }
 0x132   : > { %5592 = vmatmul.mubr.f32.gmra.mxu0 %v6806_v55  ;;  %2610 = vperm.xlu0 %6113, %v2575_v48   ;;  %v7146_v7 = vadd.f32 %v5174_v53, %v5115_v49  ;;  %v2545_v55 = vld [vmem:[%s7740_s9 + $0x70] sm:$0xff] }
 0x133   : > { %5594 = vmatprep.mubr.f32.mxu0 %v6822_v62  ;;  %v783_v8 = vpop.f32.mrf.mxu0  ;;  %v938_v14 = vpop.f32.mrf.mxu1  ;;  %v2580_v62 = vsel %vm2562_vm14, 1, %v6189_v63  ;;  %vm2563_vm2 = vcmp.gt.f32.partialorder %v2545_v55, 0.5 }
 0x134   : > { %v7152_v16 = vadd.f32 %v938_v14, %v783_v8  ;;  %v2581_v37 = vsel %vm2563_vm2, 1, %v6189_v63 }
 0x135   : > { %2619 = vperm.xlu1 %6114, %v2578_v5  }
 0x136   : > { %5595 = vmatmul.mubr.f32.gmra.mxu0 %v6824_v4  ;;  %2616 = vperm.xlu0 %6113, %v2577_v13   ;;  %v5118_v21 = vpop.f32.mrf.mxu0  ;;  %v2547_v4 = vld [vmem:[%s7740_s9 + $0x80] sm:$0xff] }
 0x137   : > { %5597 = vmatprep.mubr.f32.mxu0 %v6960_v33  ;;  %v5177_v22 = vpop.f32.mrf.mxu1  ;;  %vm2565_vm4 = vcmp.gt.f32.partialorder %v2547_v4, 0.5 }
 0x138   : > { %v7161_v24 = vadd.f32 %v5177_v22, %v5118_v21  ;;  %v793_v29 = vpop.f32.mrf.mxu0 }
 0x139   : > { %v948_v31 = vpop.f32.mrf.mxu1  ;;  %2625 = vperm.xlu1 %6114, %v2580_v62  }
 0x13a   : > { %5598 = vmatmul.mubr.f32.gmra.mxu0 %v6978_v3  ;;  %v7170_v33 = vadd.f32 %v948_v31, %v793_v29  ;;  %2622 = vperm.xlu0 %6113, %v2579_v23   ;;  %v2584_v3 = vsel %vm2566_vm3, 1, %v6189_v63 }
 0x13b   : > { %5600 = vmatprep.mubr.f32.mxu0 %v6984_v41  ;;  %v2583_v41 = vsel %vm2565_vm4, 1, %v6189_v63 }
 0x13c   : > { %v5121_v40 = vpop.f32.mrf.mxu0 }
 0x13d   : > { %v5180_v43 = vpop.f32.mrf.mxu1  ;;  %2631 = vperm.xlu1 %6114, %v2582_v32  }
 0x13e   : > { %5601 = vmatmul.mubr.f32.gmra.mxu0 %v2270_v36  ;;  %v7175_v45 = vadd.f32 %v5180_v43, %v5121_v40  ;;  %2628 = vperm.xlu0 %6113, %v2581_v37   ;;  %v803_v47 = vpop.f32.mrf.mxu0 }
 0x13f   : > { %5603 = vmatprep.mubr.f32.mxu0 %v2271_v39  ;;  %v958_v12 = vpop.f32.mrf.mxu1 }
 0x140   : > { %v7179_v18 = vadd.f32 %v958_v12, %v803_v47 }
 0x141   : > { %2637 = vperm.xlu1 %6114, %v2584_v3  }
 0x142   : > { %5604 = vmatmul.mubr.f32.gmra.mxu0 %v2272_v46  ;;  %2634 = vperm.xlu0 %6113, %v2583_v41   ;;  %v5124_v52 = vpop.f32.mrf.mxu0 }
 0x143   : > { %v5183_v54 = vpop.f32.mrf.mxu1 }
 0x144   : > { %v974_v10 = vadd.f32 %v5183_v54, %v5124_v52  ;;  %v813_v56 = vpop.f32.mrf.mxu0 }
 0x145   : > { %v968_v57 = vpop.f32.mrf.mxu1 }
 0x146   : > { %v969_v2 = vadd.f32 %v968_v57, %v813_v56 }
 0x148   : > { %v5127_v11 = vpop.f32.mrf.mxu0  ;;  %v5186_v20 = vpop.f32.mrf.mxu1 }
 0x149   : > { %v7181_v1 = vadd.f32 %v5186_v20, %v5127_v11 }
 0x14a   : > { %v823_v9 = vpop.f32.mrf.mxu0  ;;  %v978_v17 = vpop.f32.mrf.mxu1 }
 0x14b   : > { %v7183_v25 = vadd.f32 %v978_v17, %v823_v9 }
 0x14e   : > { %v5130_v63 = vpop.f32.mrf.mxu0  ;;  %v5189_v34 = vpop.f32.mrf.mxu1 }
 0x14f   : > { %v7185_v26 = vadd.f32 %v5189_v34, %v5130_v63 }
 0x150   : > { %v833_v27 = vpop.f32.mrf.mxu0  ;;  %v988_v30 = vpop.f32.mrf.mxu1 }
 0x151   : > { %v7187_v60 = vadd.f32 %v988_v30, %v833_v27 }
 0x153   : > { %v5133_v35 = vpop.f32.mrf.mxu0 }
 0x154   : > { %v5192_v0 = vpop.f32.mrf.mxu1 }
 0x155   : > { %v7189_v61 = vadd.f32 %v5192_v0, %v5133_v35  ;;  %v843_v59 = vpop.f32.mrf.mxu0 }
 0x156   : > { %v998_v38 = vpop.f32.mrf.mxu1 }
 0x157   : > { %v7191_v42 = vadd.f32 %v998_v38, %v843_v59 }
 0x159   : > { %v5227_v48 = vpop.f32.mrf.mxu0 }
 0x15a   : > { %v1198_v51 = vadd.f32 %v5227_v48, %v7116_v19 }
 0x15b   : > { %v1108_v49 = vpop.f32.mrf.mxu0 }
 0x15c   : > { %v1197_v6 = vadd.f32 %v1108_v49, %v7121_v58  ;;  %v5286_v53 = vpop.f32.mrf.mxu1 }
 0x15d   : > { %v7195_v5 = vadd.f32 %v5286_v53, %v1198_v51  ;;  %v5230_v8 = vpop.f32.mrf.mxu0 }
 0x15e   : > { %v1316_v13 = vpop.f32.mrf.mxu1  ;;  %v1200_v14 = vadd.f32 %v5230_v8, %v7130_v44 }
 0x15f   : > { %v7198_v15 = vadd.f32 %v1316_v13, %v1197_v6  ;;  %v1118_v55 = vpop.f32.mrf.mxu0 }
 0x160   : > { %v5289_v62 = vpop.f32.mrf.mxu1  ;;  %v1199_v21 = vadd.f32 %v1118_v55, %v7135_v50 }
 0x161   : > { %v7201_v22 = vadd.f32 %v5289_v62, %v1200_v14 }
 0x162   : > { %v1326_v23 = vpop.f32.mrf.mxu1  ;;  %v5233_v19 = vpop.f32.mrf.mxu0 }
 0x163   : > { %v7203_v28 = vadd.f32 %v1326_v23, %v1199_v21  ;;  %v1202_v58 = vadd.f32 %v5233_v19, %v7146_v7 }
 0x164   : > { %v1128_v29 = vpop.f32.mrf.mxu0 }
 0x165   : > { %v1201_v31 = vadd.f32 %v1128_v29, %v7152_v16 }
 0x166   : > { %v5292_v4 = vpop.f32.mrf.mxu1 }
 0x167   : > { %v7207_v32 = vadd.f32 %v5292_v4, %v1202_v58 }
 0x168   : > { %v5236_v44 = vpop.f32.mrf.mxu0  ;;  %v1336_v36 = vpop.f32.mrf.mxu1 }
 0x169   : > { %v1204_v37 = vadd.f32 %v5236_v44, %v7161_v24  ;;  %v1409_v39 = vadd.f32 %v1336_v36, %v1201_v31 }
 0x16a   : > { %v1138_v50 = vpop.f32.mrf.mxu0 }
 0x16b   : > { %v1203_v40 = vadd.f32 %v1138_v50, %v7170_v33  ;;  %v5295_v43 = vpop.f32.mrf.mxu1 }
 0x16c   : > { %v1412_v3 = vadd.f32 %v5295_v43, %v1204_v37 }
 0x16d   : > { %v1346_v47 = vpop.f32.mrf.mxu1 }
 0x16e   : > { %v5239_v46 = vpop.f32.mrf.mxu0  ;;  %v1411_v12 = vadd.f32 %v1346_v47, %v1203_v40 }
 0x16f   : > { %v1206_v7 = vadd.f32 %v5239_v46, %v7175_v45 }
 0x170   : > { %v1148_v41 = vpop.f32.mrf.mxu0 }
 0x171   : > { %v1205_v16 = vadd.f32 %v1148_v41, %v7179_v18  ;;  %v5298_v52 = vpop.f32.mrf.mxu1 }
 0x172   : > { %v1414_v54 = vadd.f32 %v5298_v52, %v1206_v7 }
 0x173   : > { %v1356_v57 = vpop.f32.mrf.mxu1 }
 0x174   : > { %v5242_v56 = vpop.f32.mrf.mxu0  ;;  %v1413_v24 = vadd.f32 %v1356_v57, %v1205_v16 }
 0x175   : > { %v1208_v11 = vadd.f32 %v5242_v56, %v974_v10 }
 0x176   : > { %v1158_v20 = vpop.f32.mrf.mxu0 }
 0x177   : > { %v1207_v9 = vadd.f32 %v1158_v20, %v969_v2  ;;  %v5301_v17 = vpop.f32.mrf.mxu1 }
 0x178   : > { %v1416_v33 = vadd.f32 %v5301_v17, %v1208_v11 }
 0x179   : > { %v1366_v63 = vpop.f32.mrf.mxu1  ;;  %v5245_v34 = vpop.f32.mrf.mxu0 }
 0x17a   : > { %v1415_v27 = vadd.f32 %v1366_v63, %v1207_v9  ;;  %v1210_v30 = vadd.f32 %v5245_v34, %v7181_v1 }
 0x17b   : > { %v1168_v45 = vpop.f32.mrf.mxu0 }
 0x17c   : > { %v1209_v35 = vadd.f32 %v1168_v45, %v7183_v25 }
 0x17d   : > { %v5304_v0 = vpop.f32.mrf.mxu1 }
 0x17e   : > { %v1418_v18 = vadd.f32 %v5304_v0, %v1210_v30 }
 0x17f   : > { %v1376_v59 = vpop.f32.mrf.mxu1  ;;  %v5248_v38 = vpop.f32.mrf.mxu0 }
 0x180   : > { %v1417_v48 = vadd.f32 %v1376_v59, %v1209_v35  ;;  %v1212_v10 = vadd.f32 %v5248_v38, %v7185_v26 }
 0x181   : > { %v1178_v51 = vpop.f32.mrf.mxu0 }
 0x182   : > { %v1211_v2 = vadd.f32 %v1178_v51, %v7187_v60  ;;  %v5307_v49 = vpop.f32.mrf.mxu1 }
 0x183   : > { %v1420_v6 = vadd.f32 %v5307_v49, %v1212_v10 }
 0x184   : > { %v1386_v8 = vpop.f32.mrf.mxu1 }
 0x185   : > { %v5251_v53 = vpop.f32.mrf.mxu0  ;;  %v1419_v1 = vadd.f32 %v1386_v8, %v1211_v2 }
 0x186   : > { %v1214_v13 = vadd.f32 %v5251_v53, %v7189_v61 }
 0x187   : > { %v1188_v14 = vpop.f32.mrf.mxu0 }
 0x188   : > { %v1213_v25 = vadd.f32 %v1188_v14, %v7191_v42  ;;  %v5310_v55 = vpop.f32.mrf.mxu1 }
 0x189   : > { %v1422_v62 = vadd.f32 %v5310_v55, %v1214_v13 }
 0x18a   : > { %v1396_v21 = vpop.f32.mrf.mxu1 }
 0x18b   : > { %v5345_v23 = vpop.f32.mrf.mxu0  ;;  %v1421_v19 = vadd.f32 %v1396_v21, %v1213_v25 }
 0x18c   : > { %v7220_v26 = vadd.f32 %v5345_v23, %v7195_v5 }
 0x18d   : > { %v1524_v58 = vpop.f32.mrf.mxu0 }
 0x18e   : > { %v7223_v60 = vadd.f32 %v1524_v58, %v7198_v15  ;;  %v7225_v29 = vpop.f32.mrf.mxu1 }
 0x18f   : > { %v5348_v31 = vpop.f32.mrf.mxu0 }
 0x190   : > { %v7227_v61 = vpop.f32.mrf.mxu1  ;;  %v7230_v4 = vadd.f32 %v5348_v31, %v7201_v22 }
 0x191   : > { %v1534_v42 = vpop.f32.mrf.mxu0 }
 0x192   : > { %v7232_v44 = vpop.f32.mrf.mxu1  ;;  %v7235_v36 = vadd.f32 %v1534_v42, %v7203_v28 }
 0x194   : > { %v7237_v5 = vpop.f32.mrf.mxu1  ;;  %v5351_v37 = vpop.f32.mrf.mxu0 }
 0x195   : > { %v7240_v15 = vadd.f32 %v5351_v37, %v7207_v32 }
 0x196   : > { %v1544_v50 = vpop.f32.mrf.mxu0 }
 0x197   : > { %v7242_v40 = vadd.f32 %v1544_v50, %v1409_v39 }
 0x198   : > { %v7244_v43 = vpop.f32.mrf.mxu1 }
 0x19a   : > { %v5354_v46 = vpop.f32.mrf.mxu0  ;;  %v7246_v22 = vpop.f32.mrf.mxu1 }
 0x19b   : > { %v7248_v47 = vadd.f32 %v5354_v46, %v1412_v3 }
 0x19c   : > { %v1554_v7 = vpop.f32.mrf.mxu0 }
 0x19d   : > { %v7250_v41 = vadd.f32 %v1554_v7, %v1411_v12  ;;  %v7252_v28 = vpop.f32.mrf.mxu1 }
 0x19f   : > { %v7254_v52 = vpop.f32.mrf.mxu1 }
 0x1a0   : > { %v5357_v16 = vpop.f32.mrf.mxu0 }
 0x1a1   : > { %v7256_v32 = vadd.f32 %v5357_v16, %v1414_v54 }
 0x1a2   : > { %v1564_v56 = vpop.f32.mrf.mxu0 }
 0x1a3   : > { %v7258_v39 = vadd.f32 %v1564_v56, %v1413_v24  ;;  %v7260_v57 = vpop.f32.mrf.mxu1 }
 0x1a5   : > { %v7262_v20 = vpop.f32.mrf.mxu1 }
 0x1a6   : > { %v5360_v11 = vpop.f32.mrf.mxu0 }
 0x1a7   : > { %v7264_v3 = vadd.f32 %v5360_v11, %v1416_v33  ;;  %v7314_v11 = vpop.permute.xlu1 %2592 }
 0x1a8   : > { %v1574_v9 = vpop.f32.mrf.mxu0  ;;  %vm2641_vm6 = vcmp.eq.s32.totalorder %v7314_v11, 1 }
 0x1a9   : > { %v7266_v12 = vadd.f32 %v1574_v9, %v1415_v27  ;;  %v7268_v17 = vpop.f32.mrf.mxu1 }
 0x1ab   : > { %v7270_v63 = vpop.f32.mrf.mxu1  ;;  %v5363_v34 = vpop.f32.mrf.mxu0 }
 0x1ac   : > { %v7272_v54 = vadd.f32 %v5363_v34, %v1418_v18 }
 0x1ad   : > { %v1584_v30 = vpop.f32.mrf.mxu0 }
 0x1ae   : > { %v7274_v24 = vadd.f32 %v1584_v30, %v1417_v48  ;;  %v7320_v30 = vpop.permute.xlu0 %2586 }
 0x1af   : > { %v7276_v45 = vpop.f32.mrf.mxu1  ;;  %vm2639_vm5 = vcmp.eq.s32.totalorder %v7320_v30, 1 }
 0x1b1   : > { %v7278_v35 = vpop.f32.mrf.mxu1  ;;  %v5366_v0 = vpop.f32.mrf.mxu0 }
 0x1b2   : > { %v7280_v33 = vadd.f32 %v5366_v0, %v1420_v6 }
 0x1b3   : > { %v1594_v59 = vpop.f32.mrf.mxu0 }
 0x1b4   : > { %v7282_v27 = vadd.f32 %v1594_v59, %v1419_v1  ;;  %v7284_v38 = vpop.f32.mrf.mxu1  ;;  %v1822_v59 = vadd.f32 %v7225_v29, %v7220_v26  ;;  %v1823_v29 = vadd.f32 %v7237_v5, %v7235_v36  ;;  %v1825_v36 = vadd.f32 %v7246_v22, %v7242_v40  ;;  %v7360_v5 = vld [vmem:[%s7736_s5] ss:$0 sm:$0xff] }
 0x1b5   : > { %7755 = vst [vmem:[#allocation10_spill] sm:$0xff] %v7284_v38  ;;  %v1827_v40 = vadd.f32 %v7254_v52, %v7250_v41 }
 0x1b6   : > { %7754 = vst [vmem:[#allocation9_spill] sm:$0xff] %v7282_v27  ;;  %v7286_v51 = vpop.f32.mrf.mxu1 }
 0x1b7   : > { %v5369_v10 = vpop.f32.mrf.mxu0  ;;  %7756 = vst [vmem:[#allocation11_spill] sm:$0xff] %v7286_v51  ;;  %v1824_v51 = vadd.f32 %v7232_v44, %v7230_v4 }
 0x1b8   : > { %v7288_v18 = vadd.f32 %v5369_v10, %v1422_v62 }
 0x1b9   : > { %v1604_v2 = vpop.f32.mrf.mxu0 }
 0x1ba   : > { %7757 = vst [vmem:[#allocation12_spill] sm:$0xff] %v7288_v18  ;;  %v7290_v48 = vadd.f32 %v1604_v2, %v1421_v19  ;;  %v7292_v49 = vpop.f32.mrf.mxu1 }
 0x1bb   : > { %7759 = vst [vmem:[#allocation14_spill] sm:$0xff] %v7292_v49  ;;  %v7332_v49 = vpop.permute.xlu1 %2595 }
 0x1bc   : > { %7758 = vst [vmem:[#allocation13_spill] sm:$0xff] %v7290_v48  ;;  %v7294_v53 = vpop.f32.mrf.mxu1  ;;  %vm2642_vm7 = vcmp.eq.s32.totalorder %v7332_v49, 1 }
 0x1bd   : > { %7760 = vst [vmem:[#allocation15_spill] sm:$0xff] %v7294_v53  ;;  %v5463_v8 = vpop.f32.mrf.mxu0  ;;  %v1821_v53 = vadd.f32 %v7227_v61, %v7223_v60  ;;  %v7347_v61 = vld [vmem:[%s7735_s4] ss:$0 sm:$0xff] }
 0x1be   : > { %v2030_v48 = vadd.f32 %v5463_v8, %v1822_v59 }
 0x1bf   : > { %v1940_v6 = vpop.f32.mrf.mxu0  ;;  %v7349_v4 = vpop.permute.xlu1 %2601 }
 0x1c0   : > { %v5522_v13 = vpop.f32.mrf.mxu1  ;;  %v2029_v27 = vadd.f32 %v1940_v6, %v1821_v53  ;;  %v1826_v6 = vadd.f32 %v7244_v43, %v7240_v15  ;;  %v1828_v15 = vadd.f32 %v7252_v28, %v7248_v47  ;;  %vm2644_vm9 = vcmp.eq.s32.totalorder %v7349_v4, 1 }
 0x1c1   : > { %v5466_v14 = vpop.f32.mrf.mxu0 }
 0x1c2   : > { %v2148_v1 = vpop.f32.mrf.mxu1  ;;  %v2032_v38 = vadd.f32 %v5466_v14, %v1824_v51 }
 0x1c3   : > { %v1950_v25 = vpop.f32.mrf.mxu0  ;;  %v2237_v8 = vadd.f32 %v2148_v1, %v2029_v27  ;;  %v7378_v41 = vpop.permute.xlu1 %2607 }
 0x1c4   : > { %v5525_v55 = vpop.f32.mrf.mxu1  ;;  %v2031_v59 = vadd.f32 %v1950_v25, %v1823_v29  ;;  %vm2646_vm11 = vcmp.eq.s32.totalorder %v7378_v41, 1 }
 0x1c6   : > { %v5469_v21 = vpop.f32.mrf.mxu0  ;;  %v2158_v23 = vpop.f32.mrf.mxu1 }
 0x1c7   : > { %v2034_v43 = vadd.f32 %v5469_v21, %v1826_v6  ;;  %v2239_v25 = vadd.f32 %v2158_v23, %v2031_v59 }
 0x1c8   : > { %v1960_v58 = vpop.f32.mrf.mxu0  ;;  %v7296_v62 = vpop.f32.mrf.mxu1 }
 0x1c9   : > { %v2033_v22 = vadd.f32 %v1960_v58, %v1825_v36  ;;  %v1829_v58 = vadd.f32 %v7262_v20, %v7258_v39  ;;  %v1832_v39 = vadd.f32 %v7268_v17, %v7264_v3 }
 0x1ca   : > { %v5472_v31 = vpop.f32.mrf.mxu0  ;;  %v7302_v37 = vpop.f32.mrf.mxu1 }
 0x1cc   : > { %v7298_v42 = vpop.f32.mrf.mxu0  ;;  %v7308_v7 = vpop.f32.mrf.mxu1 }
 0x1ce   : > { %v7300_v19 = vpop.f32.mrf.mxu0  ;;  %v7316_v9 = vpop.f32.mrf.mxu1 }
 0x1d0   : > { %v7304_v50 = vpop.f32.mrf.mxu0  ;;  %v7326_v10 = vpop.f32.mrf.mxu1 }
 0x1d2   : > { %v7306_v46 = vpop.f32.mrf.mxu0 }
 0x1d4   : > { %v7310_v16 = vpop.f32.mrf.mxu0 }
 0x1d6   : > { %v7312_v56 = vpop.f32.mrf.mxu0 }
 0x1d8   : > { %v7318_v34 = vpop.f32.mrf.mxu0 }
 0x1d9   : > { %7761 = vst [vmem:[#allocation16_spill] sm:$0xff] %v7318_v34  ;;  %v7338_v34 = vpop.f32.mrf.mxu1 }
 0x1da   : > { %v7322_v0 = vpop.f32.mrf.mxu0 }
 0x1db   : > { %7762 = vst [vmem:[#allocation17_spill] sm:$0xff] %v7322_v0  ;;  %v2590_v0 = vpop.permute.xlu0 %2589  ;;  %v7351_v44 = vpop.f32.mrf.mxu1 }
 0x1dc   : > { %v7328_v2 = vpop.f32.mrf.mxu0  ;;  %vm2640_vm8 = vcmp.eq.s32.totalorder %v2590_v0, 1 }
 0x1dd   : > { %7763 = vst [vmem:[#allocation18_spill] sm:$0xff] %v7328_v2  ;;  %v2238_v2 = vadd.f32 %v5522_v13, %v2030_v48  ;;  %v2240_v48 = vadd.f32 %v5525_v55, %v2032_v38 }
 0x1de   : > { %v7334_v18 = vpop.f32.mrf.mxu0 }
 0x1df   : > { %v7363_v27 = vpop.permute.xlu0 %2598 }
 0x1e0   : > { %v7340_v26 = vpop.f32.mrf.mxu0  ;;  %vm2643_vm10 = vcmp.eq.s32.totalorder %v7363_v27, 1  ;;  %v7765_v4 = vld [vmem:[#allocation16_spill] sm:$0xff] }
 0x1e2   : > { %v5581_v60 = vpop.f32.mrf.mxu0 }
 0x1e3   : > { %v2446_v53 = vadd.f32 %v5581_v60, %v2238_v2  ;;  %v7370_v2 = vpop.f32.mrf.mxu1  ;;  %v1830_v60 = vadd.f32 %v7260_v57, %v7256_v32  ;;  %v2242_v32 = vadd.f32 %v7296_v62, %v2034_v43  ;;  %v2241_v57 = vadd.f32 %v7302_v37, %v2033_v22  ;;  %v7388_v0 = vpop.permute.xlu0 %2604 }
 0x1e4   : > { %v2356_v51 = vpop.f32.mrf.mxu0  ;;  %v1831_v43 = vadd.f32 %v7270_v63, %v7266_v12  ;;  %v7409_v22 = vpop.permute.xlu1 %2613  ;;  %v2037_v12 = vadd.f32 %v7304_v50, %v1829_v58  ;;  %vm2645_vm12 = vcmp.eq.s32.totalorder %v7388_v0, 1 }
 0x1e5   : > { %v2471_v13 = vmul.f32 %v7347_v61, %v2446_v53  ;;  %v2445_v14 = vadd.f32 %v2356_v51, %v2237_v8  ;;  %v2036_v8 = vadd.f32 %v5472_v31, %v1828_v15  ;;  %v2035_v31 = vadd.f32 %v7298_v42, %v1827_v40  ;;  %v7390_v53 = vpop.f32.mrf.mxu1 }
 0x1e6   : > { %v5584_v1 = vpop.f32.mrf.mxu0  ;;  %v2038_v62 = vadd.f32 %v7300_v19, %v1830_v60  ;;  %vm2648_vm13 = vcmp.eq.s32.totalorder %v7409_v22, 1 }
 0x1e7   : > { %v2496_v38 = vadd.f32 %v7360_v5, %v2471_v13  ;;  %v2470_v55 = vmul.f32 %v7347_v61, %v2445_v14  ;;  %v2448_v29 = vadd.f32 %v5584_v1, %v2240_v48  ;;  %v2244_v20 = vadd.f32 %v7308_v7, %v2036_v8  ;;  %v7407_v7 = vpop.f32.mrf.mxu1  ;;  %v7419_v60 = vpop.permute.xlu0 %2610 }
 0x1e8   : > { %v2366_v47 = vpop.f32.mrf.mxu0  ;;  %v2243_v3 = vadd.f32 %v7316_v9, %v2035_v31  ;;  %v2246_v63 = vadd.f32 %v7326_v10, %v2038_v62  ;;  %v2040_v9 = vadd.f32 %v7306_v46, %v1832_v39  ;;  %v1834_v10 = vadd.f32 %v7276_v45, %v7272_v54 }
 0x1e9   : > { %v2514_v28 = vmax.f32 %v2496_v38, 0.0  ;;  %v2495_v52 = vadd.f32 %v7360_v5, %v2470_v55  ;;  %v2473_v21 = vmul.f32 %v7347_v61, %v2448_v29  ;;  %v2447_v23 = vadd.f32 %v2366_v47, %v2239_v25  ;;  %v5543_v11 = vpop.f32.mrf.mxu1 }
 0x1ea   : > { %v5587_v59 = vpop.f32.mrf.mxu0  ;;  %v1833_v46 = vadd.f32 %v7278_v35, %v7274_v24  ;;  %v2245_v31 = vadd.f32 %v7338_v34, %v2037_v12  ;;  %v2248_v54 = vadd.f32 %v7351_v44, %v2040_v9  ;;  %v2042_v24 = vadd.f32 %v7312_v56, %v1834_v10  ;;  %v7764_v44 = vld [vmem:[#allocation10_spill] sm:$0xff]  ;;  %v7770_v12 = vld [vmem:[#allocation17_spill] sm:$0xff] }
 0x1eb   : > { %v2658_v6 = vsel %vm2640_vm8, %v2514_v28, 0.0  ;;  %v2513_v36 = vmax.f32 %v2495_v52, 0.0  ;;  %v2498_v51 = vadd.f32 %v7360_v5, %v2473_v21  ;;  %v2472_v48 = vmul.f32 %v7347_v61, %v2447_v23  ;;  %v2218_v62 = vpop.f32.mrf.mxu1 }
 0x1ec   : > { %2680 = vst [vmem:[#allocation3 + $0x20] sm:$0xff] %v2658_v6  ;;  %v2450_v42 = vadd.f32 %v5587_v59, %v2242_v32  ;;  %v2376_v37 = vpop.f32.mrf.mxu0  ;;  %v2039_v28 = vadd.f32 %v7310_v16, %v1831_v43  ;;  %vm2647_vm14 = vcmp.eq.s32.totalorder %v7419_v60, 1  ;;  %v2620_v16 = vpop.permute.xlu1 %2619 }
 0x1ed   : > { %v2657_v13 = vsel %vm2639_vm5, %v2513_v36, 0.0  ;;  %v2516_v14 = vmax.f32 %v2498_v51, 0.0  ;;  %v2497_v15 = vadd.f32 %v7360_v5, %v2472_v48  ;;  %v2449_v40 = vadd.f32 %v2376_v37, %v2241_v57 }
 0x1ee   : > { %2679 = vst [vmem:[#allocation3 + $0x18] sm:$0xff] %v2657_v13  ;;  %v2475_v17 = vmul.f32 %v7347_v61, %v2450_v42  ;;  %v5590_v19 = vpop.f32.mrf.mxu0  ;;  %v1836_v51 = vadd.f32 %v7764_v44, %v7280_v33  ;;  %v2247_v56 = vadd.f32 %v7370_v2, %v2039_v28  ;;  %v2041_v48 = vadd.f32 %v7765_v4, %v1833_v46  ;;  %v2617_v42 = vpop.permute.xlu0 %2616  ;;  %v7768_v33 = vld [vmem:[#allocation12_spill] sm:$0xff]  ;;  %v7772_v28 = vld [vmem:[#allocation13_spill] sm:$0xff] }
 0x1ef   : > { %v2660_v30 = vsel %vm2642_vm7, %v2516_v14, 0.0  ;;  %v2515_v1 = vmax.f32 %v2497_v15, 0.0  ;;  %v2474_v25 = vmul.f32 %v7347_v61, %v2449_v40  ;;  %v2452_v38 = vadd.f32 %v5590_v19, %v2244_v20  ;;  %v7766_v15 = vld [vmem:[#allocation9_spill] sm:$0xff]  ;;  %v7767_v40 = vld [vmem:[#allocation11_spill] sm:$0xff] }
 0x1f0   : > { %2682 = vst [vmem:[#allocation3 + $0x30] sm:$0xff] %v2660_v30  ;;  %v2500_v55 = vadd.f32 %v7360_v5, %v2475_v17  ;;  %v2386_v29 = vpop.f32.mrf.mxu0  ;;  %v1835_v43 = vadd.f32 %v7767_v40, %v7766_v15  ;;  %v2250_v17 = vadd.f32 %v7390_v53, %v2042_v24  ;;  %v2249_v9 = vadd.f32 %v7407_v7, %v2041_v48 }
 0x1f1   : > { %v2659_v49 = vsel %vm2641_vm6, %v2515_v1, 0.0  ;;  %v2499_v8 = vadd.f32 %v7360_v5, %v2474_v25  ;;  %v2477_v47 = vmul.f32 %v7347_v61, %v2452_v38  ;;  %v2451_v50 = vadd.f32 %v2386_v29, %v2243_v3  ;;  %v7769_v3 = vld [vmem:[#allocation14_spill] sm:$0xff] }
 0x1f2   : > { %2681 = vst [vmem:[#allocation3 + $0x28] sm:$0xff] %v2659_v49  ;;  %v2518_v52 = vmax.f32 %v2500_v55, 0.0  ;;  %v5593_v21 = vpop.f32.mrf.mxu0  ;;  %v1838_v2 = vadd.f32 %v7769_v3, %v7768_v33  ;;  %v7771_v55 = vld [vmem:[#allocation18_spill] sm:$0xff]  ;;  %vm2650_vm15 = vcmp.eq.s32.totalorder %v2620_v16, 1  ;;  %vm2649_vm0 = vcmp.eq.s32.totalorder %v2617_v42, 1 }
 0x1f3   : > { %v2517_v23 = vmax.f32 %v2499_v8, 0.0  ;;  %v2502_v58 = vadd.f32 %v7360_v5, %v2477_v47  ;;  %v2476_v32 = vmul.f32 %v7347_v61, %v2451_v50  ;;  %v2454_v57 = vadd.f32 %v5593_v21, %v2246_v63  ;;  %v5546_v8 = vpop.f32.mrf.mxu1  ;;  %v2626_v47 = vpop.permute.xlu1 %2625 }
 0x1f4   : > { %v2662_v45 = vsel %vm2644_vm9, %v2518_v52, 0.0  ;;  %v2396_v35 = vpop.f32.mrf.mxu0  ;;  %v2044_v63 = vadd.f32 %v7770_v12, %v1836_v51  ;;  %v2043_v29 = vadd.f32 %v7771_v55, %v1835_v43  ;;  %v7773_v52 = vld [vmem:[#allocation15_spill] sm:$0xff]  ;;  %v2046_v7 = vadd.f32 %v7334_v18, %v1838_v2 }
 0x1f5   : > { %2684 = vst [vmem:[#allocation3 + $0x40] sm:$0xff] %v2662_v45  ;;  %v2661_v59 = vsel %vm2643_vm10, %v2517_v23, 0.0  ;;  %v2520_v6 = vmax.f32 %v2502_v58, 0.0  ;;  %v2501_v36 = vadd.f32 %v7360_v5, %v2476_v32  ;;  %v2479_v34 = vmul.f32 %v7347_v61, %v2454_v57  ;;  %v2623_v32 = vpop.permute.xlu0 %2622  ;;  %v2228_v18 = vpop.f32.mrf.mxu1 }
 0x1f6   : > { %2683 = vst [vmem:[#allocation3 + $0x38] sm:$0xff] %v2661_v59  ;;  %v2453_v39 = vadd.f32 %v2396_v35, %v2245_v31  ;;  %v5596_v20 = vpop.f32.mrf.mxu0  ;;  %v1837_v21 = vadd.f32 %v7773_v52, %v7772_v28  ;;  %v2252_v24 = vadd.f32 %v5543_v11, %v2044_v63  ;;  %v2251_v45 = vadd.f32 %v2218_v62, %v2043_v29 }
 0x1f7   : > { %v2664_v27 = vsel %vm2646_vm11, %v2520_v6, 0.0  ;;  %v2519_v37 = vmax.f32 %v2501_v36, 0.0  ;;  %v2504_v13 = vadd.f32 %v7360_v5, %v2479_v34  ;;  %v2456_v14 = vadd.f32 %v5596_v20, %v2248_v54  ;;  %v2632_v48 = vpop.permute.xlu1 %2631 }
 0x1f8   : > { %2686 = vst [vmem:[#allocation3 + $0x50] sm:$0xff] %v2664_v27  ;;  %v2478_v19 = vmul.f32 %v7347_v61, %v2453_v39  ;;  %v2406_v30 = vpop.f32.mrf.mxu0  ;;  %v2045_v35 = vadd.f32 %v7340_v26, %v1837_v21  ;;  %vm2652_vm2 = vcmp.eq.s32.totalorder %v2626_v47, 1  ;;  %vm2651_vm3 = vcmp.eq.s32.totalorder %v2623_v32, 1 }
 0x1f9   : > { %v2663_v41 = vsel %vm2645_vm12, %v2519_v37, 0.0  ;;  %v2522_v1 = vmax.f32 %v2504_v13, 0.0  ;;  %v2481_v25 = vmul.f32 %v7347_v61, %v2456_v14  ;;  %v2455_v38 = vadd.f32 %v2406_v30, %v2247_v56  ;;  %v2629_v37 = vpop.permute.xlu0 %2628 }
 0x1fa   : > { %2685 = vst [vmem:[#allocation3 + $0x48] sm:$0xff] %v2663_v41  ;;  %v2503_v53 = vadd.f32 %v7360_v5, %v2478_v19  ;;  %v5599_v49 = vpop.f32.mrf.mxu0  ;;  %v2254_v56 = vadd.f32 %v5546_v8, %v2046_v7  ;;  %v2253_v62 = vadd.f32 %v2228_v18, %v2045_v35  ;;  %vm2654_vm4 = vcmp.eq.s32.totalorder %v2632_v48, 1 }
 0x1fb   : > { %v2666_v0 = vsel %vm2648_vm13, %v2522_v1, 0.0  ;;  %v2506_v50 = vadd.f32 %v7360_v5, %v2481_v25  ;;  %v2480_v10 = vmul.f32 %v7347_v61, %v2455_v38  ;;  %v2458_v46 = vadd.f32 %v5599_v49, %v2250_v17  ;;  %v2638_v30 = vpop.permute.xlu1 %2637 }
 0x1fc   : > { %2688 = vst [vmem:[#allocation3 + $0x60] sm:$0xff] %v2666_v0  ;;  %v2521_v23 = vmax.f32 %v2503_v53, 0.0  ;;  %v2416_v58 = vpop.f32.mrf.mxu0  ;;  %vm2653_vm5 = vcmp.eq.s32.totalorder %v2629_v37, 1  ;;  %vm2656_vm6 = vcmp.eq.s32.totalorder %v2638_v30, 1 }
 0x1fd   : > { %v2524_v57 = vmax.f32 %v2506_v50, 0.0  ;;  %v2505_v31 = vadd.f32 %v7360_v5, %v2480_v10  ;;  %v2483_v22 = vmul.f32 %v7347_v61, %v2458_v46  ;;  %v2457_v54 = vadd.f32 %v2416_v58, %v2249_v9  ;;  %v2635_v12 = vpop.permute.xlu0 %2634 }
 0x1fe   : > { %v2665_v59 = vsel %vm2647_vm14, %v2521_v23, 0.0  ;;  %v5602_v6 = vpop.f32.mrf.mxu0  ;;  %vm2655_vm7 = vcmp.eq.s32.totalorder %v2635_v12, 1 }
 0x1ff   : > { %2687 = vst [vmem:[#allocation3 + $0x58] sm:$0xff] %v2665_v59  ;;  %v2668_v36 = vsel %vm2650_vm15, %v2524_v57, 0.0  ;;  %v2523_v34 = vmax.f32 %v2505_v31, 0.0  ;;  %v2508_v44 = vadd.f32 %v7360_v5, %v2483_v22  ;;  %v2482_v51 = vmul.f32 %v7347_v61, %v2457_v54 }
 0x200   : > { %2690 = vst [vmem:[#allocation3 + $0x70] sm:$0xff] %v2668_v36  ;;  %v2460_v11 = vadd.f32 %v5602_v6, %v2252_v24  ;;  %v2426_v4 = vpop.f32.mrf.mxu0 }
 0x201   : > { %v2667_v26 = vsel %vm2649_vm0, %v2523_v34, 0.0  ;;  %v2526_v39 = vmax.f32 %v2508_v44, 0.0  ;;  %v2507_v60 = vadd.f32 %v7360_v5, %v2482_v51  ;;  %v2459_v20 = vadd.f32 %v2426_v4, %v2251_v45 }
 0x202   : > { %2689 = vst [vmem:[#allocation3 + $0x68] sm:$0xff] %v2667_v26  ;;  %v2485_v16 = vmul.f32 %v7347_v61, %v2460_v11  ;;  %v5605_v27 = vpop.f32.mrf.mxu0 }
 0x203   : > { %v2670_v13 = vsel %vm2652_vm2, %v2526_v39, 0.0  ;;  %v2525_v14 = vmax.f32 %v2507_v60, 0.0  ;;  %v2484_v42 = vmul.f32 %v7347_v61, %v2459_v20  ;;  %v2462_v15 = vadd.f32 %v5605_v27, %v2254_v56 }
 0x204   : > { %2692 = vst [vmem:[#allocation3 + $0x80] sm:$0xff] %v2670_v13  ;;  %v2510_v40 = vadd.f32 %v7360_v5, %v2485_v16  ;;  %v2436_v43 = vpop.f32.mrf.mxu0 }
 0x205   : > { %v2669_v33 = vsel %vm2651_vm3, %v2525_v14, 0.0  ;;  %v2509_v3 = vadd.f32 %v7360_v5, %v2484_v42  ;;  %v2487_v2 = vmul.f32 %v7347_v61, %v2462_v15  ;;  %v2461_v17 = vadd.f32 %v2436_v43, %v2253_v62 }
 0x206   : > { %2691 = vst [vmem:[#allocation3 + $0x78] sm:$0xff] %v2669_v33  ;;  %v2528_v19 = vmax.f32 %v2510_v40, 0.0 }
 0x207   : > { %v2527_v41 = vmax.f32 %v2509_v3, 0.0  ;;  %v2512_v1 = vadd.f32 %v7360_v5, %v2487_v2  ;;  %v2486_v25 = vmul.f32 %v7347_v61, %v2461_v17 }
 0x208   : > { %v2672_v38 = vsel %vm2654_vm4, %v2528_v19, 0.0 }
 0x209   : > { %2694 = vst [vmem:[#allocation3 + $0x90] sm:$0xff] %v2672_v38  ;;  %v2671_v63 = vsel %vm2653_vm5, %v2527_v41, 0.0  ;;  %v2530_v9 = vmax.f32 %v2512_v1, 0.0  ;;  %v2511_v55 = vadd.f32 %v7360_v5, %v2486_v25 }
 0x20a   : > { %2693 = vst [vmem:[#allocation3 + $0x88] sm:$0xff] %v2671_v63  ;;  %2700 = sbr.rel (%p4505_p10) target bundleno = 530 (0x212), region = 76 }
 0x20b   : > { %v2674_v29 = vsel %vm2656_vm6, %v2530_v9, 0.0  ;;  %v2529_v53 = vmax.f32 %v2511_v55, 0.0 }
 0x20c   : > { %2696 = vst [vmem:[#allocation3 + $0xa0] sm:$0xff] %v2674_v29 }
 0x20d   : > { %v2673_v49 = vsel %vm2655_vm7, %v2529_v53, 0.0 }
 0x20e   : > { %2695 = vst [vmem:[#allocation3 + $0x98] sm:$0xff] %v2673_v49 }
 0x20f   : > { %v6190_v61 = vmov 0.0  }
 0x210   : > { %2701 = vst [vmem:[#allocation3 + $0x18] sm:$0xff] %v6190_v61  ;;  %2702 = vst [vmem:[#allocation3 + $0x20] sm:$0xff] %v6190_v61 }
 0x211   : > { %2703 = vst [vmem:[#allocation3 + $0x28] sm:$0xff] %v6190_v61 }
 0x212 PF: > { %p4506_p11 = scmp.ne.s32.totalorder %s6167_s13, 3 }
 0x214   : > { %2707 = sbr.rel (%p4506_p11) target bundleno = 540 (0x21c), region = 80 }
 0x219   : > { %v6191_v5 = vmov 0.0  }
 0x21a   : > { %2708 = vst [vmem:[#allocation3 + $0x90] sm:$0xff] %v6191_v5  ;;  %2709 = vst [vmem:[#allocation3 + $0x98] sm:$0xff] %v6191_v5 }
 0x21b   : > { %2710 = vst [vmem:[#allocation3 + $0xa0] sm:$0xff] %v6191_v5 }
 0x21c PF: > { %v2767_v8 = vld [vmem:[#allocation4 + $0xf8] sm:$0xff]  ;;  %v2766_v47 = vld [vmem:[#allocation4 + $0xf0] sm:$0xff]  ;;  %v2765_v0 = vld [vmem:[#allocation4 + $0xe8] sm:$0xff] }
 0x21d   : > { %5606 = vmatprep.subr.mxu1 %v2767_v8  ;;  %v2764_v50 = vld [vmem:[#allocation4 + $0xe0] sm:$0xff]  ;;  %v2739_v10 = vld [vmem:[#allocation3 + $0x18] sm:$0xff]  ;;  %v2763_v46 = vld [vmem:[#allocation4 + $0xd8] sm:$0xff] }
 0x21e   : > { %5607 = vmatpush3.msra.mxu1 %v2767_v8  ;;  %5638 = vmatprep.mubr.f32.mxu1 %v2739_v10  ;;  %v3038_v28 = vld [vmem:[#allocation4 + $0x178] sm:$0xff]  ;;  %v3037_v52 = vld [vmem:[#allocation4 + $0x170] sm:$0xff]  ;;  %v3036_v7 = vld [vmem:[#allocation4 + $0x168] sm:$0xff] }
 0x21f   : > { %5608 = vmatprep.subr.mxu1 %v2766_v47  ;;  %5706 = vmatprep.subr.mxu0 %v3038_v28  ;;  %v2762_v21 = vld [vmem:[#allocation4 + $0xd0] sm:$0xff]  ;;  %v2761_v23 = vld [vmem:[#allocation4 + $0xc8] sm:$0xff]  ;;  %v3035_v58 = vld [vmem:[#allocation4 + $0x160] sm:$0xff] }
 0x220   : > { %5609 = vmatpush3.msra.mxu1 %v2766_v47  ;;  %5707 = vmatpush3.msra.mxu0 %v3038_v28  ;;  %v2760_v32 = vld [vmem:[#allocation4 + $0xc0] sm:$0xff]  ;;  %v3034_v57 = vld [vmem:[#allocation4 + $0x158] sm:$0xff]  ;;  %v3033_v22 = vld [vmem:[#allocation4 + $0x150] sm:$0xff] }
 0x221   : > { %5610 = vmatprep.subr.mxu1 %v2765_v0  ;;  %5708 = vmatprep.subr.mxu0 %v3037_v52  ;;  %v2759_v31 = vld [vmem:[#allocation4 + $0xb8] sm:$0xff]  ;;  %v2758_v54 = vld [vmem:[#allocation4 + $0xb0] sm:$0xff]  ;;  %v3032_v24 = vld [vmem:[#allocation4 + $0x148] sm:$0xff] }
 0x222   : > { %5611 = vmatpush3.msra.mxu1 %v2765_v0  ;;  %5709 = vmatpush3.msra.mxu0 %v3037_v52  ;;  %v2757_v45 = vld [vmem:[#allocation4 + $0xa8] sm:$0xff]  ;;  %v3031_v35 = vld [vmem:[#allocation4 + $0x140] sm:$0xff]  ;;  %v3030_v6 = vld [vmem:[#allocation4 + $0x138] sm:$0xff] }
 0x223   : > { %5612 = vmatprep.subr.mxu1 %v2764_v50  ;;  %5710 = vmatprep.subr.mxu0 %v3036_v7  ;;  %v2756_v59 = vld [vmem:[#allocation4 + $0xa0] sm:$0xff]  ;;  %v2755_v18 = vld [vmem:[#allocation4 + $0x98] sm:$0xff]  ;;  %v3029_v36 = vld [vmem:[#allocation4 + $0x130] sm:$0xff] }
 0x224   : > { %5613 = vmatpush3.msra.mxu1 %v2764_v50  ;;  %5711 = vmatpush3.msra.mxu0 %v3036_v7  ;;  %v2754_v34 = vld [vmem:[#allocation4 + $0x90] sm:$0xff]  ;;  %v3028_v44 = vld [vmem:[#allocation4 + $0x128] sm:$0xff]  ;;  %v3027_v56 = vld [vmem:[#allocation4 + $0x120] sm:$0xff] }
 0x225   : > { %5614 = vmatprep.subr.mxu1 %v2763_v46  ;;  %5712 = vmatprep.subr.mxu0 %v3035_v58  ;;  %v2753_v51 = vld [vmem:[#allocation4 + $0x88] sm:$0xff]  ;;  %v2752_v11 = vld [vmem:[#allocation4 + $0x80] sm:$0xff]  ;;  %v3026_v4 = vld [vmem:[#allocation4 + $0x118] sm:$0xff] }
 0x226   : > { %5615 = vmatpush3.msra.mxu1 %v2763_v46  ;;  %5713 = vmatpush3.msra.mxu0 %v3035_v58  ;;  %v2740_v48 = vld [vmem:[#allocation3 + $0x20] sm:$0xff]  ;;  %v2738_v26 = vld [vmem:[#allocation4 + $0x78] sm:$0xff]  ;;  %v2736_v62 = vld [vmem:[#allocation4 + $0x68] sm:$0xff] }
 0x227   : > { %5616 = vmatprep.subr.mxu1 %v2762_v21  ;;  %5714 = vmatprep.subr.mxu0 %v3034_v57  ;;  %v2741_v39 = vld [vmem:[#allocation3 + $0x28] sm:$0xff]  ;;  %v2737_v60 = vld [vmem:[#allocation4 + $0x70] sm:$0xff]  ;;  %v7489_v16 = vld [vmem:[#allocation3 + $0x30] sm:$0xff] }
 0x228   : > { %5617 = vmatpush3.msra.mxu1 %v2762_v21  ;;  %5715 = vmatpush3.msra.mxu0 %v3034_v57  ;;  %v3025_v20 = vld [vmem:[#allocation4 + $0x110] sm:$0xff]  ;;  %v7491_v27 = vld [vmem:[#allocation3 + $0x38] sm:$0xff]  ;;  %v2735_v37 = vld [vmem:[#allocation4 + $0x60] sm:$0xff] }
 0x229   : > { %5618 = vmatprep.subr.mxu1 %v2761_v23  ;;  %5716 = vmatprep.subr.mxu0 %v3033_v22  ;;  %v3024_v13 = vld [vmem:[#allocation4 + $0x108] sm:$0xff]  ;;  %v2734_v14 = vld [vmem:[#allocation4 + $0x58] sm:$0xff]  ;;  %v7495_v42 = vld [vmem:[#allocation3 + $0x40] sm:$0xff] }
 0x22a   : > { %5619 = vmatpush3.msra.mxu1 %v2761_v23  ;;  %5717 = vmatpush3.msra.mxu0 %v3033_v22  ;;  %v7497_v15 = vld [vmem:[#allocation3 + $0x48] sm:$0xff]  ;;  %v2733_v40 = vld [vmem:[#allocation4 + $0x50] sm:$0xff]  ;;  %v3023_v43 = vld [vmem:[#allocation4 + $0x100] sm:$0xff] }
 0x22b   : > { %5620 = vmatprep.subr.mxu1 %v2760_v32  ;;  %5718 = vmatprep.subr.mxu0 %v3032_v24  ;;  %v2732_v33 = vld [vmem:[#allocation4 + $0x48] sm:$0xff]  ;;  %v7501_v3 = vld [vmem:[#allocation3 + $0x50] sm:$0xff]  ;;  %v3354_v30 = vld [vmem:[#allocation4 + $0x278] sm:$0xff] }
 0x22c   : > { %5621 = vmatpush3.msra.mxu1 %v2760_v32  ;;  %5719 = vmatpush3.msra.mxu0 %v3032_v24  ;;  %v7503_v2 = vld [vmem:[#allocation3 + $0x58] sm:$0xff]  ;;  %v2731_v17 = vld [vmem:[#allocation4 + $0x40] sm:$0xff]  ;;  %v2730_v41 = vld [vmem:[#allocation4 + $0x38] sm:$0xff] }
 0x22d   : > { %5622 = vmatprep.subr.mxu1 %v2759_v31  ;;  %5720 = vmatprep.subr.mxu0 %v3031_v35  ;;  %v3010_v19 = vld [vmem:[#allocation3 + $0x19] sm:$0xff]  ;;  %v7509_v25 = vld [vmem:[#allocation3 + $0x68] sm:$0xff]  ;;  %v7513_v9 = vld [vmem:[#allocation3 + $0x70] sm:$0xff] }
 0x22e   : > { %5623 = vmatpush3.msra.mxu1 %v2759_v31  ;;  %5721 = vmatpush3.msra.mxu0 %v3031_v35  ;;  %v7507_v1 = vld [vmem:[#allocation3 + $0x60] sm:$0xff]  ;;  %v2728_v63 = vld [vmem:[#allocation4 + $0x28] sm:$0xff]  ;;  %v2727_v29 = vld [vmem:[#allocation4 + $0x20] sm:$0xff] }
 0x22f   : > { %5624 = vmatprep.subr.mxu1 %v2758_v54  ;;  %5722 = vmatprep.subr.mxu0 %v3030_v6  ;;  %v2729_v38 = vld [vmem:[#allocation4 + $0x30] sm:$0xff]  ;;  %v2711_v55 = vld [vmem:[#allocation3 + $0x17] sm:$0xff]  ;;  %v2726_v49 = vld [vmem:[#allocation4 + $0x18] sm:$0xff] }
 0x230   : > { %5625 = vmatpush3.msra.mxu1 %v2758_v54  ;;  %5723 = vmatpush3.msra.mxu0 %v3030_v6  ;;  %v3011_v12 = vld [vmem:[#allocation3 + $0x21] sm:$0xff]  ;;  %v3352_v61 = vld [vmem:[#allocation4 + $0x268] sm:$0xff]  ;;  %v3012_v5 = vld [vmem:[#allocation3 + $0x29] sm:$0xff] }
 0x231   : > { %5626 = vmatprep.subr.mxu1 %v2757_v45  ;;  %5724 = vmatprep.subr.mxu0 %v3029_v36  ;;  %v3353_v53 = vld [vmem:[#allocation4 + $0x270] sm:$0xff]  ;;  %v7516_v47 = vld [vmem:[#allocation3 + $0x31] sm:$0xff]  ;;  %v3350_v46 = vld [vmem:[#allocation4 + $0x258] sm:$0xff] }
 0x232   : > { %5627 = vmatpush3.msra.mxu1 %v2757_v45  ;;  %5725 = vmatpush3.msra.mxu0 %v3029_v36  ;;  %v2725_v8 = vld [vmem:[#allocation4 + $0x10] sm:$0xff]  ;;  %v2724_v0 = vld [vmem:[#allocation4 + $0x8] sm:$0xff]  ;;  %v3351_v50 = vld [vmem:[#allocation4 + $0x260] sm:$0xff] }
 0x233   : > { %5628 = vmatprep.subr.mxu1 %v2756_v59  ;;  %5726 = vmatprep.subr.mxu0 %v3028_v44  ;;  %v2723_v10 = vld [vmem:[#allocation4] sm:$0xff]  ;;  %v7519_v28 = vld [vmem:[#allocation3 + $0x39] sm:$0xff]  ;;  %v3196_v21 = vld [vmem:[#allocation4 + $0x1f8] sm:$0xff] }
 0x234   : > { %5629 = vmatpush3.msra.mxu1 %v2756_v59  ;;  %5727 = vmatpush3.msra.mxu0 %v3028_v44  ;;  %v2712_v52 = vld [vmem:[#allocation3 + $0x1f] sm:$0xff]  ;;  %v2713_v7 = vld [vmem:[#allocation3 + $0x27] sm:$0xff]  ;;  %v7524_v32 = vld [vmem:[#allocation3 + $0x2f] sm:$0xff] }
 0x235   : > { %5630 = vmatprep.subr.mxu1 %v2755_v18  ;;  %5728 = vmatprep.subr.mxu0 %v3027_v56  ;;  %v3195_v23 = vld [vmem:[#allocation4 + $0x1f0] sm:$0xff]  ;;  %v3194_v57 = vld [vmem:[#allocation4 + $0x1e8] sm:$0xff]  ;;  %v3193_v22 = vld [vmem:[#allocation4 + $0x1e0] sm:$0xff] }
 0x236   : > { %5631 = vmatpush3.msra.mxu1 %v2755_v18  ;;  %5729 = vmatpush3.msra.mxu0 %v3027_v56  ;;  %v7522_v58 = vld [vmem:[#allocation3 + $0x41] sm:$0xff]  ;;  %v7526_v31 = vld [vmem:[#allocation3 + $0x37] sm:$0xff]  ;;  %v7536_v18 = vld [vmem:[#allocation3 + $0x49] sm:$0xff] }
 0x237   : > { %5632 = vmatprep.subr.mxu1 %v2754_v34  ;;  %5730 = vmatprep.subr.mxu0 %v3026_v4  ;;  %v3349_v54 = vld [vmem:[#allocation4 + $0x250] sm:$0xff]  ;;  %v3192_v45 = vld [vmem:[#allocation4 + $0x1d8] sm:$0xff]  ;;  %v3348_v6 = vld [vmem:[#allocation4 + $0x248] sm:$0xff] }
 0x238   : > { %5633 = vmatpush3.msra.mxu1 %v2754_v34  ;;  %5731 = vmatpush3.msra.mxu0 %v3026_v4  ;;  %v7531_v24 = vld [vmem:[#allocation3 + $0x3f] sm:$0xff]  ;;  %v7533_v35 = vld [vmem:[#allocation3 + $0x47] sm:$0xff]  ;;  %v7539_v36 = vld [vmem:[#allocation3 + $0x4f] sm:$0xff] }
 0x239   : > { %5634 = vmatprep.subr.mxu1 %v2753_v51  ;;  %5732 = vmatprep.subr.mxu0 %v3025_v20  ;;  %v3191_v59 = vld [vmem:[#allocation4 + $0x1d0] sm:$0xff]  ;;  %v3190_v34 = vld [vmem:[#allocation4 + $0x1c8] sm:$0xff]  ;;  %v3347_v56 = vld [vmem:[#allocation4 + $0x240] sm:$0xff] }
 0x23a   : > { %5635 = vmatpush3.msra.mxu1 %v2753_v51  ;;  %5733 = vmatpush3.msra.mxu0 %v3025_v20  ;;  %v7542_v44 = vld [vmem:[#allocation3 + $0x51] sm:$0xff]  ;;  %v7548_v4 = vld [vmem:[#allocation3 + $0x5f] sm:$0xff] }
 0x23b   : > { %5636 = vmatprep.subr.mxu1 %v2752_v11  ;;  %5734 = vmatprep.subr.mxu0 %v3024_v13  ;;  %v3189_v51 = vld [vmem:[#allocation4 + $0x1c0] sm:$0xff]  ;;  %v3187_v20 = vld [vmem:[#allocation4 + $0x1b0] sm:$0xff] }
 0x23c   : > { %5637 = vmatpush3.msra.mxu1 %v2752_v11  ;;  %5735 = vmatpush3.msra.mxu0 %v3024_v13  ;;  %v7545_v11 = vld [vmem:[#allocation3 + $0x57] sm:$0xff]  ;;  %v7560_v13 = vld [vmem:[#allocation3 + $0x6f] sm:$0xff] }
 0x23d   : > { %5639 = vmatmul.mubr.f32.vlgmr.msra.gmra.mxu1 %v2740_v48  ;;  %5656 = vmatprep.subr.mxu1 %v2738_v26  ;;  %v3188_v48 = vld [vmem:[#allocation4 + $0x1b8] sm:$0xff] }
 0x23e   : > { %5657 = vmatpush3.msra.mxu1 %v2738_v26  ;;  %5641 = vmatprep.mubr.f32.mxu1 %v2741_v39  ;;  %v3346_v26 = vld [vmem:[#allocation4 + $0x238] sm:$0xff]  ;;  %v7551_v39 = vld [vmem:[#allocation3 + $0x59] sm:$0xff] }
 0x23f   : > { %5658 = vmatprep.subr.mxu1 %v2737_v60  ;;  %5736 = vmatprep.subr.mxu0 %v3023_v43 }
 0x240   : > { %5659 = vmatpush3.msra.mxu1 %v2737_v60  ;;  %5737 = vmatpush3.msra.mxu0 %v3023_v43  ;;  %v7554_v60 = vld [vmem:[#allocation3 + $0x61] sm:$0xff]  ;;  %v7563_v43 = vld [vmem:[#allocation3 + $0x69] sm:$0xff] }
 0x241   : > { %5660 = vmatprep.subr.mxu1 %v2736_v62  ;;  %5642 = vmatmul.mubr.f32.gmra.mxu1 %v7489_v16 }
 0x242   : > { %5661 = vmatpush3.msra.mxu1 %v2736_v62  ;;  %5644 = vmatprep.mubr.f32.mxu1 %v7491_v27  ;;  %v3345_v62 = vld [vmem:[#allocation4 + $0x230] sm:$0xff] }
 0x243   : > { %5662 = vmatprep.subr.mxu1 %v2735_v37  ;;  %5738 = vmatprep.mubr.f32.mxu0 %v3010_v19  ;;  %v3343_v19 = vld [vmem:[#allocation4 + $0x220] sm:$0xff] }
 0x244   : > { %5663 = vmatpush3.msra.mxu1 %v2735_v37  ;;  %5806 = vmatprep.subr.mxu0 %v3354_v30  ;;  %v7557_v37 = vld [vmem:[#allocation3 + $0x67] sm:$0xff] }
 0x245   : > { %5664 = vmatprep.subr.mxu1 %v2734_v14  ;;  %5645 = vmatmul.mubr.f32.gmra.mxu1 %v7495_v42 }
 0x246   : > { %5665 = vmatpush3.msra.mxu1 %v2734_v14  ;;  %5647 = vmatprep.mubr.f32.mxu1 %v7497_v15  ;;  %v3186_v14 = vld [vmem:[#allocation4 + $0x1a8] sm:$0xff] }
 0x247   : > { %5666 = vmatprep.subr.mxu1 %v2733_v40  ;;  %5739 = vmatmul.mubr.f32.vlgmr.msra.gmra.mxu0 %v3011_v12  ;;  %v3341_v12 = vld [vmem:[#allocation4 + $0x210] sm:$0xff] }
 0x248   : > { %5667 = vmatpush3.msra.mxu1 %v2733_v40  ;;  %5807 = vmatpush3.msra.mxu0 %v3354_v30  ;;  %v3344_v40 = vld [vmem:[#allocation4 + $0x228] sm:$0xff]  ;;  %v3184_v30 = vld [vmem:[#allocation4 + $0x198] sm:$0xff] }
 0x249   : > { %5668 = vmatprep.subr.mxu1 %v2732_v33  ;;  %5648 = vmatmul.mubr.f32.gmra.mxu1 %v7501_v3 }
 0x24a   : > { %5669 = vmatpush3.msra.mxu1 %v2732_v33  ;;  %5650 = vmatprep.mubr.f32.mxu1 %v7503_v2  ;;  %v7566_v33 = vld [vmem:[#allocation3 + $0x71] sm:$0xff] }
 0x24b   : > { %5670 = vmatprep.subr.mxu1 %v2731_v17  ;;  %5808 = vmatprep.subr.mxu0 %v3353_v53 }
 0x24c   : > { %5671 = vmatpush3.msra.mxu1 %v2731_v17  ;;  %5809 = vmatpush3.msra.mxu0 %v3353_v53  ;;  %v3185_v17 = vld [vmem:[#allocation4 + $0x1a0] sm:$0xff] }
 0x24d   : > { %5672 = vmatprep.subr.mxu1 %v2730_v41  ;;  %5651 = vmatmul.mubr.f32.gmra.mxu1 %v7507_v1  ;;  %v3339_v53 = vld [vmem:[#allocation4 + $0x200] sm:$0xff] }
 0x24e   : > { %5673 = vmatpush3.msra.mxu1 %v2730_v41  ;;  %5653 = vmatprep.mubr.f32.mxu1 %v7509_v25  ;;  %v3342_v41 = vld [vmem:[#allocation4 + $0x218] sm:$0xff] }
 0x24f   : > { %5674 = vmatprep.subr.mxu1 %v2729_v38  ;;  %5810 = vmatprep.subr.mxu0 %v3352_v61 }
 0x250   : > { %5675 = vmatpush3.msra.mxu1 %v2729_v38  ;;  %5741 = vmatprep.mubr.f32.mxu0 %v3012_v5  ;;  %v3183_v38 = vld [vmem:[#allocation4 + $0x190] sm:$0xff] }
 0x251   : > { %5676 = vmatprep.subr.mxu1 %v2728_v63  ;;  %5654 = vmatmul.mubr.f32.gmra.mxu1 %v7513_v9  ;;  %v3511_v5 = vld [vmem:[#allocation4 + $0x2f0] sm:$0xff] }
 0x252   : > { %5677 = vmatpush3.msra.mxu1 %v2728_v63  ;;  %5688 = vmatprep.mubr.f32.mxu1 %v2711_v55  ;;  %v3182_v63 = vld [vmem:[#allocation4 + $0x188] sm:$0xff] }
 0x253   : > { %5678 = vmatprep.subr.mxu1 %v2727_v29  ;;  %5811 = vmatpush3.msra.mxu0 %v3352_v61  ;;  %v3340_v55 = vld [vmem:[#allocation4 + $0x208] sm:$0xff]  ;;  %v3670_v61 = vld [vmem:[#allocation4 + $0x378] sm:$0xff] }
 0x254   : > { %5679 = vmatpush3.msra.mxu1 %v2727_v29  ;;  %5742 = vmatmul.mubr.f32.gmra.mxu0 %v7516_v47  ;;  %v3181_v29 = vld [vmem:[#allocation4 + $0x180] sm:$0xff] }
 0x255   : > { %5680 = vmatprep.subr.mxu1 %v2726_v49  ;;  %5812 = vmatprep.subr.mxu0 %v3351_v50 }
 0x256   : > { %5681 = vmatpush3.msra.mxu1 %v2726_v49  ;;  %5813 = vmatpush3.msra.mxu0 %v3351_v50  ;;  %v3512_v49 = vld [vmem:[#allocation4 + $0x2f8] sm:$0xff]  ;;  %v3668_v50 = vld [vmem:[#allocation4 + $0x368] sm:$0xff] }
 0x257   : > { %5682 = vmatprep.subr.mxu1 %v2725_v8  ;;  %5814 = vmatprep.subr.mxu0 %v3350_v46 }
 0x258   : > { %5683 = vmatpush3.msra.mxu1 %v2725_v8  ;;  %5744 = vmatprep.mubr.f32.mxu0 %v7519_v28  ;;  %v3669_v8 = vld [vmem:[#allocation4 + $0x370] sm:$0xff] }
 0x259   : > { %5684 = vmatprep.subr.mxu1 %v2724_v0  ;;  %5815 = vmatpush3.msra.mxu0 %v3350_v46  ;;  %v3666_v46 = vld [vmem:[#allocation4 + $0x358] sm:$0xff] }
 0x25a   : > { %5685 = vmatpush3.msra.mxu1 %v2724_v0  ;;  %5745 = vmatmul.mubr.f32.gmra.mxu0 %v7522_v58  ;;  %v3510_v0 = vld [vmem:[#allocation4 + $0x2e8] sm:$0xff] }
 0x25b   : > { %5686 = vmatprep.subr.mxu1 %v2723_v10  ;;  %5816 = vmatprep.subr.mxu0 %v3349_v54 }
 0x25c   : > { %5687 = vmatpush3.msra.mxu1 %v2723_v10  ;;  %5817 = vmatpush3.msra.mxu0 %v3349_v54  ;;  %v3667_v10 = vld [vmem:[#allocation4 + $0x360] sm:$0xff]  ;;  %v7590_v54 = vld [vmem:[#allocation3 + $0x78] sm:$0xff] }
 0x25d   : > { %5689 = vmatmul.mubr.f32.vlgmr.msra.gmra.mxu1 %v2712_v52  ;;  %5756 = vmatprep.subr.mxu1 %v3196_v21  ;;  %v3507_v52 = vld [vmem:[#allocation4 + $0x2d0] sm:$0xff] }
 0x25e   : > { %5757 = vmatpush3.msra.mxu1 %v3196_v21  ;;  %5691 = vmatprep.mubr.f32.mxu1 %v2713_v7  ;;  %v3506_v21 = vld [vmem:[#allocation4 + $0x2c8] sm:$0xff] }
 0x25f   : > { %5758 = vmatprep.subr.mxu1 %v3195_v23  ;;  %5818 = vmatprep.subr.mxu0 %v3348_v6  ;;  %v3664_v7 = vld [vmem:[#allocation4 + $0x348] sm:$0xff] }
 0x260   : > { %5759 = vmatpush3.msra.mxu1 %v3195_v23  ;;  %5747 = vmatprep.mubr.f32.mxu0 %v7536_v18  ;;  %v3505_v23 = vld [vmem:[#allocation4 + $0x2c0] sm:$0xff] }
 0x261   : > { %5692 = vmatmul.mubr.f32.gmra.mxu1 %v7524_v32  ;;  %5760 = vmatprep.subr.mxu1 %v3194_v57 }
 0x262   : > { %5761 = vmatpush3.msra.mxu1 %v3194_v57  ;;  %5694 = vmatprep.mubr.f32.mxu1 %v7526_v31  ;;  %v7586_v57 = vld [vmem:[#allocation3 + $0x77] sm:$0xff] }
 0x263   : > { %5762 = vmatprep.subr.mxu1 %v3193_v22  ;;  %5819 = vmatpush3.msra.mxu0 %v3348_v6  ;;  %v7596_v6 = vld [vmem:[#allocation3 + $0x87] sm:$0xff] }
 0x264   : > { %5763 = vmatpush3.msra.mxu1 %v3193_v22  ;;  %5748 = vmatmul.mubr.f32.gmra.mxu0 %v7542_v44  ;;  %v3662_v22 = vld [vmem:[#allocation4 + $0x338] sm:$0xff] }
 0x265   : > { %5695 = vmatmul.mubr.f32.gmra.mxu1 %v7531_v24  ;;  %5764 = vmatprep.subr.mxu1 %v3192_v45 }
 0x266   : > { %5765 = vmatpush3.msra.mxu1 %v3192_v45  ;;  %5697 = vmatprep.mubr.f32.mxu1 %v7533_v35  ;;  %v3661_v45 = vld [vmem:[#allocation4 + $0x330] sm:$0xff] }
 0x267   : > { %5766 = vmatprep.subr.mxu1 %v3191_v59  ;;  %5820 = vmatprep.subr.mxu0 %v3347_v56 }
 0x268   : > { %5767 = vmatpush3.msra.mxu1 %v3191_v59  ;;  %5821 = vmatpush3.msra.mxu0 %v3347_v56  ;;  %v7593_v59 = vld [vmem:[#allocation3 + $0x7f] sm:$0xff] }
 0x269   : > { %5698 = vmatmul.mubr.f32.gmra.mxu1 %v7539_v36  ;;  %5768 = vmatprep.subr.mxu1 %v3190_v34  ;;  %v7599_v56 = vld [vmem:[#allocation3 + $0x80] sm:$0xff] }
 0x26a   : > { %5769 = vmatpush3.msra.mxu1 %v3190_v34  ;;  %5700 = vmatprep.mubr.f32.mxu1 %v7545_v11  ;;  %v3502_v34 = vld [vmem:[#allocation4 + $0x2a8] sm:$0xff] }
 0x26b   : > { %5770 = vmatprep.subr.mxu1 %v3189_v51  ;;  %5822 = vmatprep.subr.mxu0 %v3346_v26 }
 0x26c   : > { %5771 = vmatpush3.msra.mxu1 %v3189_v51  ;;  %5750 = vmatprep.mubr.f32.mxu0 %v7551_v39  ;;  %v3660_v51 = vld [vmem:[#allocation4 + $0x328] sm:$0xff] }
 0x26d   : > { %5701 = vmatmul.mubr.f32.gmra.mxu1 %v7548_v4  ;;  %5772 = vmatprep.subr.mxu1 %v3188_v48 }
 0x26e   : > { %5773 = vmatpush3.msra.mxu1 %v3188_v48  ;;  %5823 = vmatpush3.msra.mxu0 %v3346_v26  ;;  %v7602_v48 = vld [vmem:[#allocation3 + $0x88] sm:$0xff]  ;;  %v3501_v26 = vld [vmem:[#allocation4 + $0x2a0] sm:$0xff] }
 0x26f   : > { %5751 = vmatmul.mubr.f32.gmra.mxu0 %v7554_v60  ;;  %5774 = vmatprep.subr.mxu1 %v3187_v20 }
 0x270   : > { %5824 = vmatprep.subr.mxu0 %v3345_v62  ;;  %5703 = vmatprep.mubr.f32.mxu1 %v7557_v37 }
 0x271   : > { %5775 = vmatpush3.msra.mxu1 %v3187_v20  ;;  %5825 = vmatpush3.msra.mxu0 %v3345_v62  ;;  %v3659_v20 = vld [vmem:[#allocation4 + $0x320] sm:$0xff]  ;;  %v3500_v62 = vld [vmem:[#allocation4 + $0x298] sm:$0xff] }
 0x272   : > { %5704 = vmatmul.mubr.f32.gmra.mxu1 %v7560_v13  ;;  %5776 = vmatprep.subr.mxu1 %v3186_v14 }
 0x273   : > { %5826 = vmatprep.subr.mxu0 %v3344_v40  ;;  %5753 = vmatprep.mubr.f32.mxu0 %v7563_v43 }
 0x274   : > { %5777 = vmatpush3.msra.mxu1 %v3186_v14  ;;  %5827 = vmatpush3.msra.mxu0 %v3344_v40  ;;  %v3658_v14 = vld [vmem:[#allocation4 + $0x318] sm:$0xff]  ;;  %v3499_v40 = vld [vmem:[#allocation4 + $0x290] sm:$0xff] }
 0x275   : > { %5754 = vmatmul.mubr.f32.gmra.mxu0 %v7566_v33  ;;  %5778 = vmatprep.subr.mxu1 %v3185_v17 }
 0x276   : > { %5828 = vmatprep.subr.mxu0 %v3343_v19  ;;  %5779 = vmatpush3.msra.mxu1 %v3185_v17  ;;  %v3657_v17 = vld [vmem:[#allocation4 + $0x310] sm:$0xff] }
 0x277   : > { %5829 = vmatpush3.msra.mxu0 %v3343_v19  ;;  %5780 = vmatprep.subr.mxu1 %v3184_v30  ;;  %v3498_v19 = vld [vmem:[#allocation4 + $0x288] sm:$0xff] }
 0x278   : > { %5830 = vmatprep.subr.mxu0 %v3342_v41  ;;  %5781 = vmatpush3.msra.mxu1 %v3184_v30  ;;  %v3656_v30 = vld [vmem:[#allocation4 + $0x308] sm:$0xff] }
 0x279   : > { %5831 = vmatpush3.msra.mxu0 %v3342_v41  ;;  %5782 = vmatprep.subr.mxu1 %v3183_v38  ;;  %v3497_v41 = vld [vmem:[#allocation4 + $0x280] sm:$0xff] }
 0x27a   : > { %5832 = vmatprep.subr.mxu0 %v3341_v12  ;;  %5783 = vmatpush3.msra.mxu1 %v3183_v38  ;;  %v3655_v38 = vld [vmem:[#allocation4 + $0x300] sm:$0xff] }
 0x27b   : > { %5833 = vmatpush3.msra.mxu0 %v3341_v12  ;;  %5784 = vmatprep.subr.mxu1 %v3182_v63  ;;  %v3828_v12 = vld [vmem:[#allocation4 + $0x3f8] sm:$0xff] }
 0x27c   : > { %5834 = vmatprep.subr.mxu0 %v3340_v55  ;;  %5785 = vmatpush3.msra.mxu1 %v3182_v63  ;;  %v3986_v63 = vld [vmem:[#allocation4 + $0x478] sm:$0xff] }
 0x27d   : > { %5835 = vmatpush3.msra.mxu0 %v3340_v55  ;;  %5786 = vmatprep.subr.mxu1 %v3181_v29  ;;  %v3827_v55 = vld [vmem:[#allocation4 + $0x3f0] sm:$0xff] }
 0x27e   : > { %5836 = vmatprep.subr.mxu0 %v3339_v53  ;;  %5787 = vmatpush3.msra.mxu1 %v3181_v29  ;;  %v3985_v29 = vld [vmem:[#allocation4 + $0x470] sm:$0xff] }
 0x27f   : > { %5788 = vmatprep.mubr.f32.mxu1 %v7524_v32  ;;  %5837 = vmatpush3.msra.mxu0 %v3339_v53  ;;  %v3663_v32 = vld [vmem:[#allocation4 + $0x340] sm:$0xff]  ;;  %v3826_v53 = vld [vmem:[#allocation4 + $0x3e8] sm:$0xff] }
 0x280   : > { %5789 = vmatmul.mubr.f32.vlgmr.msra.gmra.mxu1 %v7526_v31  ;;  %5838 = vmatprep.mubr.f32.mxu0 %v7489_v16  ;;  %v3509_v16 = vld [vmem:[#allocation4 + $0x2e0] sm:$0xff]  ;;  %v3504_v31 = vld [vmem:[#allocation4 + $0x2b8] sm:$0xff] }
 0x281   : > { %5856 = vmatprep.subr.mxu1 %v3512_v49  ;;  %5906 = vmatprep.subr.mxu0 %v3670_v61 }
 0x282   : > { %5839 = vmatmul.mubr.f32.vlgmr.msra.gmra.mxu0 %v7491_v27  ;;  %5857 = vmatpush3.msra.mxu1 %v3512_v49  ;;  %v3508_v27 = vld [vmem:[#allocation4 + $0x2d8] sm:$0xff]  ;;  %v3984_v49 = vld [vmem:[#allocation4 + $0x468] sm:$0xff] }
 0x283   : > { %5907 = vmatpush3.msra.mxu0 %v3670_v61  ;;  %5858 = vmatprep.subr.mxu1 %v3511_v5  ;;  %v3980_v61 = vld [vmem:[#allocation4 + $0x448] sm:$0xff] }
 0x284   : > { %5908 = vmatprep.subr.mxu0 %v3669_v8  ;;  %5791 = vmatprep.mubr.f32.mxu1 %v7531_v24  ;;  %v3503_v24 = vld [vmem:[#allocation4 + $0x2b0] sm:$0xff] }
 0x285   : > { %5859 = vmatpush3.msra.mxu1 %v3511_v5  ;;  %5909 = vmatpush3.msra.mxu0 %v3669_v8  ;;  %v3821_v5 = vld [vmem:[#allocation4 + $0x3c0] sm:$0xff]  ;;  %v3820_v8 = vld [vmem:[#allocation4 + $0x3b8] sm:$0xff] }
 0x286   : > { %5792 = vmatmul.mubr.f32.gmra.mxu1 %v7533_v35  ;;  %5860 = vmatprep.subr.mxu1 %v3510_v0 }
 0x287   : > { %5910 = vmatprep.subr.mxu0 %v3668_v50  ;;  %5841 = vmatprep.mubr.f32.mxu0 %v7495_v42  ;;  %v3665_v42 = vld [vmem:[#allocation4 + $0x350] sm:$0xff] }
 0x288   : > { %5861 = vmatpush3.msra.mxu1 %v3510_v0  ;;  %5911 = vmatpush3.msra.mxu0 %v3668_v50  ;;  %v3978_v0 = vld [vmem:[#allocation4 + $0x438] sm:$0xff] }
 0x289   : > { %5842 = vmatmul.mubr.f32.gmra.mxu0 %v7497_v15  ;;  %5862 = vmatprep.subr.mxu1 %v3509_v16  ;;  %v3651_v50 = vld [vmem:[#allocation3 + $0x8f] sm:$0xff] }
 0x28a   : > { %5912 = vmatprep.subr.mxu0 %v3667_v10  ;;  %5794 = vmatprep.mubr.f32.mxu1 %v7539_v36 }
 0x28b   : > { %5863 = vmatpush3.msra.mxu1 %v3509_v16  ;;  %5913 = vmatpush3.msra.mxu0 %v3667_v10  ;;  %v3819_v16 = vld [vmem:[#allocation4 + $0x3b0] sm:$0xff] }
 0x28c   : > { %5795 = vmatmul.mubr.f32.gmra.mxu1 %v7545_v11  ;;  %5864 = vmatprep.subr.mxu1 %v3508_v27  ;;  %v3977_v10 = vld [vmem:[#allocation4 + $0x430] sm:$0xff] }
 0x28d   : > { %5914 = vmatprep.subr.mxu0 %v3666_v46  ;;  %5844 = vmatprep.mubr.f32.mxu0 %v7501_v3 }
 0x28e   : > { %5865 = vmatpush3.msra.mxu1 %v3508_v27  ;;  %5915 = vmatpush3.msra.mxu0 %v3666_v46  ;;  %v7627_v27 = vld [vmem:[#allocation3 + $0x81] sm:$0xff]  ;;  %v7629_v46 = vld [vmem:[#allocation3 + $0x89] sm:$0xff] }
 0x28f   : > { %5845 = vmatmul.mubr.f32.gmra.mxu0 %v7503_v2  ;;  %5866 = vmatprep.subr.mxu1 %v3507_v52 }
 0x290   : > { %5916 = vmatprep.subr.mxu0 %v3665_v42  ;;  %5797 = vmatprep.mubr.f32.mxu1 %v7548_v4 }
 0x291   : > { %5867 = vmatpush3.msra.mxu1 %v3507_v52  ;;  %5917 = vmatpush3.msra.mxu0 %v3665_v42  ;;  %v3818_v52 = vld [vmem:[#allocation4 + $0x3a8] sm:$0xff] }
 0x292   : > { %5798 = vmatmul.mubr.f32.gmra.mxu1 %v7557_v37  ;;  %5868 = vmatprep.subr.mxu1 %v3506_v21  ;;  %v3976_v42 = vld [vmem:[#allocation4 + $0x428] sm:$0xff] }
 0x293   : > { %5918 = vmatprep.subr.mxu0 %v3664_v7  ;;  %5847 = vmatprep.mubr.f32.mxu0 %v7507_v1 }
 0x294   : > { %5869 = vmatpush3.msra.mxu1 %v3506_v21  ;;  %5919 = vmatpush3.msra.mxu0 %v3664_v7  ;;  %v3652_v21 = vld [vmem:[#allocation3 + $0x97] sm:$0xff]  ;;  %v3653_v7 = vld [vmem:[#allocation3 + $0x9f] sm:$0xff] }
 0x295   : > { %5848 = vmatmul.mubr.f32.gmra.mxu0 %v7509_v25  ;;  %5870 = vmatprep.subr.mxu1 %v3505_v23 }
 0x296   : > { %5920 = vmatprep.subr.mxu0 %v3663_v32  ;;  %5800 = vmatprep.mubr.f32.mxu1 %v7560_v13 }
 0x297   : > { %5871 = vmatpush3.msra.mxu1 %v3505_v23  ;;  %5921 = vmatpush3.msra.mxu0 %v3663_v32  ;;  %v3817_v23 = vld [vmem:[#allocation4 + $0x3a0] sm:$0xff] }
 0x298   : > { %5801 = vmatmul.mubr.f32.gmra.mxu1 %v7586_v57  ;;  %5872 = vmatprep.subr.mxu1 %v3504_v31  ;;  %v3975_v32 = vld [vmem:[#allocation4 + $0x420] sm:$0xff] }
 0x299   : > { %5922 = vmatprep.subr.mxu0 %v3662_v22  ;;  %5850 = vmatprep.mubr.f32.mxu0 %v7513_v9 }
 0x29a   : > { %5873 = vmatpush3.msra.mxu1 %v3504_v31  ;;  %5923 = vmatpush3.msra.mxu0 %v3662_v22  ;;  %v3974_v31 = vld [vmem:[#allocation4 + $0x418] sm:$0xff]  ;;  %v3815_v22 = vld [vmem:[#allocation4 + $0x390] sm:$0xff] }
 0x29b   : > { %5851 = vmatmul.mubr.f32.gmra.mxu0 %v7590_v54  ;;  %5874 = vmatprep.subr.mxu1 %v3503_v24 }
 0x29c   : > { %5924 = vmatprep.subr.mxu0 %v3661_v45  ;;  %5803 = vmatprep.mubr.f32.mxu1 %v7593_v59 }
 0x29d   : > { %5875 = vmatpush3.msra.mxu1 %v3503_v24  ;;  %5925 = vmatpush3.msra.mxu0 %v3661_v45  ;;  %v3973_v24 = vld [vmem:[#allocation4 + $0x410] sm:$0xff]  ;;  %v3814_v45 = vld [vmem:[#allocation4 + $0x388] sm:$0xff] }
 0x29e   : > { %5804 = vmatmul.mubr.f32.gmra.mxu1 %v7596_v6  ;;  %5876 = vmatprep.subr.mxu1 %v3502_v34 }
 0x29f   : > { %5926 = vmatprep.subr.mxu0 %v3660_v51  ;;  %5853 = vmatprep.mubr.f32.mxu0 %v7599_v56 }
 0x2a0   : > { %5877 = vmatpush3.msra.mxu1 %v3502_v34  ;;  %5927 = vmatpush3.msra.mxu0 %v3660_v51  ;;  %v3971_v34 = vld [vmem:[#allocation4 + $0x400] sm:$0xff] }
 0x2a1   : > { %5854 = vmatmul.mubr.f32.gmra.mxu0 %v7602_v48  ;;  %5878 = vmatprep.subr.mxu1 %v3501_v26 }
 0x2a2   : > { %5928 = vmatprep.subr.mxu0 %v3659_v20  ;;  %5879 = vmatpush3.msra.mxu1 %v3501_v26 }
 0x2a3   : > { %5929 = vmatpush3.msra.mxu0 %v3659_v20  ;;  %5880 = vmatprep.subr.mxu1 %v3500_v62 }
 0x2a4   : > { %5930 = vmatprep.subr.mxu0 %v3658_v14  ;;  %5881 = vmatpush3.msra.mxu1 %v3500_v62 }
 0x2a5   : > { %5931 = vmatpush3.msra.mxu0 %v3658_v14  ;;  %5882 = vmatprep.subr.mxu1 %v3499_v40 }
 0x2a6   : > { %5932 = vmatprep.subr.mxu0 %v3657_v17  ;;  %5883 = vmatpush3.msra.mxu1 %v3499_v40 }
 0x2a7   : > { %5933 = vmatpush3.msra.mxu0 %v3657_v17  ;;  %5884 = vmatprep.subr.mxu1 %v3498_v19 }
 0x2a8   : > { %5934 = vmatprep.subr.mxu0 %v3656_v30  ;;  %5885 = vmatpush3.msra.mxu1 %v3498_v19 }
 0x2a9   : > { %5935 = vmatpush3.msra.mxu0 %v3656_v30  ;;  %5886 = vmatprep.subr.mxu1 %v3497_v41 }
 0x2aa   : > { %5936 = vmatprep.subr.mxu0 %v3655_v38  ;;  %5887 = vmatpush3.msra.mxu1 %v3497_v41 }
 0x2ab   : > { %5888 = vmatprep.mubr.f32.mxu1 %v7516_v47  ;;  %5937 = vmatpush3.msra.mxu0 %v3655_v38  ;;  %v3825_v47 = vld [vmem:[#allocation4 + $0x3e0] sm:$0xff] }
 0x2ac   : > { %5889 = vmatmul.mubr.f32.vlgmr.msra.gmra.mxu1 %v7519_v28  ;;  %5938 = vmatprep.mubr.f32.mxu0 %v7533_v35  ;;  %v3983_v28 = vld [vmem:[#allocation4 + $0x460] sm:$0xff]  ;;  %v3824_v35 = vld [vmem:[#allocation4 + $0x3d8] sm:$0xff] }
 0x2ad   : > { %5956 = vmatprep.subr.mxu1 %v3828_v12  ;;  %6006 = vmatprep.subr.mxu0 %v3986_v63 }
 0x2ae   : > { %5939 = vmatmul.mubr.f32.vlgmr.msra.gmra.mxu0 %v7539_v36  ;;  %5957 = vmatpush3.msra.mxu1 %v3828_v12  ;;  %v3823_v36 = vld [vmem:[#allocation4 + $0x3d0] sm:$0xff] }
 0x2af   : > { %6007 = vmatpush3.msra.mxu0 %v3986_v63  ;;  %5958 = vmatprep.subr.mxu1 %v3827_v55 }
 0x2b0   : > { %6008 = vmatprep.subr.mxu0 %v3985_v29  ;;  %5891 = vmatprep.mubr.f32.mxu1 %v7522_v58  ;;  %v3982_v58 = vld [vmem:[#allocation4 + $0x458] sm:$0xff] }
 0x2b1   : > { %5959 = vmatpush3.msra.mxu1 %v3827_v55  ;;  %6009 = vmatpush3.msra.mxu0 %v3985_v29 }
 0x2b2   : > { %5892 = vmatmul.mubr.f32.gmra.mxu1 %v7536_v18  ;;  %5960 = vmatprep.subr.mxu1 %v3826_v53 }
 0x2b3   : > { %6010 = vmatprep.subr.mxu0 %v3984_v49  ;;  %5941 = vmatprep.mubr.f32.mxu0 %v7545_v11  ;;  %v3981_v11 = vld [vmem:[#allocation4 + $0x450] sm:$0xff] }
 0x2b4   : > { %5961 = vmatpush3.msra.mxu1 %v3826_v53  ;;  %6011 = vmatpush3.msra.mxu0 %v3984_v49 }
 0x2b5   : > { %5942 = vmatmul.mubr.f32.gmra.mxu0 %v7548_v4  ;;  %5962 = vmatprep.subr.mxu1 %v3825_v47  ;;  %v3822_v4 = vld [vmem:[#allocation4 + $0x3c8] sm:$0xff] }
 0x2b6   : > { %6012 = vmatprep.subr.mxu0 %v3983_v28  ;;  %5894 = vmatprep.mubr.f32.mxu1 %v7542_v44 }
 0x2b7   : > { %5963 = vmatpush3.msra.mxu1 %v3825_v47  ;;  %6013 = vmatpush3.msra.mxu0 %v3983_v28 }
 0x2b8   : > { %5895 = vmatmul.mubr.f32.gmra.mxu1 %v7551_v39  ;;  %5964 = vmatprep.subr.mxu1 %v3824_v35 }
 0x2b9   : > { %6014 = vmatprep.subr.mxu0 %v3982_v58  ;;  %5944 = vmatprep.mubr.f32.mxu0 %v7557_v37  ;;  %v3979_v37 = vld [vmem:[#allocation4 + $0x440] sm:$0xff] }
 0x2ba   : > { %5965 = vmatpush3.msra.mxu1 %v3824_v35  ;;  %6015 = vmatpush3.msra.mxu0 %v3982_v58 }
 0x2bb   : > { %5945 = vmatmul.mubr.f32.gmra.mxu0 %v7560_v13  ;;  %5966 = vmatprep.subr.mxu1 %v3823_v36  ;;  %v7622_v13 = vld [vmem:[#allocation3 + $0x79] sm:$0xff] }
 0x2bc   : > { %6016 = vmatprep.subr.mxu0 %v3981_v11  ;;  %5897 = vmatprep.mubr.f32.mxu1 %v7554_v60 }
 0x2bd   : > { %5967 = vmatpush3.msra.mxu1 %v3823_v36  ;;  %6017 = vmatpush3.msra.mxu0 %v3981_v11 }
 0x2be   : > { %5898 = vmatmul.mubr.f32.gmra.mxu1 %v7563_v43  ;;  %5968 = vmatprep.subr.mxu1 %v3822_v4 }
 0x2bf   : > { %6018 = vmatprep.subr.mxu0 %v3980_v61  ;;  %5947 = vmatprep.mubr.f32.mxu0 %v7586_v57  ;;  %v3816_v57 = vld [vmem:[#allocation4 + $0x398] sm:$0xff] }
 0x2c0   : > { %5969 = vmatpush3.msra.mxu1 %v3822_v4  ;;  %6019 = vmatpush3.msra.mxu0 %v3980_v61 }
 0x2c1   : > { %5948 = vmatmul.mubr.f32.gmra.mxu0 %v7593_v59  ;;  %5970 = vmatprep.subr.mxu1 %v3821_v5  ;;  %v3972_v59 = vld [vmem:[#allocation4 + $0x408] sm:$0xff] }
 0x2c2   : > { %6020 = vmatprep.subr.mxu0 %v3979_v37  ;;  %5900 = vmatprep.mubr.f32.mxu1 %v7566_v33 }
 0x2c3   : > { %5971 = vmatpush3.msra.mxu1 %v3821_v5  ;;  %6021 = vmatpush3.msra.mxu0 %v3979_v37 }
 0x2c4   : > { %5901 = vmatmul.mubr.f32.gmra.mxu1 %v7622_v13  ;;  %5972 = vmatprep.subr.mxu1 %v3820_v8 }
 0x2c5   : > { %6022 = vmatprep.subr.mxu0 %v3978_v0  ;;  %5950 = vmatprep.mubr.f32.mxu0 %v7596_v6  ;;  %v3813_v6 = vld [vmem:[#allocation4 + $0x380] sm:$0xff] }
 0x2c6   : > { %5973 = vmatpush3.msra.mxu1 %v3820_v8  ;;  %6023 = vmatpush3.msra.mxu0 %v3978_v0 }
 0x2c7   : > { %5951 = vmatmul.mubr.f32.gmra.mxu0 %v3651_v50  ;;  %5974 = vmatprep.subr.mxu1 %v3819_v16 }
 0x2c8   : > { %6024 = vmatprep.subr.mxu0 %v3977_v10  ;;  %5903 = vmatprep.mubr.f32.mxu1 %v7627_v27 }
 0x2c9   : > { %5975 = vmatpush3.msra.mxu1 %v3819_v16  ;;  %6025 = vmatpush3.msra.mxu0 %v3977_v10 }
 0x2ca   : > { %5904 = vmatmul.mubr.f32.gmra.mxu1 %v7629_v46  ;;  %5976 = vmatprep.subr.mxu1 %v3818_v52 }
 0x2cb   : > { %6026 = vmatprep.subr.mxu0 %v3976_v42  ;;  %5953 = vmatprep.mubr.f32.mxu0 %v3652_v21 }
 0x2cc   : > { %5977 = vmatpush3.msra.mxu1 %v3818_v52  ;;  %6027 = vmatpush3.msra.mxu0 %v3976_v42 }
 0x2cd   : > { %5954 = vmatmul.mubr.f32.gmra.mxu0 %v3653_v7  ;;  %5978 = vmatprep.subr.mxu1 %v3817_v23 }
 0x2ce   : > { %6028 = vmatprep.subr.mxu0 %v3975_v32  ;;  %5979 = vmatpush3.msra.mxu1 %v3817_v23 }
 0x2cf   : > { %6029 = vmatpush3.msra.mxu0 %v3975_v32  ;;  %5980 = vmatprep.subr.mxu1 %v3816_v57 }
 0x2d0   : > { %6030 = vmatprep.subr.mxu0 %v3974_v31  ;;  %5981 = vmatpush3.msra.mxu1 %v3816_v57 }
 0x2d1   : > { %6031 = vmatpush3.msra.mxu0 %v3974_v31  ;;  %5982 = vmatprep.subr.mxu1 %v3815_v22 }
 0x2d2   : > { %6032 = vmatprep.subr.mxu0 %v3973_v24  ;;  %5983 = vmatpush3.msra.mxu1 %v3815_v22 }
 0x2d3   : > { %6033 = vmatpush3.msra.mxu0 %v3973_v24  ;;  %5984 = vmatprep.subr.mxu1 %v3814_v45 }
 0x2d4   : > { %6034 = vmatprep.subr.mxu0 %v3972_v59  ;;  %5985 = vmatpush3.msra.mxu1 %v3814_v45 }
 0x2d5   : > { %6035 = vmatpush3.msra.mxu0 %v3972_v59  ;;  %5986 = vmatprep.subr.mxu1 %v3813_v6 }
 0x2d6   : > { %6036 = vmatprep.subr.mxu0 %v3971_v34  ;;  %5987 = vmatpush3.msra.mxu1 %v3813_v6 }
 0x2d7   : > { %5988 = vmatprep.mubr.f32.mxu1 %v7497_v15  ;;  %6037 = vmatpush3.msra.mxu0 %v3971_v34  ;;  %v3809_v15 = vld [vmem:[#allocation3 + $0x90] sm:$0xff] }
 0x2d8   : > { %6038 = vmatprep.mubr.f32.mxu0 %v7536_v18  ;;  %5989 = vmatmul.mubr.f32.vlgmr.msra.gmra.mxu1 %v7501_v3  ;;  %v3967_v3 = vld [vmem:[#allocation3 + $0x91] sm:$0xff] }
 0x2d9   : > { %6039 = vmatmul.mubr.f32.vlgmr.msra.gmra.mxu0 %v7542_v44  ;;  %5991 = vmatprep.mubr.f32.mxu1 %v7503_v2  ;;  %v3810_v2 = vld [vmem:[#allocation3 + $0x98] sm:$0xff] }
 0x2da   : > { %6041 = vmatprep.mubr.f32.mxu0 %v7551_v39 }
 0x2dc   : > { %5992 = vmatmul.mubr.f32.gmra.mxu1 %v7507_v1  ;;  %v3968_v1 = vld [vmem:[#allocation3 + $0x99] sm:$0xff] }
 0x2dd   : > { %6042 = vmatmul.mubr.f32.gmra.mxu0 %v7554_v60  ;;  %5994 = vmatprep.mubr.f32.mxu1 %v7509_v25  ;;  %v3811_v25 = vld [vmem:[#allocation3 + $0xa0] sm:$0xff] }
 0x2de   : > { %6044 = vmatprep.mubr.f32.mxu0 %v7563_v43 }
 0x2e0   : > { %5995 = vmatmul.mubr.f32.gmra.mxu1 %v7513_v9  ;;  %v3969_v9 = vld [vmem:[#allocation3 + $0xa1] sm:$0xff] }
 0x2e1   : > { %6045 = vmatmul.mubr.f32.gmra.mxu0 %v7566_v33  ;;  %5997 = vmatprep.mubr.f32.mxu1 %v7590_v54 }
 0x2e2   : > { %6047 = vmatprep.mubr.f32.mxu0 %v7622_v13 }
 0x2e4   : > { %5998 = vmatmul.mubr.f32.gmra.mxu1 %v7599_v56 }
 0x2e5   : > { %6048 = vmatmul.mubr.f32.gmra.mxu0 %v7627_v27  ;;  %6000 = vmatprep.mubr.f32.mxu1 %v7602_v48 }
 0x2e6   : > { %6050 = vmatprep.mubr.f32.mxu0 %v7629_v46 }
 0x2e8   : > { %6001 = vmatmul.mubr.f32.gmra.mxu1 %v3809_v15 }
 0x2e9   : > { %6051 = vmatmul.mubr.f32.gmra.mxu0 %v3967_v3  ;;  %6003 = vmatprep.mubr.f32.mxu1 %v3810_v2 }
 0x2ea   : > { %6053 = vmatprep.mubr.f32.mxu0 %v3968_v1 }
 0x2ec   : > { %6004 = vmatmul.mubr.f32.gmra.mxu1 %v3811_v25 }
 0x2ed   : > { %6054 = vmatmul.mubr.f32.gmra.mxu0 %v3969_v9 }
 0x2fd   : > { %v5640_v18 = vpop.f32.mrf.mxu1 }
 0x2ff   : > { %v2834_v44 = vpop.f32.mrf.mxu1 }
 0x301   : > { %v5643_v39 = vpop.f32.mrf.mxu1 }
 0x303   : > { %v2844_v60 = vpop.f32.mrf.mxu1 }
 0x305   : > { %v5646_v43 = vpop.f32.mrf.mxu1 }
 0x307   : > { %v2853_v33 = vpop.f32.mrf.mxu1  ;;  %v5740_v26 = vpop.f32.mrf.mxu0 }
 0x309   : > { %v5649_v54 = vpop.f32.mrf.mxu1  ;;  %v3105_v62 = vpop.f32.mrf.mxu0 }
 0x30b   : > { %v2862_v51 = vpop.f32.mrf.mxu1 }
 0x30d   : > { %v5652_v56 = vpop.f32.mrf.mxu1 }
 0x30f   : > { %v2872_v48 = vpop.f32.mrf.mxu1 }
 0x311   : > { %v5655_v20 = vpop.f32.mrf.mxu1 }
 0x313   : > { %v2881_v40 = vpop.f32.mrf.mxu1 }
 0x314   : > { %v5743_v14 = vpop.f32.mrf.mxu0 }
 0x316   : > { %v3115_v17 = vpop.f32.mrf.mxu0 }
 0x31a   : > { %v5746_v63 = vpop.f32.mrf.mxu0 }
 0x31c   : > { %v3124_v58 = vpop.f32.mrf.mxu0 }
 0x31d   : > { %v5690_v19 = vpop.f32.mrf.mxu1 }
 0x31e   : > { %v2961_v30 = vadd.f32 %v5690_v19, %v5640_v18 }
 0x31f   : > { %v2955_v41 = vpop.f32.mrf.mxu1 }
 0x320   : > { %v3161_v38 = vadd.f32 %v5740_v26, %v2961_v30  ;;  %v2956_v12 = vadd.f32 %v2955_v41, %v2834_v44 }
 0x321   : > { %v5693_v55 = vpop.f32.mrf.mxu1 }
 0x322   : > { %v3160_v29 = vadd.f32 %v3105_v62, %v2956_v12  ;;  %v2970_v53 = vadd.f32 %v5693_v55, %v5643_v39 }
 0x323   : > { %v2965_v49 = vpop.f32.mrf.mxu1 }
 0x324   : > { %v3162_v47 = vadd.f32 %v5743_v14, %v2970_v53  ;;  %v5749_v37 = vpop.f32.mrf.mxu0 }
 0x325   : > { %v5696_v28 = vpop.f32.mrf.mxu1 }
 0x326   : > { %v3133_v0 = vpop.f32.mrf.mxu0 }
 0x327   : > { %v2974_v35 = vpop.f32.mrf.mxu1 }
 0x328   : > { %v2975_v36 = vadd.f32 %v2974_v35, %v2853_v33 }
 0x329   : > { %v5699_v11 = vpop.f32.mrf.mxu1 }
 0x32a   : > { %v2989_v4 = vadd.f32 %v5699_v11, %v5649_v54  ;;  %v3163_v61 = vadd.f32 %v3124_v58, %v2975_v36 }
 0x32b   : > { %v2983_v5 = vpop.f32.mrf.mxu1 }
 0x32c   : > { %v2984_v13 = vadd.f32 %v2983_v5, %v2862_v51  ;;  %v3165_v8 = vadd.f32 %v5749_v37, %v2989_v4 }
 0x32d   : > { %v5702_v50 = vpop.f32.mrf.mxu1 }
 0x32e   : > { %v3164_v16 = vadd.f32 %v3133_v0, %v2984_v13  ;;  %v2998_v10 = vadd.f32 %v5702_v50, %v5652_v56 }
 0x32f   : > { %v2993_v27 = vpop.f32.mrf.mxu1  ;;  %v5752_v46 = vpop.f32.mrf.mxu0 }
 0x330   : > { %v3166_v52 = vadd.f32 %v5752_v46, %v2998_v10 }
 0x331   : > { %v3143_v42 = vpop.f32.mrf.mxu0 }
 0x332   : > { %v5705_v21 = vpop.f32.mrf.mxu1 }
 0x334   : > { %v3002_v7 = vpop.f32.mrf.mxu1 }
 0x335   : > { %v3003_v23 = vadd.f32 %v3002_v7, %v2881_v40  ;;  %v5755_v32 = vpop.f32.mrf.mxu0 }
 0x337   : > { %v3152_v57 = vpop.f32.mrf.mxu0 }
 0x338   : > { %v7651_v31 = vadd.f32 %v3152_v57, %v3003_v23 }
 0x340   : > { %v5790_v22 = vpop.f32.mrf.mxu1 }
 0x341   : > { %v3319_v24 = vadd.f32 %v5790_v22, %v3161_v38 }
 0x342   : > { %v5840_v45 = vpop.f32.mrf.mxu0  ;;  %v3263_v59 = vpop.f32.mrf.mxu1 }
 0x343   : > { %v3477_v6 = vadd.f32 %v5840_v45, %v3319_v24  ;;  %v3318_v34 = vadd.f32 %v3263_v59, %v3160_v29 }
 0x344   : > { %v3421_v15 = vpop.f32.mrf.mxu0 }
 0x345   : > { %v3476_v3 = vadd.f32 %v3421_v15, %v3318_v34 }
 0x346   : > { %v5793_v2 = vpop.f32.mrf.mxu1 }
 0x347   : > { %v3320_v1 = vadd.f32 %v5793_v2, %v3162_v47 }
 0x348   : > { %v3273_v25 = vpop.f32.mrf.mxu1 }
 0x349   : > { %v5843_v9 = vpop.f32.mrf.mxu0 }
 0x34a   : > { %v3478_v18 = vadd.f32 %v5843_v9, %v3320_v1  ;;  %v7664_v1 = vld [vmem:[%s7738_s7] ss:$0 sm:$0xff] }
 0x34b   : > { %v3431_v44 = vpop.f32.mrf.mxu0 }
 0x34c   : > { %v5796_v39 = vpop.f32.mrf.mxu1 }
 0x34e   : > { %v3282_v60 = vpop.f32.mrf.mxu1 }
 0x34f   : > { %v3321_v43 = vadd.f32 %v3282_v60, %v3163_v61  ;;  %v5846_v33 = vpop.f32.mrf.mxu0 }
 0x351   : > { %v3440_v54 = vpop.f32.mrf.mxu0 }
 0x352   : > { %v5799_v51 = vpop.f32.mrf.mxu1  ;;  %v3479_v56 = vadd.f32 %v3440_v54, %v3321_v43 }
 0x353   : > { %v3323_v48 = vadd.f32 %v5799_v51, %v3165_v8 }
 0x354   : > { %v3291_v26 = vpop.f32.mrf.mxu1 }
 0x355   : > { %v3322_v20 = vadd.f32 %v3291_v26, %v3164_v16  ;;  %v5849_v62 = vpop.f32.mrf.mxu0  ;;  %v4147_v26 = vld [vmem:[%s6360_s29 + $0x8] sm:$0xff] }
 0x356   : > { %v3481_v14 = vadd.f32 %v5849_v62, %v3323_v48 }
 0x357   : > { %v3449_v40 = vpop.f32.mrf.mxu0 }
 0x358   : > { %v5802_v17 = vpop.f32.mrf.mxu1  ;;  %v3480_v19 = vadd.f32 %v3449_v40, %v3322_v20 }
 0x359   : > { %v3324_v30 = vadd.f32 %v5802_v17, %v3166_v52 }
 0x35a   : > { %v3301_v41 = vpop.f32.mrf.mxu1 }
 0x35b   : > { %v5852_v38 = vpop.f32.mrf.mxu0 }
 0x35c   : > { %v7653_v12 = vadd.f32 %v5852_v38, %v3324_v30  ;;  %v4146_v38 = vld [vmem:[%s6360_s29] sm:$0xff] }
 0x35d   : > { %v3459_v63 = vpop.f32.mrf.mxu0 }
 0x35e   : > { %v5805_v55 = vpop.f32.mrf.mxu1 }
 0x360   : > { %v3310_v53 = vpop.f32.mrf.mxu1 }
 0x361   : > { %v5855_v29 = vpop.f32.mrf.mxu0 }
 0x363   : > { %v7655_v49 = vpop.f32.mrf.mxu0 }
 0x36c   : > { %v5890_v47 = vpop.f32.mrf.mxu1 }
 0x36d   : > { %v3635_v23 = vadd.f32 %v5890_v47, %v3477_v6 }
 0x36e   : > { %v5940_v28 = vpop.f32.mrf.mxu0  ;;  %v3579_v35 = vpop.f32.mrf.mxu1 }
 0x36f   : > { %v3634_v32 = vadd.f32 %v3579_v35, %v3476_v3  ;;  %v3793_v22 = vadd.f32 %v5940_v28, %v3635_v23  ;;  %v3325_v28 = vadd.f32 %v3310_v53, %v7651_v31 }
 0x370   : > { %v3737_v58 = vpop.f32.mrf.mxu0 }
 0x371   : > { %v3792_v34 = vadd.f32 %v3737_v58, %v3634_v32 }
 0x372   : > { %v5893_v36 = vpop.f32.mrf.mxu1 }
 0x373   : > { %v3636_v24 = vadd.f32 %v5893_v36, %v3478_v18  ;;  %v7669_v18 = vld [vmem:[%s7739_s8] ss:$0 sm:$0xff]  ;;  %v4148_v36 = vld [vmem:[%s6360_s29 + $0x10] sm:$0xff] }
 0x374   : > { %v3589_v11 = vpop.f32.mrf.mxu1 }
 0x375   : > { %v5943_v4 = vpop.f32.mrf.mxu0 }
 0x376   : > { %v3794_v9 = vadd.f32 %v5943_v4, %v3636_v24 }
 0x377   : > { %v3747_v61 = vpop.f32.mrf.mxu0 }
 0x378   : > { %v5896_v5 = vpop.f32.mrf.mxu1 }
 0x37a   : > { %v3598_v37 = vpop.f32.mrf.mxu1 }
 0x37b   : > { %v5946_v13 = vpop.f32.mrf.mxu0  ;;  %v3637_v60 = vadd.f32 %v3598_v37, %v3479_v56 }
 0x37d   : > { %v3756_v8 = vpop.f32.mrf.mxu0 }
 0x37e   : > { %v5899_v0 = vpop.f32.mrf.mxu1  ;;  %v3795_v55 = vadd.f32 %v3756_v8, %v3637_v60  ;;  %v4150_v60 = vld [vmem:[%s6360_s29 + $0x20] sm:$0xff] }
 0x37f   : > { %v3639_v48 = vadd.f32 %v5899_v0, %v3481_v14 }
 0x380   : > { %v3607_v50 = vpop.f32.mrf.mxu1 }
 0x381   : > { %v5949_v16 = vpop.f32.mrf.mxu0  ;;  %v3638_v41 = vadd.f32 %v3607_v50, %v3480_v19 }
 0x382   : > { %v3797_v35 = vadd.f32 %v5949_v16, %v3639_v48  ;;  %v3483_v16 = vadd.f32 %v7655_v49, %v3325_v28 }
 0x383   : > { %v3765_v10 = vpop.f32.mrf.mxu0 }
 0x384   : > { %v5902_v27 = vpop.f32.mrf.mxu1  ;;  %v3796_v13 = vadd.f32 %v3765_v10, %v3638_v41 }
 0x385   : > { %v3640_v58 = vadd.f32 %v5902_v27, %v7653_v12 }
 0x386   : > { %v3617_v46 = vpop.f32.mrf.mxu1 }
 0x387   : > { %v5952_v52 = vpop.f32.mrf.mxu0 }
 0x388   : > { %v3798_v27 = vadd.f32 %v5952_v52, %v3640_v58 }
 0x389   : > { %v3775_v42 = vpop.f32.mrf.mxu0 }
 0x38a   : > { %v5905_v21 = vpop.f32.mrf.mxu1 }
 0x38c   : > { %v7657_v57 = vpop.f32.mrf.mxu1 }
 0x38d   : > { %v5955_v7 = vpop.f32.mrf.mxu0  ;;  %v3641_v32 = vadd.f32 %v7657_v57, %v3483_v16 }
 0x38f   : > { %v7659_v45 = vpop.f32.mrf.mxu0 }
 0x398   : > { %v5990_v59 = vpop.f32.mrf.mxu1 }
 0x399   : > { %v3951_v15 = vadd.f32 %v5990_v59, %v3793_v22  ;;  %v6040_v2 = vpop.f32.mrf.mxu0  ;;  %v4149_v22 = vld [vmem:[%s6360_s29 + $0x18] sm:$0xff] }
 0x39a   : > { %v3895_v25 = vpop.f32.mrf.mxu1 }
 0x39b   : > { %v4109_v6 = vadd.f32 %v6040_v2, %v3951_v15  ;;  %v3950_v3 = vadd.f32 %v3895_v25, %v3792_v34  ;;  %v4053_v44 = vpop.f32.mrf.mxu0  ;;  %v4151_v2 = vld [vmem:[%s6360_s29 + $0x28] sm:$0xff] }
 0x39c   : > { %v5993_v39 = vpop.f32.mrf.mxu1 }
 0x39d   : > { %v4124_v43 = vmul.f32 %v7664_v1, %v4109_v6  ;;  %v4108_v33 = vadd.f32 %v4053_v44, %v3950_v3  ;;  %v3952_v54 = vadd.f32 %v5993_v39, %v3794_v9  ;;  %v6043_v51 = vpop.f32.mrf.mxu0  ;;  %v3799_v39 = vadd.f32 %v7659_v45, %v3641_v32 }
 0x39e   : > { %v3905_v20 = vpop.f32.mrf.mxu1 }
 0x39f   : > { %v4139_v62 = vadd.f32 %v7669_v18, %v4124_v43  ;;  %v4123_v40 = vmul.f32 %v7664_v1, %v4108_v33  ;;  %v4110_v17 = vadd.f32 %v6043_v51, %v3952_v54  ;;  %v4063_v30 = vpop.f32.mrf.mxu0  ;;  %v4152_v20 = vld [vmem:[%s6360_s29 + $0x30] sm:$0xff] }
 0x3a0   : > { %v5996_v63 = vpop.f32.mrf.mxu1 }
 0x3a1   : > { %v4155_v56 = vadd.f32 %v4147_v26, %v4139_v62  ;;  %v4138_v29 = vadd.f32 %v7669_v18, %v4123_v40  ;;  %v4125_v47 = vmul.f32 %v7664_v1, %v4110_v17  ;;  %v6046_v14 = vpop.f32.mrf.mxu0 }
 0x3a2   : > { %v3914_v11 = vpop.f32.mrf.mxu1 }
 0x3a3   : > { %v4163_v4 = vmax.f32 %v4155_v56, 0.0  ;;  %v4154_v19 = vadd.f32 %v4146_v38, %v4138_v29  ;;  %v4140_v61 = vadd.f32 %v7669_v18, %v4125_v47  ;;  %v3953_v5 = vadd.f32 %v3914_v11, %v3795_v55  ;;  %v4072_v37 = vpop.f32.mrf.mxu0  ;;  %v4153_v47 = vld [vmem:[%s6360_s29 + $0x38] sm:$0xff] }
 0x3a4   : > { %v5999_v8 = vpop.f32.mrf.mxu1 }
 0x3a5   : > { %4171 = vst.msk [vmem:[%s6365_s12 + $0x8] sm:$0xff] %vm597_vm1, %v4163_v4  ;;  %v4162_v0 = vmax.f32 %v4154_v19, 0.0  ;;  %v4156_v50 = vadd.f32 %v4148_v36, %v4140_v61  ;;  %v4111_v31 = vadd.f32 %v4072_v37, %v3953_v5  ;;  %v3955_v53 = vadd.f32 %v5999_v8, %v3797_v35  ;;  %v6049_v12 = vpop.f32.mrf.mxu0 }
 0x3a6   : > { %v3923_v46 = vpop.f32.mrf.mxu1 }
 0x3a7   : > { %4170 = vst.msk [vmem:[%s6365_s12] sm:$0xff] %vm597_vm1, %v4162_v0  ;;  %v4164_v42 = vmax.f32 %v4156_v50, 0.0  ;;  %v4126_v10 = vmul.f32 %v7664_v1, %v4111_v31  ;;  %v4113_v21 = vadd.f32 %v6049_v12, %v3955_v53  ;;  %v3954_v7 = vadd.f32 %v3923_v46, %v3796_v13  ;;  %v4081_v23 = vpop.f32.mrf.mxu0 }
 0x3a8   : > { %v6002_v24 = vpop.f32.mrf.mxu1 }
 0x3a9   : > { %4172 = vst.msk [vmem:[%s6365_s12 + $0x10] sm:$0xff] %vm597_vm1, %v4164_v42  ;;  %v4141_v49 = vadd.f32 %v7669_v18, %v4126_v10  ;;  %v4128_v52 = vmul.f32 %v7664_v1, %v4113_v21  ;;  %v4112_v59 = vadd.f32 %v4081_v23, %v3954_v7  ;;  %v3956_v34 = vadd.f32 %v6002_v24, %v3798_v27  ;;  %v6052_v15 = vpop.f32.mrf.mxu0 }
 0x3aa   : > { %v3933_v25 = vpop.f32.mrf.mxu1 }
 0x3ab   : > { %v4157_v9 = vadd.f32 %v4149_v22, %v4141_v49  ;;  %v4143_v6 = vadd.f32 %v7669_v18, %v4128_v52  ;;  %v4127_v57 = vmul.f32 %v7664_v1, %v4112_v59  ;;  %v4114_v3 = vadd.f32 %v6052_v15, %v3956_v34  ;;  %v4091_v44 = vpop.f32.mrf.mxu0 }
 0x3ac   : > { %v6005_v43 = vpop.f32.mrf.mxu1 }
 0x3ad   : > { %v4165_v33 = vmax.f32 %v4157_v9, 0.0  ;;  %v4159_v54 = vadd.f32 %v4151_v2, %v4143_v6  ;;  %v4142_v51 = vadd.f32 %v7669_v18, %v4127_v57  ;;  %v4129_v48 = vmul.f32 %v7664_v1, %v4114_v3  ;;  %v6055_v26 = vpop.f32.mrf.mxu0 }
 0x3ae   : > { %v3942_v62 = vpop.f32.mrf.mxu1 }
 0x3af   : > { %4173 = vst.msk [vmem:[%s6365_s12 + $0x18] sm:$0xff] %vm597_vm1, %v4165_v33  ;;  %v4167_v40 = vmax.f32 %v4159_v54, 0.0  ;;  %v4158_v17 = vadd.f32 %v4150_v60, %v4142_v51  ;;  %v4144_v45 = vadd.f32 %v7669_v18, %v4129_v48  ;;  %v3957_v30 = vadd.f32 %v3942_v62, %v3799_v39  ;;  %v4100_v41 = vpop.f32.mrf.mxu0 }
 0x3b1   : > { %4175 = vst.msk [vmem:[%s6365_s12 + $0x28] sm:$0xff] %vm597_vm1, %v4167_v40  ;;  %v4166_v38 = vmax.f32 %v4158_v17, 0.0  ;;  %v4160_v63 = vadd.f32 %v4152_v20, %v4144_v45  ;;  %v4115_v55 = vadd.f32 %v4100_v41, %v3957_v30 }
 0x3b3   : > { %4174 = vst.msk [vmem:[%s6365_s12 + $0x20] sm:$0xff] %vm597_vm1, %v4166_v38  ;;  %v4168_v56 = vmax.f32 %v4160_v63, 0.0  ;;  %v4130_v29 = vmul.f32 %v7664_v1, %v4115_v55 }
 0x3b5   : > { %4176 = vst.msk [vmem:[%s6365_s12 + $0x30] sm:$0xff] %vm597_vm1, %v4168_v56  ;;  %v4145_v14 = vadd.f32 %v7669_v18, %v4130_v29 }
 0x3b7   : > { %v4161_v28 = vadd.f32 %v4153_v47, %v4145_v14 }
 0x3b9   : > { %v4169_v35 = vmax.f32 %v4161_v28, 0.0 }
 0x3bb   : > { %4177 = vst.msk [vmem:[%s6365_s12 + $0x38] sm:$0xff] %vm597_vm1, %v4169_v35 }
 0x3bc PF: > { %s21_s17 = sadd.s32 1, %s6183_s17   ;;  %s7774_s11 = sld [smem:[#allocation7_spill]] }
 0x3bd   : > { %p18_p12 = scmp.ge.s32.totalorder %s21_s17, 10   ;;  %s7775_s18 = sld [smem:[#allocation8_spill]] }
 0x3be   : > { %s7776_s13 = smov %s6175_s15  ;;  %s7777_s14 = smov %s6179_s16 }
 0x3bf   :  { %20 = sbr.rel (!%p18_p12) target bundleno = 7 (0x7), region = 138 }
 0x3c2   : > { %s7778_s15 = smov %s7774_s11 }
 0x3c3   : > { %s7779_s16 = smov %s7775_s18 }
 0x3c4   :  { %4210 = vsyncpa [#allocation5], 1 }
 0x3c5   :  { %4212 = vsyncpa [#allocation5 + $0x1], 1 }

// kernel: tpu_custom_call.1
= control target key start
LH: loop header
LB: loop body
LE: loop exit
PB: predicated region body
PF: predicated region fallthrough
CT: control target
= control target key end

     0   :  { %s7731_s0 = inlined_call_operand.vmem [shape: f32[2,16,16,4], index: 0, kind: input, shape index: {}]   ;;  %s7732_s1 = inlined_call_operand.vmem [shape: f32[2,16,16,4], index: 1, kind: input, shape index: {}]   ;;  %s7733_s2 = inlined_call_operand.vmem [shape: f32[2,16,16,4], index: 2, kind: input, shape index: {}]   ;;  %s7734_s3 = inlined_call_operand.vmem [shape: f32[9,128,128], index: 3, kind: input, shape index: {}]   ;;  %s7735_s4 = inlined_call_operand.vmem [shape: f32[1,128], index: 4, kind: input, shape index: {}]   ;;  %s7736_s5 = inlined_call_operand.vmem [shape: f32[1,128], index: 5, kind: input, shape index: {}]   ;;  %s7737_s6 = inlined_call_operand.hbm [shape: f32[9,128,128], index: 6, kind: input, shape index: {}]   ;;  %s7738_s7 = inlined_call_operand.vmem [shape: f32[1,128], index: 7, kind: input, shape index: {}]   ;;  %s7739_s8 = inlined_call_operand.vmem [shape: f32[1,128], index: 8, kind: input, shape index: {}]   ;;  %s7740_s9 = inlined_call_operand.vmem [shape: f32[144,1], index: 9, kind: input, shape index: {}]   ;;  %s7741_s10 = inlined_call_operand.vmem [shape: f32[2,16,16,4], index: 10, kind: output, shape index: {}]  }
   0x1   :  { %7742 = sst [smem:[#allocation19_spill]] %s7731_s0 }
   0x2   :  { %7743 = sst [smem:[#allocation20_spill]] %s7737_s6 }
   0x3   :  { %7744 = sst [smem:[#allocation21_spill]] %s7741_s10 }
   0x4   :  { %15 = vsyncpa [#allocation5], 0  ;;  %s6247_s13 = smov 0   ;;  %s6249_s14 = smov 0  }
   0x5   :  { %s6251_s15 = smov 0   ;;  %s6253_s16 = smov 0  }
   0x6   :  { %s6255_s17 = smov 0  }
   0x7 LB: > { %s4331_s18 = sadd.s32 4294967295, %s6183_s17   ;;  %s30_s19 = sadd.s32 1, %s6175_s15  ;;  %s6183_s17 = sphi %s6255_s17, %s21_s17   ;;  %s6179_s16 = sphi %s6253_s16, %s7779_s16   ;;  %s6175_s15 = sphi %s6251_s15, %s7778_s15   ;;  %s6171_s14 = sphi %s6249_s14, %s7777_s14   ;;  %s6167_s13 = sphi %s6247_s13, %s7776_s13  }
   0x8   : > { %p31_p0 = scmp.ge.s32.totalorder %s30_s19, 4  ;;  %s33_s20 = sadd.s32 1, %s6179_s16 }
   0x9   : > { %p4339_p1 = scmp.ge.s32.totalorder %s6183_s17, 1  ;;  %p313_p2 = scmp.lt.s32.totalorder %s6183_s17, 9 }
   0xa   : > { %s7781_s19 = smov (%p31_p0, %s30_s19), 0  ;;  %s7783_s20 = smov (!%p31_p0, %s33_s20), %s6179_s16 }
   0xb   : > { %7745 = sst [smem:[#allocation7_spill]] %s7781_s19  ;;  %p6280_p3 = pnand %p4339_p1, %p313_p2 }
   0xc   : > { %p35_p4 = scmp.ge.s32.totalorder %s7783_s20, 2  ;;  %p6284_p5 = scmp.eq.s32.totalorder %s4331_s18, 0 }
   0xd   : > { %p6060_p6 = pneg %p6280_p3  ;;  %s6185_s23 = smov [#allocation4]  }
   0xe   : > { %s7785_s20 = smov (%p35_p4, %s7783_s20), 0  ;;  %s334_s24 = sshll.u32 %s6185_s23, 4  ;;  %s335_s24 = int_to_ptr.vmem [resolvable:$true] %s334_s24 }
   0xf   : > { %7748 = sst [smem:[#allocation8_spill]] %s7785_s20  ;;  %p6294_p7 = pnand %p6284_p5, %p6060_p6 }
  0x10   : > { %s6126_s26 = scalar_lea.vmem %s335_s24, 18432  ;;  %p6134_p12 = scmp.lt.s32.totalorder %s335_s24, %s335_s24 }
  0x11   : > { %p6117_p8 = pneg %p6294_p7  ;;  %p6127_p9 = scmp.ne.s32.totalorder %s335_s24, %s6126_s26 }
  0x12   : > { %p6135_p13 = scmp.lt.s32.totalorder %s6126_s26, %s6126_s26 }
  0x13   : > { %p6129_p10 = pnand %p6127_p9, %p6117_p8 }
  0x14   : > { %p6136_p0 = por %p6135_p13, %p6134_p12 }
  0x15   : > { %p6130_p11 = pneg %p6129_p10 }
  0x17   : > { %p6137_p1 = pnand %p6136_p0, %p6130_p11 }
  0x19   : > { %6140 = shalt.err (!%p6137_p1)
}
  0x1a   : > { %s6186_s27 = smov 128   ;;  %s6187_s28 = smov 8  }
  0x1b   : > { %s7750_s6 = sld [smem:[#allocation20_spill]] }
  0x1d   : > { %417 = sbr.rel (%p6280_p3) target bundleno = 956 (0x3bc), region = 60 }
  0x21   : > { %6063 = dma.hbm_to_vmem [thread:$0]  (!%p6294_p7), %s7750_s6, 18432, %s335_s24, [#allocation5], %s6186_s27, %s6186_s27, %s6187_s28  }
  0x22   : > { %6162 = dma.done.wait (%p6284_p5), [#allocation5], 18432  }
  0x23   : > { %6164 = vsyncadd (%p6284_p5), [#allocation5], 4294948864  ;;  %s4344_s11 = sshll.u32 %s6167_s13, 2  ;;  %p494_p2 = scmp.lt.s32.totalorder %s6171_s14, 1  ;;  %v6188_v0 = vmov 0.0  }
  0x24   : > { %p6315_p4 = scmp.lt.s32.totalorder %s4344_s11, 15  ;;  %s4348_s18 = sshll.u32 %s6167_s13, 1  ;;  %555 = vst [vmem:[#allocation2 + $0x10] sm:$0xff] %v6188_v0  ;;  %556 = vst [vmem:[#allocation2 + $0x18] sm:$0xff] %v6188_v0 }
  0x25   : > { %557 = vst [vmem:[#allocation2 + $0x20] sm:$0xff] %v6188_v0  ;;  %558 = vst [vmem:[#allocation2 + $0x28] sm:$0xff] %v6188_v0  ;;  %s7787_s14 = smov (!%p494_p2, %s6171_s14), 1  ;;  %s4349_s22 = sadd.s32 4294967295, %s4348_s18 }
  0x26   : > { %559 = vst [vmem:[#allocation2 + $0x30] sm:$0xff] %v6188_v0  ;;  %560 = vst [vmem:[#allocation2 + $0x38] sm:$0xff] %v6188_v0  ;;  %s7789_s11 = smov (!%p6315_p4, %s4344_s11), 15  ;;  %s4346_s21 = sshll.u32 %s7787_s14, 5 }
  0x27   : > { %561 = vst [vmem:[#allocation2 + $0x40] sm:$0xff] %v6188_v0  ;;  %562 = vst [vmem:[#allocation2 + $0x48] sm:$0xff] %v6188_v0  ;;  %s4345_s23 = sshll.u32 %s7789_s11, 1  ;;  %p506_p3 = scmp.gt.s32.totalorder %s4349_s22, 0 }
  0x28   : > { %563 = vst [vmem:[#allocation2 + $0x50] sm:$0xff] %v6188_v0  ;;  %564 = vst [vmem:[#allocation2 + $0x58] sm:$0xff] %v6188_v0  ;;  %s500_s24 = sadd.s32 %s4346_s21, %s4345_s23  ;;  %s4516_s25 = sadd.s32 2, %s4348_s18 }
  0x29   : > { %565 = vst [vmem:[#allocation2 + $0x60] sm:$0xff] %v6188_v0  ;;  %566 = vst [vmem:[#allocation2 + $0x68] sm:$0xff] %v6188_v0  ;;  %s4347_s26 = sshll.u32 %s500_s24, 3  ;;  %p525_p5 = scmp.lt.s32.totalorder %s4516_s25, 7 }
  0x2a   : > { %567 = vst [vmem:[#allocation2 + $0x70] sm:$0xff] %v6188_v0  ;;  %568 = vst [vmem:[#allocation2 + $0x78] sm:$0xff] %v6188_v0  ;;  %s7752_s0 = sld [smem:[#allocation19_spill]]  ;;  %s7791_s22 = smov (!%p506_p3, %s4349_s22), 0 }
  0x2b   : > { %569 = vst [vmem:[#allocation2 + $0x80] sm:$0xff] %v6188_v0  ;;  %570 = vst [vmem:[#allocation2 + $0x88] sm:$0xff] %v6188_v0  ;;  %s7753_s10 = sld [smem:[#allocation21_spill]]  ;;  %s7793_s25 = smov (!%p525_p5, %s4516_s25), 7 }
  0x2c   : > { %571 = vst [vmem:[#allocation2 + $0x90] sm:$0xff] %v6188_v0  ;;  %572 = vst [vmem:[#allocation2 + $0x98] sm:$0xff] %v6188_v0  ;;  %s4350_s14 = sshll.u32 %s7791_s22, 1  ;;  %s4355_s11 = sshll.u32 %s7793_s25, 1 }
  0x2d   : > { %573 = vst [vmem:[#allocation2 + $0xa0] sm:$0xff] %v6188_v0  ;;  %574 = vst [vmem:[#allocation2 + $0xa8] sm:$0xff] %v6188_v0  ;;  %p511_p6 = scmp.lt.s32.totalorder %s4350_s14, 15  ;;  %p530_p7 = scmp.lt.s32.totalorder %s4355_s11, 15 }
  0x2e   : > { %575 = vst [vmem:[#allocation2 + $0xb0] sm:$0xff] %v6188_v0  ;;  %576 = vst [vmem:[#allocation2 + $0xb8] sm:$0xff] %v6188_v0  ;;  %p4363_p8 = scmp.le.s32.totalorder %s6167_s13, 0 }
  0x2f   : > { %577 = vst [vmem:[#allocation2 + $0xc0] sm:$0xff] %v6188_v0  ;;  %578 = vst [vmem:[#allocation2 + $0xc8] sm:$0xff] %v6188_v0  ;;  %s7795_s14 = smov (!%p511_p6, %s4350_s14), 15  ;;  %s7797_s11 = smov (!%p530_p7, %s4355_s11), 15 }
  0x30   : > { %579 = vst [vmem:[#allocation2 + $0xd0] sm:$0xff] %v6188_v0  ;;  %580 = vst [vmem:[#allocation2 + $0xd8] sm:$0xff] %v6188_v0  ;;  %s6360_s29 = scalar_lea.vmem %s7752_s0, %s4347_s26  ;;  %s4351_s18 = sshll.u32 %s7795_s14, 1 }
  0x31   : > { %s6365_s12 = scalar_lea.vmem %s7753_s10, %s4347_s26  ;;  %s515_s23 = sadd.s32 %s4351_s18, %s4346_s21 }
  0x32   : > { %s4356_s24 = sshll.u32 %s7797_s11, 1  ;;  %s4353_s20 = sshll.u32 %s515_s23, 3 }
  0x33   : > { %s534_s27 = sadd.s32 %s4356_s24, %s4346_s21  ;;  %s517_s19 = scalar_lea.vmem %s7732_s1, %s4353_s20 }
  0x34   : > { %s4358_s6 = sshll.u32 %s534_s27, 3  ;;  %584 = sbr.rel (%p4363_p8) target bundleno = 60 (0x3c), region = 68 }
  0x35   : > { %s6373_s10 = scalar_lea.vmem %s7733_s2, %s4358_s6 }
  0x39   : > { %v585_v1 = vld [vmem:[%s517_s19] sm:$0xff]  ;;  %vm587_vm0 = vcmask 31744   ;;  %v586_v2 = vld [vmem:[%s517_s19 + $0x8] sm:$0xff]  ;;  %v4364_v3 = vld [vmem:[%s517_s19 + $0x10] sm:$0xff] }
  0x3a   : > { %588 = vst.msk [vmem:[#allocation2 + $0x18] sm:$0xff] %vm587_vm0, %v585_v1  ;;  %589 = vst.msk [vmem:[#allocation2 + $0x20] sm:$0xff] %vm587_vm0, %v586_v2  ;;  %v4365_v4 = vld [vmem:[%s517_s19 + $0x18] sm:$0xff] }
  0x3b   : > { %593 = vst.msk [vmem:[#allocation2 + $0x30] sm:$0xff] %vm587_vm0, %v4364_v3  ;;  %594 = vst.msk [vmem:[#allocation2 + $0x38] sm:$0xff] %vm587_vm0, %v4365_v4 }
  0x3c PF: > { %v595_v5 = vld [vmem:[%s6360_s29] sm:$0xff]  ;;  %vm597_vm1 = vcmask 31744   ;;  %v596_v6 = vld [vmem:[%s6360_s29 + $0x8] sm:$0xff]  ;;  %v4366_v7 = vld [vmem:[%s6360_s29 + $0x10] sm:$0xff]  ;;  %p4372_p9 = scmp.ge.s32.totalorder %s6167_s13, 3 }
  0x3d   : > { %598 = vst.msk [vmem:[#allocation2 + $0x48] sm:$0xff] %vm597_vm1, %v595_v5  ;;  %599 = vst.msk [vmem:[#allocation2 + $0x50] sm:$0xff] %vm597_vm1, %v596_v6  ;;  %v4367_v8 = vld [vmem:[%s6360_s29 + $0x18] sm:$0xff]  ;;  %v4368_v9 = vld [vmem:[%s6360_s29 + $0x20] sm:$0xff] }
  0x3e   : > { %603 = vst.msk [vmem:[#allocation2 + $0x60] sm:$0xff] %vm597_vm1, %v4366_v7  ;;  %v4369_v10 = vld [vmem:[%s6360_s29 + $0x28] sm:$0xff]  ;;  %604 = vst.msk [vmem:[#allocation2 + $0x68] sm:$0xff] %vm597_vm1, %v4367_v8  ;;  %v4370_v11 = vld [vmem:[%s6360_s29 + $0x30] sm:$0xff]  ;;  %618 = sbr.rel (%p4372_p9) target bundleno = 70 (0x46), region = 72 }
  0x3f   : > { %608 = vst.msk [vmem:[#allocation2 + $0x78] sm:$0xff] %vm597_vm1, %v4368_v9  ;;  %609 = vst.msk [vmem:[#allocation2 + $0x80] sm:$0xff] %vm597_vm1, %v4369_v10  ;;  %v4371_v12 = vld [vmem:[%s6360_s29 + $0x38] sm:$0xff] }
  0x40   : > { %613 = vst.msk [vmem:[#allocation2 + $0x90] sm:$0xff] %vm597_vm1, %v4370_v11  ;;  %614 = vst.msk [vmem:[#allocation2 + $0x98] sm:$0xff] %vm597_vm1, %v4371_v12 }
  0x43   : > { %v619_v13 = vld [vmem:[%s6373_s10] sm:$0xff]  ;;  %v620_v14 = vld [vmem:[%s6373_s10 + $0x8] sm:$0xff]  ;;  %v4373_v15 = vld [vmem:[%s6373_s10 + $0x10] sm:$0xff] }
  0x44   : > { %621 = vst.msk [vmem:[#allocation2 + $0xa8] sm:$0xff] %vm597_vm1, %v619_v13  ;;  %622 = vst.msk [vmem:[#allocation2 + $0xb0] sm:$0xff] %vm597_vm1, %v620_v14  ;;  %v4374_v16 = vld [vmem:[%s6373_s10 + $0x18] sm:$0xff] }
  0x45   : > { %626 = vst.msk [vmem:[#allocation2 + $0xc0] sm:$0xff] %vm597_vm1, %v4373_v15  ;;  %627 = vst.msk [vmem:[#allocation2 + $0xc8] sm:$0xff] %vm597_vm1, %v4374_v16 }
  0x46 PF: > { %v4390_v17 = vld [vmem:[%s7734_s3 + $0xf8] sm:$0xff]  ;;  %v4389_v19 = vld [vmem:[%s7734_s3 + $0xf0] sm:$0xff]  ;;  %2677 = vst [vmem:[#allocation3 + $0x10] sm:$0xff] %v6188_v0  ;;  %2678 = vst [vmem:[#allocation3 + $0xa8] sm:$0xff] %v6188_v0  ;;  %p4505_p10 = scmp.ne.s32.totalorder %s6167_s13, 0 }
  0x47   : > { %v661_v18 = vld [vmem:[%s7734_s3 + $0x78] sm:$0xff]  ;;  %5075 = vmatprep.subr.mxu0 %v4390_v17  ;;  %v660_v20 = vld [vmem:[%s7734_s3 + $0x70] sm:$0xff]  ;;  %v4388_v21 = vld [vmem:[%s7734_s3 + $0xe8] sm:$0xff] }
  0x48   : > { %5134 = vmatprep.subr.mxu1 %v661_v18  ;;  %5076 = vmatpush3.msra.mxu0 %v4390_v17  ;;  %v659_v22 = vld [vmem:[%s7734_s3 + $0x68] sm:$0xff]  ;;  %v4387_v23 = vld [vmem:[%s7734_s3 + $0xe0] sm:$0xff]  ;;  %v4386_v25 = vld [vmem:[%s7734_s3 + $0xd8] sm:$0xff] }
  0x49   : > { %5135 = vmatpush3.msra.mxu1 %v661_v18  ;;  %5077 = vmatprep.subr.mxu0 %v4389_v19  ;;  %v658_v24 = vld [vmem:[%s7734_s3 + $0x60] sm:$0xff]  ;;  %v657_v26 = vld [vmem:[%s7734_s3 + $0x58] sm:$0xff]  ;;  %v4385_v27 = vld [vmem:[%s7734_s3 + $0xd0] sm:$0xff] }
  0x4a   : > { %5136 = vmatprep.subr.mxu1 %v660_v20  ;;  %5078 = vmatpush3.msra.mxu0 %v4389_v19  ;;  %v656_v28 = vld [vmem:[%s7734_s3 + $0x50] sm:$0xff]  ;;  %v4384_v29 = vld [vmem:[%s7734_s3 + $0xc8] sm:$0xff]  ;;  %v4383_v31 = vld [vmem:[%s7734_s3 + $0xc0] sm:$0xff] }
  0x4b   : > { %5137 = vmatpush3.msra.mxu1 %v660_v20  ;;  %5079 = vmatprep.subr.mxu0 %v4388_v21  ;;  %v655_v30 = vld [vmem:[%s7734_s3 + $0x48] sm:$0xff]  ;;  %v654_v32 = vld [vmem:[%s7734_s3 + $0x40] sm:$0xff]  ;;  %v4382_v33 = vld [vmem:[%s7734_s3 + $0xb8] sm:$0xff] }
  0x4c   : > { %5138 = vmatprep.subr.mxu1 %v659_v22  ;;  %5080 = vmatpush3.msra.mxu0 %v4388_v21  ;;  %v653_v34 = vld [vmem:[%s7734_s3 + $0x38] sm:$0xff]  ;;  %v4381_v35 = vld [vmem:[%s7734_s3 + $0xb0] sm:$0xff]  ;;  %v4380_v37 = vld [vmem:[%s7734_s3 + $0xa8] sm:$0xff] }
  0x4d   : > { %5139 = vmatpush3.msra.mxu1 %v659_v22  ;;  %5081 = vmatprep.subr.mxu0 %v4387_v23  ;;  %v652_v36 = vld [vmem:[%s7734_s3 + $0x30] sm:$0xff]  ;;  %v651_v38 = vld [vmem:[%s7734_s3 + $0x28] sm:$0xff]  ;;  %v4379_v39 = vld [vmem:[%s7734_s3 + $0xa0] sm:$0xff] }
  0x4e   : > { %5140 = vmatprep.subr.mxu1 %v658_v24  ;;  %5082 = vmatpush3.msra.mxu0 %v4387_v23  ;;  %v650_v40 = vld [vmem:[%s7734_s3 + $0x20] sm:$0xff]  ;;  %v4378_v41 = vld [vmem:[%s7734_s3 + $0x98] sm:$0xff]  ;;  %v4377_v43 = vld [vmem:[%s7734_s3 + $0x90] sm:$0xff] }
  0x4f   : > { %5141 = vmatpush3.msra.mxu1 %v658_v24  ;;  %5083 = vmatprep.subr.mxu0 %v4386_v25  ;;  %v649_v42 = vld [vmem:[%s7734_s3 + $0x18] sm:$0xff]  ;;  %v648_v44 = vld [vmem:[%s7734_s3 + $0x10] sm:$0xff]  ;;  %v4376_v45 = vld [vmem:[%s7734_s3 + $0x88] sm:$0xff] }
  0x50   : > { %5142 = vmatprep.subr.mxu1 %v657_v26  ;;  %5084 = vmatpush3.msra.mxu0 %v4386_v25  ;;  %v647_v46 = vld [vmem:[%s7734_s3 + $0x8] sm:$0xff]  ;;  %v4375_v47 = vld [vmem:[%s7734_s3 + $0x80] sm:$0xff]  ;;  %v662_v49 = vld [vmem:[#allocation2 + $0x18] sm:$0xff] }
  0x51   : > { %5143 = vmatpush3.msra.mxu1 %v657_v26  ;;  %5085 = vmatprep.subr.mxu0 %v4385_v27  ;;  %v646_v48 = vld [vmem:[%s7734_s3] sm:$0xff]  ;;  %v628_v50 = vld [vmem:[#allocation2 + $0x17] sm:$0xff]  ;;  %v664_v54 = vld [vmem:[#allocation2 + $0x28] sm:$0xff] }
  0x52   : > { %5144 = vmatprep.subr.mxu1 %v656_v28  ;;  %5086 = vmatpush3.msra.mxu0 %v4385_v27  ;;  %v663_v51 = vld [vmem:[#allocation2 + $0x20] sm:$0xff]  ;;  %v4406_v53 = vld [vmem:[%s7734_s3 + $0x178] sm:$0xff]  ;;  %v4405_v56 = vld [vmem:[%s7734_s3 + $0x170] sm:$0xff] }
  0x53   : > { %5145 = vmatpush3.msra.mxu1 %v656_v28  ;;  %5087 = vmatprep.subr.mxu0 %v4384_v29  ;;  %v629_v52 = vld [vmem:[#allocation2 + $0x1f] sm:$0xff]  ;;  %v630_v55 = vld [vmem:[#allocation2 + $0x27] sm:$0xff]  ;;  %v6508_v58 = vld [vmem:[#allocation2 + $0x30] sm:$0xff] }
  0x54   : > { %5146 = vmatprep.subr.mxu1 %v655_v30  ;;  %5088 = vmatpush3.msra.mxu0 %v4384_v29  ;;  %v4422_v57 = vld [vmem:[%s7734_s3 + $0x1f8] sm:$0xff]  ;;  %v6510_v59 = vld [vmem:[#allocation2 + $0x2f] sm:$0xff]  ;;  %v4403_v63 = vld [vmem:[%s7734_s3 + $0x160] sm:$0xff] }
  0x55   : > { %5147 = vmatpush3.msra.mxu1 %v655_v30  ;;  %5089 = vmatprep.subr.mxu0 %v4383_v31  ;;  %v6512_v60 = vld [vmem:[#allocation2 + $0x38] sm:$0xff]  ;;  %v4404_v61 = vld [vmem:[%s7734_s3 + $0x168] sm:$0xff]  ;;  %v6525_v0 = vld [vmem:[#allocation2 + $0x40] sm:$0xff] }
  0x56   : > { %5148 = vmatprep.subr.mxu1 %v654_v32  ;;  %5090 = vmatpush3.msra.mxu0 %v4383_v31  ;;  %v6517_v62 = vld [vmem:[#allocation2 + $0x37] sm:$0xff]  ;;  %v6528_v1 = vld [vmem:[#allocation2 + $0x3f] sm:$0xff]  ;;  %v4420_v4 = vld [vmem:[%s7734_s3 + $0x1e8] sm:$0xff] }
  0x57   : > { %5149 = vmatpush3.msra.mxu1 %v654_v32  ;;  %5091 = vmatprep.subr.mxu0 %v4382_v33  ;;  %v4421_v2 = vld [vmem:[%s7734_s3 + $0x1f0] sm:$0xff]  ;;  %v4402_v3 = vld [vmem:[%s7734_s3 + $0x158] sm:$0xff]  ;;  %v6541_v5 = vld [vmem:[#allocation2 + $0x48] sm:$0xff] }
  0x58   : > { %5150 = vmatprep.subr.mxu1 %v653_v34  ;;  %5092 = vmatpush3.msra.mxu0 %v4382_v33  ;;  %v6543_v6 = vld [vmem:[#allocation2 + $0x47] sm:$0xff]  ;;  %v6545_v7 = vld [vmem:[#allocation2 + $0x50] sm:$0xff]  ;;  %v4418_v12 = vld [vmem:[%s7734_s3 + $0x1d8] sm:$0xff] }
  0x59   : > { %5151 = vmatpush3.msra.mxu1 %v653_v34  ;;  %5093 = vmatprep.subr.mxu0 %v4381_v35  ;;  %v6547_v8 = vld [vmem:[#allocation2 + $0x4f] sm:$0xff]  ;;  %v4419_v10 = vld [vmem:[%s7734_s3 + $0x1e0] sm:$0xff]  ;;  %v6565_v13 = vld [vmem:[#allocation2 + $0x58] sm:$0xff] }
  0x5a   : > { %5152 = vmatprep.subr.mxu1 %v652_v36  ;;  %5094 = vmatpush3.msra.mxu0 %v4381_v35  ;;  %v4401_v9 = vld [vmem:[%s7734_s3 + $0x150] sm:$0xff]  ;;  %v4400_v11 = vld [vmem:[%s7734_s3 + $0x148] sm:$0xff]  ;;  %v6569_v15 = vld [vmem:[#allocation2 + $0x60] sm:$0xff] }
  0x5b   : > { %5153 = vmatpush3.msra.mxu1 %v652_v36  ;;  %5095 = vmatprep.subr.mxu0 %v4380_v37  ;;  %v6567_v14 = vld [vmem:[#allocation2 + $0x57] sm:$0xff]  ;;  %v6571_v16 = vld [vmem:[#allocation2 + $0x5f] sm:$0xff]  ;;  %v4416_v20 = vld [vmem:[%s7734_s3 + $0x1c8] sm:$0xff] }
  0x5c   : > { %5154 = vmatprep.subr.mxu1 %v651_v38  ;;  %5096 = vmatpush3.msra.mxu0 %v4380_v37  ;;  %v4399_v17 = vld [vmem:[%s7734_s3 + $0x140] sm:$0xff]  ;;  %v4417_v18 = vld [vmem:[%s7734_s3 + $0x1d0] sm:$0xff]  ;;  %v4398_v19 = vld [vmem:[%s7734_s3 + $0x138] sm:$0xff] }
  0x5d   : > { %5155 = vmatpush3.msra.mxu1 %v651_v38  ;;  %5097 = vmatprep.subr.mxu0 %v4379_v39  ;;  %v6589_v21 = vld [vmem:[#allocation2 + $0x68] sm:$0xff]  ;;  %v6593_v23 = vld [vmem:[#allocation2 + $0x70] sm:$0xff]  ;;  %v4415_v25 = vld [vmem:[%s7734_s3 + $0x1c0] sm:$0xff] }
  0x5e   : > { %5156 = vmatprep.subr.mxu1 %v650_v40  ;;  %5098 = vmatpush3.msra.mxu0 %v4379_v39  ;;  %v6591_v22 = vld [vmem:[#allocation2 + $0x67] sm:$0xff]  ;;  %v6595_v24 = vld [vmem:[#allocation2 + $0x6f] sm:$0xff]  ;;  %v4414_v27 = vld [vmem:[%s7734_s3 + $0x1b8] sm:$0xff] }
  0x5f   : > { %5157 = vmatpush3.msra.mxu1 %v650_v40  ;;  %5099 = vmatprep.subr.mxu0 %v4378_v41  ;;  %v4397_v26 = vld [vmem:[%s7734_s3 + $0x130] sm:$0xff]  ;;  %v6610_v28 = vld [vmem:[#allocation2 + $0x78] sm:$0xff]  ;;  %v4396_v30 = vld [vmem:[%s7734_s3 + $0x128] sm:$0xff] }
  0x60   : > { %5158 = vmatprep.subr.mxu1 %v649_v42  ;;  %5100 = vmatpush3.msra.mxu0 %v4378_v41  ;;  %v6612_v29 = vld [vmem:[#allocation2 + $0x77] sm:$0xff]  ;;  %v6617_v31 = vld [vmem:[#allocation2 + $0x80] sm:$0xff]  ;;  %v4412_v35 = vld [vmem:[%s7734_s3 + $0x1a8] sm:$0xff] }
  0x61   : > { %5159 = vmatpush3.msra.mxu1 %v649_v42  ;;  %5101 = vmatprep.subr.mxu0 %v4377_v43  ;;  %v6620_v32 = vld [vmem:[#allocation2 + $0x7f] sm:$0xff]  ;;  %v4413_v33 = vld [vmem:[%s7734_s3 + $0x1b0] sm:$0xff]  ;;  %v6634_v36 = vld [vmem:[#allocation2 + $0x88] sm:$0xff] }
  0x62   : > { %5160 = vmatprep.subr.mxu1 %v648_v44  ;;  %5102 = vmatpush3.msra.mxu0 %v4377_v43  ;;  %v4395_v34 = vld [vmem:[%s7734_s3 + $0x120] sm:$0xff]  ;;  %v4394_v38 = vld [vmem:[%s7734_s3 + $0x118] sm:$0xff]  ;;  %v6641_v39 = vld [vmem:[#allocation2 + $0x90] sm:$0xff] }
  0x63   : > { %5161 = vmatpush3.msra.mxu1 %v648_v44  ;;  %5103 = vmatprep.subr.mxu0 %v4376_v45  ;;  %v6636_v37 = vld [vmem:[#allocation2 + $0x87] sm:$0xff]  ;;  %v6644_v40 = vld [vmem:[#allocation2 + $0x8f] sm:$0xff]  ;;  %v6654_v43 = vld [vmem:[#allocation2 + $0x98] sm:$0xff] }
  0x64   : > { %5162 = vmatprep.subr.mxu1 %v647_v46  ;;  %5104 = vmatpush3.msra.mxu0 %v4376_v45  ;;  %v4411_v41 = vld [vmem:[%s7734_s3 + $0x1a0] sm:$0xff]  ;;  %v4393_v42 = vld [vmem:[%s7734_s3 + $0x110] sm:$0xff]  ;;  %v4410_v44 = vld [vmem:[%s7734_s3 + $0x198] sm:$0xff] }
  0x65   : > { %5163 = vmatpush3.msra.mxu1 %v647_v46  ;;  %5105 = vmatprep.subr.mxu0 %v4375_v47  ;;  %v6660_v45 = vld [vmem:[#allocation2 + $0x97] sm:$0xff]  ;;  %v6663_v46 = vld [vmem:[#allocation2 + $0xa0] sm:$0xff] }
  0x66   : > { %5164 = vmatprep.subr.mxu1 %v646_v48  ;;  %5106 = vmatpush3.msra.mxu0 %v4375_v47  ;;  %v6665_v47 = vld [vmem:[#allocation2 + $0x9f] sm:$0xff] }
  0x67   : > { %5107 = vmatprep.mubr.f32.mxu0 %v662_v49  ;;  %5165 = vmatpush3.msra.mxu1 %v646_v48  ;;  %v4392_v48 = vld [vmem:[%s7734_s3 + $0x108] sm:$0xff]  ;;  %v4409_v49 = vld [vmem:[%s7734_s3 + $0x190] sm:$0xff] }
  0x68   : > { %5166 = vmatprep.mubr.f32.mxu1 %v628_v50  ;;  %5108 = vmatmul.mubr.f32.vlgmr.msra.gmra.mxu0 %v663_v51  ;;  %v4391_v50 = vld [vmem:[%s7734_s3 + $0x100] sm:$0xff]  ;;  %v4408_v51 = vld [vmem:[%s7734_s3 + $0x188] sm:$0xff] }
  0x69   : > { %5167 = vmatmul.mubr.f32.vlgmr.msra.gmra.mxu1 %v629_v52  ;;  %5193 = vmatprep.subr.mxu0 %v4406_v53  ;;  %v1007_v52 = vld [vmem:[#allocation2 + $0x19] sm:$0xff] }
  0x6a   : > { %5110 = vmatprep.mubr.f32.mxu0 %v664_v54  ;;  %5194 = vmatpush3.msra.mxu0 %v4406_v53  ;;  %v1008_v53 = vld [vmem:[#allocation2 + $0x21] sm:$0xff] }
  0x6b   : > { %5169 = vmatprep.mubr.f32.mxu1 %v630_v55  ;;  %5195 = vmatprep.subr.mxu0 %v4405_v56  ;;  %v4407_v54 = vld [vmem:[%s7734_s3 + $0x180] sm:$0xff]  ;;  %v4438_v55 = vld [vmem:[%s7734_s3 + $0x278] sm:$0xff] }
  0x6c   : > { %5252 = vmatprep.subr.mxu1 %v4422_v57  ;;  %5111 = vmatmul.mubr.f32.gmra.mxu0 %v6508_v58 }
  0x6d   : > { %5170 = vmatmul.mubr.f32.gmra.mxu1 %v6510_v59  ;;  %5196 = vmatpush3.msra.mxu0 %v4405_v56  ;;  %v1009_v56 = vld [vmem:[#allocation2 + $0x29] sm:$0xff] }
  0x6e   : > { %5113 = vmatprep.mubr.f32.mxu0 %v6512_v60  ;;  %5197 = vmatprep.subr.mxu0 %v4404_v61 }
  0x6f   : > { %5172 = vmatprep.mubr.f32.mxu1 %v6517_v62  ;;  %5198 = vmatpush3.msra.mxu0 %v4404_v61  ;;  %v6692_v61 = vld [vmem:[#allocation2 + $0x31] sm:$0xff] }
  0x70   : > { %5253 = vmatpush3.msra.mxu1 %v4422_v57  ;;  %5199 = vmatprep.subr.mxu0 %v4403_v63  ;;  %v4437_v57 = vld [vmem:[%s7734_s3 + $0x270] sm:$0xff] }
  0x71   : > { %5114 = vmatmul.mubr.f32.gmra.mxu0 %v6525_v0  ;;  %5173 = vmatmul.mubr.f32.gmra.mxu1 %v6528_v1 }
  0x72   : > { %5200 = vmatpush3.msra.mxu0 %v4403_v63  ;;  %5254 = vmatprep.subr.mxu1 %v4421_v2  ;;  %v4454_v63 = vld [vmem:[%s7734_s3 + $0x2f8] sm:$0xff] }
  0x73   : > { %5201 = vmatprep.subr.mxu0 %v4402_v3  ;;  %5255 = vmatpush3.msra.mxu1 %v4421_v2  ;;  %v4436_v2 = vld [vmem:[%s7734_s3 + $0x268] sm:$0xff] }
  0x74   : > { %5202 = vmatpush3.msra.mxu0 %v4402_v3  ;;  %5256 = vmatprep.subr.mxu1 %v4420_v4  ;;  %v6709_v3 = vld [vmem:[#allocation2 + $0x41] sm:$0xff] }
  0x75   : > { %5116 = vmatprep.mubr.f32.mxu0 %v6541_v5  ;;  %5175 = vmatprep.mubr.f32.mxu1 %v6543_v6 }
  0x76   : > { %5257 = vmatpush3.msra.mxu1 %v4420_v4  ;;  %5117 = vmatmul.mubr.f32.gmra.mxu0 %v6545_v7  ;;  %v4453_v4 = vld [vmem:[%s7734_s3 + $0x2f0] sm:$0xff] }
  0x77   : > { %5176 = vmatmul.mubr.f32.gmra.mxu1 %v6547_v8  ;;  %5203 = vmatprep.subr.mxu0 %v4401_v9 }
  0x78   : > { %5258 = vmatprep.subr.mxu1 %v4419_v10  ;;  %5204 = vmatpush3.msra.mxu0 %v4401_v9  ;;  %v4452_v9 = vld [vmem:[%s7734_s3 + $0x2e8] sm:$0xff] }
  0x79   : > { %5259 = vmatpush3.msra.mxu1 %v4419_v10  ;;  %5205 = vmatprep.subr.mxu0 %v4400_v11  ;;  %v6723_v10 = vld [vmem:[#allocation2 + $0x49] sm:$0xff] }
  0x7a   : > { %5260 = vmatprep.subr.mxu1 %v4418_v12  ;;  %5119 = vmatprep.mubr.f32.mxu0 %v6565_v13 }
  0x7b   : > { %5178 = vmatprep.mubr.f32.mxu1 %v6567_v14  ;;  %5206 = vmatpush3.msra.mxu0 %v4400_v11  ;;  %v6725_v11 = vld [vmem:[#allocation2 + $0x51] sm:$0xff] }
  0x7c   : > { %5261 = vmatpush3.msra.mxu1 %v4418_v12  ;;  %5120 = vmatmul.mubr.f32.gmra.mxu0 %v6569_v15  ;;  %v4433_v12 = vld [vmem:[%s7734_s3 + $0x250] sm:$0xff] }
  0x7d   : > { %5179 = vmatmul.mubr.f32.gmra.mxu1 %v6571_v16  ;;  %5207 = vmatprep.subr.mxu0 %v4399_v17 }
  0x7e   : > { %5262 = vmatprep.subr.mxu1 %v4417_v18  ;;  %5208 = vmatpush3.msra.mxu0 %v4399_v17  ;;  %v4451_v17 = vld [vmem:[%s7734_s3 + $0x2e0] sm:$0xff] }
  0x7f   : > { %5263 = vmatpush3.msra.mxu1 %v4417_v18  ;;  %5209 = vmatprep.subr.mxu0 %v4398_v19  ;;  %v4432_v18 = vld [vmem:[%s7734_s3 + $0x248] sm:$0xff] }
  0x80   : > { %5264 = vmatprep.subr.mxu1 %v4416_v20  ;;  %5122 = vmatprep.mubr.f32.mxu0 %v6589_v21 }
  0x81   : > { %5181 = vmatprep.mubr.f32.mxu1 %v6591_v22  ;;  %5210 = vmatpush3.msra.mxu0 %v4398_v19  ;;  %v4450_v19 = vld [vmem:[%s7734_s3 + $0x2d8] sm:$0xff] }
  0x82   : > { %5265 = vmatpush3.msra.mxu1 %v4416_v20  ;;  %5123 = vmatmul.mubr.f32.gmra.mxu0 %v6593_v23  ;;  %v6743_v20 = vld [vmem:[#allocation2 + $0x59] sm:$0xff] }
  0x83   : > { %5182 = vmatmul.mubr.f32.gmra.mxu1 %v6595_v24  ;;  %5266 = vmatprep.subr.mxu1 %v4415_v25 }
  0x84   : > { %5211 = vmatprep.subr.mxu0 %v4397_v26  ;;  %5267 = vmatpush3.msra.mxu1 %v4415_v25  ;;  %v6745_v25 = vld [vmem:[#allocation2 + $0x61] sm:$0xff] }
  0x85   : > { %5212 = vmatpush3.msra.mxu0 %v4397_v26  ;;  %5268 = vmatprep.subr.mxu1 %v4414_v27  ;;  %v4431_v26 = vld [vmem:[%s7734_s3 + $0x240] sm:$0xff] }
  0x86   : > { %5125 = vmatprep.mubr.f32.mxu0 %v6610_v28  ;;  %5184 = vmatprep.mubr.f32.mxu1 %v6612_v29 }
  0x87   : > { %5213 = vmatprep.subr.mxu0 %v4396_v30  ;;  %5269 = vmatpush3.msra.mxu1 %v4414_v27  ;;  %v4449_v27 = vld [vmem:[%s7734_s3 + $0x2d0] sm:$0xff] }
  0x88   : > { %5126 = vmatmul.mubr.f32.gmra.mxu0 %v6617_v31  ;;  %5185 = vmatmul.mubr.f32.gmra.mxu1 %v6620_v32 }
  0x89   : > { %5214 = vmatpush3.msra.mxu0 %v4396_v30  ;;  %5270 = vmatprep.subr.mxu1 %v4413_v33  ;;  %v4430_v30 = vld [vmem:[%s7734_s3 + $0x238] sm:$0xff] }
  0x8a   : > { %5215 = vmatprep.subr.mxu0 %v4395_v34  ;;  %5271 = vmatpush3.msra.mxu1 %v4413_v33  ;;  %v4448_v33 = vld [vmem:[%s7734_s3 + $0x2c8] sm:$0xff] }
  0x8b   : > { %5216 = vmatpush3.msra.mxu0 %v4395_v34  ;;  %5272 = vmatprep.subr.mxu1 %v4412_v35  ;;  %v6763_v34 = vld [vmem:[#allocation2 + $0x69] sm:$0xff] }
  0x8c   : > { %5128 = vmatprep.mubr.f32.mxu0 %v6634_v36  ;;  %5187 = vmatprep.mubr.f32.mxu1 %v6636_v37 }
  0x8d   : > { %5217 = vmatprep.subr.mxu0 %v4394_v38  ;;  %5273 = vmatpush3.msra.mxu1 %v4412_v35  ;;  %v6765_v35 = vld [vmem:[#allocation2 + $0x71] sm:$0xff] }
  0x8e   : > { %5129 = vmatmul.mubr.f32.gmra.mxu0 %v6641_v39  ;;  %5188 = vmatmul.mubr.f32.gmra.mxu1 %v6644_v40 }
  0x8f   : > { %5218 = vmatpush3.msra.mxu0 %v4394_v38  ;;  %5274 = vmatprep.subr.mxu1 %v4411_v41  ;;  %v4447_v38 = vld [vmem:[%s7734_s3 + $0x2c0] sm:$0xff] }
  0x90   : > { %5219 = vmatprep.subr.mxu0 %v4393_v42  ;;  %5275 = vmatpush3.msra.mxu1 %v4411_v41  ;;  %v4429_v41 = vld [vmem:[%s7734_s3 + $0x230] sm:$0xff] }
  0x91   : > { %5131 = vmatprep.mubr.f32.mxu0 %v6654_v43  ;;  %5276 = vmatprep.subr.mxu1 %v4410_v44 }
  0x92   : > { %5190 = vmatprep.mubr.f32.mxu1 %v6660_v45  ;;  %5220 = vmatpush3.msra.mxu0 %v4393_v42  ;;  %v4446_v42 = vld [vmem:[%s7734_s3 + $0x2b8] sm:$0xff] }
  0x93   : > { %5277 = vmatpush3.msra.mxu1 %v4410_v44  ;;  %5132 = vmatmul.mubr.f32.gmra.mxu0 %v6663_v46  ;;  %v6780_v44 = vld [vmem:[#allocation2 + $0x79] sm:$0xff] }
  0x94   : > { %5191 = vmatmul.mubr.f32.gmra.mxu1 %v6665_v47  ;;  %5221 = vmatprep.subr.mxu0 %v4392_v48 }
  0x95   : > { %5278 = vmatprep.subr.mxu1 %v4409_v49  ;;  %5222 = vmatpush3.msra.mxu0 %v4392_v48  ;;  %v4428_v48 = vld [vmem:[%s7734_s3 + $0x228] sm:$0xff] }
  0x96   : > { %5279 = vmatpush3.msra.mxu1 %v4409_v49  ;;  %5223 = vmatprep.subr.mxu0 %v4391_v50  ;;  %v6786_v49 = vld [vmem:[#allocation2 + $0x81] sm:$0xff] }
  0x97   : > { %5280 = vmatprep.subr.mxu1 %v4408_v51  ;;  %5224 = vmatpush3.msra.mxu0 %v4391_v50  ;;  %v4445_v50 = vld [vmem:[%s7734_s3 + $0x2b0] sm:$0xff] }
  0x98   : > { %5225 = vmatprep.mubr.f32.mxu0 %v1007_v52  ;;  %5281 = vmatpush3.msra.mxu1 %v4408_v51  ;;  %v4427_v51 = vld [vmem:[%s7734_s3 + $0x220] sm:$0xff]  ;;  %v4444_v52 = vld [vmem:[%s7734_s3 + $0x2a8] sm:$0xff] }
  0x99   : > { %5226 = vmatmul.mubr.f32.vlgmr.msra.gmra.mxu0 %v1008_v53  ;;  %5282 = vmatprep.subr.mxu1 %v4407_v54  ;;  %v6800_v53 = vld [vmem:[#allocation2 + $0x89] sm:$0xff] }
  0x9a   : > { %5311 = vmatprep.subr.mxu0 %v4438_v55  ;;  %5283 = vmatpush3.msra.mxu1 %v4407_v54  ;;  %v4426_v54 = vld [vmem:[%s7734_s3 + $0x218] sm:$0xff] }
  0x9b   : > { %5284 = vmatprep.mubr.f32.mxu1 %v6510_v59  ;;  %5312 = vmatpush3.msra.mxu0 %v4438_v55  ;;  %v6703_v59 = vld [vmem:[#allocation2 + $0x39] sm:$0xff]  ;;  %v6806_v55 = vld [vmem:[#allocation2 + $0x91] sm:$0xff] }
  0x9c   : > { %5285 = vmatmul.mubr.f32.vlgmr.msra.gmra.mxu1 %v6517_v62  ;;  %5228 = vmatprep.mubr.f32.mxu0 %v1009_v56  ;;  %v4435_v62 = vld [vmem:[%s7734_s3 + $0x260] sm:$0xff] }
  0x9d   : > { %5313 = vmatprep.subr.mxu0 %v4437_v57  ;;  %5229 = vmatmul.mubr.f32.gmra.mxu0 %v6692_v61  ;;  %v4443_v56 = vld [vmem:[%s7734_s3 + $0x2a0] sm:$0xff] }
  0x9e   : > { %5287 = vmatprep.mubr.f32.mxu1 %v6528_v1  ;;  %5314 = vmatpush3.msra.mxu0 %v4437_v57  ;;  %v4434_v1 = vld [vmem:[%s7734_s3 + $0x258] sm:$0xff]  ;;  %v4425_v57 = vld [vmem:[%s7734_s3 + $0x210] sm:$0xff] }
  0x9f   : > { %5370 = vmatprep.subr.mxu1 %v4454_v63  ;;  %5315 = vmatprep.subr.mxu0 %v4436_v2 }
  0xa0   : > { %5288 = vmatmul.mubr.f32.gmra.mxu1 %v6543_v6  ;;  %5316 = vmatpush3.msra.mxu0 %v4436_v2  ;;  %v4442_v2 = vld [vmem:[%s7734_s3 + $0x298] sm:$0xff] }
  0xa1   : > { %5231 = vmatprep.mubr.f32.mxu0 %v6703_v59  ;;  %5317 = vmatprep.subr.mxu0 %v4435_v62 }
  0xa2   : > { %5371 = vmatpush3.msra.mxu1 %v4454_v63  ;;  %5232 = vmatmul.mubr.f32.gmra.mxu0 %v6709_v3  ;;  %v6816_v63 = vld [vmem:[#allocation2 + $0xa7] sm:$0xff] }
  0xa3   : > { %5372 = vmatprep.subr.mxu1 %v4453_v4  ;;  %5318 = vmatpush3.msra.mxu0 %v4435_v62  ;;  %v6822_v62 = vld [vmem:[#allocation2 + $0x99] sm:$0xff] }
  0xa4   : > { %5290 = vmatprep.mubr.f32.mxu1 %v6547_v8  ;;  %5319 = vmatprep.subr.mxu0 %v4434_v1 }
  0xa5   : > { %5373 = vmatpush3.msra.mxu1 %v4453_v4  ;;  %5320 = vmatpush3.msra.mxu0 %v4434_v1  ;;  %v6824_v4 = vld [vmem:[#allocation2 + $0xa1] sm:$0xff] }
  0xa6   : > { %5291 = vmatmul.mubr.f32.gmra.mxu1 %v6567_v14  ;;  %5374 = vmatprep.subr.mxu1 %v4452_v9  ;;  %v4424_v1 = vld [vmem:[%s7734_s3 + $0x208] sm:$0xff] }
  0xa7   : > { %5234 = vmatprep.mubr.f32.mxu0 %v6723_v10  ;;  %5375 = vmatpush3.msra.mxu1 %v4452_v9  ;;  %v4441_v9 = vld [vmem:[%s7734_s3 + $0x290] sm:$0xff] }
  0xa8   : > { %5235 = vmatmul.mubr.f32.gmra.mxu0 %v6725_v11  ;;  %5321 = vmatprep.subr.mxu0 %v4433_v12 }
  0xa9   : > { %5376 = vmatprep.subr.mxu1 %v4451_v17  ;;  %5293 = vmatprep.mubr.f32.mxu1 %v6571_v16 }
  0xaa   : > { %5322 = vmatpush3.msra.mxu0 %v4433_v12  ;;  %5377 = vmatpush3.msra.mxu1 %v4451_v17  ;;  %v6834_v12 = vld [vmem:[#allocation2 + $0xaf] sm:$0xff]  ;;  %v4423_v17 = vld [vmem:[%s7734_s3 + $0x200] sm:$0xff] }
  0xab   : > { %5323 = vmatprep.subr.mxu0 %v4432_v18  ;;  %5294 = vmatmul.mubr.f32.gmra.mxu1 %v6591_v22 }
  0xac   : > { %5378 = vmatprep.subr.mxu1 %v4450_v19  ;;  %5237 = vmatprep.mubr.f32.mxu0 %v6743_v20 }
  0xad   : > { %5324 = vmatpush3.msra.mxu0 %v4432_v18  ;;  %5379 = vmatpush3.msra.mxu1 %v4450_v19  ;;  %v6840_v18 = vld [vmem:[#allocation2 + $0xb7] sm:$0xff]  ;;  %v4440_v19 = vld [vmem:[%s7734_s3 + $0x288] sm:$0xff] }
  0xae   : > { %5238 = vmatmul.mubr.f32.gmra.mxu0 %v6745_v25  ;;  %5325 = vmatprep.subr.mxu0 %v4431_v26 }
  0xaf   : > { %5380 = vmatprep.subr.mxu1 %v4449_v27  ;;  %5296 = vmatprep.mubr.f32.mxu1 %v6595_v24 }
  0xb0   : > { %5326 = vmatpush3.msra.mxu0 %v4431_v26  ;;  %5381 = vmatpush3.msra.mxu1 %v4449_v27  ;;  %v4439_v26 = vld [vmem:[%s7734_s3 + $0x280] sm:$0xff]  ;;  %v4470_v27 = vld [vmem:[%s7734_s3 + $0x378] sm:$0xff] }
  0xb1   : > { %5327 = vmatprep.subr.mxu0 %v4430_v30  ;;  %5297 = vmatmul.mubr.f32.gmra.mxu1 %v6612_v29 }
  0xb2   : > { %5382 = vmatprep.subr.mxu1 %v4448_v33  ;;  %5240 = vmatprep.mubr.f32.mxu0 %v6763_v34 }
  0xb3   : > { %5328 = vmatpush3.msra.mxu0 %v4430_v30  ;;  %5383 = vmatpush3.msra.mxu1 %v4448_v33  ;;  %v4469_v30 = vld [vmem:[%s7734_s3 + $0x370] sm:$0xff]  ;;  %v4486_v33 = vld [vmem:[%s7734_s3 + $0x3f8] sm:$0xff] }
  0xb4   : > { %5241 = vmatmul.mubr.f32.gmra.mxu0 %v6765_v35  ;;  %5384 = vmatprep.subr.mxu1 %v4447_v38 }
  0xb5   : > { %5299 = vmatprep.mubr.f32.mxu1 %v6620_v32  ;;  %5329 = vmatprep.subr.mxu0 %v4429_v41 }
  0xb6   : > { %5385 = vmatpush3.msra.mxu1 %v4447_v38  ;;  %5330 = vmatpush3.msra.mxu0 %v4429_v41  ;;  %v4483_v38 = vld [vmem:[%s7734_s3 + $0x3e0] sm:$0xff]  ;;  %v4464_v41 = vld [vmem:[%s7734_s3 + $0x348] sm:$0xff] }
  0xb7   : > { %5300 = vmatmul.mubr.f32.gmra.mxu1 %v6636_v37  ;;  %5386 = vmatprep.subr.mxu1 %v4446_v42 }
  0xb8   : > { %5243 = vmatprep.mubr.f32.mxu0 %v6780_v44  ;;  %5331 = vmatprep.subr.mxu0 %v4428_v48 }
  0xb9   : > { %5387 = vmatpush3.msra.mxu1 %v4446_v42  ;;  %5244 = vmatmul.mubr.f32.gmra.mxu0 %v6786_v49  ;;  %v4482_v42 = vld [vmem:[%s7734_s3 + $0x3d8] sm:$0xff] }
  0xba   : > { %5388 = vmatprep.subr.mxu1 %v4445_v50  ;;  %5332 = vmatpush3.msra.mxu0 %v4428_v48  ;;  %v4463_v48 = vld [vmem:[%s7734_s3 + $0x340] sm:$0xff] }
  0xbb   : > { %5302 = vmatprep.mubr.f32.mxu1 %v6644_v40  ;;  %5333 = vmatprep.subr.mxu0 %v4427_v51 }
  0xbc   : > { %5389 = vmatpush3.msra.mxu1 %v4445_v50  ;;  %5334 = vmatpush3.msra.mxu0 %v4427_v51  ;;  %v4481_v50 = vld [vmem:[%s7734_s3 + $0x3d0] sm:$0xff]  ;;  %v4462_v51 = vld [vmem:[%s7734_s3 + $0x338] sm:$0xff] }
  0xbd   : > { %5303 = vmatmul.mubr.f32.gmra.mxu1 %v6660_v45  ;;  %5390 = vmatprep.subr.mxu1 %v4444_v52 }
  0xbe   : > { %5246 = vmatprep.mubr.f32.mxu0 %v6800_v53  ;;  %5335 = vmatprep.subr.mxu0 %v4426_v54 }
  0xbf   : > { %5391 = vmatpush3.msra.mxu1 %v4444_v52  ;;  %5247 = vmatmul.mubr.f32.gmra.mxu0 %v6806_v55  ;;  %v4480_v52 = vld [vmem:[%s7734_s3 + $0x3c8] sm:$0xff] }
  0xc0   : > { %5392 = vmatprep.subr.mxu1 %v4443_v56  ;;  %5336 = vmatpush3.msra.mxu0 %v4426_v54  ;;  %v4479_v54 = vld [vmem:[%s7734_s3 + $0x3c0] sm:$0xff] }
  0xc1   : > { %5305 = vmatprep.mubr.f32.mxu1 %v6665_v47  ;;  %5393 = vmatpush3.msra.mxu1 %v4443_v56  ;;  %v4461_v56 = vld [vmem:[%s7734_s3 + $0x330] sm:$0xff] }
  0xc2   : > { %5337 = vmatprep.subr.mxu0 %v4425_v57  ;;  %5306 = vmatmul.mubr.f32.gmra.mxu1 %v6816_v63 }
  0xc3   : > { %5394 = vmatprep.subr.mxu1 %v4442_v2  ;;  %5249 = vmatprep.mubr.f32.mxu0 %v6822_v62 }
  0xc4   : > { %5338 = vmatpush3.msra.mxu0 %v4425_v57  ;;  %5395 = vmatpush3.msra.mxu1 %v4442_v2  ;;  %v4478_v57 = vld [vmem:[%s7734_s3 + $0x3b8] sm:$0xff]  ;;  %v4460_v2 = vld [vmem:[%s7734_s3 + $0x328] sm:$0xff] }
  0xc5   : > { %5250 = vmatmul.mubr.f32.gmra.mxu0 %v6824_v4  ;;  %5339 = vmatprep.subr.mxu0 %v4424_v1 }
  0xc6   : > { %5396 = vmatprep.subr.mxu1 %v4441_v9  ;;  %5308 = vmatprep.mubr.f32.mxu1 %v6834_v12 }
  0xc7   : > { %5340 = vmatpush3.msra.mxu0 %v4424_v1  ;;  %5397 = vmatpush3.msra.mxu1 %v4441_v9  ;;  %v4477_v1 = vld [vmem:[%s7734_s3 + $0x3b0] sm:$0xff]  ;;  %v4459_v9 = vld [vmem:[%s7734_s3 + $0x320] sm:$0xff] }
  0xc8   : > { %5341 = vmatprep.subr.mxu0 %v4423_v17  ;;  %5309 = vmatmul.mubr.f32.gmra.mxu1 %v6840_v18 }
  0xc9   : > { %5398 = vmatprep.subr.mxu1 %v4440_v19  ;;  %5342 = vmatpush3.msra.mxu0 %v4423_v17  ;;  %v4476_v17 = vld [vmem:[%s7734_s3 + $0x3a8] sm:$0xff] }
  0xca   : > { %5343 = vmatprep.mubr.f32.mxu0 %v6508_v58  ;;  %5399 = vmatpush3.msra.mxu1 %v4440_v19  ;;  %v4468_v58 = vld [vmem:[%s7734_s3 + $0x368] sm:$0xff]  ;;  %v4458_v19 = vld [vmem:[%s7734_s3 + $0x318] sm:$0xff] }
  0xcb   : > { %5344 = vmatmul.mubr.f32.vlgmr.msra.gmra.mxu0 %v6512_v60  ;;  %5400 = vmatprep.subr.mxu1 %v4439_v26  ;;  %v4467_v60 = vld [vmem:[%s7734_s3 + $0x360] sm:$0xff] }
  0xcc   : > { %5429 = vmatprep.subr.mxu0 %v4470_v27  ;;  %5401 = vmatpush3.msra.mxu1 %v4439_v26  ;;  %v6950_v26 = vld [vmem:[#allocation2 + $0xa8] sm:$0xff] }
  0xcd   : > { %5402 = vmatprep.mubr.f32.mxu1 %v6692_v61  ;;  %5430 = vmatpush3.msra.mxu0 %v4470_v27  ;;  %v4466_v61 = vld [vmem:[%s7734_s3 + $0x358] sm:$0xff]  ;;  %v4475_v27 = vld [vmem:[%s7734_s3 + $0x3a0] sm:$0xff] }
  0xce   : > { %5403 = vmatmul.mubr.f32.vlgmr.msra.gmra.mxu1 %v6703_v59  ;;  %5346 = vmatprep.mubr.f32.mxu0 %v6525_v0  ;;  %v4485_v0 = vld [vmem:[%s7734_s3 + $0x3f0] sm:$0xff]  ;;  %v4484_v59 = vld [vmem:[%s7734_s3 + $0x3e8] sm:$0xff] }
  0xcf   : > { %5431 = vmatprep.subr.mxu0 %v4469_v30  ;;  %5347 = vmatmul.mubr.f32.gmra.mxu0 %v6541_v5 }
  0xd0   : > { %5405 = vmatprep.mubr.f32.mxu1 %v6709_v3  ;;  %5432 = vmatpush3.msra.mxu0 %v4469_v30  ;;  %v4465_v3 = vld [vmem:[%s7734_s3 + $0x350] sm:$0xff] }
  0xd1   : > { %5488 = vmatprep.subr.mxu1 %v4486_v33  ;;  %5433 = vmatprep.subr.mxu0 %v4468_v58  ;;  %v4457_v30 = vld [vmem:[%s7734_s3 + $0x310] sm:$0xff] }
  0xd2   : > { %5406 = vmatmul.mubr.f32.gmra.mxu1 %v6723_v10  ;;  %5434 = vmatpush3.msra.mxu0 %v4468_v58  ;;  %v4474_v58 = vld [vmem:[%s7734_s3 + $0x398] sm:$0xff] }
  0xd3   : > { %5349 = vmatprep.mubr.f32.mxu0 %v6545_v7  ;;  %5435 = vmatprep.subr.mxu0 %v4467_v60 }
  0xd4   : > { %5489 = vmatpush3.msra.mxu1 %v4486_v33  ;;  %5350 = vmatmul.mubr.f32.gmra.mxu0 %v6565_v13  ;;  %v6960_v33 = vld [vmem:[#allocation2 + $0xa9] sm:$0xff] }
  0xd5   : > { %5490 = vmatprep.subr.mxu1 %v4485_v0  ;;  %5436 = vmatpush3.msra.mxu0 %v4467_v60  ;;  %v6966_v60 = vld [vmem:[#allocation2 + $0xb0] sm:$0xff] }
  0xd6   : > { %5408 = vmatprep.mubr.f32.mxu1 %v6725_v11  ;;  %5437 = vmatprep.subr.mxu0 %v4466_v61 }
  0xd7   : > { %5491 = vmatpush3.msra.mxu1 %v4485_v0  ;;  %5438 = vmatpush3.msra.mxu0 %v4466_v61  ;;  %v6968_v0 = vld [vmem:[#allocation2 + $0xb8] sm:$0xff]  ;;  %v4456_v61 = vld [vmem:[%s7734_s3 + $0x308] sm:$0xff] }
  0xd8   : > { %5409 = vmatmul.mubr.f32.gmra.mxu1 %v6743_v20  ;;  %5492 = vmatprep.subr.mxu1 %v4484_v59 }
  0xd9   : > { %5352 = vmatprep.mubr.f32.mxu0 %v6569_v15  ;;  %5493 = vmatpush3.msra.mxu1 %v4484_v59  ;;  %v4473_v59 = vld [vmem:[%s7734_s3 + $0x390] sm:$0xff] }
  0xda   : > { %5353 = vmatmul.mubr.f32.gmra.mxu0 %v6589_v21  ;;  %5439 = vmatprep.subr.mxu0 %v4465_v3 }
  0xdb   : > { %5494 = vmatprep.subr.mxu1 %v4483_v38  ;;  %5411 = vmatprep.mubr.f32.mxu1 %v6745_v25 }
  0xdc   : > { %5440 = vmatpush3.msra.mxu0 %v4465_v3  ;;  %5495 = vmatpush3.msra.mxu1 %v4483_v38  ;;  %v6978_v3 = vld [vmem:[#allocation2 + $0xb1] sm:$0xff]  ;;  %v4455_v38 = vld [vmem:[%s7734_s3 + $0x300] sm:$0xff] }
  0xdd   : > { %5441 = vmatprep.subr.mxu0 %v4464_v41  ;;  %5412 = vmatmul.mubr.f32.gmra.mxu1 %v6763_v34 }
  0xde   : > { %5496 = vmatprep.subr.mxu1 %v4482_v42  ;;  %5355 = vmatprep.mubr.f32.mxu0 %v6593_v23 }
  0xdf   : > { %5442 = vmatpush3.msra.mxu0 %v4464_v41  ;;  %5497 = vmatpush3.msra.mxu1 %v4482_v42  ;;  %v6984_v41 = vld [vmem:[#allocation2 + $0xb9] sm:$0xff]  ;;  %v4472_v42 = vld [vmem:[%s7734_s3 + $0x388] sm:$0xff] }
  0xe0   : > { %5356 = vmatmul.mubr.f32.gmra.mxu0 %v6610_v28  ;;  %5443 = vmatprep.subr.mxu0 %v4463_v48 }
  0xe1   : > { %5498 = vmatprep.subr.mxu1 %v4481_v50  ;;  %5414 = vmatprep.mubr.f32.mxu1 %v6765_v35 }
  0xe2   : > { %5444 = vmatpush3.msra.mxu0 %v4463_v48  ;;  %5499 = vmatpush3.msra.mxu1 %v4481_v50  ;;  %v4471_v48 = vld [vmem:[%s7734_s3 + $0x380] sm:$0xff]  ;;  %v4502_v50 = vld [vmem:[%s7734_s3 + $0x478] sm:$0xff] }
  0xe3   : > { %5445 = vmatprep.subr.mxu0 %v4462_v51  ;;  %5415 = vmatmul.mubr.f32.gmra.mxu1 %v6780_v44 }
  0xe4   : > { %5500 = vmatprep.subr.mxu1 %v4480_v52  ;;  %5358 = vmatprep.mubr.f32.mxu0 %v6617_v31 }
  0xe5   : > { %5446 = vmatpush3.msra.mxu0 %v4462_v51  ;;  %5501 = vmatpush3.msra.mxu1 %v4480_v52  ;;  %v4501_v51 = vld [vmem:[%s7734_s3 + $0x470] sm:$0xff]  ;;  %v2536_v52 = vld [vmem:[%s7740_s9 + $0x28] sm:$0xff] }
  0xe6   : > { %5359 = vmatmul.mubr.f32.gmra.mxu0 %v6634_v36  ;;  %5502 = vmatprep.subr.mxu1 %v4479_v54  ;;  %vm2554_vm6 = vcmp.gt.f32.partialorder %v2536_v52, 0.5 }
  0xe7   : > { %5417 = vmatprep.mubr.f32.mxu1 %v6786_v49  ;;  %5447 = vmatprep.subr.mxu0 %v4461_v56 }
  0xe8   : > { %5503 = vmatpush3.msra.mxu1 %v4479_v54  ;;  %5448 = vmatpush3.msra.mxu0 %v4461_v56  ;;  %v2535_v54 = vld [vmem:[%s7740_s9 + $0x20] sm:$0xff] }
  0xe9   : > { %5418 = vmatmul.mubr.f32.gmra.mxu1 %v6800_v53  ;;  %5504 = vmatprep.subr.mxu1 %v4478_v57  ;;  %vm2553_vm7 = vcmp.gt.f32.partialorder %v2535_v54, 0.5 }
  0xea   : > { %5361 = vmatprep.mubr.f32.mxu0 %v6641_v39  ;;  %5449 = vmatprep.subr.mxu0 %v4460_v2 }
  0xeb   : > { %5505 = vmatpush3.msra.mxu1 %v4478_v57  ;;  %5362 = vmatmul.mubr.f32.gmra.mxu0 %v6654_v43  ;;  %v2538_v57 = vld [vmem:[%s7740_s9 + $0x38] sm:$0xff] }
  0xec   : > { %5506 = vmatprep.subr.mxu1 %v4477_v1  ;;  %5450 = vmatpush3.msra.mxu0 %v4460_v2  ;;  %v2537_v2 = vld [vmem:[%s7740_s9 + $0x30] sm:$0xff]  ;;  %vm2556_vm8 = vcmp.gt.f32.partialorder %v2538_v57, 0.5 }
  0xed   : > { %5420 = vmatprep.mubr.f32.mxu1 %v6806_v55  ;;  %5451 = vmatprep.subr.mxu0 %v4459_v9  ;;  %vm2555_vm9 = vcmp.gt.f32.partialorder %v2537_v2, 0.5 }
  0xee   : > { %5507 = vmatpush3.msra.mxu1 %v4477_v1  ;;  %5452 = vmatpush3.msra.mxu0 %v4459_v9  ;;  %v2540_v1 = vld [vmem:[%s7740_s9 + $0x48] sm:$0xff] }
  0xef   : > { %5421 = vmatmul.mubr.f32.gmra.mxu1 %v6822_v62  ;;  %5508 = vmatprep.subr.mxu1 %v4476_v17  ;;  %vm2558_vm10 = vcmp.gt.f32.partialorder %v2540_v1, 0.5 }
  0xf0   : > { %5364 = vmatprep.mubr.f32.mxu0 %v6663_v46  ;;  %5453 = vmatprep.subr.mxu0 %v4458_v19 }
  0xf1   : > { %5509 = vmatpush3.msra.mxu1 %v4476_v17  ;;  %5365 = vmatmul.mubr.f32.gmra.mxu0 %v6950_v26 }
  0xf2   : > { %5510 = vmatprep.subr.mxu1 %v4475_v27  ;;  %5454 = vmatpush3.msra.mxu0 %v4458_v19 }
  0xf3   : > { %5423 = vmatprep.mubr.f32.mxu1 %v6824_v4  ;;  %5511 = vmatpush3.msra.mxu1 %v4475_v27 }
  0xf4   : > { %5455 = vmatprep.subr.mxu0 %v4457_v30  ;;  %5424 = vmatmul.mubr.f32.gmra.mxu1 %v6960_v33 }
  0xf5   : > { %5512 = vmatprep.subr.mxu1 %v4474_v58  ;;  %5367 = vmatprep.mubr.f32.mxu0 %v6966_v60 }
  0xf6   : > { %5456 = vmatpush3.msra.mxu0 %v4457_v30  ;;  %5513 = vmatpush3.msra.mxu1 %v4474_v58 }
  0xf7   : > { %5368 = vmatmul.mubr.f32.gmra.mxu0 %v6968_v0  ;;  %5457 = vmatprep.subr.mxu0 %v4456_v61 }
  0xf8   : > { %5514 = vmatprep.subr.mxu1 %v4473_v59  ;;  %5426 = vmatprep.mubr.f32.mxu1 %v6978_v3 }
  0xf9   : > { %5458 = vmatpush3.msra.mxu0 %v4456_v61  ;;  %5515 = vmatpush3.msra.mxu1 %v4473_v59  ;;  %v2541_v61 = vld [vmem:[%s7740_s9 + $0x50] sm:$0xff] }
  0xfa   : > { %5459 = vmatprep.subr.mxu0 %v4455_v38  ;;  %5427 = vmatmul.mubr.f32.gmra.mxu1 %v6984_v41  ;;  %vm2559_vm13 = vcmp.gt.f32.partialorder %v2541_v61, 0.5 }
  0xfb   : > { %5516 = vmatprep.subr.mxu1 %v4472_v42  ;;  %5460 = vmatpush3.msra.mxu0 %v4455_v38 }
  0xfc   : > { %5461 = vmatprep.mubr.f32.mxu0 %v6543_v6  ;;  %5517 = vmatpush3.msra.mxu1 %v4472_v42  ;;  %v4500_v6 = vld [vmem:[%s7734_s3 + $0x468] sm:$0xff] }
  0xfd   : > { %5462 = vmatmul.mubr.f32.vlgmr.msra.gmra.mxu0 %v6547_v8  ;;  %5518 = vmatprep.subr.mxu1 %v4471_v48  ;;  %v4497_v8 = vld [vmem:[%s7734_s3 + $0x450] sm:$0xff] }
  0xfe   : > { %5547 = vmatprep.subr.mxu0 %v4502_v50  ;;  %5519 = vmatpush3.msra.mxu1 %v4471_v48 }
  0xff   : > { %5520 = vmatprep.mubr.f32.mxu1 %v6541_v5  ;;  %5548 = vmatpush3.msra.mxu0 %v4502_v50  ;;  %v4499_v5 = vld [vmem:[%s7734_s3 + $0x460] sm:$0xff] }
 0x100   : > { %5521 = vmatmul.mubr.f32.vlgmr.msra.gmra.mxu1 %v6545_v7  ;;  %5464 = vmatprep.mubr.f32.mxu0 %v6567_v14  ;;  %v4498_v7 = vld [vmem:[%s7734_s3 + $0x458] sm:$0xff]  ;;  %v4495_v14 = vld [vmem:[%s7734_s3 + $0x440] sm:$0xff] }
 0x101   : > { %5549 = vmatprep.subr.mxu0 %v4501_v51  ;;  %5465 = vmatmul.mubr.f32.gmra.mxu0 %v6571_v16  ;;  %v4493_v16 = vld [vmem:[%s7734_s3 + $0x430] sm:$0xff] }
 0x102   : > { %5523 = vmatprep.mubr.f32.mxu1 %v6565_v13  ;;  %5550 = vmatpush3.msra.mxu0 %v4501_v51  ;;  %v4496_v13 = vld [vmem:[%s7734_s3 + $0x448] sm:$0xff] }
 0x103   : > { %5467 = vmatprep.mubr.f32.mxu0 %v6591_v22  ;;  %5551 = vmatprep.subr.mxu0 %v4500_v6  ;;  %v4491_v22 = vld [vmem:[%s7734_s3 + $0x420] sm:$0xff]  ;;  %v2544_v51 = vld [vmem:[%s7740_s9 + $0x68] sm:$0xff] }
 0x104   : > { %5524 = vmatmul.mubr.f32.gmra.mxu1 %v6569_v15  ;;  %5552 = vmatpush3.msra.mxu0 %v4500_v6  ;;  %v4494_v15 = vld [vmem:[%s7734_s3 + $0x438] sm:$0xff]  ;;  %v2543_v6 = vld [vmem:[%s7740_s9 + $0x60] sm:$0xff]  ;;  %vm2562_vm14 = vcmp.gt.f32.partialorder %v2544_v51, 0.5 }
 0x105   : > { %5526 = vmatprep.mubr.f32.mxu1 %v6589_v21  ;;  %5553 = vmatprep.subr.mxu0 %v4499_v5  ;;  %v4492_v21 = vld [vmem:[%s7734_s3 + $0x428] sm:$0xff]  ;;  %vm2561_vm15 = vcmp.gt.f32.partialorder %v2543_v6, 0.5 }
 0x106   : > { %5468 = vmatmul.mubr.f32.gmra.mxu0 %v6595_v24  ;;  %v1854_v24 = vld [vmem:[#allocation2 + $0xbf] sm:$0xff] }
 0x107   : > { %5554 = vmatpush3.msra.mxu0 %v4499_v5  ;;  %5470 = vmatprep.mubr.f32.mxu0 %v6612_v29  ;;  %v1855_v29 = vld [vmem:[#allocation2 + $0xc7] sm:$0xff] }
 0x108   : > { %5555 = vmatprep.subr.mxu0 %v4498_v7  ;;  %5527 = vmatmul.mubr.f32.gmra.mxu1 %v6593_v23  ;;  %v4490_v23 = vld [vmem:[%s7734_s3 + $0x418] sm:$0xff] }
 0x109   : > { %5556 = vmatpush3.msra.mxu0 %v4498_v7  ;;  %5529 = vmatprep.mubr.f32.mxu1 %v6610_v28  ;;  %v4489_v28 = vld [vmem:[%s7734_s3 + $0x410] sm:$0xff] }
 0x10a   : > { %5471 = vmatmul.mubr.f32.gmra.mxu0 %v6620_v32  ;;  %5557 = vmatprep.subr.mxu0 %v4497_v8  ;;  %v2062_v32 = vld [vmem:[#allocation2 + $0xc0] sm:$0xff] }
 0x10b   : > { %5558 = vmatpush3.msra.mxu0 %v4497_v8  ;;  %5473 = vmatprep.mubr.f32.mxu0 %v6636_v37  ;;  %v2531_v37 = vld [vmem:[%s7740_s9] sm:$0xff] }
 0x10c   : > { %5530 = vmatmul.mubr.f32.gmra.mxu1 %v6617_v31  ;;  %5559 = vmatprep.subr.mxu0 %v4496_v13  ;;  %v2533_v31 = vld [vmem:[%s7740_s9 + $0x10] sm:$0xff]  ;;  %vm2549_vm3 = vcmp.gt.f32.partialorder %v2531_v37, 0.5 }
 0x10d   : > { %5560 = vmatpush3.msra.mxu0 %v4496_v13  ;;  %5532 = vmatprep.mubr.f32.mxu1 %v6634_v36  ;;  %v4488_v36 = vld [vmem:[%s7734_s3 + $0x408] sm:$0xff]  ;;  %vm2551_vm2 = vcmp.gt.f32.partialorder %v2533_v31, 0.5 }
 0x10e   : > { %5474 = vmatmul.mubr.f32.gmra.mxu0 %v6644_v40  ;;  %5561 = vmatprep.subr.mxu0 %v4495_v14  ;;  %v1856_v40 = vld [vmem:[#allocation2 + $0xcf] sm:$0xff] }
 0x10f   : > { %5562 = vmatpush3.msra.mxu0 %v4495_v14  ;;  %5476 = vmatprep.mubr.f32.mxu0 %v6660_v45  ;;  %v2534_v45 = vld [vmem:[%s7740_s9 + $0x18] sm:$0xff] }
 0x110   : > { %5533 = vmatmul.mubr.f32.gmra.mxu1 %v6641_v39  ;;  %5563 = vmatprep.subr.mxu0 %v4494_v15  ;;  %v2063_v39 = vld [vmem:[#allocation2 + $0xc8] sm:$0xff]  ;;  %vm2552_vm4 = vcmp.gt.f32.partialorder %v2534_v45, 0.5 }
 0x111   : > { %5564 = vmatpush3.msra.mxu0 %v4494_v15  ;;  %5535 = vmatprep.mubr.f32.mxu1 %v6654_v43  ;;  %v4487_v43 = vld [vmem:[%s7734_s3 + $0x400] sm:$0xff]  ;;  %v2546_v15 = vld [vmem:[%s7740_s9 + $0x78] sm:$0xff] }
 0x112   : > { %5477 = vmatmul.mubr.f32.gmra.mxu0 %v6665_v47  ;;  %5565 = vmatprep.subr.mxu0 %v4493_v16  ;;  %v2532_v47 = vld [vmem:[%s7740_s9 + $0x8] sm:$0xff]  ;;  %vm2564_vm0 = vcmp.gt.f32.partialorder %v2546_v15, 0.5 }
 0x113   : > { %5566 = vmatpush3.msra.mxu0 %v4493_v16  ;;  %5479 = vmatprep.mubr.f32.mxu0 %v6816_v63  ;;  %v6189_v63 = vmov 0   ;;  %vm2550_vm5 = vcmp.gt.f32.partialorder %v2532_v47, 0.5 }
 0x114   : > { %5536 = vmatmul.mubr.f32.gmra.mxu1 %v6663_v46  ;;  %5567 = vmatprep.subr.mxu0 %v4492_v21  ;;  %v2064_v46 = vld [vmem:[#allocation2 + $0xd0] sm:$0xff]  ;;  %v2568_v56 = vsel %vm2550_vm5, 1, %v6189_v63  ;;  %v2573_v30 = vsel %vm2555_vm9, 1, %v6189_v63  ;;  %v2576_v59 = vsel %vm2558_vm10, 1, %v6189_v63  ;;  %v2577_v13 = vsel %vm2559_vm13, 1, %v6189_v63 }
 0x115   : > { %5568 = vmatpush3.msra.mxu0 %v4492_v21  ;;  %5538 = vmatprep.mubr.f32.mxu1 %v6950_v26 }
 0x116   : > { %5480 = vmatmul.mubr.f32.gmra.mxu0 %v6834_v12  ;;  %5569 = vmatprep.subr.mxu0 %v4491_v22  ;;  %v2569_v12 = vsel %vm2551_vm2, 1, %v6189_v63 }
 0x117   : > { %5570 = vmatpush3.msra.mxu0 %v4491_v22  ;;  %5482 = vmatprep.mubr.f32.mxu0 %v6840_v18  ;;  %v2567_v18 = vsel %vm2549_vm3, 1, %v6189_v63 }
 0x118   : > { %5539 = vmatmul.mubr.f32.gmra.mxu1 %v6966_v60  ;;  %5571 = vmatprep.subr.mxu0 %v4490_v23  ;;  %v2542_v60 = vld [vmem:[%s7740_s9 + $0x58] sm:$0xff] }
 0x119   : > { %5572 = vmatpush3.msra.mxu0 %v4490_v23  ;;  %5541 = vmatprep.mubr.f32.mxu1 %v6968_v0  ;;  %vm2560_vm12 = vcmp.gt.f32.partialorder %v2542_v60, 0.5  ;;  %v2579_v23 = vsel %vm2561_vm15, 1, %v6189_v63 }
 0x11a   : > { %5483 = vmatmul.mubr.f32.gmra.mxu0 %v1854_v24  ;;  %5573 = vmatprep.subr.mxu0 %v4489_v28  ;;  %v2578_v5 = vsel %vm2560_vm12, 1, %v6189_v63 }
 0x11b   : > { %5485 = vmatprep.mubr.f32.mxu0 %v1855_v29  ;;  %5574 = vmatpush3.msra.mxu0 %v4489_v28  ;;  %v2548_v28 = vld [vmem:[%s7740_s9 + $0x88] sm:$0xff] }
 0x11c   : > { %5542 = vmatmul.mubr.f32.gmra.mxu1 %v2062_v32  ;;  %5575 = vmatprep.subr.mxu0 %v4488_v36  ;;  %v2582_v32 = vsel %vm2564_vm0, 1, %v6189_v63  ;;  %vm2566_vm3 = vcmp.gt.f32.partialorder %v2548_v28, 0.5 }
 0x11d   : > { %5544 = vmatprep.mubr.f32.mxu1 %v2063_v39  ;;  %5576 = vmatpush3.msra.mxu0 %v4488_v36  ;;  %v2270_v36 = vld [vmem:[#allocation2 + $0xc1] sm:$0xff]  ;;  %v2271_v39 = vld [vmem:[#allocation2 + $0xc9] sm:$0xff] }
 0x11e   : > { %5486 = vmatmul.mubr.f32.gmra.mxu0 %v1856_v40  ;;  %5577 = vmatprep.subr.mxu0 %v4487_v43 }
 0x11f   : > { %5578 = vmatpush3.msra.mxu0 %v4487_v43  ;;  %5579 = vmatprep.mubr.f32.mxu0 %v6723_v10  ;;  %v2570_v10 = vsel %vm2552_vm4, 1, %v6189_v63 }
 0x120   : > { %5545 = vmatmul.mubr.f32.gmra.mxu1 %v2064_v46  ;;  %6114 = vset.pattern.permute.xlu1 %v6189_v63  ;;  %v2272_v46 = vld [vmem:[#allocation2 + $0xd1] sm:$0xff] }
 0x121   : > { %6113 = vset.pattern.permute.xlu0 %v6189_v63  ;;  %2592 = vperm.xlu1 %6114, %v2569_v12  }
 0x122   : > { %5580 = vmatmul.mubr.f32.vlgmr.msra.gmra.mxu0 %v6725_v11  ;;  %2586 = vperm.xlu0 %6113, %v2567_v18   ;;  %v2572_v11 = vsel %vm2554_vm6, 1, %v6189_v63 }
 0x123   : > { %5582 = vmatprep.mubr.f32.mxu0 %v6743_v20  ;;  %v2571_v20 = vsel %vm2553_vm7, 1, %v6189_v63 }
 0x125   : > { %2595 = vperm.xlu1 %6114, %v2570_v10  }
 0x126   : > { %5583 = vmatmul.mubr.f32.gmra.mxu0 %v6745_v25  ;;  %2589 = vperm.xlu0 %6113, %v2568_v56   ;;  %v2539_v25 = vld [vmem:[%s7740_s9 + $0x40] sm:$0xff] }
 0x127   : > { %5585 = vmatprep.mubr.f32.mxu0 %v6763_v34  ;;  %v2574_v34 = vsel %vm2556_vm8, 1, %v6189_v63  ;;  %vm2557_vm11 = vcmp.gt.f32.partialorder %v2539_v25, 0.5 }
 0x128   : > { %v5109_v9 = vpop.f32.mrf.mxu0  ;;  %v2575_v48 = vsel %vm2557_vm11, 1, %v6189_v63 }
 0x129   : > { %v5168_v17 = vpop.f32.mrf.mxu1  ;;  %2601 = vperm.xlu1 %6114, %v2572_v11  }
 0x12a   : > { %5586 = vmatmul.mubr.f32.gmra.mxu0 %v6765_v35  ;;  %v7116_v19 = vadd.f32 %v5168_v17, %v5109_v9  ;;  %2598 = vperm.xlu0 %6113, %v2571_v20   ;;  %v763_v26 = vpop.f32.mrf.mxu0 }
 0x12b   : > { %5588 = vmatprep.mubr.f32.mxu0 %v6780_v44  ;;  %v918_v27 = vpop.f32.mrf.mxu1 }
 0x12c   : > { %v7121_v58 = vadd.f32 %v918_v27, %v763_v26  ;;  %v5112_v35 = vpop.f32.mrf.mxu0 }
 0x12d   : > { %v5171_v0 = vpop.f32.mrf.mxu1  ;;  %2607 = vperm.xlu1 %6114, %v2574_v34  }
 0x12e   : > { %5589 = vmatmul.mubr.f32.gmra.mxu0 %v6786_v49  ;;  %v7130_v44 = vadd.f32 %v5171_v0, %v5112_v35  ;;  %2604 = vperm.xlu0 %6113, %v2573_v30   ;;  %v773_v38 = vpop.f32.mrf.mxu0 }
 0x12f   : > { %5591 = vmatprep.mubr.f32.mxu0 %v6800_v53  ;;  %v928_v42 = vpop.f32.mrf.mxu1 }
 0x130   : > { %v7135_v50 = vadd.f32 %v928_v42, %v773_v38 }
 0x131   : > { %v5115_v49 = vpop.f32.mrf.mxu0  ;;  %2613 = vperm.xlu1 %6114, %v2576_v59   ;;  %v5174_v53 = vpop.f32.mrf.mxu1 }
 0x132   : > { %5592 = vmatmul.mubr.f32.gmra.mxu0 %v6806_v55  ;;  %2610 = vperm.xlu0 %6113, %v2575_v48   ;;  %v7146_v7 = vadd.f32 %v5174_v53, %v5115_v49  ;;  %v2545_v55 = vld [vmem:[%s7740_s9 + $0x70] sm:$0xff] }
 0x133   : > { %5594 = vmatprep.mubr.f32.mxu0 %v6822_v62  ;;  %v783_v8 = vpop.f32.mrf.mxu0  ;;  %v938_v14 = vpop.f32.mrf.mxu1  ;;  %v2580_v62 = vsel %vm2562_vm14, 1, %v6189_v63  ;;  %vm2563_vm2 = vcmp.gt.f32.partialorder %v2545_v55, 0.5 }
 0x134   : > { %v7152_v16 = vadd.f32 %v938_v14, %v783_v8  ;;  %v2581_v37 = vsel %vm2563_vm2, 1, %v6189_v63 }
 0x135   : > { %2619 = vperm.xlu1 %6114, %v2578_v5  }
 0x136   : > { %5595 = vmatmul.mubr.f32.gmra.mxu0 %v6824_v4  ;;  %2616 = vperm.xlu0 %6113, %v2577_v13   ;;  %v5118_v21 = vpop.f32.mrf.mxu0  ;;  %v2547_v4 = vld [vmem:[%s7740_s9 + $0x80] sm:$0xff] }
 0x137   : > { %5597 = vmatprep.mubr.f32.mxu0 %v6960_v33  ;;  %v5177_v22 = vpop.f32.mrf.mxu1  ;;  %vm2565_vm4 = vcmp.gt.f32.partialorder %v2547_v4, 0.5 }
 0x138   : > { %v7161_v24 = vadd.f32 %v5177_v22, %v5118_v21  ;;  %v793_v29 = vpop.f32.mrf.mxu0 }
 0x139   : > { %v948_v31 = vpop.f32.mrf.mxu1  ;;  %2625 = vperm.xlu1 %6114, %v2580_v62  }
 0x13a   : > { %5598 = vmatmul.mubr.f32.gmra.mxu0 %v6978_v3  ;;  %v7170_v33 = vadd.f32 %v948_v31, %v793_v29  ;;  %2622 = vperm.xlu0 %6113, %v2579_v23   ;;  %v2584_v3 = vsel %vm2566_vm3, 1, %v6189_v63 }
 0x13b   : > { %5600 = vmatprep.mubr.f32.mxu0 %v6984_v41  ;;  %v2583_v41 = vsel %vm2565_vm4, 1, %v6189_v63 }
 0x13c   : > { %v5121_v40 = vpop.f32.mrf.mxu0 }
 0x13d   : > { %v5180_v43 = vpop.f32.mrf.mxu1  ;;  %2631 = vperm.xlu1 %6114, %v2582_v32  }
 0x13e   : > { %5601 = vmatmul.mubr.f32.gmra.mxu0 %v2270_v36  ;;  %v7175_v45 = vadd.f32 %v5180_v43, %v5121_v40  ;;  %2628 = vperm.xlu0 %6113, %v2581_v37   ;;  %v803_v47 = vpop.f32.mrf.mxu0 }
 0x13f   : > { %5603 = vmatprep.mubr.f32.mxu0 %v2271_v39  ;;  %v958_v12 = vpop.f32.mrf.mxu1 }
 0x140   : > { %v7179_v18 = vadd.f32 %v958_v12, %v803_v47 }
 0x141   : > { %2637 = vperm.xlu1 %6114, %v2584_v3  }
 0x142   : > { %5604 = vmatmul.mubr.f32.gmra.mxu0 %v2272_v46  ;;  %2634 = vperm.xlu0 %6113, %v2583_v41   ;;  %v5124_v52 = vpop.f32.mrf.mxu0 }
 0x143   : > { %v5183_v54 = vpop.f32.mrf.mxu1 }
 0x144   : > { %v974_v10 = vadd.f32 %v5183_v54, %v5124_v52  ;;  %v813_v56 = vpop.f32.mrf.mxu0 }
 0x145   : > { %v968_v57 = vpop.f32.mrf.mxu1 }
 0x146   : > { %v969_v2 = vadd.f32 %v968_v57, %v813_v56 }
 0x148   : > { %v5127_v11 = vpop.f32.mrf.mxu0  ;;  %v5186_v20 = vpop.f32.mrf.mxu1 }
 0x149   : > { %v7181_v1 = vadd.f32 %v5186_v20, %v5127_v11 }
 0x14a   : > { %v823_v9 = vpop.f32.mrf.mxu0  ;;  %v978_v17 = vpop.f32.mrf.mxu1 }
 0x14b   : > { %v7183_v25 = vadd.f32 %v978_v17, %v823_v9 }
 0x14e   : > { %v5130_v63 = vpop.f32.mrf.mxu0  ;;  %v5189_v34 = vpop.f32.mrf.mxu1 }
 0x14f   : > { %v7185_v26 = vadd.f32 %v5189_v34, %v5130_v63 }
 0x150   : > { %v833_v27 = vpop.f32.mrf.mxu0  ;;  %v988_v30 = vpop.f32.mrf.mxu1 }
 0x151   : > { %v7187_v60 = vadd.f32 %v988_v30, %v833_v27 }
 0x153   : > { %v5133_v35 = vpop.f32.mrf.mxu0 }
 0x154   : > { %v5192_v0 = vpop.f32.mrf.mxu1 }
 0x155   : > { %v7189_v61 = vadd.f32 %v5192_v0, %v5133_v35  ;;  %v843_v59 = vpop.f32.mrf.mxu0 }
 0x156   : > { %v998_v38 = vpop.f32.mrf.mxu1 }
 0x157   : > { %v7191_v42 = vadd.f32 %v998_v38, %v843_v59 }
 0x159   : > { %v5227_v48 = vpop.f32.mrf.mxu0 }
 0x15a   : > { %v1198_v51 = vadd.f32 %v5227_v48, %v7116_v19 }
 0x15b   : > { %v1108_v49 = vpop.f32.mrf.mxu0 }
 0x15c   : > { %v1197_v6 = vadd.f32 %v1108_v49, %v7121_v58  ;;  %v5286_v53 = vpop.f32.mrf.mxu1 }
 0x15d   : > { %v7195_v5 = vadd.f32 %v5286_v53, %v1198_v51  ;;  %v5230_v8 = vpop.f32.mrf.mxu0 }
 0x15e   : > { %v1316_v13 = vpop.f32.mrf.mxu1  ;;  %v1200_v14 = vadd.f32 %v5230_v8, %v7130_v44 }
 0x15f   : > { %v7198_v15 = vadd.f32 %v1316_v13, %v1197_v6  ;;  %v1118_v55 = vpop.f32.mrf.mxu0 }
 0x160   : > { %v5289_v62 = vpop.f32.mrf.mxu1  ;;  %v1199_v21 = vadd.f32 %v1118_v55, %v7135_v50 }
 0x161   : > { %v7201_v22 = vadd.f32 %v5289_v62, %v1200_v14 }
 0x162   : > { %v1326_v23 = vpop.f32.mrf.mxu1  ;;  %v5233_v19 = vpop.f32.mrf.mxu0 }
 0x163   : > { %v7203_v28 = vadd.f32 %v1326_v23, %v1199_v21  ;;  %v1202_v58 = vadd.f32 %v5233_v19, %v7146_v7 }
 0x164   : > { %v1128_v29 = vpop.f32.mrf.mxu0 }
 0x165   : > { %v1201_v31 = vadd.f32 %v1128_v29, %v7152_v16 }
 0x166   : > { %v5292_v4 = vpop.f32.mrf.mxu1 }
 0x167   : > { %v7207_v32 = vadd.f32 %v5292_v4, %v1202_v58 }
 0x168   : > { %v5236_v44 = vpop.f32.mrf.mxu0  ;;  %v1336_v36 = vpop.f32.mrf.mxu1 }
 0x169   : > { %v1204_v37 = vadd.f32 %v5236_v44, %v7161_v24  ;;  %v1409_v39 = vadd.f32 %v1336_v36, %v1201_v31 }
 0x16a   : > { %v1138_v50 = vpop.f32.mrf.mxu0 }
 0x16b   : > { %v1203_v40 = vadd.f32 %v1138_v50, %v7170_v33  ;;  %v5295_v43 = vpop.f32.mrf.mxu1 }
 0x16c   : > { %v1412_v3 = vadd.f32 %v5295_v43, %v1204_v37 }
 0x16d   : > { %v1346_v47 = vpop.f32.mrf.mxu1 }
 0x16e   : > { %v5239_v46 = vpop.f32.mrf.mxu0  ;;  %v1411_v12 = vadd.f32 %v1346_v47, %v1203_v40 }
 0x16f   : > { %v1206_v7 = vadd.f32 %v5239_v46, %v7175_v45 }
 0x170   : > { %v1148_v41 = vpop.f32.mrf.mxu0 }
 0x171   : > { %v1205_v16 = vadd.f32 %v1148_v41, %v7179_v18  ;;  %v5298_v52 = vpop.f32.mrf.mxu1 }
 0x172   : > { %v1414_v54 = vadd.f32 %v5298_v52, %v1206_v7 }
 0x173   : > { %v1356_v57 = vpop.f32.mrf.mxu1 }
 0x174   : > { %v5242_v56 = vpop.f32.mrf.mxu0  ;;  %v1413_v24 = vadd.f32 %v1356_v57, %v1205_v16 }
 0x175   : > { %v1208_v11 = vadd.f32 %v5242_v56, %v974_v10 }
 0x176   : > { %v1158_v20 = vpop.f32.mrf.mxu0 }
 0x177   : > { %v1207_v9 = vadd.f32 %v1158_v20, %v969_v2  ;;  %v5301_v17 = vpop.f32.mrf.mxu1 }
 0x178   : > { %v1416_v33 = vadd.f32 %v5301_v17, %v1208_v11 }
 0x179   : > { %v1366_v63 = vpop.f32.mrf.mxu1  ;;  %v5245_v34 = vpop.f32.mrf.mxu0 }
 0x17a   : > { %v1415_v27 = vadd.f32 %v1366_v63, %v1207_v9  ;;  %v1210_v30 = vadd.f32 %v5245_v34, %v7181_v1 }
 0x17b   : > { %v1168_v45 = vpop.f32.mrf.mxu0 }
 0x17c   : > { %v1209_v35 = vadd.f32 %v1168_v45, %v7183_v25 }
 0x17d   : > { %v5304_v0 = vpop.f32.mrf.mxu1 }
 0x17e   : > { %v1418_v18 = vadd.f32 %v5304_v0, %v1210_v30 }
 0x17f   : > { %v1376_v59 = vpop.f32.mrf.mxu1  ;;  %v5248_v38 = vpop.f32.mrf.mxu0 }
 0x180   : > { %v1417_v48 = vadd.f32 %v1376_v59, %v1209_v35  ;;  %v1212_v10 = vadd.f32 %v5248_v38, %v7185_v26 }
 0x181   : > { %v1178_v51 = vpop.f32.mrf.mxu0 }
 0x182   : > { %v1211_v2 = vadd.f32 %v1178_v51, %v7187_v60  ;;  %v5307_v49 = vpop.f32.mrf.mxu1 }
 0x183   : > { %v1420_v6 = vadd.f32 %v5307_v49, %v1212_v10 }
 0x184   : > { %v1386_v8 = vpop.f32.mrf.mxu1 }
 0x185   : > { %v5251_v53 = vpop.f32.mrf.mxu0  ;;  %v1419_v1 = vadd.f32 %v1386_v8, %v1211_v2 }
 0x186   : > { %v1214_v13 = vadd.f32 %v5251_v53, %v7189_v61 }
 0x187   : > { %v1188_v14 = vpop.f32.mrf.mxu0 }
 0x188   : > { %v1213_v25 = vadd.f32 %v1188_v14, %v7191_v42  ;;  %v5310_v55 = vpop.f32.mrf.mxu1 }
 0x189   : > { %v1422_v62 = vadd.f32 %v5310_v55, %v1214_v13 }
 0x18a   : > { %v1396_v21 = vpop.f32.mrf.mxu1 }
 0x18b   : > { %v5345_v23 = vpop.f32.mrf.mxu0  ;;  %v1421_v19 = vadd.f32 %v1396_v21, %v1213_v25 }
 0x18c   : > { %v7220_v26 = vadd.f32 %v5345_v23, %v7195_v5 }
 0x18d   : > { %v1524_v58 = vpop.f32.mrf.mxu0 }
 0x18e   : > { %v7223_v60 = vadd.f32 %v1524_v58, %v7198_v15  ;;  %v7225_v29 = vpop.f32.mrf.mxu1 }
 0x18f   : > { %v5348_v31 = vpop.f32.mrf.mxu0 }
 0x190   : > { %v7227_v61 = vpop.f32.mrf.mxu1  ;;  %v7230_v4 = vadd.f32 %v5348_v31, %v7201_v22 }
 0x191   : > { %v1534_v42 = vpop.f32.mrf.mxu0 }
 0x192   : > { %v7232_v44 = vpop.f32.mrf.mxu1  ;;  %v7235_v36 = vadd.f32 %v1534_v42, %v7203_v28 }
 0x194   : > { %v7237_v5 = vpop.f32.mrf.mxu1  ;;  %v5351_v37 = vpop.f32.mrf.mxu0 }
 0x195   : > { %v7240_v15 = vadd.f32 %v5351_v37, %v7207_v32 }
 0x196   : > { %v1544_v50 = vpop.f32.mrf.mxu0 }
 0x197   : > { %v7242_v40 = vadd.f32 %v1544_v50, %v1409_v39 }
 0x198   : > { %v7244_v43 = vpop.f32.mrf.mxu1 }
 0x19a   : > { %v5354_v46 = vpop.f32.mrf.mxu0  ;;  %v7246_v22 = vpop.f32.mrf.mxu1 }
 0x19b   : > { %v7248_v47 = vadd.f32 %v5354_v46, %v1412_v3 }
 0x19c   : > { %v1554_v7 = vpop.f32.mrf.mxu0 }
 0x19d   : > { %v7250_v41 = vadd.f32 %v1554_v7, %v1411_v12  ;;  %v7252_v28 = vpop.f32.mrf.mxu1 }
 0x19f   : > { %v7254_v52 = vpop.f32.mrf.mxu1 }
 0x1a0   : > { %v5357_v16 = vpop.f32.mrf.mxu0 }
 0x1a1   : > { %v7256_v32 = vadd.f32 %v5357_v16, %v1414_v54 }
 0x1a2   : > { %v1564_v56 = vpop.f32.mrf.mxu0 }
 0x1a3   : > { %v7258_v39 = vadd.f32 %v1564_v56, %v1413_v24  ;;  %v7260_v57 = vpop.f32.mrf.mxu1 }
 0x1a5   : > { %v7262_v20 = vpop.f32.mrf.mxu1 }
 0x1a6   : > { %v5360_v11 = vpop.f32.mrf.mxu0 }
 0x1a7   : > { %v7264_v3 = vadd.f32 %v5360_v11, %v1416_v33  ;;  %v7314_v11 = vpop.permute.xlu1 %2592 }
 0x1a8   : > { %v1574_v9 = vpop.f32.mrf.mxu0  ;;  %vm2641_vm6 = vcmp.eq.s32.totalorder %v7314_v11, 1 }
 0x1a9   : > { %v7266_v12 = vadd.f32 %v1574_v9, %v1415_v27  ;;  %v7268_v17 = vpop.f32.mrf.mxu1 }
 0x1ab   : > { %v7270_v63 = vpop.f32.mrf.mxu1  ;;  %v5363_v34 = vpop.f32.mrf.mxu0 }
 0x1ac   : > { %v7272_v54 = vadd.f32 %v5363_v34, %v1418_v18 }
 0x1ad   : > { %v1584_v30 = vpop.f32.mrf.mxu0 }
 0x1ae   : > { %v7274_v24 = vadd.f32 %v1584_v30, %v1417_v48  ;;  %v7320_v30 = vpop.permute.xlu0 %2586 }
 0x1af   : > { %v7276_v45 = vpop.f32.mrf.mxu1  ;;  %vm2639_vm5 = vcmp.eq.s32.totalorder %v7320_v30, 1 }
 0x1b1   : > { %v7278_v35 = vpop.f32.mrf.mxu1  ;;  %v5366_v0 = vpop.f32.mrf.mxu0 }
 0x1b2   : > { %v7280_v33 = vadd.f32 %v5366_v0, %v1420_v6 }
 0x1b3   : > { %v1594_v59 = vpop.f32.mrf.mxu0 }
 0x1b4   : > { %v7282_v27 = vadd.f32 %v1594_v59, %v1419_v1  ;;  %v7284_v38 = vpop.f32.mrf.mxu1  ;;  %v1822_v59 = vadd.f32 %v7225_v29, %v7220_v26  ;;  %v1823_v29 = vadd.f32 %v7237_v5, %v7235_v36  ;;  %v1825_v36 = vadd.f32 %v7246_v22, %v7242_v40  ;;  %v7360_v5 = vld [vmem:[%s7736_s5] ss:$0 sm:$0xff] }
 0x1b5   : > { %7755 = vst [vmem:[#allocation10_spill] sm:$0xff] %v7284_v38  ;;  %v1827_v40 = vadd.f32 %v7254_v52, %v7250_v41 }
 0x1b6   : > { %7754 = vst [vmem:[#allocation9_spill] sm:$0xff] %v7282_v27  ;;  %v7286_v51 = vpop.f32.mrf.mxu1 }
 0x1b7   : > { %v5369_v10 = vpop.f32.mrf.mxu0  ;;  %7756 = vst [vmem:[#allocation11_spill] sm:$0xff] %v7286_v51  ;;  %v1824_v51 = vadd.f32 %v7232_v44, %v7230_v4 }
 0x1b8   : > { %v7288_v18 = vadd.f32 %v5369_v10, %v1422_v62 }
 0x1b9   : > { %v1604_v2 = vpop.f32.mrf.mxu0 }
 0x1ba   : > { %7757 = vst [vmem:[#allocation12_spill] sm:$0xff] %v7288_v18  ;;  %v7290_v48 = vadd.f32 %v1604_v2, %v1421_v19  ;;  %v7292_v49 = vpop.f32.mrf.mxu1 }
 0x1bb   : > { %7759 = vst [vmem:[#allocation14_spill] sm:$0xff] %v7292_v49  ;;  %v7332_v49 = vpop.permute.xlu1 %2595 }
 0x1bc   : > { %7758 = vst [vmem:[#allocation13_spill] sm:$0xff] %v7290_v48  ;;  %v7294_v53 = vpop.f32.mrf.mxu1  ;;  %vm2642_vm7 = vcmp.eq.s32.totalorder %v7332_v49, 1 }
 0x1bd   : > { %7760 = vst [vmem:[#allocation15_spill] sm:$0xff] %v7294_v53  ;;  %v5463_v8 = vpop.f32.mrf.mxu0  ;;  %v1821_v53 = vadd.f32 %v7227_v61, %v7223_v60  ;;  %v7347_v61 = vld [vmem:[%s7735_s4] ss:$0 sm:$0xff] }
 0x1be   : > { %v2030_v48 = vadd.f32 %v5463_v8, %v1822_v59 }
 0x1bf   : > { %v1940_v6 = vpop.f32.mrf.mxu0  ;;  %v7349_v4 = vpop.permute.xlu1 %2601 }
 0x1c0   : > { %v5522_v13 = vpop.f32.mrf.mxu1  ;;  %v2029_v27 = vadd.f32 %v1940_v6, %v1821_v53  ;;  %v1826_v6 = vadd.f32 %v7244_v43, %v7240_v15  ;;  %v1828_v15 = vadd.f32 %v7252_v28, %v7248_v47  ;;  %vm2644_vm9 = vcmp.eq.s32.totalorder %v7349_v4, 1 }
 0x1c1   : > { %v5466_v14 = vpop.f32.mrf.mxu0 }
 0x1c2   : > { %v2148_v1 = vpop.f32.mrf.mxu1  ;;  %v2032_v38 = vadd.f32 %v5466_v14, %v1824_v51 }
 0x1c3   : > { %v1950_v25 = vpop.f32.mrf.mxu0  ;;  %v2237_v8 = vadd.f32 %v2148_v1, %v2029_v27  ;;  %v7378_v41 = vpop.permute.xlu1 %2607 }
 0x1c4   : > { %v5525_v55 = vpop.f32.mrf.mxu1  ;;  %v2031_v59 = vadd.f32 %v1950_v25, %v1823_v29  ;;  %vm2646_vm11 = vcmp.eq.s32.totalorder %v7378_v41, 1 }
 0x1c6   : > { %v5469_v21 = vpop.f32.mrf.mxu0  ;;  %v2158_v23 = vpop.f32.mrf.mxu1 }
 0x1c7   : > { %v2034_v43 = vadd.f32 %v5469_v21, %v1826_v6  ;;  %v2239_v25 = vadd.f32 %v2158_v23, %v2031_v59 }
 0x1c8   : > { %v1960_v58 = vpop.f32.mrf.mxu0  ;;  %v7296_v62 = vpop.f32.mrf.mxu1 }
 0x1c9   : > { %v2033_v22 = vadd.f32 %v1960_v58, %v1825_v36  ;;  %v1829_v58 = vadd.f32 %v7262_v20, %v7258_v39  ;;  %v1832_v39 = vadd.f32 %v7268_v17, %v7264_v3 }
 0x1ca   : > { %v5472_v31 = vpop.f32.mrf.mxu0  ;;  %v7302_v37 = vpop.f32.mrf.mxu1 }
 0x1cc   : > { %v7298_v42 = vpop.f32.mrf.mxu0  ;;  %v7308_v7 = vpop.f32.mrf.mxu1 }
 0x1ce   : > { %v7300_v19 = vpop.f32.mrf.mxu0  ;;  %v7316_v9 = vpop.f32.mrf.mxu1 }
 0x1d0   : > { %v7304_v50 = vpop.f32.mrf.mxu0  ;;  %v7326_v10 = vpop.f32.mrf.mxu1 }
 0x1d2   : > { %v7306_v46 = vpop.f32.mrf.mxu0 }
 0x1d4   : > { %v7310_v16 = vpop.f32.mrf.mxu0 }
 0x1d6   : > { %v7312_v56 = vpop.f32.mrf.mxu0 }
 0x1d8   : > { %v7318_v34 = vpop.f32.mrf.mxu0 }
 0x1d9   : > { %7761 = vst [vmem:[#allocation16_spill] sm:$0xff] %v7318_v34  ;;  %v7338_v34 = vpop.f32.mrf.mxu1 }
 0x1da   : > { %v7322_v0 = vpop.f32.mrf.mxu0 }
 0x1db   : > { %7762 = vst [vmem:[#allocation17_spill] sm:$0xff] %v7322_v0  ;;  %v2590_v0 = vpop.permute.xlu0 %2589  ;;  %v7351_v44 = vpop.f32.mrf.mxu1 }
 0x1dc   : > { %v7328_v2 = vpop.f32.mrf.mxu0  ;;  %vm2640_vm8 = vcmp.eq.s32.totalorder %v2590_v0, 1 }
 0x1dd   : > { %7763 = vst [vmem:[#allocation18_spill] sm:$0xff] %v7328_v2  ;;  %v2238_v2 = vadd.f32 %v5522_v13, %v2030_v48  ;;  %v2240_v48 = vadd.f32 %v5525_v55, %v2032_v38 }
 0x1de   : > { %v7334_v18 = vpop.f32.mrf.mxu0 }
 0x1df   : > { %v7363_v27 = vpop.permute.xlu0 %2598 }
 0x1e0   : > { %v7340_v26 = vpop.f32.mrf.mxu0  ;;  %vm2643_vm10 = vcmp.eq.s32.totalorder %v7363_v27, 1  ;;  %v7765_v4 = vld [vmem:[#allocation16_spill] sm:$0xff] }
 0x1e2   : > { %v5581_v60 = vpop.f32.mrf.mxu0 }
 0x1e3   : > { %v2446_v53 = vadd.f32 %v5581_v60, %v2238_v2  ;;  %v7370_v2 = vpop.f32.mrf.mxu1  ;;  %v1830_v60 = vadd.f32 %v7260_v57, %v7256_v32  ;;  %v2242_v32 = vadd.f32 %v7296_v62, %v2034_v43  ;;  %v2241_v57 = vadd.f32 %v7302_v37, %v2033_v22  ;;  %v7388_v0 = vpop.permute.xlu0 %2604 }
 0x1e4   : > { %v2356_v51 = vpop.f32.mrf.mxu0  ;;  %v1831_v43 = vadd.f32 %v7270_v63, %v7266_v12  ;;  %v7409_v22 = vpop.permute.xlu1 %2613  ;;  %v2037_v12 = vadd.f32 %v7304_v50, %v1829_v58  ;;  %vm2645_vm12 = vcmp.eq.s32.totalorder %v7388_v0, 1 }
 0x1e5   : > { %v2471_v13 = vmul.f32 %v7347_v61, %v2446_v53  ;;  %v2445_v14 = vadd.f32 %v2356_v51, %v2237_v8  ;;  %v2036_v8 = vadd.f32 %v5472_v31, %v1828_v15  ;;  %v2035_v31 = vadd.f32 %v7298_v42, %v1827_v40  ;;  %v7390_v53 = vpop.f32.mrf.mxu1 }
 0x1e6   : > { %v5584_v1 = vpop.f32.mrf.mxu0  ;;  %v2038_v62 = vadd.f32 %v7300_v19, %v1830_v60  ;;  %vm2648_vm13 = vcmp.eq.s32.totalorder %v7409_v22, 1 }
 0x1e7   : > { %v2496_v38 = vadd.f32 %v7360_v5, %v2471_v13  ;;  %v2470_v55 = vmul.f32 %v7347_v61, %v2445_v14  ;;  %v2448_v29 = vadd.f32 %v5584_v1, %v2240_v48  ;;  %v2244_v20 = vadd.f32 %v7308_v7, %v2036_v8  ;;  %v7407_v7 = vpop.f32.mrf.mxu1  ;;  %v7419_v60 = vpop.permute.xlu0 %2610 }
 0x1e8   : > { %v2366_v47 = vpop.f32.mrf.mxu0  ;;  %v2243_v3 = vadd.f32 %v7316_v9, %v2035_v31  ;;  %v2246_v63 = vadd.f32 %v7326_v10, %v2038_v62  ;;  %v2040_v9 = vadd.f32 %v7306_v46, %v1832_v39  ;;  %v1834_v10 = vadd.f32 %v7276_v45, %v7272_v54 }
 0x1e9   : > { %v2514_v28 = vmax.f32 %v2496_v38, 0.0  ;;  %v2495_v52 = vadd.f32 %v7360_v5, %v2470_v55  ;;  %v2473_v21 = vmul.f32 %v7347_v61, %v2448_v29  ;;  %v2447_v23 = vadd.f32 %v2366_v47, %v2239_v25  ;;  %v5543_v11 = vpop.f32.mrf.mxu1 }
 0x1ea   : > { %v5587_v59 = vpop.f32.mrf.mxu0  ;;  %v1833_v46 = vadd.f32 %v7278_v35, %v7274_v24  ;;  %v2245_v31 = vadd.f32 %v7338_v34, %v2037_v12  ;;  %v2248_v54 = vadd.f32 %v7351_v44, %v2040_v9  ;;  %v2042_v24 = vadd.f32 %v7312_v56, %v1834_v10  ;;  %v7764_v44 = vld [vmem:[#allocation10_spill] sm:$0xff]  ;;  %v7770_v12 = vld [vmem:[#allocation17_spill] sm:$0xff] }
 0x1eb   : > { %v2658_v6 = vsel %vm2640_vm8, %v2514_v28, 0.0  ;;  %v2513_v36 = vmax.f32 %v2495_v52, 0.0  ;;  %v2498_v51 = vadd.f32 %v7360_v5, %v2473_v21  ;;  %v2472_v48 = vmul.f32 %v7347_v61, %v2447_v23  ;;  %v2218_v62 = vpop.f32.mrf.mxu1 }
 0x1ec   : > { %2680 = vst [vmem:[#allocation3 + $0x20] sm:$0xff] %v2658_v6  ;;  %v2450_v42 = vadd.f32 %v5587_v59, %v2242_v32  ;;  %v2376_v37 = vpop.f32.mrf.mxu0  ;;  %v2039_v28 = vadd.f32 %v7310_v16, %v1831_v43  ;;  %vm2647_vm14 = vcmp.eq.s32.totalorder %v7419_v60, 1  ;;  %v2620_v16 = vpop.permute.xlu1 %2619 }
 0x1ed   : > { %v2657_v13 = vsel %vm2639_vm5, %v2513_v36, 0.0  ;;  %v2516_v14 = vmax.f32 %v2498_v51, 0.0  ;;  %v2497_v15 = vadd.f32 %v7360_v5, %v2472_v48  ;;  %v2449_v40 = vadd.f32 %v2376_v37, %v2241_v57 }
 0x1ee   : > { %2679 = vst [vmem:[#allocation3 + $0x18] sm:$0xff] %v2657_v13  ;;  %v2475_v17 = vmul.f32 %v7347_v61, %v2450_v42  ;;  %v5590_v19 = vpop.f32.mrf.mxu0  ;;  %v1836_v51 = vadd.f32 %v7764_v44, %v7280_v33  ;;  %v2247_v56 = vadd.f32 %v7370_v2, %v2039_v28  ;;  %v2041_v48 = vadd.f32 %v7765_v4, %v1833_v46  ;;  %v2617_v42 = vpop.permute.xlu0 %2616  ;;  %v7768_v33 = vld [vmem:[#allocation12_spill] sm:$0xff]  ;;  %v7772_v28 = vld [vmem:[#allocation13_spill] sm:$0xff] }
 0x1ef   : > { %v2660_v30 = vsel %vm2642_vm7, %v2516_v14, 0.0  ;;  %v2515_v1 = vmax.f32 %v2497_v15, 0.0  ;;  %v2474_v25 = vmul.f32 %v7347_v61, %v2449_v40  ;;  %v2452_v38 = vadd.f32 %v5590_v19, %v2244_v20  ;;  %v7766_v15 = vld [vmem:[#allocation9_spill] sm:$0xff]  ;;  %v7767_v40 = vld [vmem:[#allocation11_spill] sm:$0xff] }
 0x1f0   : > { %2682 = vst [vmem:[#allocation3 + $0x30] sm:$0xff] %v2660_v30  ;;  %v2500_v55 = vadd.f32 %v7360_v5, %v2475_v17  ;;  %v2386_v29 = vpop.f32.mrf.mxu0  ;;  %v1835_v43 = vadd.f32 %v7767_v40, %v7766_v15  ;;  %v2250_v17 = vadd.f32 %v7390_v53, %v2042_v24  ;;  %v2249_v9 = vadd.f32 %v7407_v7, %v2041_v48 }
 0x1f1   : > { %v2659_v49 = vsel %vm2641_vm6, %v2515_v1, 0.0  ;;  %v2499_v8 = vadd.f32 %v7360_v5, %v2474_v25  ;;  %v2477_v47 = vmul.f32 %v7347_v61, %v2452_v38  ;;  %v2451_v50 = vadd.f32 %v2386_v29, %v2243_v3  ;;  %v7769_v3 = vld [vmem:[#allocation14_spill] sm:$0xff] }
 0x1f2   : > { %2681 = vst [vmem:[#allocation3 + $0x28] sm:$0xff] %v2659_v49  ;;  %v2518_v52 = vmax.f32 %v2500_v55, 0.0  ;;  %v5593_v21 = vpop.f32.mrf.mxu0  ;;  %v1838_v2 = vadd.f32 %v7769_v3, %v7768_v33  ;;  %v7771_v55 = vld [vmem:[#allocation18_spill] sm:$0xff]  ;;  %vm2650_vm15 = vcmp.eq.s32.totalorder %v2620_v16, 1  ;;  %vm2649_vm0 = vcmp.eq.s32.totalorder %v2617_v42, 1 }
 0x1f3   : > { %v2517_v23 = vmax.f32 %v2499_v8, 0.0  ;;  %v2502_v58 = vadd.f32 %v7360_v5, %v2477_v47  ;;  %v2476_v32 = vmul.f32 %v7347_v61, %v2451_v50  ;;  %v2454_v57 = vadd.f32 %v5593_v21, %v2246_v63  ;;  %v5546_v8 = vpop.f32.mrf.mxu1  ;;  %v2626_v47 = vpop.permute.xlu1 %2625 }
 0x1f4   : > { %v2662_v45 = vsel %vm2644_vm9, %v2518_v52, 0.0  ;;  %v2396_v35 = vpop.f32.mrf.mxu0  ;;  %v2044_v63 = vadd.f32 %v7770_v12, %v1836_v51  ;;  %v2043_v29 = vadd.f32 %v7771_v55, %v1835_v43  ;;  %v7773_v52 = vld [vmem:[#allocation15_spill] sm:$0xff]  ;;  %v2046_v7 = vadd.f32 %v7334_v18, %v1838_v2 }
 0x1f5   : > { %2684 = vst [vmem:[#allocation3 + $0x40] sm:$0xff] %v2662_v45  ;;  %v2661_v59 = vsel %vm2643_vm10, %v2517_v23, 0.0  ;;  %v2520_v6 = vmax.f32 %v2502_v58, 0.0  ;;  %v2501_v36 = vadd.f32 %v7360_v5, %v2476_v32  ;;  %v2479_v34 = vmul.f32 %v7347_v61, %v2454_v57  ;;  %v2623_v32 = vpop.permute.xlu0 %2622  ;;  %v2228_v18 = vpop.f32.mrf.mxu1 }
 0x1f6   : > { %2683 = vst [vmem:[#allocation3 + $0x38] sm:$0xff] %v2661_v59  ;;  %v2453_v39 = vadd.f32 %v2396_v35, %v2245_v31  ;;  %v5596_v20 = vpop.f32.mrf.mxu0  ;;  %v1837_v21 = vadd.f32 %v7773_v52, %v7772_v28  ;;  %v2252_v24 = vadd.f32 %v5543_v11, %v2044_v63  ;;  %v2251_v45 = vadd.f32 %v2218_v62, %v2043_v29 }
 0x1f7   : > { %v2664_v27 = vsel %vm2646_vm11, %v2520_v6, 0.0  ;;  %v2519_v37 = vmax.f32 %v2501_v36, 0.0  ;;  %v2504_v13 = vadd.f32 %v7360_v5, %v2479_v34  ;;  %v2456_v14 = vadd.f32 %v5596_v20, %v2248_v54  ;;  %v2632_v48 = vpop.permute.xlu1 %2631 }
 0x1f8   : > { %2686 = vst [vmem:[#allocation3 + $0x50] sm:$0xff] %v2664_v27  ;;  %v2478_v19 = vmul.f32 %v7347_v61, %v2453_v39  ;;  %v2406_v30 = vpop.f32.mrf.mxu0  ;;  %v2045_v35 = vadd.f32 %v7340_v26, %v1837_v21  ;;  %vm2652_vm2 = vcmp.eq.s32.totalorder %v2626_v47, 1  ;;  %vm2651_vm3 = vcmp.eq.s32.totalorder %v2623_v32, 1 }
 0x1f9   : > { %v2663_v41 = vsel %vm2645_vm12, %v2519_v37, 0.0  ;;  %v2522_v1 = vmax.f32 %v2504_v13, 0.0  ;;  %v2481_v25 = vmul.f32 %v7347_v61, %v2456_v14  ;;  %v2455_v38 = vadd.f32 %v2406_v30, %v2247_v56  ;;  %v2629_v37 = vpop.permute.xlu0 %2628 }
 0x1fa   : > { %2685 = vst [vmem:[#allocation3 + $0x48] sm:$0xff] %v2663_v41  ;;  %v2503_v53 = vadd.f32 %v7360_v5, %v2478_v19  ;;  %v5599_v49 = vpop.f32.mrf.mxu0  ;;  %v2254_v56 = vadd.f32 %v5546_v8, %v2046_v7  ;;  %v2253_v62 = vadd.f32 %v2228_v18, %v2045_v35  ;;  %vm2654_vm4 = vcmp.eq.s32.totalorder %v2632_v48, 1 }
 0x1fb   : > { %v2666_v0 = vsel %vm2648_vm13, %v2522_v1, 0.0  ;;  %v2506_v50 = vadd.f32 %v7360_v5, %v2481_v25  ;;  %v2480_v10 = vmul.f32 %v7347_v61, %v2455_v38  ;;  %v2458_v46 = vadd.f32 %v5599_v49, %v2250_v17  ;;  %v2638_v30 = vpop.permute.xlu1 %2637 }
 0x1fc   : > { %2688 = vst [vmem:[#allocation3 + $0x60] sm:$0xff] %v2666_v0  ;;  %v2521_v23 = vmax.f32 %v2503_v53, 0.0  ;;  %v2416_v58 = vpop.f32.mrf.mxu0  ;;  %vm2653_vm5 = vcmp.eq.s32.totalorder %v2629_v37, 1  ;;  %vm2656_vm6 = vcmp.eq.s32.totalorder %v2638_v30, 1 }
 0x1fd   : > { %v2524_v57 = vmax.f32 %v2506_v50, 0.0  ;;  %v2505_v31 = vadd.f32 %v7360_v5, %v2480_v10  ;;  %v2483_v22 = vmul.f32 %v7347_v61, %v2458_v46  ;;  %v2457_v54 = vadd.f32 %v2416_v58, %v2249_v9  ;;  %v2635_v12 = vpop.permute.xlu0 %2634 }
 0x1fe   : > { %v2665_v59 = vsel %vm2647_vm14, %v2521_v23, 0.0  ;;  %v5602_v6 = vpop.f32.mrf.mxu0  ;;  %vm2655_vm7 = vcmp.eq.s32.totalorder %v2635_v12, 1 }
 0x1ff   : > { %2687 = vst [vmem:[#allocation3 + $0x58] sm:$0xff] %v2665_v59  ;;  %v2668_v36 = vsel %vm2650_vm15, %v2524_v57, 0.0  ;;  %v2523_v34 = vmax.f32 %v2505_v31, 0.0  ;;  %v2508_v44 = vadd.f32 %v7360_v5, %v2483_v22  ;;  %v2482_v51 = vmul.f32 %v7347_v61, %v2457_v54 }
 0x200   : > { %2690 = vst [vmem:[#allocation3 + $0x70] sm:$0xff] %v2668_v36  ;;  %v2460_v11 = vadd.f32 %v5602_v6, %v2252_v24  ;;  %v2426_v4 = vpop.f32.mrf.mxu0 }
 0x201   : > { %v2667_v26 = vsel %vm2649_vm0, %v2523_v34, 0.0  ;;  %v2526_v39 = vmax.f32 %v2508_v44, 0.0  ;;  %v2507_v60 = vadd.f32 %v7360_v5, %v2482_v51  ;;  %v2459_v20 = vadd.f32 %v2426_v4, %v2251_v45 }
 0x202   : > { %2689 = vst [vmem:[#allocation3 + $0x68] sm:$0xff] %v2667_v26  ;;  %v2485_v16 = vmul.f32 %v7347_v61, %v2460_v11  ;;  %v5605_v27 = vpop.f32.mrf.mxu0 }
 0x203   : > { %v2670_v13 = vsel %vm2652_vm2, %v2526_v39, 0.0  ;;  %v2525_v14 = vmax.f32 %v2507_v60, 0.0  ;;  %v2484_v42 = vmul.f32 %v7347_v61, %v2459_v20  ;;  %v2462_v15 = vadd.f32 %v5605_v27, %v2254_v56 }
 0x204   : > { %2692 = vst [vmem:[#allocation3 + $0x80] sm:$0xff] %v2670_v13  ;;  %v2510_v40 = vadd.f32 %v7360_v5, %v2485_v16  ;;  %v2436_v43 = vpop.f32.mrf.mxu0 }
 0x205   : > { %v2669_v33 = vsel %vm2651_vm3, %v2525_v14, 0.0  ;;  %v2509_v3 = vadd.f32 %v7360_v5, %v2484_v42  ;;  %v2487_v2 = vmul.f32 %v7347_v61, %v2462_v15  ;;  %v2461_v17 = vadd.f32 %v2436_v43, %v2253_v62 }
 0x206   : > { %2691 = vst [vmem:[#allocation3 + $0x78] sm:$0xff] %v2669_v33  ;;  %v2528_v19 = vmax.f32 %v2510_v40, 0.0 }
 0x207   : > { %v2527_v41 = vmax.f32 %v2509_v3, 0.0  ;;  %v2512_v1 = vadd.f32 %v7360_v5, %v2487_v2  ;;  %v2486_v25 = vmul.f32 %v7347_v61, %v2461_v17 }
 0x208   : > { %v2672_v38 = vsel %vm2654_vm4, %v2528_v19, 0.0 }
 0x209   : > { %2694 = vst [vmem:[#allocation3 + $0x90] sm:$0xff] %v2672_v38  ;;  %v2671_v63 = vsel %vm2653_vm5, %v2527_v41, 0.0  ;;  %v2530_v9 = vmax.f32 %v2512_v1, 0.0  ;;  %v2511_v55 = vadd.f32 %v7360_v5, %v2486_v25 }
 0x20a   : > { %2693 = vst [vmem:[#allocation3 + $0x88] sm:$0xff] %v2671_v63  ;;  %2700 = sbr.rel (%p4505_p10) target bundleno = 530 (0x212), region = 76 }
 0x20b   : > { %v2674_v29 = vsel %vm2656_vm6, %v2530_v9, 0.0  ;;  %v2529_v53 = vmax.f32 %v2511_v55, 0.0 }
 0x20c   : > { %2696 = vst [vmem:[#allocation3 + $0xa0] sm:$0xff] %v2674_v29 }
 0x20d   : > { %v2673_v49 = vsel %vm2655_vm7, %v2529_v53, 0.0 }
 0x20e   : > { %2695 = vst [vmem:[#allocation3 + $0x98] sm:$0xff] %v2673_v49 }
 0x20f   : > { %v6190_v61 = vmov 0.0  }
 0x210   : > { %2701 = vst [vmem:[#allocation3 + $0x18] sm:$0xff] %v6190_v61  ;;  %2702 = vst [vmem:[#allocation3 + $0x20] sm:$0xff] %v6190_v61 }
 0x211   : > { %2703 = vst [vmem:[#allocation3 + $0x28] sm:$0xff] %v6190_v61 }
 0x212 PF: > { %p4506_p11 = scmp.ne.s32.totalorder %s6167_s13, 3 }
 0x214   : > { %2707 = sbr.rel (%p4506_p11) target bundleno = 540 (0x21c), region = 80 }
 0x219   : > { %v6191_v5 = vmov 0.0  }
 0x21a   : > { %2708 = vst [vmem:[#allocation3 + $0x90] sm:$0xff] %v6191_v5  ;;  %2709 = vst [vmem:[#allocation3 + $0x98] sm:$0xff] %v6191_v5 }
 0x21b   : > { %2710 = vst [vmem:[#allocation3 + $0xa0] sm:$0xff] %v6191_v5 }
 0x21c PF: > { %v2767_v8 = vld [vmem:[#allocation4 + $0xf8] sm:$0xff]  ;;  %v2766_v47 = vld [vmem:[#allocation4 + $0xf0] sm:$0xff]  ;;  %v2765_v0 = vld [vmem:[#allocation4 + $0xe8] sm:$0xff] }
 0x21d   : > { %5606 = vmatprep.subr.mxu1 %v2767_v8  ;;  %v2764_v50 = vld [vmem:[#allocation4 + $0xe0] sm:$0xff]  ;;  %v2739_v10 = vld [vmem:[#allocation3 + $0x18] sm:$0xff]  ;;  %v2763_v46 = vld [vmem:[#allocation4 + $0xd8] sm:$0xff] }
 0x21e   : > { %5607 = vmatpush3.msra.mxu1 %v2767_v8  ;;  %5638 = vmatprep.mubr.f32.mxu1 %v2739_v10  ;;  %v3038_v28 = vld [vmem:[#allocation4 + $0x178] sm:$0xff]  ;;  %v3037_v52 = vld [vmem:[#allocation4 + $0x170] sm:$0xff]  ;;  %v3036_v7 = vld [vmem:[#allocation4 + $0x168] sm:$0xff] }
 0x21f   : > { %5608 = vmatprep.subr.mxu1 %v2766_v47  ;;  %5706 = vmatprep.subr.mxu0 %v3038_v28  ;;  %v2762_v21 = vld [vmem:[#allocation4 + $0xd0] sm:$0xff]  ;;  %v2761_v23 = vld [vmem:[#allocation4 + $0xc8] sm:$0xff]  ;;  %v3035_v58 = vld [vmem:[#allocation4 + $0x160] sm:$0xff] }
 0x220   : > { %5609 = vmatpush3.msra.mxu1 %v2766_v47  ;;  %5707 = vmatpush3.msra.mxu0 %v3038_v28  ;;  %v2760_v32 = vld [vmem:[#allocation4 + $0xc0] sm:$0xff]  ;;  %v3034_v57 = vld [vmem:[#allocation4 + $0x158] sm:$0xff]  ;;  %v3033_v22 = vld [vmem:[#allocation4 + $0x150] sm:$0xff] }
 0x221   : > { %5610 = vmatprep.subr.mxu1 %v2765_v0  ;;  %5708 = vmatprep.subr.mxu0 %v3037_v52  ;;  %v2759_v31 = vld [vmem:[#allocation4 + $0xb8] sm:$0xff]  ;;  %v2758_v54 = vld [vmem:[#allocation4 + $0xb0] sm:$0xff]  ;;  %v3032_v24 = vld [vmem:[#allocation4 + $0x148] sm:$0xff] }
 0x222   : > { %5611 = vmatpush3.msra.mxu1 %v2765_v0  ;;  %5709 = vmatpush3.msra.mxu0 %v3037_v52  ;;  %v2757_v45 = vld [vmem:[#allocation4 + $0xa8] sm:$0xff]  ;;  %v3031_v35 = vld [vmem:[#allocation4 + $0x140] sm:$0xff]  ;;  %v3030_v6 = vld [vmem:[#allocation4 + $0x138] sm:$0xff] }
 0x223   : > { %5612 = vmatprep.subr.mxu1 %v2764_v50  ;;  %5710 = vmatprep.subr.mxu0 %v3036_v7  ;;  %v2756_v59 = vld [vmem:[#allocation4 + $0xa0] sm:$0xff]  ;;  %v2755_v18 = vld [vmem:[#allocation4 + $0x98] sm:$0xff]  ;;  %v3029_v36 = vld [vmem:[#allocation4 + $0x130] sm:$0xff] }
 0x224   : > { %5613 = vmatpush3.msra.mxu1 %v2764_v50  ;;  %5711 = vmatpush3.msra.mxu0 %v3036_v7  ;;  %v2754_v34 = vld [vmem:[#allocation4 + $0x90] sm:$0xff]  ;;  %v3028_v44 = vld [vmem:[#allocation4 + $0x128] sm:$0xff]  ;;  %v3027_v56 = vld [vmem:[#allocation4 + $0x120] sm:$0xff] }
 0x225   : > { %5614 = vmatprep.subr.mxu1 %v2763_v46  ;;  %5712 = vmatprep.subr.mxu0 %v3035_v58  ;;  %v2753_v51 = vld [vmem:[#allocation4 + $0x88] sm:$0xff]  ;;  %v2752_v11 = vld [vmem:[#allocation4 + $0x80] sm:$0xff]  ;;  %v3026_v4 = vld [vmem:[#allocation4 + $0x118] sm:$0xff] }
 0x226   : > { %5615 = vmatpush3.msra.mxu1 %v2763_v46  ;;  %5713 = vmatpush3.msra.mxu0 %v3035_v58  ;;  %v2740_v48 = vld [vmem:[#allocation3 + $0x20] sm:$0xff]  ;;  %v2738_v26 = vld [vmem:[#allocation4 + $0x78] sm:$0xff]  ;;  %v2736_v62 = vld [vmem:[#allocation4 + $0x68] sm:$0xff] }
 0x227   : > { %5616 = vmatprep.subr.mxu1 %v2762_v21  ;;  %5714 = vmatprep.subr.mxu0 %v3034_v57  ;;  %v2741_v39 = vld [vmem:[#allocation3 + $0x28] sm:$0xff]  ;;  %v2737_v60 = vld [vmem:[#allocation4 + $0x70] sm:$0xff]  ;;  %v7489_v16 = vld [vmem:[#allocation3 + $0x30] sm:$0xff] }
 0x228   : > { %5617 = vmatpush3.msra.mxu1 %v2762_v21  ;;  %5715 = vmatpush3.msra.mxu0 %v3034_v57  ;;  %v3025_v20 = vld [vmem:[#allocation4 + $0x110] sm:$0xff]  ;;  %v7491_v27 = vld [vmem:[#allocation3 + $0x38] sm:$0xff]  ;;  %v2735_v37 = vld [vmem:[#allocation4 + $0x60] sm:$0xff] }
 0x229   : > { %5618 = vmatprep.subr.mxu1 %v2761_v23  ;;  %5716 = vmatprep.subr.mxu0 %v3033_v22  ;;  %v3024_v13 = vld [vmem:[#allocation4 + $0x108] sm:$0xff]  ;;  %v2734_v14 = vld [vmem:[#allocation4 + $0x58] sm:$0xff]  ;;  %v7495_v42 = vld [vmem:[#allocation3 + $0x40] sm:$0xff] }
 0x22a   : > { %5619 = vmatpush3.msra.mxu1 %v2761_v23  ;;  %5717 = vmatpush3.msra.mxu0 %v3033_v22  ;;  %v7497_v15 = vld [vmem:[#allocation3 + $0x48] sm:$0xff]  ;;  %v2733_v40 = vld [vmem:[#allocation4 + $0x50] sm:$0xff]  ;;  %v3023_v43 = vld [vmem:[#allocation4 + $0x100] sm:$0xff] }
 0x22b   : > { %5620 = vmatprep.subr.mxu1 %v2760_v32  ;;  %5718 = vmatprep.subr.mxu0 %v3032_v24  ;;  %v2732_v33 = vld [vmem:[#allocation4 + $0x48] sm:$0xff]  ;;  %v7501_v3 = vld [vmem:[#allocation3 + $0x50] sm:$0xff]  ;;  %v3354_v30 = vld [vmem:[#allocation4 + $0x278] sm:$0xff] }
 0x22c   : > { %5621 = vmatpush3.msra.mxu1 %v2760_v32  ;;  %5719 = vmatpush3.msra.mxu0 %v3032_v24  ;;  %v7503_v2 = vld [vmem:[#allocation3 + $0x58] sm:$0xff]  ;;  %v2731_v17 = vld [vmem:[#allocation4 + $0x40] sm:$0xff]  ;;  %v2730_v41 = vld [vmem:[#allocation4 + $0x38] sm:$0xff] }
 0x22d   : > { %5622 = vmatprep.subr.mxu1 %v2759_v31  ;;  %5720 = vmatprep.subr.mxu0 %v3031_v35  ;;  %v3010_v19 = vld [vmem:[#allocation3 + $0x19] sm:$0xff]  ;;  %v7509_v25 = vld [vmem:[#allocation3 + $0x68] sm:$0xff]  ;;  %v7513_v9 = vld [vmem:[#allocation3 + $0x70] sm:$0xff] }
 0x22e   : > { %5623 = vmatpush3.msra.mxu1 %v2759_v31  ;;  %5721 = vmatpush3.msra.mxu0 %v3031_v35  ;;  %v7507_v1 = vld [vmem:[#allocation3 + $0x60] sm:$0xff]  ;;  %v2728_v63 = vld [vmem:[#allocation4 + $0x28] sm:$0xff]  ;;  %v2727_v29 = vld [vmem:[#allocation4 + $0x20] sm:$0xff] }
 0x22f   : > { %5624 = vmatprep.subr.mxu1 %v2758_v54  ;;  %5722 = vmatprep.subr.mxu0 %v3030_v6  ;;  %v2729_v38 = vld [vmem:[#allocation4 + $0x30] sm:$0xff]  ;;  %v2711_v55 = vld [vmem:[#allocation3 + $0x17] sm:$0xff]  ;;  %v2726_v49 = vld [vmem:[#allocation4 + $0x18] sm:$0xff] }
 0x230   : > { %5625 = vmatpush3.msra.mxu1 %v2758_v54  ;;  %5723 = vmatpush3.msra.mxu0 %v3030_v6  ;;  %v3011_v12 = vld [vmem:[#allocation3 + $0x21] sm:$0xff]  ;;  %v3352_v61 = vld [vmem:[#allocation4 + $0x268] sm:$0xff]  ;;  %v3012_v5 = vld [vmem:[#allocation3 + $0x29] sm:$0xff] }
 0x231   : > { %5626 = vmatprep.subr.mxu1 %v2757_v45  ;;  %5724 = vmatprep.subr.mxu0 %v3029_v36  ;;  %v3353_v53 = vld [vmem:[#allocation4 + $0x270] sm:$0xff]  ;;  %v7516_v47 = vld [vmem:[#allocation3 + $0x31] sm:$0xff]  ;;  %v3350_v46 = vld [vmem:[#allocation4 + $0x258] sm:$0xff] }
 0x232   : > { %5627 = vmatpush3.msra.mxu1 %v2757_v45  ;;  %5725 = vmatpush3.msra.mxu0 %v3029_v36  ;;  %v2725_v8 = vld [vmem:[#allocation4 + $0x10] sm:$0xff]  ;;  %v2724_v0 = vld [vmem:[#allocation4 + $0x8] sm:$0xff]  ;;  %v3351_v50 = vld [vmem:[#allocation4 + $0x260] sm:$0xff] }
 0x233   : > { %5628 = vmatprep.subr.mxu1 %v2756_v59  ;;  %5726 = vmatprep.subr.mxu0 %v3028_v44  ;;  %v2723_v10 = vld [vmem:[#allocation4] sm:$0xff]  ;;  %v7519_v28 = vld [vmem:[#allocation3 + $0x39] sm:$0xff]  ;;  %v3196_v21 = vld [vmem:[#allocation4 + $0x1f8] sm:$0xff] }
 0x234   : > { %5629 = vmatpush3.msra.mxu1 %v2756_v59  ;;  %5727 = vmatpush3.msra.mxu0 %v3028_v44  ;;  %v2712_v52 = vld [vmem:[#allocation3 + $0x1f] sm:$0xff]  ;;  %v2713_v7 = vld [vmem:[#allocation3 + $0x27] sm:$0xff]  ;;  %v7524_v32 = vld [vmem:[#allocation3 + $0x2f] sm:$0xff] }
 0x235   : > { %5630 = vmatprep.subr.mxu1 %v2755_v18  ;;  %5728 = vmatprep.subr.mxu0 %v3027_v56  ;;  %v3195_v23 = vld [vmem:[#allocation4 + $0x1f0] sm:$0xff]  ;;  %v3194_v57 = vld [vmem:[#allocation4 + $0x1e8] sm:$0xff]  ;;  %v3193_v22 = vld [vmem:[#allocation4 + $0x1e0] sm:$0xff] }
 0x236   : > { %5631 = vmatpush3.msra.mxu1 %v2755_v18  ;;  %5729 = vmatpush3.msra.mxu0 %v3027_v56  ;;  %v7522_v58 = vld [vmem:[#allocation3 + $0x41] sm:$0xff]  ;;  %v7526_v31 = vld [vmem:[#allocation3 + $0x37] sm:$0xff]  ;;  %v7536_v18 = vld [vmem:[#allocation3 + $0x49] sm:$0xff] }
 0x237   : > { %5632 = vmatprep.subr.mxu1 %v2754_v34  ;;  %5730 = vmatprep.subr.mxu0 %v3026_v4  ;;  %v3349_v54 = vld [vmem:[#allocation4 + $0x250] sm:$0xff]  ;;  %v3192_v45 = vld [vmem:[#allocation4 + $0x1d8] sm:$0xff]  ;;  %v3348_v6 = vld [vmem:[#allocation4 + $0x248] sm:$0xff] }
 0x238   : > { %5633 = vmatpush3.msra.mxu1 %v2754_v34  ;;  %5731 = vmatpush3.msra.mxu0 %v3026_v4  ;;  %v7531_v24 = vld [vmem:[#allocation3 + $0x3f] sm:$0xff]  ;;  %v7533_v35 = vld [vmem:[#allocation3 + $0x47] sm:$0xff]  ;;  %v7539_v36 = vld [vmem:[#allocation3 + $0x4f] sm:$0xff] }
 0x239   : > { %5634 = vmatprep.subr.mxu1 %v2753_v51  ;;  %5732 = vmatprep.subr.mxu0 %v3025_v20  ;;  %v3191_v59 = vld [vmem:[#allocation4 + $0x1d0] sm:$0xff]  ;;  %v3190_v34 = vld [vmem:[#allocation4 + $0x1c8] sm:$0xff]  ;;  %v3347_v56 = vld [vmem:[#allocation4 + $0x240] sm:$0xff] }
 0x23a   : > { %5635 = vmatpush3.msra.mxu1 %v2753_v51  ;;  %5733 = vmatpush3.msra.mxu0 %v3025_v20  ;;  %v7542_v44 = vld [vmem:[#allocation3 + $0x51] sm:$0xff]  ;;  %v7548_v4 = vld [vmem:[#allocation3 + $0x5f] sm:$0xff] }
 0x23b   : > { %5636 = vmatprep.subr.mxu1 %v2752_v11  ;;  %5734 = vmatprep.subr.mxu0 %v3024_v13  ;;  %v3189_v51 = vld [vmem:[#allocation4 + $0x1c0] sm:$0xff]  ;;  %v3187_v20 = vld [vmem:[#allocation4 + $0x1b0] sm:$0xff] }
 0x23c   : > { %5637 = vmatpush3.msra.mxu1 %v2752_v11  ;;  %5735 = vmatpush3.msra.mxu0 %v3024_v13  ;;  %v7545_v11 = vld [vmem:[#allocation3 + $0x57] sm:$0xff]  ;;  %v7560_v13 = vld [vmem:[#allocation3 + $0x6f] sm:$0xff] }
 0x23d   : > { %5639 = vmatmul.mubr.f32.vlgmr.msra.gmra.mxu1 %v2740_v48  ;;  %5656 = vmatprep.subr.mxu1 %v2738_v26  ;;  %v3188_v48 = vld [vmem:[#allocation4 + $0x1b8] sm:$0xff] }
 0x23e   : > { %5657 = vmatpush3.msra.mxu1 %v2738_v26  ;;  %5641 = vmatprep.mubr.f32.mxu1 %v2741_v39  ;;  %v3346_v26 = vld [vmem:[#allocation4 + $0x238] sm:$0xff]  ;;  %v7551_v39 = vld [vmem:[#allocation3 + $0x59] sm:$0xff] }
 0x23f   : > { %5658 = vmatprep.subr.mxu1 %v2737_v60  ;;  %5736 = vmatprep.subr.mxu0 %v3023_v43 }
 0x240   : > { %5659 = vmatpush3.msra.mxu1 %v2737_v60  ;;  %5737 = vmatpush3.msra.mxu0 %v3023_v43  ;;  %v7554_v60 = vld [vmem:[#allocation3 + $0x61] sm:$0xff]  ;;  %v7563_v43 = vld [vmem:[#allocation3 + $0x69] sm:$0xff] }
 0x241   : > { %5660 = vmatprep.subr.mxu1 %v2736_v62  ;;  %5642 = vmatmul.mubr.f32.gmra.mxu1 %v7489_v16 }
 0x242   : > { %5661 = vmatpush3.msra.mxu1 %v2736_v62  ;;  %5644 = vmatprep.mubr.f32.mxu1 %v7491_v27  ;;  %v3345_v62 = vld [vmem:[#allocation4 + $0x230] sm:$0xff] }
 0x243   : > { %5662 = vmatprep.subr.mxu1 %v2735_v37  ;;  %5738 = vmatprep.mubr.f32.mxu0 %v3010_v19  ;;  %v3343_v19 = vld [vmem:[#allocation4 + $0x220] sm:$0xff] }
 0x244   : > { %5663 = vmatpush3.msra.mxu1 %v2735_v37  ;;  %5806 = vmatprep.subr.mxu0 %v3354_v30  ;;  %v7557_v37 = vld [vmem:[#allocation3 + $0x67] sm:$0xff] }
 0x245   : > { %5664 = vmatprep.subr.mxu1 %v2734_v14  ;;  %5645 = vmatmul.mubr.f32.gmra.mxu1 %v7495_v42 }
 0x246   : > { %5665 = vmatpush3.msra.mxu1 %v2734_v14  ;;  %5647 = vmatprep.mubr.f32.mxu1 %v7497_v15  ;;  %v3186_v14 = vld [vmem:[#allocation4 + $0x1a8] sm:$0xff] }
 0x247   : > { %5666 = vmatprep.subr.mxu1 %v2733_v40  ;;  %5739 = vmatmul.mubr.f32.vlgmr.msra.gmra.mxu0 %v3011_v12  ;;  %v3341_v12 = vld [vmem:[#allocation4 + $0x210] sm:$0xff] }
 0x248   : > { %5667 = vmatpush3.msra.mxu1 %v2733_v40  ;;  %5807 = vmatpush3.msra.mxu0 %v3354_v30  ;;  %v3344_v40 = vld [vmem:[#allocation4 + $0x228] sm:$0xff]  ;;  %v3184_v30 = vld [vmem:[#allocation4 + $0x198] sm:$0xff] }
 0x249   : > { %5668 = vmatprep.subr.mxu1 %v2732_v33  ;;  %5648 = vmatmul.mubr.f32.gmra.mxu1 %v7501_v3 }
 0x24a   : > { %5669 = vmatpush3.msra.mxu1 %v2732_v33  ;;  %5650 = vmatprep.mubr.f32.mxu1 %v7503_v2  ;;  %v7566_v33 = vld [vmem:[#allocation3 + $0x71] sm:$0xff] }
 0x24b   : > { %5670 = vmatprep.subr.mxu1 %v2731_v17  ;;  %5808 = vmatprep.subr.mxu0 %v3353_v53 }
 0x24c   : > { %5671 = vmatpush3.msra.mxu1 %v2731_v17  ;;  %5809 = vmatpush3.msra.mxu0 %v3353_v53  ;;  %v3185_v17 = vld [vmem:[#allocation4 + $0x1a0] sm:$0xff] }
 0x24d   : > { %5672 = vmatprep.subr.mxu1 %v2730_v41  ;;  %5651 = vmatmul.mubr.f32.gmra.mxu1 %v7507_v1  ;;  %v3339_v53 = vld [vmem:[#allocation4 + $0x200] sm:$0xff] }
 0x24e   : > { %5673 = vmatpush3.msra.mxu1 %v2730_v41  ;;  %5653 = vmatprep.mubr.f32.mxu1 %v7509_v25  ;;  %v3342_v41 = vld [vmem:[#allocation4 + $0x218] sm:$0xff] }
 0x24f   : > { %5674 = vmatprep.subr.mxu1 %v2729_v38  ;;  %5810 = vmatprep.subr.mxu0 %v3352_v61 }
 0x250   : > { %5675 = vmatpush3.msra.mxu1 %v2729_v38  ;;  %5741 = vmatprep.mubr.f32.mxu0 %v3012_v5  ;;  %v3183_v38 = vld [vmem:[#allocation4 + $0x190] sm:$0xff] }
 0x251   : > { %5676 = vmatprep.subr.mxu1 %v2728_v63  ;;  %5654 = vmatmul.mubr.f32.gmra.mxu1 %v7513_v9  ;;  %v3511_v5 = vld [vmem:[#allocation4 + $0x2f0] sm:$0xff] }
 0x252   : > { %5677 = vmatpush3.msra.mxu1 %v2728_v63  ;;  %5688 = vmatprep.mubr.f32.mxu1 %v2711_v55  ;;  %v3182_v63 = vld [vmem:[#allocation4 + $0x188] sm:$0xff] }
 0x253   : > { %5678 = vmatprep.subr.mxu1 %v2727_v29  ;;  %5811 = vmatpush3.msra.mxu0 %v3352_v61  ;;  %v3340_v55 = vld [vmem:[#allocation4 + $0x208] sm:$0xff]  ;;  %v3670_v61 = vld [vmem:[#allocation4 + $0x378] sm:$0xff] }
 0x254   : > { %5679 = vmatpush3.msra.mxu1 %v2727_v29  ;;  %5742 = vmatmul.mubr.f32.gmra.mxu0 %v7516_v47  ;;  %v3181_v29 = vld [vmem:[#allocation4 + $0x180] sm:$0xff] }
 0x255   : > { %5680 = vmatprep.subr.mxu1 %v2726_v49  ;;  %5812 = vmatprep.subr.mxu0 %v3351_v50 }
 0x256   : > { %5681 = vmatpush3.msra.mxu1 %v2726_v49  ;;  %5813 = vmatpush3.msra.mxu0 %v3351_v50  ;;  %v3512_v49 = vld [vmem:[#allocation4 + $0x2f8] sm:$0xff]  ;;  %v3668_v50 = vld [vmem:[#allocation4 + $0x368] sm:$0xff] }
 0x257   : > { %5682 = vmatprep.subr.mxu1 %v2725_v8  ;;  %5814 = vmatprep.subr.mxu0 %v3350_v46 }
 0x258   : > { %5683 = vmatpush3.msra.mxu1 %v2725_v8  ;;  %5744 = vmatprep.mubr.f32.mxu0 %v7519_v28  ;;  %v3669_v8 = vld [vmem:[#allocation4 + $0x370] sm:$0xff] }
 0x259   : > { %5684 = vmatprep.subr.mxu1 %v2724_v0  ;;  %5815 = vmatpush3.msra.mxu0 %v3350_v46  ;;  %v3666_v46 = vld [vmem:[#allocation4 + $0x358] sm:$0xff] }
 0x25a   : > { %5685 = vmatpush3.msra.mxu1 %v2724_v0  ;;  %5745 = vmatmul.mubr.f32.gmra.mxu0 %v7522_v58  ;;  %v3510_v0 = vld [vmem:[#allocation4 + $0x2e8] sm:$0xff] }
 0x25b   : > { %5686 = vmatprep.subr.mxu1 %v2723_v10  ;;  %5816 = vmatprep.subr.mxu0 %v3349_v54 }
 0x25c   : > { %5687 = vmatpush3.msra.mxu1 %v2723_v10  ;;  %5817 = vmatpush3.msra.mxu0 %v3349_v54  ;;  %v3667_v10 = vld [vmem:[#allocation4 + $0x360] sm:$0xff]  ;;  %v7590_v54 = vld [vmem:[#allocation3 + $0x78] sm:$0xff] }
 0x25d   : > { %5689 = vmatmul.mubr.f32.vlgmr.msra.gmra.mxu1 %v2712_v52  ;;  %5756 = vmatprep.subr.mxu1 %v3196_v21  ;;  %v3507_v52 = vld [vmem:[#allocation4 + $0x2d0] sm:$0xff] }
 0x25e   : > { %5757 = vmatpush3.msra.mxu1 %v3196_v21  ;;  %5691 = vmatprep.mubr.f32.mxu1 %v2713_v7  ;;  %v3506_v21 = vld [vmem:[#allocation4 + $0x2c8] sm:$0xff] }
 0x25f   : > { %5758 = vmatprep.subr.mxu1 %v3195_v23  ;;  %5818 = vmatprep.subr.mxu0 %v3348_v6  ;;  %v3664_v7 = vld [vmem:[#allocation4 + $0x348] sm:$0xff] }
 0x260   : > { %5759 = vmatpush3.msra.mxu1 %v3195_v23  ;;  %5747 = vmatprep.mubr.f32.mxu0 %v7536_v18  ;;  %v3505_v23 = vld [vmem:[#allocation4 + $0x2c0] sm:$0xff] }
 0x261   : > { %5692 = vmatmul.mubr.f32.gmra.mxu1 %v7524_v32  ;;  %5760 = vmatprep.subr.mxu1 %v3194_v57 }
 0x262   : > { %5761 = vmatpush3.msra.mxu1 %v3194_v57  ;;  %5694 = vmatprep.mubr.f32.mxu1 %v7526_v31  ;;  %v7586_v57 = vld [vmem:[#allocation3 + $0x77] sm:$0xff] }
 0x263   : > { %5762 = vmatprep.subr.mxu1 %v3193_v22  ;;  %5819 = vmatpush3.msra.mxu0 %v3348_v6  ;;  %v7596_v6 = vld [vmem:[#allocation3 + $0x87] sm:$0xff] }
 0x264   : > { %5763 = vmatpush3.msra.mxu1 %v3193_v22  ;;  %5748 = vmatmul.mubr.f32.gmra.mxu0 %v7542_v44  ;;  %v3662_v22 = vld [vmem:[#allocation4 + $0x338] sm:$0xff] }
 0x265   : > { %5695 = vmatmul.mubr.f32.gmra.mxu1 %v7531_v24  ;;  %5764 = vmatprep.subr.mxu1 %v3192_v45 }
 0x266   : > { %5765 = vmatpush3.msra.mxu1 %v3192_v45  ;;  %5697 = vmatprep.mubr.f32.mxu1 %v7533_v35  ;;  %v3661_v45 = vld [vmem:[#allocation4 + $0x330] sm:$0xff] }
 0x267   : > { %5766 = vmatprep.subr.mxu1 %v3191_v59  ;;  %5820 = vmatprep.subr.mxu0 %v3347_v56 }
 0x268   : > { %5767 = vmatpush3.msra.mxu1 %v3191_v59  ;;  %5821 = vmatpush3.msra.mxu0 %v3347_v56  ;;  %v7593_v59 = vld [vmem:[#allocation3 + $0x7f] sm:$0xff] }
 0x269   : > { %5698 = vmatmul.mubr.f32.gmra.mxu1 %v7539_v36  ;;  %5768 = vmatprep.subr.mxu1 %v3190_v34  ;;  %v7599_v56 = vld [vmem:[#allocation3 + $0x80] sm:$0xff] }
 0x26a   : > { %5769 = vmatpush3.msra.mxu1 %v3190_v34  ;;  %5700 = vmatprep.mubr.f32.mxu1 %v7545_v11  ;;  %v3502_v34 = vld [vmem:[#allocation4 + $0x2a8] sm:$0xff] }
 0x26b   : > { %5770 = vmatprep.subr.mxu1 %v3189_v51  ;;  %5822 = vmatprep.subr.mxu0 %v3346_v26 }
 0x26c   : > { %5771 = vmatpush3.msra.mxu1 %v3189_v51  ;;  %5750 = vmatprep.mubr.f32.mxu0 %v7551_v39  ;;  %v3660_v51 = vld [vmem:[#allocation4 + $0x328] sm:$0xff] }
 0x26d   : > { %5701 = vmatmul.mubr.f32.gmra.mxu1 %v7548_v4  ;;  %5772 = vmatprep.subr.mxu1 %v3188_v48 }
 0x26e   : > { %5773 = vmatpush3.msra.mxu1 %v3188_v48  ;;  %5823 = vmatpush3.msra.mxu0 %v3346_v26  ;;  %v7602_v48 = vld [vmem:[#allocation3 + $0x88] sm:$0xff]  ;;  %v3501_v26 = vld [vmem:[#allocation4 + $0x2a0] sm:$0xff] }
 0x26f   : > { %5751 = vmatmul.mubr.f32.gmra.mxu0 %v7554_v60  ;;  %5774 = vmatprep.subr.mxu1 %v3187_v20 }
 0x270   : > { %5824 = vmatprep.subr.mxu0 %v3345_v62  ;;  %5703 = vmatprep.mubr.f32.mxu1 %v7557_v37 }
 0x271   : > { %5775 = vmatpush3.msra.mxu1 %v3187_v20  ;;  %5825 = vmatpush3.msra.mxu0 %v3345_v62  ;;  %v3659_v20 = vld [vmem:[#allocation4 + $0x320] sm:$0xff]  ;;  %v3500_v62 = vld [vmem:[#allocation4 + $0x298] sm:$0xff] }
 0x272   : > { %5704 = vmatmul.mubr.f32.gmra.mxu1 %v7560_v13  ;;  %5776 = vmatprep.subr.mxu1 %v3186_v14 }
 0x273   : > { %5826 = vmatprep.subr.mxu0 %v3344_v40  ;;  %5753 = vmatprep.mubr.f32.mxu0 %v7563_v43 }
 0x274   : > { %5777 = vmatpush3.msra.mxu1 %v3186_v14  ;;  %5827 = vmatpush3.msra.mxu0 %v3344_v40  ;;  %v3658_v14 = vld [vmem:[#allocation4 + $0x318] sm:$0xff]  ;;  %v3499_v40 = vld [vmem:[#allocation4 + $0x290] sm:$0xff] }
 0x275   : > { %5754 = vmatmul.mubr.f32.gmra.mxu0 %v7566_v33  ;;  %5778 = vmatprep.subr.mxu1 %v3185_v17 }
 0x276   : > { %5828 = vmatprep.subr.mxu0 %v3343_v19  ;;  %5779 = vmatpush3.msra.mxu1 %v3185_v17  ;;  %v3657_v17 = vld [vmem:[#allocation4 + $0x310] sm:$0xff] }
 0x277   : > { %5829 = vmatpush3.msra.mxu0 %v3343_v19  ;;  %5780 = vmatprep.subr.mxu1 %v3184_v30  ;;  %v3498_v19 = vld [vmem:[#allocation4 + $0x288] sm:$0xff] }
 0x278   : > { %5830 = vmatprep.subr.mxu0 %v3342_v41  ;;  %5781 = vmatpush3.msra.mxu1 %v3184_v30  ;;  %v3656_v30 = vld [vmem:[#allocation4 + $0x308] sm:$0xff] }
 0x279   : > { %5831 = vmatpush3.msra.mxu0 %v3342_v41  ;;  %5782 = vmatprep.subr.mxu1 %v3183_v38  ;;  %v3497_v41 = vld [vmem:[#allocation4 + $0x280] sm:$0xff] }
 0x27a   : > { %5832 = vmatprep.subr.mxu0 %v3341_v12  ;;  %5783 = vmatpush3.msra.mxu1 %v3183_v38  ;;  %v3655_v38 = vld [vmem:[#allocation4 + $0x300] sm:$0xff] }
 0x27b   : > { %5833 = vmatpush3.msra.mxu0 %v3341_v12  ;;  %5784 = vmatprep.subr.mxu1 %v3182_v63  ;;  %v3828_v12 = vld [vmem:[#allocation4 + $0x3f8] sm:$0xff] }
 0x27c   : > { %5834 = vmatprep.subr.mxu0 %v3340_v55  ;;  %5785 = vmatpush3.msra.mxu1 %v3182_v63  ;;  %v3986_v63 = vld [vmem:[#allocation4 + $0x478] sm:$0xff] }
 0x27d   : > { %5835 = vmatpush3.msra.mxu0 %v3340_v55  ;;  %5786 = vmatprep.subr.mxu1 %v3181_v29  ;;  %v3827_v55 = vld [vmem:[#allocation4 + $0x3f0] sm:$0xff] }
 0x27e   : > { %5836 = vmatprep.subr.mxu0 %v3339_v53  ;;  %5787 = vmatpush3.msra.mxu1 %v3181_v29  ;;  %v3985_v29 = vld [vmem:[#allocation4 + $0x470] sm:$0xff] }
 0x27f   : > { %5788 = vmatprep.mubr.f32.mxu1 %v7524_v32  ;;  %5837 = vmatpush3.msra.mxu0 %v3339_v53  ;;  %v3663_v32 = vld [vmem:[#allocation4 + $0x340] sm:$0xff]  ;;  %v3826_v53 = vld [vmem:[#allocation4 + $0x3e8] sm:$0xff] }
 0x280   : > { %5789 = vmatmul.mubr.f32.vlgmr.msra.gmra.mxu1 %v7526_v31  ;;  %5838 = vmatprep.mubr.f32.mxu0 %v7489_v16  ;;  %v3509_v16 = vld [vmem:[#allocation4 + $0x2e0] sm:$0xff]  ;;  %v3504_v31 = vld [vmem:[#allocation4 + $0x2b8] sm:$0xff] }
 0x281   : > { %5856 = vmatprep.subr.mxu1 %v3512_v49  ;;  %5906 = vmatprep.subr.mxu0 %v3670_v61 }
 0x282   : > { %5839 = vmatmul.mubr.f32.vlgmr.msra.gmra.mxu0 %v7491_v27  ;;  %5857 = vmatpush3.msra.mxu1 %v3512_v49  ;;  %v3508_v27 = vld [vmem:[#allocation4 + $0x2d8] sm:$0xff]  ;;  %v3984_v49 = vld [vmem:[#allocation4 + $0x468] sm:$0xff] }
 0x283   : > { %5907 = vmatpush3.msra.mxu0 %v3670_v61  ;;  %5858 = vmatprep.subr.mxu1 %v3511_v5  ;;  %v3980_v61 = vld [vmem:[#allocation4 + $0x448] sm:$0xff] }
 0x284   : > { %5908 = vmatprep.subr.mxu0 %v3669_v8  ;;  %5791 = vmatprep.mubr.f32.mxu1 %v7531_v24  ;;  %v3503_v24 = vld [vmem:[#allocation4 + $0x2b0] sm:$0xff] }
 0x285   : > { %5859 = vmatpush3.msra.mxu1 %v3511_v5  ;;  %5909 = vmatpush3.msra.mxu0 %v3669_v8  ;;  %v3821_v5 = vld [vmem:[#allocation4 + $0x3c0] sm:$0xff]  ;;  %v3820_v8 = vld [vmem:[#allocation4 + $0x3b8] sm:$0xff] }
 0x286   : > { %5792 = vmatmul.mubr.f32.gmra.mxu1 %v7533_v35  ;;  %5860 = vmatprep.subr.mxu1 %v3510_v0 }
 0x287   : > { %5910 = vmatprep.subr.mxu0 %v3668_v50  ;;  %5841 = vmatprep.mubr.f32.mxu0 %v7495_v42  ;;  %v3665_v42 = vld [vmem:[#allocation4 + $0x350] sm:$0xff] }
 0x288   : > { %5861 = vmatpush3.msra.mxu1 %v3510_v0  ;;  %5911 = vmatpush3.msra.mxu0 %v3668_v50  ;;  %v3978_v0 = vld [vmem:[#allocation4 + $0x438] sm:$0xff] }
 0x289   : > { %5842 = vmatmul.mubr.f32.gmra.mxu0 %v7497_v15  ;;  %5862 = vmatprep.subr.mxu1 %v3509_v16  ;;  %v3651_v50 = vld [vmem:[#allocation3 + $0x8f] sm:$0xff] }
 0x28a   : > { %5912 = vmatprep.subr.mxu0 %v3667_v10  ;;  %5794 = vmatprep.mubr.f32.mxu1 %v7539_v36 }
 0x28b   : > { %5863 = vmatpush3.msra.mxu1 %v3509_v16  ;;  %5913 = vmatpush3.msra.mxu0 %v3667_v10  ;;  %v3819_v16 = vld [vmem:[#allocation4 + $0x3b0] sm:$0xff] }
 0x28c   : > { %5795 = vmatmul.mubr.f32.gmra.mxu1 %v7545_v11  ;;  %5864 = vmatprep.subr.mxu1 %v3508_v27  ;;  %v3977_v10 = vld [vmem:[#allocation4 + $0x430] sm:$0xff] }
 0x28d   : > { %5914 = vmatprep.subr.mxu0 %v3666_v46  ;;  %5844 = vmatprep.mubr.f32.mxu0 %v7501_v3 }
 0x28e   : > { %5865 = vmatpush3.msra.mxu1 %v3508_v27  ;;  %5915 = vmatpush3.msra.mxu0 %v3666_v46  ;;  %v7627_v27 = vld [vmem:[#allocation3 + $0x81] sm:$0xff]  ;;  %v7629_v46 = vld [vmem:[#allocation3 + $0x89] sm:$0xff] }
 0x28f   : > { %5845 = vmatmul.mubr.f32.gmra.mxu0 %v7503_v2  ;;  %5866 = vmatprep.subr.mxu1 %v3507_v52 }
 0x290   : > { %5916 = vmatprep.subr.mxu0 %v3665_v42  ;;  %5797 = vmatprep.mubr.f32.mxu1 %v7548_v4 }
 0x291   : > { %5867 = vmatpush3.msra.mxu1 %v3507_v52  ;;  %5917 = vmatpush3.msra.mxu0 %v3665_v42  ;;  %v3818_v52 = vld [vmem:[#allocation4 + $0x3a8] sm:$0xff] }
 0x292   : > { %5798 = vmatmul.mubr.f32.gmra.mxu1 %v7557_v37  ;;  %5868 = vmatprep.subr.mxu1 %v3506_v21  ;;  %v3976_v42 = vld [vmem:[#allocation4 + $0x428] sm:$0xff] }
 0x293   : > { %5918 = vmatprep.subr.mxu0 %v3664_v7  ;;  %5847 = vmatprep.mubr.f32.mxu0 %v7507_v1 }
 0x294   : > { %5869 = vmatpush3.msra.mxu1 %v3506_v21  ;;  %5919 = vmatpush3.msra.mxu0 %v3664_v7  ;;  %v3652_v21 = vld [vmem:[#allocation3 + $0x97] sm:$0xff]  ;;  %v3653_v7 = vld [vmem:[#allocation3 + $0x9f] sm:$0xff] }
 0x295   : > { %5848 = vmatmul.mubr.f32.gmra.mxu0 %v7509_v25  ;;  %5870 = vmatprep.subr.mxu1 %v3505_v23 }
 0x296   : > { %5920 = vmatprep.subr.mxu0 %v3663_v32  ;;  %5800 = vmatprep.mubr.f32.mxu1 %v7560_v13 }
 0x297   : > { %5871 = vmatpush3.msra.mxu1 %v3505_v23  ;;  %5921 = vmatpush3.msra.mxu0 %v3663_v32  ;;  %v3817_v23 = vld [vmem:[#allocation4 + $0x3a0] sm:$0xff] }
 0x298   : > { %5801 = vmatmul.mubr.f32.gmra.mxu1 %v7586_v57  ;;  %5872 = vmatprep.subr.mxu1 %v3504_v31  ;;  %v3975_v32 = vld [vmem:[#allocation4 + $0x420] sm:$0xff] }
 0x299   : > { %5922 = vmatprep.subr.mxu0 %v3662_v22  ;;  %5850 = vmatprep.mubr.f32.mxu0 %v7513_v9 }
 0x29a   : > { %5873 = vmatpush3.msra.mxu1 %v3504_v31  ;;  %5923 = vmatpush3.msra.mxu0 %v3662_v22  ;;  %v3974_v31 = vld [vmem:[#allocation4 + $0x418] sm:$0xff]  ;;  %v3815_v22 = vld [vmem:[#allocation4 + $0x390] sm:$0xff] }
 0x29b   : > { %5851 = vmatmul.mubr.f32.gmra.mxu0 %v7590_v54  ;;  %5874 = vmatprep.subr.mxu1 %v3503_v24 }
 0x29c   : > { %5924 = vmatprep.subr.mxu0 %v3661_v45  ;;  %5803 = vmatprep.mubr.f32.mxu1 %v7593_v59 }
 0x29d   : > { %5875 = vmatpush3.msra.mxu1 %v3503_v24  ;;  %5925 = vmatpush3.msra.mxu0 %v3661_v45  ;;  %v3973_v24 = vld [vmem:[#allocation4 + $0x410] sm:$0xff]  ;;  %v3814_v45 = vld [vmem:[#allocation4 + $0x388] sm:$0xff] }
 0x29e   : > { %5804 = vmatmul.mubr.f32.gmra.mxu1 %v7596_v6  ;;  %5876 = vmatprep.subr.mxu1 %v3502_v34 }
 0x29f   : > { %5926 = vmatprep.subr.mxu0 %v3660_v51  ;;  %5853 = vmatprep.mubr.f32.mxu0 %v7599_v56 }
 0x2a0   : > { %5877 = vmatpush3.msra.mxu1 %v3502_v34  ;;  %5927 = vmatpush3.msra.mxu0 %v3660_v51  ;;  %v3971_v34 = vld [vmem:[#allocation4 + $0x400] sm:$0xff] }
 0x2a1   : > { %5854 = vmatmul.mubr.f32.gmra.mxu0 %v7602_v48  ;;  %5878 = vmatprep.subr.mxu1 %v3501_v26 }
 0x2a2   : > { %5928 = vmatprep.subr.mxu0 %v3659_v20  ;;  %5879 = vmatpush3.msra.mxu1 %v3501_v26 }
 0x2a3   : > { %5929 = vmatpush3.msra.mxu0 %v3659_v20  ;;  %5880 = vmatprep.subr.mxu1 %v3500_v62 }
 0x2a4   : > { %5930 = vmatprep.subr.mxu0 %v3658_v14  ;;  %5881 = vmatpush3.msra.mxu1 %v3500_v62 }
 0x2a5   : > { %5931 = vmatpush3.msra.mxu0 %v3658_v14  ;;  %5882 = vmatprep.subr.mxu1 %v3499_v40 }
 0x2a6   : > { %5932 = vmatprep.subr.mxu0 %v3657_v17  ;;  %5883 = vmatpush3.msra.mxu1 %v3499_v40 }
 0x2a7   : > { %5933 = vmatpush3.msra.mxu0 %v3657_v17  ;;  %5884 = vmatprep.subr.mxu1 %v3498_v19 }
 0x2a8   : > { %5934 = vmatprep.subr.mxu0 %v3656_v30  ;;  %5885 = vmatpush3.msra.mxu1 %v3498_v19 }
 0x2a9   : > { %5935 = vmatpush3.msra.mxu0 %v3656_v30  ;;  %5886 = vmatprep.subr.mxu1 %v3497_v41 }
 0x2aa   : > { %5936 = vmatprep.subr.mxu0 %v3655_v38  ;;  %5887 = vmatpush3.msra.mxu1 %v3497_v41 }
 0x2ab   : > { %5888 = vmatprep.mubr.f32.mxu1 %v7516_v47  ;;  %5937 = vmatpush3.msra.mxu0 %v3655_v38  ;;  %v3825_v47 = vld [vmem:[#allocation4 + $0x3e0] sm:$0xff] }
 0x2ac   : > { %5889 = vmatmul.mubr.f32.vlgmr.msra.gmra.mxu1 %v7519_v28  ;;  %5938 = vmatprep.mubr.f32.mxu0 %v7533_v35  ;;  %v3983_v28 = vld [vmem:[#allocation4 + $0x460] sm:$0xff]  ;;  %v3824_v35 = vld [vmem:[#allocation4 + $0x3d8] sm:$0xff] }
 0x2ad   : > { %5956 = vmatprep.subr.mxu1 %v3828_v12  ;;  %6006 = vmatprep.subr.mxu0 %v3986_v63 }
 0x2ae   : > { %5939 = vmatmul.mubr.f32.vlgmr.msra.gmra.mxu0 %v7539_v36  ;;  %5957 = vmatpush3.msra.mxu1 %v3828_v12  ;;  %v3823_v36 = vld [vmem:[#allocation4 + $0x3d0] sm:$0xff] }
 0x2af   : > { %6007 = vmatpush3.msra.mxu0 %v3986_v63  ;;  %5958 = vmatprep.subr.mxu1 %v3827_v55 }
 0x2b0   : > { %6008 = vmatprep.subr.mxu0 %v3985_v29  ;;  %5891 = vmatprep.mubr.f32.mxu1 %v7522_v58  ;;  %v3982_v58 = vld [vmem:[#allocation4 + $0x458] sm:$0xff] }
 0x2b1   : > { %5959 = vmatpush3.msra.mxu1 %v3827_v55  ;;  %6009 = vmatpush3.msra.mxu0 %v3985_v29 }
 0x2b2   : > { %5892 = vmatmul.mubr.f32.gmra.mxu1 %v7536_v18  ;;  %5960 = vmatprep.subr.mxu1 %v3826_v53 }
 0x2b3   : > { %6010 = vmatprep.subr.mxu0 %v3984_v49  ;;  %5941 = vmatprep.mubr.f32.mxu0 %v7545_v11  ;;  %v3981_v11 = vld [vmem:[#allocation4 + $0x450] sm:$0xff] }
 0x2b4   : > { %5961 = vmatpush3.msra.mxu1 %v3826_v53  ;;  %6011 = vmatpush3.msra.mxu0 %v3984_v49 }
 0x2b5   : > { %5942 = vmatmul.mubr.f32.gmra.mxu0 %v7548_v4  ;;  %5962 = vmatprep.subr.mxu1 %v3825_v47  ;;  %v3822_v4 = vld [vmem:[#allocation4 + $0x3c8] sm:$0xff] }
 0x2b6   : > { %6012 = vmatprep.subr.mxu0 %v3983_v28  ;;  %5894 = vmatprep.mubr.f32.mxu1 %v7542_v44 }
 0x2b7   : > { %5963 = vmatpush3.msra.mxu1 %v3825_v47  ;;  %6013 = vmatpush3.msra.mxu0 %v3983_v28 }
 0x2b8   : > { %5895 = vmatmul.mubr.f32.gmra.mxu1 %v7551_v39  ;;  %5964 = vmatprep.subr.mxu1 %v3824_v35 }
 0x2b9   : > { %6014 = vmatprep.subr.mxu0 %v3982_v58  ;;  %5944 = vmatprep.mubr.f32.mxu0 %v7557_v37  ;;  %v3979_v37 = vld [vmem:[#allocation4 + $0x440] sm:$0xff] }
 0x2ba   : > { %5965 = vmatpush3.msra.mxu1 %v3824_v35  ;;  %6015 = vmatpush3.msra.mxu0 %v3982_v58 }
 0x2bb   : > { %5945 = vmatmul.mubr.f32.gmra.mxu0 %v7560_v13  ;;  %5966 = vmatprep.subr.mxu1 %v3823_v36  ;;  %v7622_v13 = vld [vmem:[#allocation3 + $0x79] sm:$0xff] }
 0x2bc   : > { %6016 = vmatprep.subr.mxu0 %v3981_v11  ;;  %5897 = vmatprep.mubr.f32.mxu1 %v7554_v60 }
 0x2bd   : > { %5967 = vmatpush3.msra.mxu1 %v3823_v36  ;;  %6017 = vmatpush3.msra.mxu0 %v3981_v11 }
 0x2be   : > { %5898 = vmatmul.mubr.f32.gmra.mxu1 %v7563_v43  ;;  %5968 = vmatprep.subr.mxu1 %v3822_v4 }
 0x2bf   : > { %6018 = vmatprep.subr.mxu0 %v3980_v61  ;;  %5947 = vmatprep.mubr.f32.mxu0 %v7586_v57  ;;  %v3816_v57 = vld [vmem:[#allocation4 + $0x398] sm:$0xff] }
 0x2c0   : > { %5969 = vmatpush3.msra.mxu1 %v3822_v4  ;;  %6019 = vmatpush3.msra.mxu0 %v3980_v61 }
 0x2c1   : > { %5948 = vmatmul.mubr.f32.gmra.mxu0 %v7593_v59  ;;  %5970 = vmatprep.subr.mxu1 %v3821_v5  ;;  %v3972_v59 = vld [vmem:[#allocation4 + $0x408] sm:$0xff] }
 0x2c2   : > { %6020 = vmatprep.subr.mxu0 %v3979_v37  ;;  %5900 = vmatprep.mubr.f32.mxu1 %v7566_v33 }
 0x2c3   : > { %5971 = vmatpush3.msra.mxu1 %v3821_v5  ;;  %6021 = vmatpush3.msra.mxu0 %v3979_v37 }
 0x2c4   : > { %5901 = vmatmul.mubr.f32.gmra.mxu1 %v7622_v13  ;;  %5972 = vmatprep.subr.mxu1 %v3820_v8 }
 0x2c5   : > { %6022 = vmatprep.subr.mxu0 %v3978_v0  ;;  %5950 = vmatprep.mubr.f32.mxu0 %v7596_v6  ;;  %v3813_v6 = vld [vmem:[#allocation4 + $0x380] sm:$0xff] }
 0x2c6   : > { %5973 = vmatpush3.msra.mxu1 %v3820_v8  ;;  %6023 = vmatpush3.msra.mxu0 %v3978_v0 }
 0x2c7   : > { %5951 = vmatmul.mubr.f32.gmra.mxu0 %v3651_v50  ;;  %5974 = vmatprep.subr.mxu1 %v3819_v16 }
 0x2c8   : > { %6024 = vmatprep.subr.mxu0 %v3977_v10  ;;  %5903 = vmatprep.mubr.f32.mxu1 %v7627_v27 }
 0x2c9   : > { %5975 = vmatpush3.msra.mxu1 %v3819_v16  ;;  %6025 = vmatpush3.msra.mxu0 %v3977_v10 }
 0x2ca   : > { %5904 = vmatmul.mubr.f32.gmra.mxu1 %v7629_v46  ;;  %5976 = vmatprep.subr.mxu1 %v3818_v52 }
 0x2cb   : > { %6026 = vmatprep.subr.mxu0 %v3976_v42  ;;  %5953 = vmatprep.mubr.f32.mxu0 %v3652_v21 }
 0x2cc   : > { %5977 = vmatpush3.msra.mxu1 %v3818_v52  ;;  %6027 = vmatpush3.msra.mxu0 %v3976_v42 }
 0x2cd   : > { %5954 = vmatmul.mubr.f32.gmra.mxu0 %v3653_v7  ;;  %5978 = vmatprep.subr.mxu1 %v3817_v23 }
 0x2ce   : > { %6028 = vmatprep.subr.mxu0 %v3975_v32  ;;  %5979 = vmatpush3.msra.mxu1 %v3817_v23 }
 0x2cf   : > { %6029 = vmatpush3.msra.mxu0 %v3975_v32  ;;  %5980 = vmatprep.subr.mxu1 %v3816_v57 }
 0x2d0   : > { %6030 = vmatprep.subr.mxu0 %v3974_v31  ;;  %5981 = vmatpush3.msra.mxu1 %v3816_v57 }
 0x2d1   : > { %6031 = vmatpush3.msra.mxu0 %v3974_v31  ;;  %5982 = vmatprep.subr.mxu1 %v3815_v22 }
 0x2d2   : > { %6032 = vmatprep.subr.mxu0 %v3973_v24  ;;  %5983 = vmatpush3.msra.mxu1 %v3815_v22 }
 0x2d3   : > { %6033 = vmatpush3.msra.mxu0 %v3973_v24  ;;  %5984 = vmatprep.subr.mxu1 %v3814_v45 }
 0x2d4   : > { %6034 = vmatprep.subr.mxu0 %v3972_v59  ;;  %5985 = vmatpush3.msra.mxu1 %v3814_v45 }
 0x2d5   : > { %6035 = vmatpush3.msra.mxu0 %v3972_v59  ;;  %5986 = vmatprep.subr.mxu1 %v3813_v6 }
 0x2d6   : > { %6036 = vmatprep.subr.mxu0 %v3971_v34  ;;  %5987 = vmatpush3.msra.mxu1 %v3813_v6 }
 0x2d7   : > { %5988 = vmatprep.mubr.f32.mxu1 %v7497_v15  ;;  %6037 = vmatpush3.msra.mxu0 %v3971_v34  ;;  %v3809_v15 = vld [vmem:[#allocation3 + $0x90] sm:$0xff] }
 0x2d8   : > { %6038 = vmatprep.mubr.f32.mxu0 %v7536_v18  ;;  %5989 = vmatmul.mubr.f32.vlgmr.msra.gmra.mxu1 %v7501_v3  ;;  %v3967_v3 = vld [vmem:[#allocation3 + $0x91] sm:$0xff] }
 0x2d9   : > { %6039 = vmatmul.mubr.f32.vlgmr.msra.gmra.mxu0 %v7542_v44  ;;  %5991 = vmatprep.mubr.f32.mxu1 %v7503_v2  ;;  %v3810_v2 = vld [vmem:[#allocation3 + $0x98] sm:$0xff] }
 0x2da   : > { %6041 = vmatprep.mubr.f32.mxu0 %v7551_v39 }
 0x2dc   : > { %5992 = vmatmul.mubr.f32.gmra.mxu1 %v7507_v1  ;;  %v3968_v1 = vld [vmem:[#allocation3 + $0x99] sm:$0xff] }
 0x2dd   : > { %6042 = vmatmul.mubr.f32.gmra.mxu0 %v7554_v60  ;;  %5994 = vmatprep.mubr.f32.mxu1 %v7509_v25  ;;  %v3811_v25 = vld [vmem:[#allocation3 + $0xa0] sm:$0xff] }
 0x2de   : > { %6044 = vmatprep.mubr.f32.mxu0 %v7563_v43 }
 0x2e0   : > { %5995 = vmatmul.mubr.f32.gmra.mxu1 %v7513_v9  ;;  %v3969_v9 = vld [vmem:[#allocation3 + $0xa1] sm:$0xff] }
 0x2e1   : > { %6045 = vmatmul.mubr.f32.gmra.mxu0 %v7566_v33  ;;  %5997 = vmatprep.mubr.f32.mxu1 %v7590_v54 }
 0x2e2   : > { %6047 = vmatprep.mubr.f32.mxu0 %v7622_v13 }
 0x2e4   : > { %5998 = vmatmul.mubr.f32.gmra.mxu1 %v7599_v56 }
 0x2e5   : > { %6048 = vmatmul.mubr.f32.gmra.mxu0 %v7627_v27  ;;  %6000 = vmatprep.mubr.f32.mxu1 %v7602_v48 }
 0x2e6   : > { %6050 = vmatprep.mubr.f32.mxu0 %v7629_v46 }
 0x2e8   : > { %6001 = vmatmul.mubr.f32.gmra.mxu1 %v3809_v15 }
 0x2e9   : > { %6051 = vmatmul.mubr.f32.gmra.mxu0 %v3967_v3  ;;  %6003 = vmatprep.mubr.f32.mxu1 %v3810_v2 }
 0x2ea   : > { %6053 = vmatprep.mubr.f32.mxu0 %v3968_v1 }
 0x2ec   : > { %6004 = vmatmul.mubr.f32.gmra.mxu1 %v3811_v25 }
 0x2ed   : > { %6054 = vmatmul.mubr.f32.gmra.mxu0 %v3969_v9 }
 0x2fd   : > { %v5640_v18 = vpop.f32.mrf.mxu1 }
 0x2ff   : > { %v2834_v44 = vpop.f32.mrf.mxu1 }
 0x301   : > { %v5643_v39 = vpop.f32.mrf.mxu1 }
 0x303   : > { %v2844_v60 = vpop.f32.mrf.mxu1 }
 0x305   : > { %v5646_v43 = vpop.f32.mrf.mxu1 }
 0x307   : > { %v2853_v33 = vpop.f32.mrf.mxu1  ;;  %v5740_v26 = vpop.f32.mrf.mxu0 }
 0x309   : > { %v5649_v54 = vpop.f32.mrf.mxu1  ;;  %v3105_v62 = vpop.f32.mrf.mxu0 }
 0x30b   : > { %v2862_v51 = vpop.f32.mrf.mxu1 }
 0x30d   : > { %v5652_v56 = vpop.f32.mrf.mxu1 }
 0x30f   : > { %v2872_v48 = vpop.f32.mrf.mxu1 }
 0x311   : > { %v5655_v20 = vpop.f32.mrf.mxu1 }
 0x313   : > { %v2881_v40 = vpop.f32.mrf.mxu1 }
 0x314   : > { %v5743_v14 = vpop.f32.mrf.mxu0 }
 0x316   : > { %v3115_v17 = vpop.f32.mrf.mxu0 }
 0x31a   : > { %v5746_v63 = vpop.f32.mrf.mxu0 }
 0x31c   : > { %v3124_v58 = vpop.f32.mrf.mxu0 }
 0x31d   : > { %v5690_v19 = vpop.f32.mrf.mxu1 }
 0x31e   : > { %v2961_v30 = vadd.f32 %v5690_v19, %v5640_v18 }
 0x31f   : > { %v2955_v41 = vpop.f32.mrf.mxu1 }
 0x320   : > { %v3161_v38 = vadd.f32 %v5740_v26, %v2961_v30  ;;  %v2956_v12 = vadd.f32 %v2955_v41, %v2834_v44 }
 0x321   : > { %v5693_v55 = vpop.f32.mrf.mxu1 }
 0x322   : > { %v3160_v29 = vadd.f32 %v3105_v62, %v2956_v12  ;;  %v2970_v53 = vadd.f32 %v5693_v55, %v5643_v39 }
 0x323   : > { %v2965_v49 = vpop.f32.mrf.mxu1 }
 0x324   : > { %v3162_v47 = vadd.f32 %v5743_v14, %v2970_v53  ;;  %v5749_v37 = vpop.f32.mrf.mxu0 }
 0x325   : > { %v5696_v28 = vpop.f32.mrf.mxu1 }
 0x326   : > { %v3133_v0 = vpop.f32.mrf.mxu0 }
 0x327   : > { %v2974_v35 = vpop.f32.mrf.mxu1 }
 0x328   : > { %v2975_v36 = vadd.f32 %v2974_v35, %v2853_v33 }
 0x329   : > { %v5699_v11 = vpop.f32.mrf.mxu1 }
 0x32a   : > { %v2989_v4 = vadd.f32 %v5699_v11, %v5649_v54  ;;  %v3163_v61 = vadd.f32 %v3124_v58, %v2975_v36 }
 0x32b   : > { %v2983_v5 = vpop.f32.mrf.mxu1 }
 0x32c   : > { %v2984_v13 = vadd.f32 %v2983_v5, %v2862_v51  ;;  %v3165_v8 = vadd.f32 %v5749_v37, %v2989_v4 }
 0x32d   : > { %v5702_v50 = vpop.f32.mrf.mxu1 }
 0x32e   : > { %v3164_v16 = vadd.f32 %v3133_v0, %v2984_v13  ;;  %v2998_v10 = vadd.f32 %v5702_v50, %v5652_v56 }
 0x32f   : > { %v2993_v27 = vpop.f32.mrf.mxu1  ;;  %v5752_v46 = vpop.f32.mrf.mxu0 }
 0x330   : > { %v3166_v52 = vadd.f32 %v5752_v46, %v2998_v10 }
 0x331   : > { %v3143_v42 = vpop.f32.mrf.mxu0 }
 0x332   : > { %v5705_v21 = vpop.f32.mrf.mxu1 }
 0x334   : > { %v3002_v7 = vpop.f32.mrf.mxu1 }
 0x335   : > { %v3003_v23 = vadd.f32 %v3002_v7, %v2881_v40  ;;  %v5755_v32 = vpop.f32.mrf.mxu0 }
 0x337   : > { %v3152_v57 = vpop.f32.mrf.mxu0 }
 0x338   : > { %v7651_v31 = vadd.f32 %v3152_v57, %v3003_v23 }
 0x340   : > { %v5790_v22 = vpop.f32.mrf.mxu1 }
 0x341   : > { %v3319_v24 = vadd.f32 %v5790_v22, %v3161_v38 }
 0x342   : > { %v5840_v45 = vpop.f32.mrf.mxu0  ;;  %v3263_v59 = vpop.f32.mrf.mxu1 }
 0x343   : > { %v3477_v6 = vadd.f32 %v5840_v45, %v3319_v24  ;;  %v3318_v34 = vadd.f32 %v3263_v59, %v3160_v29 }
 0x344   : > { %v3421_v15 = vpop.f32.mrf.mxu0 }
 0x345   : > { %v3476_v3 = vadd.f32 %v3421_v15, %v3318_v34 }
 0x346   : > { %v5793_v2 = vpop.f32.mrf.mxu1 }
 0x347   : > { %v3320_v1 = vadd.f32 %v5793_v2, %v3162_v47 }
 0x348   : > { %v3273_v25 = vpop.f32.mrf.mxu1 }
 0x349   : > { %v5843_v9 = vpop.f32.mrf.mxu0 }
 0x34a   : > { %v3478_v18 = vadd.f32 %v5843_v9, %v3320_v1  ;;  %v7664_v1 = vld [vmem:[%s7738_s7] ss:$0 sm:$0xff] }
 0x34b   : > { %v3431_v44 = vpop.f32.mrf.mxu0 }
 0x34c   : > { %v5796_v39 = vpop.f32.mrf.mxu1 }
 0x34e   : > { %v3282_v60 = vpop.f32.mrf.mxu1 }
 0x34f   : > { %v3321_v43 = vadd.f32 %v3282_v60, %v3163_v61  ;;  %v5846_v33 = vpop.f32.mrf.mxu0 }
 0x351   : > { %v3440_v54 = vpop.f32.mrf.mxu0 }
 0x352   : > { %v5799_v51 = vpop.f32.mrf.mxu1  ;;  %v3479_v56 = vadd.f32 %v3440_v54, %v3321_v43 }
 0x353   : > { %v3323_v48 = vadd.f32 %v5799_v51, %v3165_v8 }
 0x354   : > { %v3291_v26 = vpop.f32.mrf.mxu1 }
 0x355   : > { %v3322_v20 = vadd.f32 %v3291_v26, %v3164_v16  ;;  %v5849_v62 = vpop.f32.mrf.mxu0  ;;  %v4147_v26 = vld [vmem:[%s6360_s29 + $0x8] sm:$0xff] }
 0x356   : > { %v3481_v14 = vadd.f32 %v5849_v62, %v3323_v48 }
 0x357   : > { %v3449_v40 = vpop.f32.mrf.mxu0 }
 0x358   : > { %v5802_v17 = vpop.f32.mrf.mxu1  ;;  %v3480_v19 = vadd.f32 %v3449_v40, %v3322_v20 }
 0x359   : > { %v3324_v30 = vadd.f32 %v5802_v17, %v3166_v52 }
 0x35a   : > { %v3301_v41 = vpop.f32.mrf.mxu1 }
 0x35b   : > { %v5852_v38 = vpop.f32.mrf.mxu0 }
 0x35c   : > { %v7653_v12 = vadd.f32 %v5852_v38, %v3324_v30  ;;  %v4146_v38 = vld [vmem:[%s6360_s29] sm:$0xff] }
 0x35d   : > { %v3459_v63 = vpop.f32.mrf.mxu0 }
 0x35e   : > { %v5805_v55 = vpop.f32.mrf.mxu1 }
 0x360   : > { %v3310_v53 = vpop.f32.mrf.mxu1 }
 0x361   : > { %v5855_v29 = vpop.f32.mrf.mxu0 }
 0x363   : > { %v7655_v49 = vpop.f32.mrf.mxu0 }
 0x36c   : > { %v5890_v47 = vpop.f32.mrf.mxu1 }
 0x36d   : > { %v3635_v23 = vadd.f32 %v5890_v47, %v3477_v6 }
 0x36e   : > { %v5940_v28 = vpop.f32.mrf.mxu0  ;;  %v3579_v35 = vpop.f32.mrf.mxu1 }
 0x36f   : > { %v3634_v32 = vadd.f32 %v3579_v35, %v3476_v3  ;;  %v3793_v22 = vadd.f32 %v5940_v28, %v3635_v23  ;;  %v3325_v28 = vadd.f32 %v3310_v53, %v7651_v31 }
 0x370   : > { %v3737_v58 = vpop.f32.mrf.mxu0 }
 0x371   : > { %v3792_v34 = vadd.f32 %v3737_v58, %v3634_v32 }
 0x372   : > { %v5893_v36 = vpop.f32.mrf.mxu1 }
 0x373   : > { %v3636_v24 = vadd.f32 %v5893_v36, %v3478_v18  ;;  %v7669_v18 = vld [vmem:[%s7739_s8] ss:$0 sm:$0xff]  ;;  %v4148_v36 = vld [vmem:[%s6360_s29 + $0x10] sm:$0xff] }
 0x374   : > { %v3589_v11 = vpop.f32.mrf.mxu1 }
 0x375   : > { %v5943_v4 = vpop.f32.mrf.mxu0 }
 0x376   : > { %v3794_v9 = vadd.f32 %v5943_v4, %v3636_v24 }
 0x377   : > { %v3747_v61 = vpop.f32.mrf.mxu0 }
 0x378   : > { %v5896_v5 = vpop.f32.mrf.mxu1 }
 0x37a   : > { %v3598_v37 = vpop.f32.mrf.mxu1 }
 0x37b   : > { %v5946_v13 = vpop.f32.mrf.mxu0  ;;  %v3637_v60 = vadd.f32 %v3598_v37, %v3479_v56 }
 0x37d   : > { %v3756_v8 = vpop.f32.mrf.mxu0 }
 0x37e   : > { %v5899_v0 = vpop.f32.mrf.mxu1  ;;  %v3795_v55 = vadd.f32 %v3756_v8, %v3637_v60  ;;  %v4150_v60 = vld [vmem:[%s6360_s29 + $0x20] sm:$0xff] }
 0x37f   : > { %v3639_v48 = vadd.f32 %v5899_v0, %v3481_v14 }
 0x380   : > { %v3607_v50 = vpop.f32.mrf.mxu1 }
 0x381   : > { %v5949_v16 = vpop.f32.mrf.mxu0  ;;  %v3638_v41 = vadd.f32 %v3607_v50, %v3480_v19 }
 0x382   : > { %v3797_v35 = vadd.f32 %v5949_v16, %v3639_v48  ;;  %v3483_v16 = vadd.f32 %v7655_v49, %v3325_v28 }
 0x383   : > { %v3765_v10 = vpop.f32.mrf.mxu0 }
 0x384   : > { %v5902_v27 = vpop.f32.mrf.mxu1  ;;  %v3796_v13 = vadd.f32 %v3765_v10, %v3638_v41 }
 0x385   : > { %v3640_v58 = vadd.f32 %v5902_v27, %v7653_v12 }
 0x386   : > { %v3617_v46 = vpop.f32.mrf.mxu1 }
 0x387   : > { %v5952_v52 = vpop.f32.mrf.mxu0 }
 0x388   : > { %v3798_v27 = vadd.f32 %v5952_v52, %v3640_v58 }
 0x389   : > { %v3775_v42 = vpop.f32.mrf.mxu0 }
 0x38a   : > { %v5905_v21 = vpop.f32.mrf.mxu1 }
 0x38c   : > { %v7657_v57 = vpop.f32.mrf.mxu1 }
 0x38d   : > { %v5955_v7 = vpop.f32.mrf.mxu0  ;;  %v3641_v32 = vadd.f32 %v7657_v57, %v3483_v16 }
 0x38f   : > { %v7659_v45 = vpop.f32.mrf.mxu0 }
 0x398   : > { %v5990_v59 = vpop.f32.mrf.mxu1 }
 0x399   : > { %v3951_v15 = vadd.f32 %v5990_v59, %v3793_v22  ;;  %v6040_v2 = vpop.f32.mrf.mxu0  ;;  %v4149_v22 = vld [vmem:[%s6360_s29 + $0x18] sm:$0xff] }
 0x39a   : > { %v3895_v25 = vpop.f32.mrf.mxu1 }
 0x39b   : > { %v4109_v6 = vadd.f32 %v6040_v2, %v3951_v15  ;;  %v3950_v3 = vadd.f32 %v3895_v25, %v3792_v34  ;;  %v4053_v44 = vpop.f32.mrf.mxu0  ;;  %v4151_v2 = vld [vmem:[%s6360_s29 + $0x28] sm:$0xff] }
 0x39c   : > { %v5993_v39 = vpop.f32.mrf.mxu1 }
 0x39d   : > { %v4124_v43 = vmul.f32 %v7664_v1, %v4109_v6  ;;  %v4108_v33 = vadd.f32 %v4053_v44, %v3950_v3  ;;  %v3952_v54 = vadd.f32 %v5993_v39, %v3794_v9  ;;  %v6043_v51 = vpop.f32.mrf.mxu0  ;;  %v3799_v39 = vadd.f32 %v7659_v45, %v3641_v32 }
 0x39e   : > { %v3905_v20 = vpop.f32.mrf.mxu1 }
 0x39f   : > { %v4139_v62 = vadd.f32 %v7669_v18, %v4124_v43  ;;  %v4123_v40 = vmul.f32 %v7664_v1, %v4108_v33  ;;  %v4110_v17 = vadd.f32 %v6043_v51, %v3952_v54  ;;  %v4063_v30 = vpop.f32.mrf.mxu0  ;;  %v4152_v20 = vld [vmem:[%s6360_s29 + $0x30] sm:$0xff] }
 0x3a0   : > { %v5996_v63 = vpop.f32.mrf.mxu1 }
 0x3a1   : > { %v4155_v56 = vadd.f32 %v4147_v26, %v4139_v62  ;;  %v4138_v29 = vadd.f32 %v7669_v18, %v4123_v40  ;;  %v4125_v47 = vmul.f32 %v7664_v1, %v4110_v17  ;;  %v6046_v14 = vpop.f32.mrf.mxu0 }
 0x3a2   : > { %v3914_v11 = vpop.f32.mrf.mxu1 }
 0x3a3   : > { %v4163_v4 = vmax.f32 %v4155_v56, 0.0  ;;  %v4154_v19 = vadd.f32 %v4146_v38, %v4138_v29  ;;  %v4140_v61 = vadd.f32 %v7669_v18, %v4125_v47  ;;  %v3953_v5 = vadd.f32 %v3914_v11, %v3795_v55  ;;  %v4072_v37 = vpop.f32.mrf.mxu0  ;;  %v4153_v47 = vld [vmem:[%s6360_s29 + $0x38] sm:$0xff] }
 0x3a4   : > { %v5999_v8 = vpop.f32.mrf.mxu1 }
 0x3a5   : > { %4171 = vst.msk [vmem:[%s6365_s12 + $0x8] sm:$0xff] %vm597_vm1, %v4163_v4  ;;  %v4162_v0 = vmax.f32 %v4154_v19, 0.0  ;;  %v4156_v50 = vadd.f32 %v4148_v36, %v4140_v61  ;;  %v4111_v31 = vadd.f32 %v4072_v37, %v3953_v5  ;;  %v3955_v53 = vadd.f32 %v5999_v8, %v3797_v35  ;;  %v6049_v12 = vpop.f32.mrf.mxu0 }
 0x3a6   : > { %v3923_v46 = vpop.f32.mrf.mxu1 }
 0x3a7   : > { %4170 = vst.msk [vmem:[%s6365_s12] sm:$0xff] %vm597_vm1, %v4162_v0  ;;  %v4164_v42 = vmax.f32 %v4156_v50, 0.0  ;;  %v4126_v10 = vmul.f32 %v7664_v1, %v4111_v31  ;;  %v4113_v21 = vadd.f32 %v6049_v12, %v3955_v53  ;;  %v3954_v7 = vadd.f32 %v3923_v46, %v3796_v13  ;;  %v4081_v23 = vpop.f32.mrf.mxu0 }
 0x3a8   : > { %v6002_v24 = vpop.f32.mrf.mxu1 }
 0x3a9   : > { %4172 = vst.msk [vmem:[%s6365_s12 + $0x10] sm:$0xff] %vm597_vm1, %v4164_v42  ;;  %v4141_v49 = vadd.f32 %v7669_v18, %v4126_v10  ;;  %v4128_v52 = vmul.f32 %v7664_v1, %v4113_v21  ;;  %v4112_v59 = vadd.f32 %v4081_v23, %v3954_v7  ;;  %v3956_v34 = vadd.f32 %v6002_v24, %v3798_v27  ;;  %v6052_v15 = vpop.f32.mrf.mxu0 }
 0x3aa   : > { %v3933_v25 = vpop.f32.mrf.mxu1 }
 0x3ab   : > { %v4157_v9 = vadd.f32 %v4149_v22, %v4141_v49  ;;  %v4143_v6 = vadd.f32 %v7669_v18, %v4128_v52  ;;  %v4127_v57 = vmul.f32 %v7664_v1, %v4112_v59  ;;  %v4114_v3 = vadd.f32 %v6052_v15, %v3956_v34  ;;  %v4091_v44 = vpop.f32.mrf.mxu0 }
 0x3ac   : > { %v6005_v43 = vpop.f32.mrf.mxu1 }
 0x3ad   : > { %v4165_v33 = vmax.f32 %v4157_v9, 0.0  ;;  %v4159_v54 = vadd.f32 %v4151_v2, %v4143_v6  ;;  %v4142_v51 = vadd.f32 %v7669_v18, %v4127_v57  ;;  %v4129_v48 = vmul.f32 %v7664_v1, %v4114_v3  ;;  %v6055_v26 = vpop.f32.mrf.mxu0 }
 0x3ae   : > { %v3942_v62 = vpop.f32.mrf.mxu1 }
 0x3af   : > { %4173 = vst.msk [vmem:[%s6365_s12 + $0x18] sm:$0xff] %vm597_vm1, %v4165_v33  ;;  %v4167_v40 = vmax.f32 %v4159_v54, 0.0  ;;  %v4158_v17 = vadd.f32 %v4150_v60, %v4142_v51  ;;  %v4144_v45 = vadd.f32 %v7669_v18, %v4129_v48  ;;  %v3957_v30 = vadd.f32 %v3942_v62, %v3799_v39  ;;  %v4100_v41 = vpop.f32.mrf.mxu0 }
 0x3b1   : > { %4175 = vst.msk [vmem:[%s6365_s12 + $0x28] sm:$0xff] %vm597_vm1, %v4167_v40  ;;  %v4166_v38 = vmax.f32 %v4158_v17, 0.0  ;;  %v4160_v63 = vadd.f32 %v4152_v20, %v4144_v45  ;;  %v4115_v55 = vadd.f32 %v4100_v41, %v3957_v30 }
 0x3b3   : > { %4174 = vst.msk [vmem:[%s6365_s12 + $0x20] sm:$0xff] %vm597_vm1, %v4166_v38  ;;  %v4168_v56 = vmax.f32 %v4160_v63, 0.0  ;;  %v4130_v29 = vmul.f32 %v7664_v1, %v4115_v55 }
 0x3b5   : > { %4176 = vst.msk [vmem:[%s6365_s12 + $0x30] sm:$0xff] %vm597_vm1, %v4168_v56  ;;  %v4145_v14 = vadd.f32 %v7669_v18, %v4130_v29 }
 0x3b7   : > { %v4161_v28 = vadd.f32 %v4153_v47, %v4145_v14 }
 0x3b9   : > { %v4169_v35 = vmax.f32 %v4161_v28, 0.0 }
 0x3bb   : > { %4177 = vst.msk [vmem:[%s6365_s12 + $0x38] sm:$0xff] %vm597_vm1, %v4169_v35 }
 0x3bc PF: > { %s21_s17 = sadd.s32 1, %s6183_s17   ;;  %s7774_s11 = sld [smem:[#allocation7_spill]] }
 0x3bd   : > { %p18_p12 = scmp.ge.s32.totalorder %s21_s17, 10   ;;  %s7775_s18 = sld [smem:[#allocation8_spill]] }
 0x3be   : > { %s7776_s13 = smov %s6175_s15  ;;  %s7777_s14 = smov %s6179_s16 }
 0x3bf   :  { %20 = sbr.rel (!%p18_p12) target bundleno = 7 (0x7), region = 138 }
 0x3c2   : > { %s7778_s15 = smov %s7774_s11 }
 0x3c3   : > { %s7779_s16 = smov %s7775_s18 }
 0x3c4   :  { %4210 = vsyncpa [#allocation5], 1 }
 0x3c5   :  { %4212 = vsyncpa [#allocation5 + $0x1], 1 }

</bundles_post_ra>
